<compile_context>
chip_gen: v5e
topology: v5e:2x2
jax: 0.10.0
libtpu: 0.0.40
codegen_flags: <defaults>
</compile_context>

<pallas_src>
import functools

import jax
import jax.numpy as jnp
from jax.experimental import pallas as pl
from jax.experimental.pallas import tpu as pltpu


# --------------------------------------------------------------------------------------
# Fused feature extractor: conv(1x3,p=(0,1)) + ReLU + maxpool(3,2,1) + conv(1x3) + ReLU + maxpool
# --------------------------------------------------------------------------------------
def _maxpool_3x3_s2_p1(a, tmp_ref):
    """3x3 / stride-2 / pad-1 max-pool of a non-negative (Hi, Wi, C) value.

    Zero padding == -inf padding here because the inputs are post-ReLU (>= 0).
    H direction uses a pure major-dim reshape; W direction uses stride-2 sublane reads
    from `tmp_ref` (the documented replacement for a strided load).
    """
    hi, wi, c = a.shape
    ho, wo = hi // 2, wi // 2
    ar = a.reshape(ho, 2, wi, c)                                  # major-dim split (safe)
    ev, od = ar[:, 0], ar[:, 1]                                   # rows 2i, 2i+1
    up = jnp.concatenate([jnp.zeros((1, wi, c), a.dtype), od[:ho - 1]], axis=0)   # rows 2i-1
    tmp_ref[...] = jnp.maximum(jnp.maximum(ev, od), up)           # (ho, wi, c)
    evw = tmp_ref[:, pl.ds(0, wo, stride=2), :]                   # cols 2j
    odw = tmp_ref[:, pl.ds(1, wo, stride=2), :]                   # cols 2j+1
    lf = jnp.concatenate([jnp.zeros((ho, 1, c), a.dtype), odw[:, :wo - 1, :]], axis=1)  # cols 2j-1
    return jnp.maximum(jnp.maximum(evw, odw), lf)                 # (ho, wo, c)


def _features_kernel(x_ref, w1_ref, b1_ref, w2_ref, b2_ref, o_ref, t1_ref, t2_ref):
    # x_ref : (H, W, Cin=3)     one NHWC image
    # w1_ref: (3, Cin, 128)     conv1 weight (kw, cin, cout padded 64->128)
    # b1_ref: (1, 128)          conv1 bias (zero-padded)
    # w2_ref: (3*128, 128)      conv2 weight, im2col rows (kw*128 + cin_pad)
    # b2_ref: (1, 128)
    # o_ref : (H//4 * W//4, 128)  pooled features, rows in (h, w) order, channels on lanes
    # t1_ref/t2_ref: VMEM scratch for the two pooling stages
    h, w, cin = x_ref.shape
    c = o_ref.shape[-1]                     # 128 (lane-dense)
    hh, wh = h // 2, w // 2

    # ---- conv1 (1,3)/pad(0,1) + bias + ReLU: three shifted matmuls with M = H*W rows ----
    x = x_ref[...]
    zc = jnp.zeros((h, 1, cin), jnp.float32)
    taps = (jnp.concatenate([zc, x[:, :w - 1, :]], axis=1),       # x[:, w-1]  (kw = 0)
            x,                                                    # x[:, w]    (kw = 1)
            jnp.concatenate([x[:, 1:, :], zc], axis=1))           # x[:, w+1]  (kw = 2)
    acc = jnp.zeros((h * w, c), jnp.float32)
    for kw in range(3):                     # Cin=3 => MXU is inherently K-starved; 3 pushes are negligible
        acc += jnp.dot(taps[kw].reshape(h * w, cin), w1_ref[kw],
                       preferred_element_type=jnp.float32)
    a1 = jnp.maximum(acc + b1_ref[...], 0.0).reshape(h, w, c)

    # ---- maxpool 3x3 / s2 / p1 ----
    p1 = _maxpool_3x3_s2_p1(a1, t1_ref)                           # (h/2, w/2, 128)

    # ---- conv2 (1,3)/pad(0,1) + bias + ReLU: one (M=hh*wh, K=3*128) im2col matmul ----
    z2 = jnp.zeros((hh, 1, c), jnp.float32)
    xi2 = jnp.concatenate(
        [jnp.concatenate([z2, p1[:, :wh - 1, :]], axis=1).reshape(hh * wh, c),   # kw = 0
         p1.reshape(hh * wh, c),                                                 # kw = 1
         jnp.concatenate([p1[:, 1:, :], z2], axis=1).reshape(hh * wh, c)],       # kw = 2
        axis=1)                                                   # (hh*wh, 384), 128-lane aligned pieces
    a2 = jnp.maximum(jnp.dot(xi2, w2_ref[...], preferred_element_type=jnp.float32)
                     + b2_ref[...], 0.0).reshape(hh, wh, c)

    # ---- maxpool 3x3 / s2 / p1 -> (h/4, w/4, 128), stored HWC-flattened (lane-dense output) ----
    p2 = _maxpool_3x3_s2_p1(a2, t2_ref)
    o_ref[...] = p2.reshape((h // 4) * (w // 4), c)


def features_fused(x_nhwc, fp):
    n, h, w, cin = x_nhwc.shape
    assert h % 4 == 0 and w % 4 == 0, "two stride-2 pools need H, W divisible by 4"
    ho, wo, c = h // 4, w // 4, 128
    out = pl.pallas_call(
        _features_kernel,
        out_shape=jax.ShapeDtypeStruct((n, ho * wo, c), jnp.float32),
        grid=(n,),
        in_specs=[
            pl.BlockSpec((None, h, w, cin), lambda i: (i, 0, 0, 0)),
            pl.BlockSpec(fp["conv1_w"].shape, lambda i: (0, 0, 0)),
            pl.BlockSpec(fp["conv1_b"].shape, lambda i: (0, 0)),
            pl.BlockSpec(fp["conv2_w"].shape, lambda i: (0, 0)),
            pl.BlockSpec(fp["conv2_b"].shape, lambda i: (0, 0)),
        ],
        out_specs=pl.BlockSpec((None, ho * wo, c), lambda i: (i, 0, 0)),
        scratch_shapes=[
            pltpu.VMEM((h // 2, w, c), jnp.float32),      # pool-1 H-stage scratch
            pltpu.VMEM((h // 4, w // 2, c), jnp.float32),  # pool-2 H-stage scratch
        ],
        compiler_params=pltpu.CompilerParams(dimension_semantics=("parallel",)),
    )(x_nhwc, fp["conv1_w"], fp["conv1_b"], fp["conv2_w"], fp["conv2_b"])
    return out.reshape(n, ho, wo, c)


# --------------------------------------------------------------------------------------
# Classifier: Linear(4096,512) + ReLU + Linear(512, num_classes), K-tiled / bf16 weights
# --------------------------------------------------------------------------------------
def _mlp_kernel(x_ref, w1_ref, b1_ref, w2_ref, b2_ref, o_ref, acc_ref):
    k = pl.program_id(0)

    @pl.when(k == 0)
    def _():
        acc_ref[...] = jnp.zeros_like(acc_ref)

    # bf16 weights in HBM/VMEM (halves the dominant DMA); accumulate in f32.
    acc_ref[...] += jnp.dot(x_ref[...], w1_ref[...].astype(jnp.float32),
                            preferred_element_type=jnp.float32)

    @pl.when(k == pl.num_programs(0) - 1)
    def _():
        hidden = jnp.maximum(acc_ref[...] + b1_ref[...], 0.0)
        o_ref[...] = jnp.dot(hidden, w2_ref[...].astype(jnp.float32),
                             preferred_element_type=jnp.float32) + b2_ref[...]


def classifier(feats, fp, tk=512):
    n, kdim = feats.shape
    hid = fp["fc1_b"].shape[1]
    ncp = fp["fc2_w"].shape[1]
    assert kdim % tk == 0
    return pl.pallas_call(
        _mlp_kernel,
        out_shape=jax.ShapeDtypeStruct((n, ncp), jnp.float32),
        grid=(kdim // tk,),
        in_specs=[
            pl.BlockSpec((n, tk), lambda k: (0, k)),
            pl.BlockSpec((tk, hid), lambda k: (k, 0)),     # streamed + double-buffered weight tile
            pl.BlockSpec((1, hid), lambda k: (0, 0)),
            pl.BlockSpec((hid, ncp), lambda k: (0, 0)),
            pl.BlockSpec((1, ncp), lambda k: (0, 0)),
        ],
        out_specs=pl.BlockSpec((n, ncp), lambda k: (0, 0)),
        scratch_shapes=[pltpu.VMEM((n, hid), jnp.float32)],
        compiler_params=pltpu.CompilerParams(dimension_semantics=("arbitrary",)),
    )(feats, fp["fc1_w"], fp["fc1_b"], fp["fc2_w"], fp["fc2_b"])


# --------------------------------------------------------------------------------------
# Parameters: PyTorch-native layouts -> one-time host-side repack into TPU-friendly layouts
# --------------------------------------------------------------------------------------
def init_torch_params(key, num_classes=1000):
    ks = jax.random.split(key, 4)
    return {
        "conv1_w": jax.random.normal(ks[0], (64, 3, 1, 3), jnp.float32) * 0.1,     # (Cout,Cin,kH,kW)
        "conv1_b": jnp.zeros((64,), jnp.float32),
        "conv2_w": jax.random.normal(ks[1], (128, 64, 1, 3), jnp.float32) * 0.05,
        "conv2_b": jnp.zeros((128,), jnp.float32),
        "fc1_w": jax.random.normal(ks[2], (512, 128 * 4 * 8), jnp.float32) * 0.01,  # (out, in)
        "fc1_b": jnp.zeros((512,), jnp.float32),
        "fc2_w": jax.random.normal(ks[3], (num_classes, 512), jnp.float32) * 0.01,
        "fc2_b": jnp.zeros((num_classes,), jnp.float32),
    }


def prepare_params(tp, num_classes=1000):
    """One-time repack: lane-dense (128) conv channels, im2col conv2 weight, HWC-ordered fc1 rows."""
    c1p = 128
    # conv1: (64,3,1,3) -> (kw, cin, cout padded 64->128)
    w1 = jnp.transpose(tp["conv1_w"][:, :, 0, :], (2, 1, 0))                  # (3, 3, 64)
    w1 = jnp.pad(w1, ((0, 0), (0, 0), (0, c1p - w1.shape[-1])))
    b1 = jnp.pad(tp["conv1_b"], (0, c1p - tp["conv1_b"].shape[0])).reshape(1, c1p)
    # conv2: (128,64,1,3) -> im2col rows (kw*128 + cin_pad) x cout
    w2 = jnp.transpose(tp["conv2_w"][:, :, 0, :], (2, 1, 0))                  # (3, 64, 128)
    w2 = jnp.pad(w2, ((0, 0), (0, c1p - w2.shape[1]), (0, 0))).reshape(3 * c1p, 128)
    b2 = tp["conv2_b"].reshape(1, 128)
    # fc1: permute input rows (torch flattens (c,h,w); our features flatten (h,w,c)) -> pure reshape at runtime
    hid = tp["fc1_w"].shape[0]
    f = tp["fc1_w"].reshape(hid, 128, 4, 8)                                   # (out, c, h, w)
    fc1_w = jnp.transpose(f, (2, 3, 1, 0)).reshape(4 * 8 * 128, hid).astype(jnp.bfloat16)
    fc1_b = tp["fc1_b"].reshape(1, hid)
    # fc2: transpose + pad classes to a 128-lane multiple (sliced back after the kernel)
    ncp = ((num_classes + 127) // 128) * 128
    fc2_w = jnp.pad(tp["fc2_w"].T, ((0, 0), (0, ncp - num_classes))).astype(jnp.bfloat16)
    fc2_b = jnp.pad(tp["fc2_b"], (0, ncp - num_classes)).reshape(1, ncp)
    return dict(conv1_w=w1, conv1_b=b1, conv2_w=w2, conv2_b=b2,
                fc1_w=fc1_w, fc1_b=fc1_b, fc2_w=fc2_w, fc2_b=fc2_b)


# --------------------------------------------------------------------------------------
# Forward
# --------------------------------------------------------------------------------------
def adaptive_avg_pool_nhwc(x, out_h, out_w):
    # AdaptiveAvgPool2d((4,8)): identity for the (16,32) input; XLA fallback otherwise.
    n, h, w, c = x.shape
    if (h, w) == (out_h, out_w):
        return x
    rows = []
    for i in range(out_h):
        h0, h1 = (i * h) // out_h, -((-(i + 1) * h) // out_h)
        cols = []
        for j in range(out_w):
            w0, w1 = (j * w) // out_w, -((-(j + 1) * w) // out_w)
            cols.append(jnp.mean(x[:, h0:h1, w0:w1, :], axis=(1, 2)))
        rows.append(jnp.stack(cols, axis=1))
    return jnp.stack(rows, axis=1)


@functools.partial(jax.jit, static_argnames=("num_classes",))
def alexnet_forward(x_nchw, fp, num_classes=1000):
    x = jnp.transpose(x_nchw.astype(jnp.float32), (0, 2, 3, 1))   # NCHW -> NHWC once (tiny)
    f = features_fused(x, fp)                                     # (N, H/4, W/4, 128)
    f = adaptive_avg_pool_nhwc(f, 4, 8)                           # identity for (16,32) inputs
    feats = f.reshape(f.shape[0], 4 * 8 * 128)                    # pure reshape (fc1 rows pre-permuted)
    # nn.Dropout(p=0.5) is identity at inference.
    # TODO(synk): training-mode dropout (RNG mask/scale) not implemented.
    logits = classifier(feats, fp)
    return logits[:, :num_classes]


if __name__ == "__main__":
    key = jax.random.PRNGKey(0)
    kx, kp = jax.random.split(key)
    # NCHW input like PyTorch; (16, 32) spatial -> features are exactly (4, 8) before avgpool.
    x = jax.random.normal(kx, (2, 3, 16, 32), jnp.float32)
    torch_params = init_torch_params(kp, num_classes=1000)
    params = prepare_params(torch_params, num_classes=1000)
    out = alexnet_forward(x, params, num_classes=1000)
    out = jax.block_until_ready(out)
    assert out.shape == (2, 1000) and out.dtype == jnp.float32
    print("KERNEL_OK")
</pallas_src>

<mosaic_0001>
module attributes {stable_mosaic.version = 11 : i64} {
  func.func @_mlp_kernel(%arg0: i32, %arg1: memref<2x512xf32, #tpu.memory_space<vmem>>, %arg2: memref<512x512xbf16, #tpu.memory_space<vmem>>, %arg3: memref<1x512xf32, #tpu.memory_space<vmem>>, %arg4: memref<512x1024xbf16, #tpu.memory_space<vmem>>, %arg5: memref<1x1024xf32, #tpu.memory_space<vmem>>, %arg6: memref<2x1024xf32, #tpu.memory_space<vmem>>, %arg7: memref<2x512xf32, #tpu.memory_space<vmem>>) attributes {dimension_semantics = [#tpu.dimension_semantics<arbitrary>], iteration_bounds = array<i64: 8>, scalar_prefetch = 0 : i64, scratch_operands = 1 : i64, tpu.core_type = #tpu.core_type<tc>, window_params = [{transform_indices = @transform_0, window_bounds = array<i64: 2, 512>}, {transform_indices = @transform_1, window_bounds = array<i64: 512, 512>}, {pipeline_mode = #tpu.pipeline_mode<synchronous>, transform_indices = @transform_2, window_bounds = array<i64: 1, 512>}, {pipeline_mode = #tpu.pipeline_mode<synchronous>, transform_indices = @transform_3, window_bounds = array<i64: 512, 1024>}, {pipeline_mode = #tpu.pipeline_mode<synchronous>, transform_indices = @transform_4, window_bounds = array<i64: 1, 1024>}, {pipeline_mode = #tpu.pipeline_mode<synchronous>, transform_indices = @transform_5, window_bounds = array<i64: 2, 1024>}]} {
    %c0_i32 = arith.constant 0 : i32
    %0 = arith.cmpi eq, %arg0, %c0_i32 : i32
    %1 = arith.extui %0 : i1 to i32
    %c0_i32_0 = arith.constant 0 : i32
    %2 = arith.cmpi ne, %1, %c0_i32_0 : i32
    scf.if %2 {
      %cst_9 = arith.constant 0.000000e+00 : f32
      %13 = vector.broadcast %cst_9 : f32 to vector<2x512xf32>
      %c0_10 = arith.constant 0 : index
      %c0_11 = arith.constant 0 : index
      %14 = vector.load %arg7[%c0_10, %c0_11] : memref<2x512xf32, #tpu.memory_space<vmem>>, vector<2x512xf32>
      tpu.vector_store %arg7[%c0_10, %c0_11], %13 {strides = array<i32>} : memref<2x512xf32, #tpu.memory_space<vmem>>, vector<2x512xf32>,
    } else {
    }
    %c0 = arith.constant 0 : index
    %c0_1 = arith.constant 0 : index
    %3 = vector.load %arg7[%c0, %c0_1] : memref<2x512xf32, #tpu.memory_space<vmem>>, vector<2x512xf32>
    %c0_2 = arith.constant 0 : index
    %c0_3 = arith.constant 0 : index
    %4 = vector.load %arg1[%c0_2, %c0_3] : memref<2x512xf32, #tpu.memory_space<vmem>>, vector<2x512xf32>
    %c0_4 = arith.constant 0 : index
    %c0_5 = arith.constant 0 : index
    %5 = vector.load %arg2[%c0_4, %c0_5] : memref<512x512xbf16, #tpu.memory_space<vmem>>, vector<512x512xbf16>
    %6 = arith.extf %5 : vector<512x512xbf16> to vector<512x512xf32>
    %cst = arith.constant dense<0.000000e+00> : vector<2x512xf32>
    %7 = tpu.matmul %4, %6, %cst {dimension_numbers = #tpu.dot_dimension_numbers<[1], [0], [0], [1], [0, 0, 1, 1], [], []>} : vector<2x512xf32>, vector<512x512xf32>, vector<2x512xf32> -> vector<2x512xf32>
    %8 = arith.addf %3, %7 : vector<2x512xf32>
    %c0_6 = arith.constant 0 : index
    %c0_7 = arith.constant 0 : index
    %9 = vector.load %arg7[%c0_6, %c0_7] : memref<2x512xf32, #tpu.memory_space<vmem>>, vector<2x512xf32>
    tpu.vector_store %arg7[%c0_6, %c0_7], %8 {strides = array<i32>} : memref<2x512xf32, #tpu.memory_space<vmem>>, vector<2x512xf32>,
    %c7_i32 = arith.constant 7 : i32
    %10 = arith.cmpi eq, %arg0, %c7_i32 : i32
    %11 = arith.extui %10 : i1 to i32
    %c0_i32_8 = arith.constant 0 : i32
    %12 = arith.cmpi ne, %11, %c0_i32_8 : i32
    scf.if %12 {
      %c0_9 = arith.constant 0 : index
      %c0_10 = arith.constant 0 : index
      %13 = vector.load %arg7[%c0_9, %c0_10] : memref<2x512xf32, #tpu.memory_space<vmem>>, vector<2x512xf32>
      %c0_11 = arith.constant 0 : index
      %c0_12 = arith.constant 0 : index
      %14 = vector.load %arg3[%c0_11, %c0_12] : memref<1x512xf32, #tpu.memory_space<vmem>>, vector<1x512xf32>
      %15 = vector.broadcast %14 : vector<1x512xf32> to vector<2x512xf32>
      %16 = arith.addf %13, %15 : vector<2x512xf32>
      %cst_13 = arith.constant 0.000000e+00 : f32
      %17 = vector.broadcast %cst_13 : f32 to vector<2x512xf32>
      %18 = arith.maximumf %16, %17 : vector<2x512xf32>
      %c0_14 = arith.constant 0 : index
      %c0_15 = arith.constant 0 : index
      %19 = vector.load %arg4[%c0_14, %c0_15] : memref<512x1024xbf16, #tpu.memory_space<vmem>>, vector<512x1024xbf16>
      %20 = arith.extf %19 : vector<512x1024xbf16> to vector<512x1024xf32>
      %cst_16 = arith.constant dense<0.000000e+00> : vector<2x1024xf32>
      %21 = tpu.matmul %18, %20, %cst_16 {dimension_numbers = #tpu.dot_dimension_numbers<[1], [0], [0], [1], [0, 0, 1, 1], [], []>} : vector<2x512xf32>, vector<512x1024xf32>, vector<2x1024xf32> -> vector<2x1024xf32>
      %c0_17 = arith.constant 0 : index
      %c0_18 = arith.constant 0 : index
      %22 = vector.load %arg5[%c0_17, %c0_18] : memref<1x1024xf32, #tpu.memory_space<vmem>>, vector<1x1024xf32>
      %23 = vector.broadcast %22 : vector<1x1024xf32> to vector<2x1024xf32>
      %24 = arith.addf %21, %23 : vector<2x1024xf32>
      %c0_19 = arith.constant 0 : index
      %c0_20 = arith.constant 0 : index
      %25 = vector.load %arg6[%c0_19, %c0_20] : memref<2x1024xf32, #tpu.memory_space<vmem>>, vector<2x1024xf32>
      tpu.vector_store %arg6[%c0_19, %c0_20], %24 {strides = array<i32>} : memref<2x1024xf32, #tpu.memory_space<vmem>>, vector<2x1024xf32>,
    } else {
    }
    return
  }
  func.func @transform_0(%arg0: i32) -> (i32, i32) {
    %c0_i32 = arith.constant 0 : i32
    %c0_i32_0 = arith.constant 0 : i32
    return %c0_i32, %arg0 : i32, i32
  }
  func.func @transform_1(%arg0: i32) -> (i32, i32) {
    %c0_i32 = arith.constant 0 : i32
    %c0_i32_0 = arith.constant 0 : i32
    return %arg0, %c0_i32 : i32, i32
  }
  func.func @transform_2(%arg0: i32) -> (i32, i32) {
    %c0_i32 = arith.constant 0 : i32
    %c0_i32_0 = arith.constant 0 : i32
    %c0_i32_1 = arith.constant 0 : i32
    return %c0_i32, %c0_i32_0 : i32, i32
  }
  func.func @transform_3(%arg0: i32) -> (i32, i32) {
    %c0_i32 = arith.constant 0 : i32
    %c0_i32_0 = arith.constant 0 : i32
    %c0_i32_1 = arith.constant 0 : i32
    return %c0_i32, %c0_i32_0 : i32, i32
  }
  func.func @transform_4(%arg0: i32) -> (i32, i32) {
    %c0_i32 = arith.constant 0 : i32
    %c0_i32_0 = arith.constant 0 : i32
    %c0_i32_1 = arith.constant 0 : i32
    return %c0_i32, %c0_i32_0 : i32, i32
  }
  func.func @transform_5(%arg0: i32) -> (i32, i32) {
    %c0_i32 = arith.constant 0 : i32
    %c0_i32_0 = arith.constant 0 : i32
    %c0_i32_1 = arith.constant 0 : i32
    return %c0_i32, %c0_i32_0 : i32, i32
  }
}

module attributes {stable_mosaic.version = 11 : i64} {
  func.func @_features_kernel(%arg0: i32, %arg1: memref<1x16x32x3xf32, #tpu.memory_space<vmem>>, %arg2: memref<3x3x128xf32, #tpu.memory_space<vmem>>, %arg3: memref<1x128xf32, #tpu.memory_space<vmem>>, %arg4: memref<384x128xf32, #tpu.memory_space<vmem>>, %arg5: memref<1x128xf32, #tpu.memory_space<vmem>>, %arg6: memref<1x32x128xf32, #tpu.memory_space<vmem>>, %arg7: memref<8x32x128xf32, #tpu.memory_space<vmem>>, %arg8: memref<4x16x128xf32, #tpu.memory_space<vmem>>) attributes {dimension_semantics = [#tpu.dimension_semantics<parallel>], iteration_bounds = array<i64: 2>, scalar_prefetch = 0 : i64, scratch_operands = 2 : i64, tpu.core_type = #tpu.core_type<tc>, window_params = [{transform_indices = @transform_0, window_bounds = array<i64: 1, 16, 32, 3>}, {pipeline_mode = #tpu.pipeline_mode<synchronous>, transform_indices = @transform_1, window_bounds = array<i64: 3, 3, 128>}, {pipeline_mode = #tpu.pipeline_mode<synchronous>, transform_indices = @transform_2, window_bounds = array<i64: 1, 128>}, {pipeline_mode = #tpu.pipeline_mode<synchronous>, transform_indices = @transform_3, window_bounds = array<i64: 384, 128>}, {pipeline_mode = #tpu.pipeline_mode<synchronous>, transform_indices = @transform_4, window_bounds = array<i64: 1, 128>}, {transform_indices = @transform_5, window_bounds = array<i64: 1, 32, 128>}]} {
    %c0 = arith.constant 0 : index
    %c0_0 = arith.constant 0 : index
    %c0_1 = arith.constant 0 : index
    %c0_2 = arith.constant 0 : index
    %0 = vector.load %arg1[%c0, %c0_0, %c0_1, %c0_2] : memref<1x16x32x3xf32, #tpu.memory_space<vmem>>, vector<1x16x32x3xf32>
    %1 = vector.shape_cast %0 : vector<1x16x32x3xf32> to vector<16x32x3xf32>
    %cst = arith.constant 0.000000e+00 : f32
    %2 = vector.broadcast %cst : f32 to vector<16x1x3xf32>
    %3 = vector.extract_strided_slice %1 {offsets = [0, 0, 0], sizes = [16, 31, 3], strides = [1, 1, 1]} : vector<16x32x3xf32> to vector<16x31x3xf32>
    %4 = tpu.concatenate %2, %3 in 1 : vector<16x1x3xf32>, vector<16x31x3xf32> -> vector<16x32x3xf32>
    %5 = vector.extract_strided_slice %1 {offsets = [0, 1, 0], sizes = [16, 31, 3], strides = [1, 1, 1]} : vector<16x32x3xf32> to vector<16x31x3xf32>
    %6 = tpu.concatenate %5, %2 in 1 : vector<16x31x3xf32>, vector<16x1x3xf32> -> vector<16x32x3xf32>
    %cst_3 = arith.constant 0.000000e+00 : f32
    %7 = vector.broadcast %cst_3 : f32 to vector<512x128xf32>
    %8 = vector.shape_cast %4 : vector<16x32x3xf32> to vector<512x3xf32>
    %c0_4 = arith.constant 0 : index
    %c0_5 = arith.constant 0 : index
    %c0_6 = arith.constant 0 : index
    %9 = vector.load %arg2[%c0_4, %c0_5, %c0_6] : memref<3x3x128xf32, #tpu.memory_space<vmem>>, vector<1x3x128xf32>
    %10 = vector.shape_cast %9 : vector<1x3x128xf32> to vector<3x128xf32>
    %cst_7 = arith.constant dense<0.000000e+00> : vector<512x128xf32>
    %11 = tpu.matmul %8, %10, %cst_7 {dimension_numbers = #tpu.dot_dimension_numbers<[1], [0], [0], [1], [0, 0, 1, 1], [], []>} : vector<512x3xf32>, vector<3x128xf32>, vector<512x128xf32> -> vector<512x128xf32>
    %12 = arith.addf %7, %11 : vector<512x128xf32>
    %13 = vector.shape_cast %1 : vector<16x32x3xf32> to vector<512x3xf32>
    %c1 = arith.constant 1 : index
    %c0_8 = arith.constant 0 : index
    %c0_9 = arith.constant 0 : index
    %14 = vector.load %arg2[%c1, %c0_8, %c0_9] : memref<3x3x128xf32, #tpu.memory_space<vmem>>, vector<1x3x128xf32>
    %15 = vector.shape_cast %14 : vector<1x3x128xf32> to vector<3x128xf32>
    %cst_10 = arith.constant dense<0.000000e+00> : vector<512x128xf32>
    %16 = tpu.matmul %13, %15, %cst_10 {dimension_numbers = #tpu.dot_dimension_numbers<[1], [0], [0], [1], [0, 0, 1, 1], [], []>} : vector<512x3xf32>, vector<3x128xf32>, vector<512x128xf32> -> vector<512x128xf32>
    %17 = arith.addf %12, %16 : vector<512x128xf32>
    %18 = vector.shape_cast %6 : vector<16x32x3xf32> to vector<512x3xf32>
    %c2 = arith.constant 2 : index
    %c0_11 = arith.constant 0 : index
    %c0_12 = arith.constant 0 : index
    %19 = vector.load %arg2[%c2, %c0_11, %c0_12] : memref<3x3x128xf32, #tpu.memory_space<vmem>>, vector<1x3x128xf32>
    %20 = vector.shape_cast %19 : vector<1x3x128xf32> to vector<3x128xf32>
    %cst_13 = arith.constant dense<0.000000e+00> : vector<512x128xf32>
    %21 = tpu.matmul %18, %20, %cst_13 {dimension_numbers = #tpu.dot_dimension_numbers<[1], [0], [0], [1], [0, 0, 1, 1], [], []>} : vector<512x3xf32>, vector<3x128xf32>, vector<512x128xf32> -> vector<512x128xf32>
    %22 = arith.addf %17, %21 : vector<512x128xf32>
    %c0_14 = arith.constant 0 : index
    %c0_15 = arith.constant 0 : index
    %23 = vector.load %arg3[%c0_14, %c0_15] : memref<1x128xf32, #tpu.memory_space<vmem>>, vector<1x128xf32>
    %24 = vector.broadcast %23 : vector<1x128xf32> to vector<512x128xf32>
    %25 = arith.addf %22, %24 : vector<512x128xf32>
    %cst_16 = arith.constant 0.000000e+00 : f32
    %26 = vector.broadcast %cst_16 : f32 to vector<512x128xf32>
    %27 = arith.maximumf %25, %26 : vector<512x128xf32>
    %28 = vector.shape_cast %27 : vector<512x128xf32> to vector<16x32x128xf32>
    %29 = vector.shape_cast %28 : vector<16x32x128xf32> to vector<8x2x32x128xf32>
    %30 = vector.extract_strided_slice %29 {offsets = [0, 0, 0, 0], sizes = [8, 1, 32, 128], strides = [1, 1, 1, 1]} : vector<8x2x32x128xf32> to vector<8x1x32x128xf32>
    %31 = vector.shape_cast %30 : vector<8x1x32x128xf32> to vector<8x32x128xf32>
    %32 = vector.extract_strided_slice %29 {offsets = [0, 1, 0, 0], sizes = [8, 1, 32, 128], strides = [1, 1, 1, 1]} : vector<8x2x32x128xf32> to vector<8x1x32x128xf32>
    %33 = vector.shape_cast %32 : vector<8x1x32x128xf32> to vector<8x32x128xf32>
    %cst_17 = arith.constant 0.000000e+00 : f32
    %34 = vector.broadcast %cst_17 : f32 to vector<1x32x128xf32>
    %35 = vector.extract_strided_slice %33 {offsets = [0, 0, 0], sizes = [7, 32, 128], strides = [1, 1, 1]} : vector<8x32x128xf32> to vector<7x32x128xf32>
    %36 = tpu.concatenate %34, %35 in 0 : vector<1x32x128xf32>, vector<7x32x128xf32> -> vector<8x32x128xf32>
    %37 = arith.maximumf %31, %33 : vector<8x32x128xf32>
    %38 = arith.maximumf %37, %36 : vector<8x32x128xf32>
    %c0_18 = arith.constant 0 : index
    %c0_19 = arith.constant 0 : index
    %c0_20 = arith.constant 0 : index
    %39 = vector.load %arg7[%c0_18, %c0_19, %c0_20] : memref<8x32x128xf32, #tpu.memory_space<vmem>>, vector<8x32x128xf32>
    tpu.vector_store %arg7[%c0_18, %c0_19, %c0_20], %38 {strides = array<i32>} : memref<8x32x128xf32, #tpu.memory_space<vmem>>, vector<8x32x128xf32>,
    %c0_21 = arith.constant 0 : index
    %c0_22 = arith.constant 0 : index
    %c0_23 = arith.constant 0 : index
    %40 = tpu.strided_load %arg7[%c0_21, %c0_22, %c0_23] {strides = array<i32: 1, 2, 1>} : memref<8x32x128xf32, #tpu.memory_space<vmem>>, vector<8x16x128xf32>
    %c0_24 = arith.constant 0 : index
    %c1_25 = arith.constant 1 : index
    %c0_26 = arith.constant 0 : index
    %41 = tpu.strided_load %arg7[%c0_24, %c1_25, %c0_26] {strides = array<i32: 1, 2, 1>} : memref<8x32x128xf32, #tpu.memory_space<vmem>>, vector<8x16x128xf32>
    %cst_27 = arith.constant 0.000000e+00 : f32
    %42 = vector.broadcast %cst_27 : f32 to vector<8x1x128xf32>
    %43 = vector.extract_strided_slice %41 {offsets = [0, 0, 0], sizes = [8, 15, 128], strides = [1, 1, 1]} : vector<8x16x128xf32> to vector<8x15x128xf32>
    %44 = tpu.concatenate %42, %43 in 1 : vector<8x1x128xf32>, vector<8x15x128xf32> -> vector<8x16x128xf32>
    %45 = arith.maximumf %40, %41 : vector<8x16x128xf32>
    %46 = arith.maximumf %45, %44 : vector<8x16x128xf32>
    %cst_28 = arith.constant 0.000000e+00 : f32
    %47 = vector.broadcast %cst_28 : f32 to vector<8x1x128xf32>
    %48 = vector.extract_strided_slice %46 {offsets = [0, 0, 0], sizes = [8, 15, 128], strides = [1, 1, 1]} : vector<8x16x128xf32> to vector<8x15x128xf32>
    %49 = tpu.concatenate %47, %48 in 1 : vector<8x1x128xf32>, vector<8x15x128xf32> -> vector<8x16x128xf32>
    %50 = vector.shape_cast %49 : vector<8x16x128xf32> to vector<128x128xf32>
    %51 = vector.shape_cast %46 : vector<8x16x128xf32> to vector<128x128xf32>
    %52 = vector.extract_strided_slice %46 {offsets = [0, 1, 0], sizes = [8, 15, 128], strides = [1, 1, 1]} : vector<8x16x128xf32> to vector<8x15x128xf32>
    %53 = tpu.concatenate %52, %47 in 1 : vector<8x15x128xf32>, vector<8x1x128xf32> -> vector<8x16x128xf32>
    %54 = vector.shape_cast %53 : vector<8x16x128xf32> to vector<128x128xf32>
    %55 = tpu.concatenate %50, %51, %54 in 1 : vector<128x128xf32>, vector<128x128xf32>, vector<128x128xf32> -> vector<128x384xf32>
    %c0_29 = arith.constant 0 : index
    %c0_30 = arith.constant 0 : index
    %56 = vector.load %arg4[%c0_29, %c0_30] : memref<384x128xf32, #tpu.memory_space<vmem>>, vector<384x128xf32>
    %cst_31 = arith.constant dense<0.000000e+00> : vector<128x128xf32>
    %57 = tpu.matmul %55, %56, %cst_31 {dimension_numbers = #tpu.dot_dimension_numbers<[1], [0], [0], [1], [0, 0, 1, 1], [], []>} : vector<128x384xf32>, vector<384x128xf32>, vector<128x128xf32> -> vector<128x128xf32>
    %c0_32 = arith.constant 0 : index
    %c0_33 = arith.constant 0 : index
    %58 = vector.load %arg5[%c0_32, %c0_33] : memref<1x128xf32, #tpu.memory_space<vmem>>, vector<1x128xf32>
    %59 = vector.broadcast %58 : vector<1x128xf32> to vector<128x128xf32>
    %60 = arith.addf %57, %59 : vector<128x128xf32>
    %cst_34 = arith.constant 0.000000e+00 : f32
    %61 = vector.broadcast %cst_34 : f32 to vector<128x128xf32>
    %62 = arith.maximumf %60, %61 : vector<128x128xf32>
    %63 = vector.shape_cast %62 : vector<128x128xf32> to vector<8x16x128xf32>
    %64 = vector.shape_cast %63 : vector<8x16x128xf32> to vector<4x2x16x128xf32>
    %65 = vector.extract_strided_slice %64 {offsets = [0, 0, 0, 0], sizes = [4, 1, 16, 128], strides = [1, 1, 1, 1]} : vector<4x2x16x128xf32> to vector<4x1x16x128xf32>
    %66 = vector.shape_cast %65 : vector<4x1x16x128xf32> to vector<4x16x128xf32>
    %67 = vector.extract_strided_slice %64 {offsets = [0, 1, 0, 0], sizes = [4, 1, 16, 128], strides = [1, 1, 1, 1]} : vector<4x2x16x128xf32> to vector<4x1x16x128xf32>
    %68 = vector.shape_cast %67 : vector<4x1x16x128xf32> to vector<4x16x128xf32>
    %cst_35 = arith.constant 0.000000e+00 : f32
    %69 = vector.broadcast %cst_35 : f32 to vector<1x16x128xf32>
    %70 = vector.extract_strided_slice %68 {offsets = [0, 0, 0], sizes = [3, 16, 128], strides = [1, 1, 1]} : vector<4x16x128xf32> to vector<3x16x128xf32>
    %71 = tpu.concatenate %69, %70 in 0 : vector<1x16x128xf32>, vector<3x16x128xf32> -> vector<4x16x128xf32>
    %72 = arith.maximumf %66, %68 : vector<4x16x128xf32>
    %73 = arith.maximumf %72, %71 : vector<4x16x128xf32>
    %c0_36 = arith.constant 0 : index
    %c0_37 = arith.constant 0 : index
    %c0_38 = arith.constant 0 : index
    %74 = vector.load %arg8[%c0_36, %c0_37, %c0_38] : memref<4x16x128xf32, #tpu.memory_space<vmem>>, vector<4x16x128xf32>
    tpu.vector_store %arg8[%c0_36, %c0_37, %c0_38], %73 {strides = array<i32>} : memref<4x16x128xf32, #tpu.memory_space<vmem>>, vector<4x16x128xf32>,
    %c0_39 = arith.constant 0 : index
    %c0_40 = arith.constant 0 : index
    %c0_41 = arith.constant 0 : index
    %75 = tpu.strided_load %arg8[%c0_39, %c0_40, %c0_41] {strides = array<i32: 1, 2, 1>} : memref<4x16x128xf32, #tpu.memory_space<vmem>>, vector<4x8x128xf32>
    %c0_42 = arith.constant 0 : index
    %c1_43 = arith.constant 1 : index
    %c0_44 = arith.constant 0 : index
    %76 = tpu.strided_load %arg8[%c0_42, %c1_43, %c0_44] {strides = array<i32: 1, 2, 1>} : memref<4x16x128xf32, #tpu.memory_space<vmem>>, vector<4x8x128xf32>
    %cst_45 = arith.constant 0.000000e+00 : f32
    %77 = vector.broadcast %cst_45 : f32 to vector<4x1x128xf32>
    %78 = vector.extract_strided_slice %76 {offsets = [0, 0, 0], sizes = [4, 7, 128], strides = [1, 1, 1]} : vector<4x8x128xf32> to vector<4x7x128xf32>
    %79 = tpu.concatenate %77, %78 in 1 : vector<4x1x128xf32>, vector<4x7x128xf32> -> vector<4x8x128xf32>
    %80 = arith.maximumf %75, %76 : vector<4x8x128xf32>
    %81 = arith.maximumf %80, %79 : vector<4x8x128xf32>
    %82 = vector.shape_cast %81 : vector<4x8x128xf32> to vector<32x128xf32>
    %c0_46 = arith.constant 0 : index
    %c0_47 = arith.constant 0 : index
    %c0_48 = arith.constant 0 : index
    %83 = vector.load %arg6[%c0_46, %c0_47, %c0_48] : memref<1x32x128xf32, #tpu.memory_space<vmem>>, vector<1x32x128xf32>
    %84 = vector.shape_cast %83 : vector<1x32x128xf32> to vector<32x128xf32>
    %85 = vector.shape_cast %82 : vector<32x128xf32> to vector<1x32x128xf32>
    tpu.vector_store %arg6[%c0_46, %c0_47, %c0_48], %85 {strides = array<i32>} : memref<1x32x128xf32, #tpu.memory_space<vmem>>, vector<1x32x128xf32>,
    return
  }
  func.func @transform_0(%arg0: i32) -> (i32, i32, i32, i32) {
    %c0_i32 = arith.constant 0 : i32
    %c0_i32_0 = arith.constant 0 : i32
    %c0_i32_1 = arith.constant 0 : i32
    %c0_i32_2 = arith.constant 0 : i32
    return %arg0, %c0_i32, %c0_i32_0, %c0_i32_1 : i32, i32, i32, i32
  }
  func.func @transform_1(%arg0: i32) -> (i32, i32, i32) {
    %c0_i32 = arith.constant 0 : i32
    %c0_i32_0 = arith.constant 0 : i32
    %c0_i32_1 = arith.constant 0 : i32
    %c0_i32_2 = arith.constant 0 : i32
    return %c0_i32, %c0_i32_0, %c0_i32_1 : i32, i32, i32
  }
  func.func @transform_2(%arg0: i32) -> (i32, i32) {
    %c0_i32 = arith.constant 0 : i32
    %c0_i32_0 = arith.constant 0 : i32
    %c0_i32_1 = arith.constant 0 : i32
    return %c0_i32, %c0_i32_0 : i32, i32
  }
  func.func @transform_3(%arg0: i32) -> (i32, i32) {
    %c0_i32 = arith.constant 0 : i32
    %c0_i32_0 = arith.constant 0 : i32
    %c0_i32_1 = arith.constant 0 : i32
    return %c0_i32, %c0_i32_0 : i32, i32
  }
  func.func @transform_4(%arg0: i32) -> (i32, i32) {
    %c0_i32 = arith.constant 0 : i32
    %c0_i32_0 = arith.constant 0 : i32
    %c0_i32_1 = arith.constant 0 : i32
    return %c0_i32, %c0_i32_0 : i32, i32
  }
  func.func @transform_5(%arg0: i32) -> (i32, i32, i32) {
    %c0_i32 = arith.constant 0 : i32
    %c0_i32_0 = arith.constant 0 : i32
    %c0_i32_1 = arith.constant 0 : i32
    return %arg0, %c0_i32, %c0_i32_0 : i32, i32, i32
  }
}

</mosaic_0001>

<bundles_post_ra>
// kernel: alexnet_forward.3
= control target key start
LH: loop header
LB: loop body
LE: loop exit
PB: predicated region body
PF: predicated region fallthrough
CT: control target
= control target key end

     0   :  { %10 = vsyncpa [#allocation4], 0  ;;  %s4877_s0 = inlined_call_operand.vmem [shape: f32[2,4096], index: 0, kind: input, shape index: {}]   ;;  %s4878_s1 = inlined_call_operand.hbm [shape: bf16[4096,512], index: 1, kind: input, shape index: {}]   ;;  %s4879_s2 = inlined_call_operand.hbm [shape: f32[1,512], index: 2, kind: input, shape index: {}]   ;;  %s4880_s3 = inlined_call_operand.hbm [shape: bf16[512,1024], index: 3, kind: input, shape index: {}]   ;;  %s4881_s4 = inlined_call_operand.hbm [shape: f32[1,1024], index: 4, kind: input, shape index: {}]   ;;  %s4882_s5 = inlined_call_operand.hbm [shape: f32[2,1024], index: 5, kind: output, shape index: {}]  }
   0x1   :  { %12 = vsyncpa [#allocation4 + $0x1], 0 }
   0x2   :  { %13 = vsyncpa [#allocation7], 0 }
   0x3   :  { %14 = vsyncpa [#allocation10], 0 }
   0x4   :  { %15 = vsyncpa [#allocation5], 0  ;;  %s2966_s18 = smov 0   ;;  %s2968_s19 = smov 0  }
   0x5   :  { %s2970_s20 = smov 0   ;;  %s2972_s21 = smov 0  }
   0x6 LB: > { %s2985_s22 = sadd.s32 4294967295, %s2925_s21   ;;  %p67_p0 = scmp.ne.s32.totalorder %s2917_s19, %s2913_s18  ;;  %s2925_s21 = sphi %s2972_s21, %s5212_s21   ;;  %s2921_s20 = sphi %s2970_s20, %s5211_s20   ;;  %s2917_s19 = sphi %s2968_s19, %s5210_s19   ;;  %s2913_s18 = sphi %s2966_s18, %s5209_s18  }
   0x7   : > { %p68_p1 = scmp.eq.s32.totalorder %s2985_s22, 0  ;;  %p2621_p2 = scmp.ge.s32.totalorder %s2925_s21, 1 }
   0x8   : > { %p162_p3 = scmp.lt.s32.totalorder %s2925_s21, 9  ;;  %p2622_p4 = scmp.ne.s32.totalorder %s2985_s22, 0 }
   0x9   : > { %p2994_p5 = por %p68_p1, %p67_p0  ;;  %s174_s26 = sshll.u32 %s4879_s2, 4  ;;  %s175_s26 = int_to_ptr.hbm [resolvable:$true] %s174_s26 }
   0xa   : > { %p3001_p6 = pnand %p2621_p2, %p162_p3  ;;  %s2927_s28 = smov [#allocation6]  }
   0xb   : > { %s176_s29 = sshll.u32 %s2927_s28, 4  ;;  %s185_s7 = sshll.u32 %s4880_s3, 4  ;;  %s177_s29 = int_to_ptr.vmem [resolvable:$true] %s176_s29  ;;  %s186_s7 = int_to_ptr.hbm [resolvable:$true] %s185_s7 }
   0xc   : > { %p2663_p7 = pneg %p3001_p6  ;;  %s2928_s9 = smov [#allocation8]  }
   0xd   : > { %s187_s10 = sshll.u32 %s2928_s9, 4  ;;  %s2929_s11 = smov 512   ;;  %s188_s10 = int_to_ptr.vmem [resolvable:$true] %s187_s10 }
   0xe   : > { %p3012_p8 = pnand %p2663_p7, %p68_p1  ;;  %s2930_s12 = smov 32  }
   0xf   : > { %s200_s15 = sshll.u32 %s4881_s4, 4  ;;  %s2931_s16 = smov [#allocation9]   ;;  %s201_s15 = int_to_ptr.hbm [resolvable:$true] %s200_s15 }
  0x10   : > { %2666 = dma.hbm_to_vmem [thread:$0]  (!%p3012_p8), %s175_s26, 64, %s177_s29, [#allocation7]  }
  0x11   : > { %2669 = dma.hbm_to_vmem [thread:$0]  (!%p3012_p8), %s186_s7, 32768, %s188_s10, [#allocation7], %s2929_s11, %s2929_s11, %s2930_s12  }
  0x12   : > { %s202_s17 = sshll.u32 %s2931_s16, 4  ;;  %s3026_s18 = sadd.s32 1, %s2925_s21   ;;  %s203_s17 = int_to_ptr.vmem [resolvable:$true] %s202_s17 }
  0x13   : > { %2672 = dma.hbm_to_vmem [thread:$0]  (!%p3012_p8), %s201_s15, 128, %s203_s17, [#allocation10]  }
  0x14   : > { %s51_s24 = ssub.s32 %s2925_s21, %s3026_s18  ;;  %s54_s25 = sadd.s32 1, %s2921_s20 }
  0x15   : > { %p52_p9 = scmp.eq.s32.totalorder %s51_s24, 0  ;;  %p61_p10 = scmp.ne.s32.totalorder %s2921_s20, %s2917_s19 }
  0x16   : > { %p62_p11 = scmp.eq.s32.totalorder %s2925_s21, 0  ;;  %p2680_p12 = scmp.lt.s32.totalorder %s2925_s21, 8 }
  0x17   : > { %s3036_s26 = scalar_select %p52_p9, %s2921_s20, %s54_s25  }
  0x18   : > { %p63_p13 = por %p62_p11, %p61_p10  ;;  %s222_s28 = sand.u32 1, %s2921_s20  }
  0x19   : > { %s2626_s29 = sshll.u32 %s222_s28, 10  ;;  %s2644_s30 = sshll.u32 %s2925_s21, 10 }
  0x1a   : > { %s232_s8 = scalar_lea.hbm %s4878_s1, %s2644_s30  ;;  %s226_s9 = scalar_lea.vmem [#allocation3], %s2626_s29 }
  0x1b   : > { %s235_s10 = sshll.u32 %s226_s9, 4  ;;  %s233_s11 = sshll.u32 %s232_s8, 4  ;;  %s236_s10 = int_to_ptr.vmem [resolvable:$true] %s235_s10  ;;  %s234_s11 = int_to_ptr.hbm [resolvable:$true] %s233_s11 }
  0x1c   : > { %p3043_p0 = pnand %p2680_p12, %p63_p13  ;;  %s223_s13 = scalar_lea.sflag [#allocation4], %s222_s28 }
  0x1d   : > { %s2821_s14 = sshra.s32 %s234_s11, 4  ;;  %s2828_s17 = scalar_lea.hbm %s4878_s1, 8192  ;;  %s2822_s14 = int_to_ptr.hbm [resolvable:$true] %s2821_s14 }
  0x1e   : > { %s2823_s15 = scalar_lea.hbm %s2822_s14, 1024  ;;  %p2825_p3 = pneg %p3043_p0 }
  0x1f   : > { %p2824_p2 = scmp.ne.s32.totalorder %s2822_s14, %s2823_s15  ;;  %p2829_p9 = scmp.lt.s32.totalorder %s2822_s14, %s4878_s1 }
  0x20   : > { %p2830_p10 = scmp.lt.s32.totalorder %s2828_s17, %s2823_s15 }
  0x21   : > { %p2826_p7 = pnand %p2825_p3, %p2824_p2 }
  0x22   : > { %p2831_p11 = por %p2830_p10, %p2829_p9 }
  0x23   : > { %p2827_p8 = pneg %p2826_p7 }
  0x25   : > { %p2832_p12 = pnand %p2831_p11, %p2827_p8 }
  0x27   : > { %2835 = shalt.err (!%p2832_p12)
}
  0x28   : > { %s2932_s28 = smov 256   ;;  %s2933_s29 = smov 16  }
  0x29   : > { %2676 = dma.hbm_to_vmem [thread:$0]  (!%p3043_p0), %s234_s11, 16384, %s236_s10, %s223_s13, %s2932_s28, %s2932_s28, %s2933_s29  }
  0x2a   : > { %247 = sbr.rel (%p3001_p6) target bundleno = 803 (0x323), region = 40 }
  0x2f   : > { %s249_s30 = sand.u32 1, %s2917_s19  }
  0x30   : > { %s2631_s6 = sshll.u32 %s249_s30, 10  ;;  %s250_s7 = scalar_lea.sflag [#allocation4], %s249_s30 }
  0x31   : > { %s3060_s8 = scalar_lea.vmem [#allocation3], %s2631_s6 }
  0x32   : > { %2896 = dma.done.wait (%p2994_p5), %s250_s7, 16384  }
  0x33   : > { %2898 = vsyncadd (%p2994_p5), %s250_s7, 4294950912 }
  0x34   : > { %2900 = dma.done.wait (%p68_p1), [#allocation7], 32832  }
  0x35   : > { %2902 = vsyncadd (%p68_p1), [#allocation7], 4294934464 }
  0x36   : > { %2904 = dma.done.wait (%p68_p1), [#allocation10], 128  }
  0x37   : > { %2906 = vsyncadd (%p68_p1), [#allocation10], 4294967168  ;;  %s2635_s27 = sshll.u32 %s2985_s22, 2 }
  0x38   : > { %p297_p6 = scmp.lt.s32.totalorder %s2635_s27, 31  ;;  %306 = sbr.rel (%p2622_p4) target bundleno = 63 (0x3f), region = 60 }
  0x3a   : > { %s5214_s27 = smov (!%p297_p6, %s2635_s27), 31 }
  0x3b   : > { %s2636_s9 = sshll.u32 %s5214_s27, 1 }
  0x3c   : > { %s3078_s11 = scalar_lea.vmem %s4877_s0, %s2636_s9 }
  0x3d   : > { %v2934_v0 = vmov 0.0  }
  0x3e   : > { %307 = vst [vmem:[#allocation2] sm:$0xff] %v2934_v0 }
  0x3f PF: > { %v3083_v1 = vld [vmem:[%s3060_s8 + $0x2f0] sm:$0xff]  ;;  %v3086_v2 = vld [vmem:[%s3060_s8 + $0x2e0] sm:$0xff]  ;;  %vm1031_vm0 = vcmask 1041408   ;;  %vm1033_vm1 = vcmask 1045508   ;;  %vm1035_vm2 = vcmask 1043456   ;;  %p2638_p1 = scmp.ne.s32.totalorder %s2985_s22, 7 }
  0x40   : > { %v3089_v3 = vld [vmem:[%s3060_s8 + $0x3f0] sm:$0xff]  ;;  %v626_v4 = vunpack.c.l.bf16 %v3083_v1  ;;  %v622_v5 = vunpack.c.l.bf16 %v3086_v2  ;;  %v3106_v12 = vld [vmem:[%s3060_s8 + $0x3e0] sm:$0xff] }
  0x41   : > { %v690_v6 = vunpack.c.l.bf16 %v3089_v3  ;;  %v3095_v7 = vld [vmem:[%s3060_s8 + $0xf0] sm:$0xff]  ;;  %v3109_v13 = vld [vmem:[%s3060_s8 + $0xe0] sm:$0xff]  ;;  %v686_v16 = vunpack.c.l.bf16 %v3106_v12 }
  0x42   : > { %v3098_v8 = vld [vmem:[%s3060_s8 + $0x1f0] sm:$0xff]  ;;  %v498_v10 = vunpack.c.l.bf16 %v3095_v7  ;;  %v3112_v14 = vld [vmem:[%s3060_s8 + $0x1e0] sm:$0xff]  ;;  %744 = vmatpush.msra.mxu2 %v626_v4  ;;  %v494_v17 = vunpack.c.l.bf16 %v3109_v13 }
  0x43   : > { %v3101_v9 = vld [vmem:[%s3060_s8 + $0x2d0] sm:$0xff]  ;;  %v562_v11 = vunpack.c.l.bf16 %v3098_v8  ;;  %764 = vmatpush.msra.mxu3 %v690_v6  ;;  %v558_v18 = vunpack.c.l.bf16 %v3112_v14  ;;  %v3119_v19 = vld [vmem:[%s3060_s8 + $0x2c0] sm:$0xff] }
  0x44   : > { %v618_v15 = vunpack.c.l.bf16 %v3101_v9  ;;  %v3122_v20 = vld [vmem:[%s3060_s8 + $0x3d0] sm:$0xff]  ;;  %704 = vmatpush.msra.mxu0 %v498_v10  ;;  %v3136_v26 = vld [vmem:[%s3060_s8 + $0x3c0] sm:$0xff]  ;;  %745 = vmatpush.msra.mxu2 %v622_v5  ;;  %v614_v27 = vunpack.c.l.bf16 %v3119_v19 }
  0x45   : > { %v3125_v21 = vld [vmem:[%s3060_s8 + $0xd0] sm:$0xff]  ;;  %724 = vmatpush.msra.mxu1 %v562_v11  ;;  %v682_v22 = vunpack.c.l.bf16 %v3122_v20  ;;  %765 = vmatpush.msra.mxu3 %v686_v16  ;;  %v678_v29 = vunpack.c.l.bf16 %v3136_v26  ;;  %v3142_v30 = vld [vmem:[%s3060_s8 + $0xc0] sm:$0xff] }
  0x46   : > { %v490_v23 = vunpack.c.l.bf16 %v3125_v21  ;;  %v3130_v24 = vld [vmem:[%s3060_s8 + $0x1d0] sm:$0xff]  ;;  %v3145_v31 = vld [vmem:[%s3060_s8 + $0x1c0] sm:$0xff]  ;;  %705 = vmatpush.msra.mxu0 %v494_v17  ;;  %v486_v33 = vunpack.c.l.bf16 %v3142_v30  ;;  %746 = vmatpush.msra.mxu2 %v618_v15 }
  0x47   : > { %v3133_v25 = vld [vmem:[%s3060_s8 + $0x2b0] sm:$0xff]  ;;  %v554_v28 = vunpack.c.l.bf16 %v3130_v24  ;;  %v3148_v32 = vld [vmem:[%s3060_s8 + $0x2a0] sm:$0xff]  ;;  %725 = vmatpush.msra.mxu1 %v558_v18  ;;  %v550_v34 = vunpack.c.l.bf16 %v3145_v31  ;;  %766 = vmatpush.msra.mxu3 %v682_v22 }
  0x48   : > { %v3153_v35 = vld [vmem:[%s3060_s8 + $0x3b0] sm:$0xff]  ;;  %v610_v38 = vunpack.c.l.bf16 %v3133_v25  ;;  %v3164_v40 = vld [vmem:[%s3060_s8 + $0x3a0] sm:$0xff]  ;;  %706 = vmatpush.msra.mxu0 %v490_v23  ;;  %747 = vmatpush.msra.mxu2 %v614_v27  ;;  %v606_v47 = vunpack.c.l.bf16 %v3148_v32 }
  0x49   : > { %v3156_v36 = vld [vmem:[%s3060_s8 + $0xb0] sm:$0xff]  ;;  %v674_v39 = vunpack.c.l.bf16 %v3153_v35  ;;  %v3167_v41 = vld [vmem:[%s3060_s8 + $0xa0] sm:$0xff]  ;;  %726 = vmatpush.msra.mxu1 %v554_v28  ;;  %767 = vmatpush.msra.mxu3 %v678_v29  ;;  %v670_v48 = vunpack.c.l.bf16 %v3164_v40 }
  0x4a   : > { %v3159_v37 = vld [vmem:[%s3060_s8 + $0x1b0] sm:$0xff]  ;;  %v482_v42 = vunpack.c.l.bf16 %v3156_v36  ;;  %v3175_v45 = vld [vmem:[%s3060_s8 + $0x1a0] sm:$0xff]  ;;  %707 = vmatpush.msra.mxu0 %v486_v33  ;;  %v478_v51 = vunpack.c.l.bf16 %v3167_v41  ;;  %748 = vmatpush.msra.mxu2 %v610_v38 }
  0x4b   : > { %v546_v43 = vunpack.c.l.bf16 %v3159_v37  ;;  %v3172_v44 = vld [vmem:[%s3060_s8 + $0x290] sm:$0xff]  ;;  %727 = vmatpush.msra.mxu1 %v550_v34  ;;  %v542_v52 = vunpack.c.l.bf16 %v3175_v45  ;;  %v3191_v53 = vld [vmem:[%s3060_s8 + $0x280] sm:$0xff]  ;;  %768 = vmatpush.msra.mxu3 %v674_v39 }
  0x4c   : > { %v3178_v46 = vld [vmem:[%s3060_s8 + $0x390] sm:$0xff]  ;;  %v3194_v54 = vld [vmem:[%s3060_s8 + $0x380] sm:$0xff]  ;;  %v602_v55 = vunpack.c.l.bf16 %v3172_v44  ;;  %708 = vmatpush.msra.mxu0 %v482_v42  ;;  %749 = vmatpush.msra.mxu2 %v606_v47  ;;  %v598_v63 = vunpack.c.l.bf16 %v3191_v53 }
  0x4d   : > { %v3183_v49 = vld [vmem:[%s3060_s8 + $0x90] sm:$0xff]  ;;  %v666_v56 = vunpack.c.l.bf16 %v3178_v46  ;;  %v3199_v57 = vld [vmem:[%s3060_s8 + $0x80] sm:$0xff]  ;;  %728 = vmatpush.msra.mxu1 %v546_v43  ;;  %769 = vmatpush.msra.mxu3 %v670_v48  ;;  %v662_v0 = vunpack.c.l.bf16 %v3194_v54 }
  0x4e   : > { %v3186_v50 = vld [vmem:[%s3060_s8 + $0x190] sm:$0xff]  ;;  %v3202_v58 = vld [vmem:[%s3060_s8 + $0x180] sm:$0xff]  ;;  %v474_v59 = vunpack.c.l.bf16 %v3183_v49  ;;  %709 = vmatpush.msra.mxu0 %v478_v51  ;;  %v470_v6 = vunpack.c.l.bf16 %v3199_v57  ;;  %750 = vmatpush.msra.mxu2 %v602_v55 }
  0x4f   : > { %v538_v60 = vunpack.c.l.bf16 %v3186_v50  ;;  %v3207_v61 = vld [vmem:[%s3060_s8 + $0x270] sm:$0xff]  ;;  %729 = vmatpush.msra.mxu1 %v542_v52  ;;  %v534_v10 = vunpack.c.l.bf16 %v3202_v58  ;;  %v3223_v11 = vld [vmem:[%s3060_s8 + $0x260] sm:$0xff]  ;;  %770 = vmatpush.msra.mxu3 %v666_v56 }
  0x50   : > { %v3210_v62 = vld [vmem:[%s3060_s8 + $0x370] sm:$0xff]  ;;  %v3226_v15 = vld [vmem:[%s3060_s8 + $0x360] sm:$0xff]  ;;  %v594_v16 = vunpack.c.l.bf16 %v3207_v61  ;;  %710 = vmatpush.msra.mxu0 %v474_v59  ;;  %751 = vmatpush.msra.mxu2 %v598_v63  ;;  %v590_v33 = vunpack.c.l.bf16 %v3223_v11 }
  0x51   : > { %v3215_v4 = vld [vmem:[%s3060_s8 + $0x70] sm:$0xff]  ;;  %v658_v17 = vunpack.c.l.bf16 %v3210_v62  ;;  %v3231_v18 = vld [vmem:[%s3060_s8 + $0x60] sm:$0xff]  ;;  %730 = vmatpush.msra.mxu1 %v538_v60  ;;  %771 = vmatpush.msra.mxu3 %v662_v0  ;;  %v654_v34 = vunpack.c.l.bf16 %v3226_v15 }
  0x52   : > { %v3218_v5 = vld [vmem:[%s3060_s8 + $0x170] sm:$0xff]  ;;  %v3234_v22 = vld [vmem:[%s3060_s8 + $0x160] sm:$0xff]  ;;  %v466_v23 = vunpack.c.l.bf16 %v3215_v4  ;;  %711 = vmatpush.msra.mxu0 %v470_v6  ;;  %v462_v42 = vunpack.c.l.bf16 %v3231_v18  ;;  %752 = vmatpush.msra.mxu2 %v594_v16 }
  0x53   : > { %v530_v27 = vunpack.c.l.bf16 %v3218_v5  ;;  %v3239_v28 = vld [vmem:[%s3060_s8 + $0x250] sm:$0xff]  ;;  %731 = vmatpush.msra.mxu1 %v534_v10  ;;  %v526_v43 = vunpack.c.l.bf16 %v3234_v22  ;;  %v3255_v47 = vld [vmem:[%s3060_s8 + $0x240] sm:$0xff]  ;;  %772 = vmatpush.msra.mxu3 %v658_v17 }
  0x54   : > { %v3242_v29 = vld [vmem:[%s3060_s8 + $0x350] sm:$0xff]  ;;  %v3258_v48 = vld [vmem:[%s3060_s8 + $0x340] sm:$0xff]  ;;  %v586_v51 = vunpack.c.l.bf16 %v3239_v28  ;;  %712 = vmatpush.msra.mxu0 %v466_v23  ;;  %753 = vmatpush.msra.mxu2 %v590_v33  ;;  %v582_v6 = vunpack.c.l.bf16 %v3255_v47 }
  0x55   : > { %v3247_v38 = vld [vmem:[%s3060_s8 + $0x50] sm:$0xff]  ;;  %5004 = vst [vmem:[#allocation18_spill] sm:$0xff] %v3258_v48  ;;  %v650_v52 = vunpack.c.l.bf16 %v3242_v29  ;;  %v3263_v55 = vld [vmem:[%s3060_s8 + $0x40] sm:$0xff]  ;;  %732 = vmatpush.msra.mxu1 %v530_v27  ;;  %773 = vmatpush.msra.mxu3 %v654_v34  ;;  %v646_v10 = vunpack.c.l.bf16 %v3258_v48 }
  0x56   : > { %5002 = vst [vmem:[#allocation16_spill] sm:$0xff] %v3247_v38  ;;  %v3250_v39 = vld [vmem:[%s3060_s8 + $0x150] sm:$0xff]  ;;  %v3266_v56 = vld [vmem:[%s3060_s8 + $0x140] sm:$0xff]  ;;  %v458_v59 = vunpack.c.l.bf16 %v3247_v38  ;;  %713 = vmatpush.msra.mxu0 %v462_v42  ;;  %v454_v27 = vunpack.c.l.bf16 %v3263_v55  ;;  %754 = vmatpush.msra.mxu2 %v586_v51 }
  0x57   : > { %5003 = vst [vmem:[#allocation17_spill] sm:$0xff] %v3250_v39  ;;  %v522_v60 = vunpack.c.l.bf16 %v3250_v39  ;;  %v3271_v63 = vld [vmem:[%s3060_s8 + $0x230] sm:$0xff]  ;;  %733 = vmatpush.msra.mxu1 %v526_v43  ;;  %v518_v33 = vunpack.c.l.bf16 %v3266_v56  ;;  %v3288_v34 = vld [vmem:[%s3060_s8 + $0x220] sm:$0xff]  ;;  %774 = vmatpush.msra.mxu3 %v650_v52 }
  0x58   : > { %5005 = vst [vmem:[#allocation19_spill] sm:$0xff] %v3263_v55  ;;  %v3274_v0 = vld [vmem:[%s3060_s8 + $0x330] sm:$0xff]  ;;  %v3291_v39 = vld [vmem:[%s3060_s8 + $0x320] sm:$0xff]  ;;  %v578_v48 = vunpack.c.l.bf16 %v3271_v63  ;;  %714 = vmatpush.msra.mxu0 %v458_v59  ;;  %755 = vmatpush.msra.mxu2 %v582_v6 }
  0x59   : > { %5006 = vst [vmem:[#allocation20_spill] sm:$0xff] %v3266_v56  ;;  %v3279_v16 = vld [vmem:[%s3060_s8 + $0x30] sm:$0xff]  ;;  %v642_v42 = vunpack.c.l.bf16 %v3274_v0  ;;  %v3296_v43 = vld [vmem:[%s3060_s8 + $0x20] sm:$0xff]  ;;  %734 = vmatpush.msra.mxu1 %v522_v60  ;;  %775 = vmatpush.msra.mxu3 %v646_v10  ;;  %v638_v55 = vunpack.c.l.bf16 %v3291_v39 }
  0x5a   : > { %5007 = vst [vmem:[#allocation21_spill] sm:$0xff] %v3271_v63  ;;  %v3282_v17 = vld [vmem:[%s3060_s8 + $0x130] sm:$0xff]  ;;  %v3299_v38 = vld [vmem:[%s3060_s8 + $0x120] sm:$0xff]  ;;  %v450_v56 = vunpack.c.l.bf16 %v3279_v16  ;;  %715 = vmatpush.msra.mxu0 %v454_v27  ;;  %v446_v60 = vunpack.c.l.bf16 %v3296_v43  ;;  %756 = vmatpush.msra.mxu2 %v578_v48 }
  0x5b   : > { %5008 = vst [vmem:[#allocation22_spill] sm:$0xff] %v3274_v0  ;;  %v309_v23 = vld [vmem:[%s3078_s11] sm:$0xff]  ;;  %v574_v0 = vunpack.c.l.bf16 %v3288_v34  ;;  %735 = vmatpush.msra.mxu1 %v518_v33  ;;  %v3323_v6 = vld [vmem:[%s3060_s8 + $0x300] sm:$0xff]  ;;  %776 = vmatpush.msra.mxu3 %v642_v42  ;;  %v627_v42 = vunpack.c.h.bf16 %v3083_v1  ;;  %v687_v1 = vunpack.c.h.bf16 %v3106_v12  ;;  %v555_v12 = vunpack.c.h.bf16 %v3130_v24 }
  0x5c   : > { %5009 = vst [vmem:[#allocation23_spill] sm:$0xff] %v3279_v16  ;;  %v3304_v51 = vld [vmem:[%s3060_s8 + $0x210] sm:$0xff]  ;;  %v3320_v16 = vld [vmem:[%s3060_s8 + $0x200] sm:$0xff]  ;;  %716 = vmatpush.msra.mxu0 %v450_v56  ;;  %v630_v48 = vunpack.c.l.bf16 %v3323_v6  ;;  %v691_v56 = vunpack.c.h.bf16 %v3089_v3  ;;  %v619_v3 = vunpack.c.h.bf16 %v3101_v9  ;;  %v679_v9 = vunpack.c.h.bf16 %v3136_v26 }
  0x5d   : > { %5010 = vst [vmem:[#allocation24_spill] sm:$0xff] %v3282_v17  ;;  %v3307_v52 = vld [vmem:[%s3060_s8 + $0x310] sm:$0xff]  ;;  %v570_v10 = vunpack.c.l.bf16 %v3304_v51  ;;  %v3330_v33 = vld [vmem:[%s3060_s8] sm:$0xff]  ;;  %757 = vmatpush.msra.mxu2 %v574_v0  ;;  %777 = vmatpush.msra.mxu3 %v638_v55  ;;  %v623_v55 = vunpack.c.h.bf16 %v3086_v2  ;;  %v499_v0 = vunpack.c.h.bf16 %v3095_v7  ;;  %v683_v2 = vunpack.c.h.bf16 %v3122_v20 }
  0x5e   : > { %5011 = vst [vmem:[#allocation25_spill] sm:$0xff] %v3288_v34  ;;  %v3312_v63 = vld [vmem:[%s3060_s8 + $0x10] sm:$0xff]  ;;  %717 = vmatpush.msra.mxu0 %v446_v60  ;;  %v615_v7 = vunpack.c.h.bf16 %v3119_v19  ;;  %v551_v20 = vunpack.c.h.bf16 %v3145_v31  ;;  %v675_v19 = vunpack.c.h.bf16 %v3153_v35  ;;  %v483_v24 = vunpack.c.h.bf16 %v3156_v36 }
  0x5f   : > { %5012 = vst [vmem:[#allocation26_spill] sm:$0xff] %v3291_v39  ;;  %v3315_v59 = vld [vmem:[%s3060_s8 + $0x110] sm:$0xff]  ;;  %v634_v39 = vunpack.c.l.bf16 %v3307_v52  ;;  %v442_v34 = vunpack.c.l.bf16 %v3312_v63  ;;  %758 = vmatpush.msra.mxu2 %v570_v10  ;;  %v547_v26 = vunpack.c.h.bf16 %v3159_v37  ;;  %v479_v31 = vunpack.c.h.bf16 %v3167_v41 }
  0x60   : > { %695 = vst [vmem:[#allocation1] ss:$4 sm:$0xff] %v309_v23  ;;  %v514_v23 = vunpack.c.l.bf16 %v3282_v17  ;;  %v510_v17 = vunpack.c.l.bf16 %v3299_v38  ;;  %v506_v27 = vunpack.c.l.bf16 %v3315_v59  ;;  %v543_v35 = vunpack.c.h.bf16 %v3175_v45  ;;  %v5020_v10 = vld [vmem:[#allocation18_spill] sm:$0xff] }
  0x61   : > { %5013 = vst [vmem:[#allocation27_spill] sm:$0xff] %v3296_v43  ;;  %v3333_v43 = vld [vmem:[%s3060_s8 + $0x100] sm:$0xff]  ;;  %778 = vmatpush.msra.mxu3 %v634_v39  ;;  %718 = vmatpush.msra.mxu0 %v442_v34  ;;  %v495_v39 = vunpack.c.h.bf16 %v3109_v13  ;;  %v559_v34 = vunpack.c.h.bf16 %v3112_v14  ;;  %v611_v13 = vunpack.c.h.bf16 %v3133_v25  ;;  %v487_v14 = vunpack.c.h.bf16 %v3142_v30 }
  0x62   : > { %5014 = vst [vmem:[#allocation28_spill] sm:$0xff] %v3299_v38  ;;  %736 = vmatpush.msra.mxu1 %v514_v23  ;;  %v566_v38 = vunpack.c.l.bf16 %v3320_v16  ;;  %v438_v23 = vunpack.c.l.bf16 %v3330_v33  ;;  %v671_v25 = vunpack.c.h.bf16 %v3164_v40  ;;  %v603_v30 = vunpack.c.h.bf16 %v3172_v44 }
  0x63   : > { %5015 = vst [vmem:[#allocation29_spill] sm:$0xff] %v3315_v59  ;;  %v502_v59 = vunpack.c.l.bf16 %v3333_v43  ;;  %779 = vmatpush.msra.mxu3 %v630_v48  ;;  %v599_v36 = vunpack.c.h.bf16 %v3191_v53  ;;  %v475_v37 = vunpack.c.h.bf16 %v3183_v49  ;;  %v539_v40 = vunpack.c.h.bf16 %v3186_v50  ;;  %v5023_v48 = vld [vmem:[#allocation20_spill] sm:$0xff] }
  0x64   : > { %737 = vmatpush.msra.mxu1 %v510_v17  ;;  %759 = vmatpush.msra.mxu2 %v566_v38  ;;  %v563_v17 = vunpack.c.h.bf16 %v3098_v8  ;;  %v491_v8 = vunpack.c.h.bf16 %v3125_v21  ;;  %v607_v21 = vunpack.c.h.bf16 %v3148_v32  ;;  %v667_v32 = vunpack.c.h.bf16 %v3178_v46  ;;  %v5016_v38 = vld [vmem:[#allocation16_spill] sm:$0xff] }
  0x65   : > { %844 = vmatpush.msrb.mxu3 %v691_v56  ;;  %719 = vmatpush.msra.mxu0 %v438_v23  ;;  %v663_v44 = vunpack.c.h.bf16 %v3194_v54  ;;  %v595_v41 = vunpack.c.h.bf16 %v3207_v61  ;;  %v471_v45 = vunpack.c.h.bf16 %v3199_v57  ;;  %v535_v46 = vunpack.c.h.bf16 %v3202_v58  ;;  %v5024_v56 = vld [vmem:[#allocation25_spill] sm:$0xff] }
  0x66   : > { %738 = vmatpush.msra.mxu1 %v506_v27  ;;  %824 = vmatpush.msrb.mxu2 %v627_v42  ;;  %v659_v53 = vunpack.c.h.bf16 %v3210_v62  ;;  %v591_v49 = vunpack.c.h.bf16 %v3223_v11  ;;  %v467_v50 = vunpack.c.h.bf16 %v3215_v4  ;;  %v531_v54 = vunpack.c.h.bf16 %v3218_v5 }
  0x67   : > { %784 = vmatpush.msrb.mxu0 %v499_v0  ;;  %845 = vmatpush.msrb.mxu3 %v687_v1  ;;  %v655_v61 = vunpack.c.h.bf16 %v3226_v15  ;;  %v587_v57 = vunpack.c.h.bf16 %v3239_v28  ;;  %v463_v58 = vunpack.c.h.bf16 %v3231_v18  ;;  %v527_v62 = vunpack.c.h.bf16 %v3234_v22  ;;  %v5017_v15 = vld [vmem:[#allocation17_spill] sm:$0xff]  ;;  %v5027_v1 = vld [vmem:[#allocation23_spill] sm:$0xff] }
  0x68   : > { %739 = vmatpush.msra.mxu1 %v502_v59  ;;  %825 = vmatpush.msrb.mxu2 %v623_v55  ;;  %v651_v11 = vunpack.c.h.bf16 %v3242_v29  ;;  %v583_v4 = vunpack.c.h.bf16 %v3255_v47  ;;  %v459_v5 = vunpack.c.h.bf16 %v5016_v38  ;;  %v523_v59 = vunpack.c.h.bf16 %v5017_v15  ;;  %v3384_v28 = vld.sshfl [vmem:[#allocation1 + $0x10] sm:$0xff pattern:$0x73625140]  ;;  %v5021_v29 = vld [vmem:[#allocation19_spill] sm:$0xff]  ;;  %v5025_v55 = vld [vmem:[#allocation22_spill] sm:$0xff] }
  0x69   : > { %785 = vmatpush.msrb.mxu0 %v495_v39  ;;  %846 = vmatpush.msrb.mxu3 %v683_v2  ;;  %5018 = vst [vmem:[#allocation16_spill] sm:$0xff] %v3384_v28  ;;  %v5019_v18 = vld [vmem:[#allocation21_spill] sm:$0xff]  ;;  %v647_v22 = vunpack.c.h.bf16 %v5020_v10  ;;  %v455_v27 = vunpack.c.h.bf16 %v5021_v29  ;;  %v519_v42 = vunpack.c.h.bf16 %v5023_v48  ;;  %v575_v23 = vunpack.c.h.bf16 %v5024_v56  ;;  %v3399_v39 = vld.sshfl [vmem:[#allocation1 + $0x8] sm:$0xff pattern:$0x73625140] }
  0x6a   : > { %804 = vmatpush.msrb.mxu1 %v563_v17  ;;  %826 = vmatpush.msrb.mxu2 %v619_v3  ;;  %v579_v60 = vunpack.c.h.bf16 %v5019_v18  ;;  %v3389_v47 = vld.sshfl [vmem:[#allocation1 + $0x18] sm:$0xff pattern:$0x73625140]  ;;  %v643_v0 = vunpack.c.h.bf16 %v5025_v55  ;;  %v3395_v17 = vld.sshfl [vmem:[#allocation1] sm:$0xff pattern:$0x73625140]  ;;  %v451_v3 = vunpack.c.h.bf16 %v5027_v1 }
  0x6b   : > { %786 = vmatpush.msrb.mxu0 %v491_v8  ;;  %847 = vmatpush.msrb.mxu3 %v679_v9  ;;  %5022 = vst [vmem:[#allocation17_spill] sm:$0xff] %v3389_v47  ;;  %v5030_v8 = vld [vmem:[#allocation26_spill] sm:$0xff]  ;;  %v5031_v9 = vld [vmem:[#allocation27_spill] sm:$0xff] }
  0x6c   : > { %805 = vmatpush.msrb.mxu1 %v559_v34  ;;  %827 = vmatpush.msrb.mxu2 %v615_v7  ;;  %5026 = vst [vmem:[#allocation21_spill] sm:$0xff] %v3395_v17  ;;  %v5029_v34 = vld [vmem:[#allocation24_spill] sm:$0xff]  ;;  %v571_v7 = vunpack.c.h.bf16 %v3304_v51  ;;  %v635_v51 = vunpack.c.h.bf16 %v3307_v52  ;;  %v631_v52 = vunpack.c.h.bf16 %v3323_v6  ;;  %v503_v6 = vunpack.c.h.bf16 %v3333_v43  ;;  %v3474_v38 = vld [vmem:[%s3060_s8 + $0xc8] sm:$0xff] }
  0x6d   : > { %787 = vmatpush.msrb.mxu0 %v487_v14  ;;  %848 = vmatpush.msrb.mxu3 %v675_v19  ;;  %5028 = vst [vmem:[#allocation18_spill] sm:$0xff] %v3399_v39  ;;  %v515_v2 = vunpack.c.h.bf16 %v5029_v34  ;;  %v3406_v14 = vld [vmem:[%s3060_s8 + $0x2f8] sm:$0xff]  ;;  %v3483_v18 = vld [vmem:[%s3060_s8 + $0x2a8] sm:$0xff]  ;;  %v488_v48 = vunpack.c.l.bf16 %v3474_v38 }
  0x6e   : > { %806 = vmatpush.msrb.mxu1 %v555_v12  ;;  %828 = vmatpush.msrb.mxu2 %v611_v13  ;;  %v639_v12 = vunpack.c.h.bf16 %v5030_v8  ;;  %v447_v13 = vunpack.c.h.bf16 %v5031_v9  ;;  %v3491_v29 = vld [vmem:[%s3060_s8 + $0xb8] sm:$0xff]  ;;  %v608_v55 = vunpack.c.l.bf16 %v3483_v18  ;;  %v3507_v1 = vld [vmem:[%s3060_s8 + $0xa8] sm:$0xff] }
  0x6f   : > { %788 = vmatpush.msrb.mxu0 %v483_v24  ;;  %849 = vmatpush.msrb.mxu3 %v671_v25  ;;  %v3414_v24 = vld [vmem:[%s3060_s8 + $0x2e8] sm:$0xff]  ;;  %v443_v25 = vunpack.c.h.bf16 %v3312_v63  ;;  %v3499_v56 = vld [vmem:[%s3060_s8 + $0x298] sm:$0xff]  ;;  %v484_v34 = vunpack.c.l.bf16 %v3491_v29 }
  0x70   : > { %807 = vmatpush.msrb.mxu1 %v551_v20  ;;  %829 = vmatpush.msrb.mxu2 %v607_v21  ;;  %v5032_v20 = vld [vmem:[#allocation28_spill] sm:$0xff]  ;;  %v567_v21 = vunpack.c.h.bf16 %v3320_v16  ;;  %v5033_v16 = vld [vmem:[#allocation29_spill] sm:$0xff] }
  0x71   : > { %789 = vmatpush.msrb.mxu0 %v479_v31  ;;  %850 = vmatpush.msrb.mxu3 %v667_v32  ;;  %v511_v19 = vunpack.c.h.bf16 %v5032_v20  ;;  %v507_v31 = vunpack.c.h.bf16 %v5033_v16  ;;  %v3425_v32 = vld [vmem:[%s3060_s8 + $0xf8] sm:$0xff]  ;;  %v3536_v16 = vld [vmem:[%s3060_s8 + $0x388] sm:$0xff] }
  0x72   : > { %808 = vmatpush.msrb.mxu1 %v547_v26  ;;  %830 = vmatpush.msrb.mxu2 %v603_v30  ;;  %v628_v26 = vunpack.c.l.bf16 %v3406_v14  ;;  %v3419_v30 = vld [vmem:[%s3060_s8 + $0x3f8] sm:$0xff] }
  0x73   : > { %790 = vmatpush.msrb.mxu0 %v475_v37  ;;  %851 = vmatpush.msrb.mxu3 %v663_v44  ;;  %v692_v63 = vunpack.c.l.bf16 %v3419_v30  ;;  %v3431_v37 = vld [vmem:[%s3060_s8 + $0x1f8] sm:$0xff]  ;;  %v3438_v44 = vld [vmem:[%s3060_s8 + $0x3e8] sm:$0xff] }
  0x74   : > { %809 = vmatpush.msrb.mxu1 %v543_v35  ;;  %831 = vmatpush.msrb.mxu2 %v599_v36  ;;  %v624_v35 = vunpack.c.l.bf16 %v3414_v24  ;;  %v439_v36 = vunpack.c.h.bf16 %v3330_v33  ;;  %v500_v33 = vunpack.c.l.bf16 %v3425_v32  ;;  %v564_v43 = vunpack.c.l.bf16 %v3431_v37  ;;  %v3520_v9 = vld [vmem:[%s3060_s8 + $0x398] sm:$0xff] }
  0x75   : > { %791 = vmatpush.msrb.mxu0 %v471_v45  ;;  %852 = vmatpush.msrb.mxu3 %v659_v53  ;;  %v3445_v45 = vld [vmem:[%s3060_s8 + $0x1e8] sm:$0xff] }
  0x76   : > { %810 = vmatpush.msrb.mxu1 %v539_v40  ;;  %832 = vmatpush.msrb.mxu2 %v595_v41  ;;  %v3434_v40 = vld [vmem:[%s3060_s8 + $0x2d8] sm:$0xff]  ;;  %v3441_v41 = vld [vmem:[%s3060_s8 + $0xe8] sm:$0xff] }
  0x77   : > { %792 = vmatpush.msrb.mxu0 %v467_v50  ;;  %853 = vmatpush.msrb.mxu3 %v655_v61  ;;  %v620_v53 = vunpack.c.l.bf16 %v3434_v40  ;;  %v3457_v50 = vld [vmem:[%s3060_s8 + $0xd8] sm:$0xff]  ;;  %v496_v61 = vunpack.c.l.bf16 %v3441_v41 }
  0x78   : > { %811 = vmatpush.msrb.mxu1 %v535_v46  ;;  %833 = vmatpush.msrb.mxu2 %v591_v49  ;;  %v3448_v46 = vld [vmem:[%s3060_s8 + $0x2c8] sm:$0xff]  ;;  %v3454_v49 = vld [vmem:[%s3060_s8 + $0x3d8] sm:$0xff]  ;;  %v492_v15 = vunpack.c.l.bf16 %v3457_v50 }
  0x79   : > { %793 = vmatpush.msrb.mxu0 %v463_v58  ;;  %854 = vmatpush.msrb.mxu3 %v651_v11  ;;  %v3465_v58 = vld [vmem:[%s3060_s8 + $0x2b8] sm:$0xff]  ;;  %v616_v11 = vunpack.c.l.bf16 %v3448_v46 }
  0x7a   : > { %812 = vmatpush.msrb.mxu1 %v531_v54  ;;  %834 = vmatpush.msrb.mxu2 %v587_v57  ;;  %v688_v54 = vunpack.c.l.bf16 %v3438_v44  ;;  %v3462_v57 = vld [vmem:[%s3060_s8 + $0x1d8] sm:$0xff]  ;;  %v612_v10 = vunpack.c.l.bf16 %v3465_v58 }
  0x7b   : > { %794 = vmatpush.msrb.mxu0 %v459_v5  ;;  %760 = vmatmul.f32.vlgmr.msra.gmra.mxu2 %v3384_v28  ;;  %v684_v5 = vunpack.c.l.bf16 %v3454_v49 }
  0x7c   : > { %813 = vmatpush.msrb.mxu1 %v527_v62  ;;  %835 = vmatpush.msrb.mxu2 %v583_v4  ;;  %v560_v62 = vunpack.c.l.bf16 %v3445_v45  ;;  %v3471_v4 = vld [vmem:[%s3060_s8 + $0x3c8] sm:$0xff] }
  0x7d   : > { %855 = vmatpush.msrb.mxu3 %v647_v22  ;;  %795 = vmatpush.msrb.mxu0 %v455_v27  ;;  %v3488_v22 = vld [vmem:[%s3060_s8 + $0x3b8] sm:$0xff]  ;;  %v680_v27 = vunpack.c.l.bf16 %v3471_v4 }
  0x7e   : > { %814 = vmatpush.msrb.mxu1 %v523_v59  ;;  %836 = vmatpush.msrb.mxu2 %v579_v60  ;;  %v3480_v59 = vld [vmem:[%s3060_s8 + $0x1c8] sm:$0xff]  ;;  %v556_v60 = vunpack.c.l.bf16 %v3462_v57 }
  0x7f   : > { %780 = vmatmul.f32.vlgmr.msra.gmra.mxu3 %v3389_v47  ;;  %720 = vmatmul.f32.vlgmr.msra.gmra.mxu0 %v3395_v17 }
  0x80   : > { %815 = vmatpush.msrb.mxu1 %v519_v42  ;;  %837 = vmatpush.msrb.mxu2 %v575_v23  ;;  %v3496_v42 = vld [vmem:[%s3060_s8 + $0x1b8] sm:$0xff]  ;;  %v552_v23 = vunpack.c.l.bf16 %v3480_v59 }
  0x81   : > { %856 = vmatpush.msrb.mxu3 %v643_v0  ;;  %740 = vmatmul.f32.vlgmr.msra.gmra.mxu1 %v3399_v39  ;;  %v3504_v0 = vld [vmem:[%s3060_s8 + $0x3a8] sm:$0xff]  ;;  %v548_v8 = vunpack.c.l.bf16 %v3496_v42 }
  0x82   : > { %796 = vmatpush.msrb.mxu0 %v451_v3  ;;  %816 = vmatpush.msrb.mxu1 %v515_v2  ;;  %v676_v3 = vunpack.c.l.bf16 %v3488_v22  ;;  %v3512_v2 = vld [vmem:[%s3060_s8 + $0x1a8] sm:$0xff]  ;;  %v672_v20 = vunpack.c.l.bf16 %v3504_v0 }
  0x83   : > { %838 = vmatpush.msrb.mxu2 %v571_v7  ;;  %857 = vmatpush.msrb.mxu3 %v639_v12  ;;  %v3515_v7 = vld [vmem:[%s3060_s8 + $0x288] sm:$0xff]  ;;  %v604_v12 = vunpack.c.l.bf16 %v3499_v56 }
  0x84   : > { %797 = vmatpush.msrb.mxu0 %v447_v13  ;;  %817 = vmatpush.msrb.mxu1 %v511_v19  ;;  %v3523_v13 = vld [vmem:[%s3060_s8 + $0x98] sm:$0xff]  ;;  %v480_v19 = vunpack.c.l.bf16 %v3507_v1 }
  0x85   : > { %839 = vmatpush.msrb.mxu2 %v567_v21  ;;  %858 = vmatpush.msrb.mxu3 %v635_v51  ;;  %v3528_v21 = vld [vmem:[%s3060_s8 + $0x198] sm:$0xff] }
  0x86   : > { %840 = vmatmul.f32.vlgmr.msrb.gmra.mxu2 %v3384_v28  ;;  %798 = vmatpush.msrb.mxu0 %v443_v25  ;;  %v3531_v51 = vld [vmem:[%s3060_s8 + $0x278] sm:$0xff]  ;;  %v600_v25 = vunpack.c.l.bf16 %v3515_v7 }
  0x87   : > { %904 = vmatpush.msra.mxu2 %v628_v26  ;;  %818 = vmatpush.msrb.mxu1 %v507_v31  ;;  %v544_v26 = vunpack.c.l.bf16 %v3512_v2  ;;  %v3539_v31 = vld [vmem:[%s3060_s8 + $0x88] sm:$0xff] }
  0x88   : > { %859 = vmatpush.msrb.mxu3 %v631_v52  ;;  %799 = vmatpush.msrb.mxu0 %v439_v36  ;;  %v668_v52 = vunpack.c.l.bf16 %v3520_v9  ;;  %v3547_v36 = vld [vmem:[%s3060_s8 + $0x268] sm:$0xff] }
  0x89   : > { %860 = vmatmul.f32.vlgmr.msrb.gmra.mxu3 %v3389_v47  ;;  %905 = vmatpush.msra.mxu2 %v624_v35  ;;  %v476_v35 = vunpack.c.l.bf16 %v3523_v13 }
  0x8a   : > { %924 = vmatpush.msra.mxu3 %v692_v63  ;;  %819 = vmatpush.msrb.mxu1 %v503_v6  ;;  %v3544_v63 = vld [vmem:[%s3060_s8 + $0x188] sm:$0xff]  ;;  %v540_v6 = vunpack.c.l.bf16 %v3528_v21 }
  0x8b   : > { %800 = vmatmul.f32.vlgmr.msrb.gmra.mxu0 %v3395_v17  ;;  %820 = vmatmul.f32.vlgmr.msrb.gmra.mxu1 %v3399_v39 }
  0x8c   : > { %864 = vmatpush.msra.mxu0 %v500_v33  ;;  %884 = vmatpush.msra.mxu1 %v564_v43  ;;  %v596_v33 = vunpack.c.l.bf16 %v3531_v51  ;;  %v3552_v43 = vld [vmem:[%s3060_s8 + $0x378] sm:$0xff] }
  0x8d   : > { %906 = vmatpush.msra.mxu2 %v620_v53  ;;  %925 = vmatpush.msra.mxu3 %v688_v54  ;;  %v3555_v53 = vld [vmem:[%s3060_s8 + $0x78] sm:$0xff]  ;;  %v664_v54 = vunpack.c.l.bf16 %v3536_v16 }
  0x8e   : > { %865 = vmatpush.msra.mxu0 %v496_v61  ;;  %885 = vmatpush.msra.mxu1 %v560_v62  ;;  %v472_v61 = vunpack.c.l.bf16 %v3539_v31  ;;  %v3560_v62 = vld [vmem:[%s3060_s8 + $0x178] sm:$0xff] }
  0x8f   : > { %907 = vmatpush.msra.mxu2 %v616_v11  ;;  %926 = vmatpush.msra.mxu3 %v684_v5  ;;  %v3563_v11 = vld [vmem:[%s3060_s8 + $0x258] sm:$0xff]  ;;  %v536_v5 = vunpack.c.l.bf16 %v3544_v63 }
  0x90   : > { %866 = vmatpush.msra.mxu0 %v492_v15  ;;  %886 = vmatpush.msra.mxu1 %v556_v60  ;;  %v592_v15 = vunpack.c.l.bf16 %v3547_v36  ;;  %v3568_v60 = vld [vmem:[%s3060_s8 + $0x368] sm:$0xff] }
  0x91   : > { %908 = vmatpush.msra.mxu2 %v612_v10  ;;  %927 = vmatpush.msra.mxu3 %v680_v27  ;;  %v3571_v10 = vld [vmem:[%s3060_s8 + $0x68] sm:$0xff]  ;;  %v660_v27 = vunpack.c.l.bf16 %v3552_v43 }
  0x92   : > { %867 = vmatpush.msra.mxu0 %v488_v48  ;;  %887 = vmatpush.msra.mxu1 %v552_v23  ;;  %v468_v48 = vunpack.c.l.bf16 %v3555_v53  ;;  %v3576_v23 = vld [vmem:[%s3060_s8 + $0x168] sm:$0xff] }
  0x93   : > { %909 = vmatpush.msra.mxu2 %v608_v55  ;;  %928 = vmatpush.msra.mxu3 %v676_v3  ;;  %v3579_v55 = vld [vmem:[%s3060_s8 + $0x248] sm:$0xff]  ;;  %v532_v3 = vunpack.c.l.bf16 %v3560_v62 }
  0x94   : > { %868 = vmatpush.msra.mxu0 %v484_v34  ;;  %888 = vmatpush.msra.mxu1 %v548_v8  ;;  %v588_v34 = vunpack.c.l.bf16 %v3563_v11  ;;  %v3584_v8 = vld [vmem:[%s3060_s8 + $0x358] sm:$0xff] }
  0x95   : > { %910 = vmatpush.msra.mxu2 %v604_v12  ;;  %929 = vmatpush.msra.mxu3 %v672_v20  ;;  %v3587_v12 = vld [vmem:[%s3060_s8 + $0x58] sm:$0xff]  ;;  %v656_v20 = vunpack.c.l.bf16 %v3568_v60 }
  0x96   : > { %869 = vmatpush.msra.mxu0 %v480_v19  ;;  %889 = vmatpush.msra.mxu1 %v544_v26  ;;  %5034 = vst [vmem:[#allocation19_spill] sm:$0xff] %v3587_v12  ;;  %v464_v19 = vunpack.c.l.bf16 %v3571_v10  ;;  %v3592_v26 = vld [vmem:[%s3060_s8 + $0x158] sm:$0xff] }
  0x97   : > { %911 = vmatpush.msra.mxu2 %v600_v25  ;;  %930 = vmatpush.msra.mxu3 %v668_v52  ;;  %5035 = vst [vmem:[#allocation20_spill] sm:$0xff] %v3592_v26  ;;  %v3595_v25 = vld [vmem:[%s3060_s8 + $0x238] sm:$0xff]  ;;  %v528_v52 = vunpack.c.l.bf16 %v3576_v23  ;;  %v524_v39 = vunpack.c.l.bf16 %v3592_v26 }
  0x98   : > { %870 = vmatpush.msra.mxu0 %v476_v35  ;;  %890 = vmatpush.msra.mxu1 %v540_v6  ;;  %5036 = vst [vmem:[#allocation25_spill] sm:$0xff] %v3595_v25  ;;  %v584_v35 = vunpack.c.l.bf16 %v3579_v55  ;;  %v3600_v6 = vld [vmem:[%s3060_s8 + $0x348] sm:$0xff]  ;;  %v580_v17 = vunpack.c.l.bf16 %v3595_v25 }
  0x99   : > { %912 = vmatpush.msra.mxu2 %v596_v33  ;;  %931 = vmatpush.msra.mxu3 %v664_v54  ;;  %5037 = vst [vmem:[#allocation22_spill] sm:$0xff] %v3600_v6  ;;  %v3603_v33 = vld [vmem:[%s3060_s8 + $0x48] sm:$0xff]  ;;  %v652_v54 = vunpack.c.l.bf16 %v3584_v8  ;;  %v648_v47 = vunpack.c.l.bf16 %v3600_v6 }
  0x9a   : > { %871 = vmatpush.msra.mxu0 %v472_v61  ;;  %891 = vmatpush.msra.mxu1 %v536_v5  ;;  %5038 = vst [vmem:[#allocation23_spill] sm:$0xff] %v3603_v33  ;;  %v460_v61 = vunpack.c.l.bf16 %v3587_v12  ;;  %v3608_v5 = vld [vmem:[%s3060_s8 + $0x148] sm:$0xff]  ;;  %v456_v28 = vunpack.c.l.bf16 %v3603_v33 }
  0x9b   : > { %913 = vmatpush.msra.mxu2 %v592_v15  ;;  %932 = vmatpush.msra.mxu3 %v660_v27  ;;  %5039 = vst [vmem:[#allocation24_spill] sm:$0xff] %v3608_v5  ;;  %v3611_v15 = vld [vmem:[%s3060_s8 + $0x228] sm:$0xff]  ;;  %v3616_v27 = vld [vmem:[%s3060_s8 + $0x338] sm:$0xff]  ;;  %v520_v25 = vunpack.c.l.bf16 %v3608_v5 }
  0x9c   : > { %872 = vmatpush.msra.mxu0 %v468_v48  ;;  %5040 = vst [vmem:[#allocation26_spill] sm:$0xff] %v3611_v15  ;;  %892 = vmatpush.msra.mxu1 %v532_v3  ;;  %v3619_v48 = vld [vmem:[%s3060_s8 + $0x38] sm:$0xff]  ;;  %v576_v26 = vunpack.c.l.bf16 %v3611_v15  ;;  %v3632_v12 = vld [vmem:[%s3060_s8 + $0x328] sm:$0xff] }
  0x9d   : > { %914 = vmatpush.msra.mxu2 %v588_v34  ;;  %5041 = vst [vmem:[#allocation27_spill] sm:$0xff] %v3616_v27  ;;  %933 = vmatpush.msra.mxu3 %v656_v20  ;;  %v3624_v3 = vld [vmem:[%s3060_s8 + $0x138] sm:$0xff]  ;;  %v3635_v20 = vld [vmem:[%s3060_s8 + $0x28] sm:$0xff]  ;;  %v452_v33 = vunpack.c.l.bf16 %v3619_v48 }
  0x9e   : > { %5042 = vst [vmem:[#allocation28_spill] sm:$0xff] %v3619_v48  ;;  %873 = vmatpush.msra.mxu0 %v464_v19  ;;  %v3627_v34 = vld [vmem:[%s3060_s8 + $0x218] sm:$0xff]  ;;  %893 = vmatpush.msra.mxu1 %v528_v52  ;;  %v644_v19 = vunpack.c.l.bf16 %v3616_v27  ;;  %v3640_v6 = vld [vmem:[%s3060_s8 + $0x128] sm:$0xff] }
  0x9f   : > { %5043 = vst [vmem:[#allocation29_spill] sm:$0xff] %v3627_v34  ;;  %915 = vmatpush.msra.mxu2 %v584_v35  ;;  %934 = vmatpush.msra.mxu3 %v652_v54  ;;  %v3643_v52 = vld [vmem:[%s3060_s8 + $0x208] sm:$0xff]  ;;  %v516_v35 = vunpack.c.l.bf16 %v3624_v3  ;;  %v572_v15 = vunpack.c.l.bf16 %v3627_v34  ;;  %v3648_v5 = vld [vmem:[%s3060_s8 + $0x318] sm:$0xff]  ;;  %v640_v54 = vunpack.c.l.bf16 %v3632_v12 }
  0xa0   : > { %5044 = vst [vmem:[#allocation30_spill] sm:$0xff] %v3632_v12  ;;  %874 = vmatpush.msra.mxu0 %v460_v61  ;;  %894 = vmatpush.msra.mxu1 %v524_v39  ;;  %v448_v61 = vunpack.c.l.bf16 %v3635_v20  ;;  %v3653_v48 = vld [vmem:[%s3060_s8 + $0x18] sm:$0xff]  ;;  %v568_v39 = vunpack.c.l.bf16 %v3643_v52  ;;  %v3661_v34 = vld [vmem:[%s3060_s8 + $0x308] sm:$0xff] }
  0xa1   : > { %5045 = vst [vmem:[#allocation31_spill] sm:$0xff] %v3635_v20  ;;  %916 = vmatpush.msra.mxu2 %v580_v17  ;;  %935 = vmatpush.msra.mxu3 %v648_v47  ;;  %v3656_v27 = vld [vmem:[%s3060_s8 + $0x118] sm:$0xff]  ;;  %v512_v17 = vunpack.c.l.bf16 %v3640_v6  ;;  %v629_v47 = vunpack.c.h.bf16 %v3406_v14  ;;  %v3666_v20 = vld [vmem:[%s3060_s8 + $0x8] sm:$0xff]  ;;  %v444_v12 = vunpack.c.l.bf16 %v3653_v48  ;;  %v693_v14 = vunpack.c.h.bf16 %v3419_v30 }
  0xa2   : > { %5046 = vst [vmem:[#allocation32_spill] sm:$0xff] %v3643_v52  ;;  %875 = vmatpush.msra.mxu0 %v456_v28  ;;  %895 = vmatpush.msra.mxu1 %v520_v25  ;;  %v636_v28 = vunpack.c.l.bf16 %v3648_v5  ;;  %v3671_v25 = vld [vmem:[%s3060_s8 + $0x108] sm:$0xff]  ;;  %v632_v52 = vunpack.c.l.bf16 %v3661_v34  ;;  %v497_v30 = vunpack.c.h.bf16 %v3441_v41  ;;  %v681_v41 = vunpack.c.h.bf16 %v3471_v4 }
  0xa3   : > { %917 = vmatpush.msra.mxu2 %v576_v26  ;;  %936 = vmatpush.msra.mxu3 %v644_v19  ;;  %v508_v26 = vunpack.c.l.bf16 %v3656_v27  ;;  %v440_v19 = vunpack.c.l.bf16 %v3666_v20  ;;  %v605_v4 = vunpack.c.h.bf16 %v3499_v56  ;;  %v541_v56 = vunpack.c.h.bf16 %v3528_v21 }
  0xa4   : > { %876 = vmatpush.msra.mxu0 %v452_v33  ;;  %896 = vmatpush.msra.mxu1 %v516_v35  ;;  %v625_v33 = vunpack.c.h.bf16 %v3414_v24  ;;  %v501_v35 = vunpack.c.h.bf16 %v3425_v32  ;;  %v689_v24 = vunpack.c.h.bf16 %v3438_v44  ;;  %v685_v32 = vunpack.c.h.bf16 %v3454_v49 }
  0xa5   : > { %918 = vmatpush.msra.mxu2 %v572_v15  ;;  %937 = vmatpush.msra.mxu3 %v640_v54  ;;  %v504_v15 = vunpack.c.l.bf16 %v3671_v25  ;;  %v565_v54 = vunpack.c.h.bf16 %v3431_v37  ;;  %v493_v37 = vunpack.c.h.bf16 %v3457_v50  ;;  %v613_v44 = vunpack.c.h.bf16 %v3465_v58 }
  0xa6   : > { %877 = vmatpush.msra.mxu0 %v448_v61  ;;  %897 = vmatpush.msra.mxu1 %v512_v17  ;;  %v621_v61 = vunpack.c.h.bf16 %v3434_v40  ;;  %v561_v17 = vunpack.c.h.bf16 %v3445_v45  ;;  %v557_v40 = vunpack.c.h.bf16 %v3462_v57  ;;  %v489_v45 = vunpack.c.h.bf16 %v3474_v38 }
  0xa7   : > { %919 = vmatpush.msra.mxu2 %v568_v39  ;;  %938 = vmatpush.msra.mxu3 %v636_v28  ;;  %v617_v39 = vunpack.c.h.bf16 %v3448_v46  ;;  %v553_v46 = vunpack.c.h.bf16 %v3480_v59  ;;  %v609_v49 = vunpack.c.h.bf16 %v3483_v18  ;;  %v677_v50 = vunpack.c.h.bf16 %v3488_v22  ;;  %v5050_v28 = vld [vmem:[#allocation22_spill] sm:$0xff] }
  0xa8   : > { %878 = vmatpush.msra.mxu0 %v444_v12  ;;  %898 = vmatpush.msra.mxu1 %v508_v26  ;;  %v485_v57 = vunpack.c.h.bf16 %v3491_v29  ;;  %v549_v58 = vunpack.c.h.bf16 %v3496_v42  ;;  %v673_v38 = vunpack.c.h.bf16 %v3504_v0  ;;  %v481_v59 = vunpack.c.h.bf16 %v3507_v1  ;;  %v5048_v12 = vld [vmem:[#allocation20_spill] sm:$0xff] }
  0xa9   : > { %984 = vmatpush.msrb.mxu2 %v629_v47  ;;  %939 = vmatpush.msra.mxu3 %v632_v52  ;;  %v545_v18 = vunpack.c.h.bf16 %v3512_v2  ;;  %v601_v22 = vunpack.c.h.bf16 %v3515_v7  ;;  %v669_v29 = vunpack.c.h.bf16 %v3520_v9  ;;  %v477_v42 = vunpack.c.h.bf16 %v3523_v13  ;;  %v5052_v26 = vld [vmem:[#allocation16_spill] sm:$0xff] }
  0xaa   : > { %879 = vmatpush.msra.mxu0 %v440_v19  ;;  %899 = vmatpush.msra.mxu1 %v504_v15  ;;  %v597_v0 = vunpack.c.h.bf16 %v3531_v51  ;;  %v665_v1 = vunpack.c.h.bf16 %v3536_v16  ;;  %v473_v2 = vunpack.c.h.bf16 %v3539_v31  ;;  %v537_v7 = vunpack.c.h.bf16 %v3544_v63  ;;  %v5055_v15 = vld [vmem:[#allocation27_spill] sm:$0xff] }
  0xab   : > { %985 = vmatpush.msrb.mxu2 %v625_v33  ;;  %1004 = vmatpush.msrb.mxu3 %v693_v14  ;;  %v593_v9 = vunpack.c.h.bf16 %v3547_v36  ;;  %v661_v13 = vunpack.c.h.bf16 %v3552_v43  ;;  %v469_v21 = vunpack.c.h.bf16 %v3555_v53  ;;  %v533_v51 = vunpack.c.h.bf16 %v3560_v62  ;;  %v5047_v62 = vld [vmem:[#allocation19_spill] sm:$0xff]  ;;  %v5054_v14 = vld [vmem:[#allocation26_spill] sm:$0xff] }
  0xac   : > { %944 = vmatpush.msrb.mxu0 %v501_v35  ;;  %964 = vmatpush.msrb.mxu1 %v565_v54  ;;  %v589_v16 = vunpack.c.h.bf16 %v3563_v11  ;;  %v657_v31 = vunpack.c.h.bf16 %v3568_v60  ;;  %v465_v63 = vunpack.c.h.bf16 %v3571_v10  ;;  %v529_v36 = vunpack.c.h.bf16 %v3576_v23  ;;  %v5049_v60 = vld [vmem:[#allocation25_spill] sm:$0xff]  ;;  %v5051_v23 = vld [vmem:[#allocation23_spill] sm:$0xff]  ;;  %v5056_v54 = vld [vmem:[#allocation28_spill] sm:$0xff] }
  0xad   : > { %986 = vmatpush.msrb.mxu2 %v621_v61  ;;  %1005 = vmatpush.msrb.mxu3 %v689_v24  ;;  %v585_v43 = vunpack.c.h.bf16 %v3579_v55  ;;  %v653_v53 = vunpack.c.h.bf16 %v3584_v8  ;;  %v461_v11 = vunpack.c.h.bf16 %v5047_v62  ;;  %v525_v52 = vunpack.c.h.bf16 %v5048_v12  ;;  %v5053_v8 = vld [vmem:[#allocation24_spill] sm:$0xff]  ;;  %v5057_v24 = vld [vmem:[#allocation17_spill] sm:$0xff] }
  0xae   : > { %945 = vmatpush.msrb.mxu0 %v497_v30  ;;  %965 = vmatpush.msrb.mxu1 %v561_v17  ;;  %v581_v10 = vunpack.c.h.bf16 %v5049_v60  ;;  %v649_v47 = vunpack.c.h.bf16 %v5050_v28  ;;  %v457_v55 = vunpack.c.h.bf16 %v5051_v23  ;;  %v521_v33 = vunpack.c.h.bf16 %v5053_v8  ;;  %v5058_v17 = vld [vmem:[#allocation29_spill] sm:$0xff] }
  0xaf   : > { %987 = vmatpush.msrb.mxu2 %v617_v39  ;;  %1006 = vmatpush.msrb.mxu3 %v685_v32  ;;  %v577_v19 = vunpack.c.h.bf16 %v5054_v14  ;;  %v645_v35 = vunpack.c.h.bf16 %v5055_v15  ;;  %v453_v61 = vunpack.c.h.bf16 %v5056_v54  ;;  %v517_v30 = vunpack.c.h.bf16 %v3624_v3  ;;  %v5059_v32 = vld [vmem:[#allocation30_spill] sm:$0xff] }
  0xb0   : > { %946 = vmatpush.msrb.mxu0 %v493_v37  ;;  %966 = vmatpush.msrb.mxu1 %v557_v40  ;;  %v573_v39 = vunpack.c.h.bf16 %v5058_v17  ;;  %v641_v37 = vunpack.c.h.bf16 %v5059_v32  ;;  %v5060_v40 = vld [vmem:[#allocation31_spill] sm:$0xff]  ;;  %v637_v3 = vunpack.c.h.bf16 %v3648_v5 }
  0xb1   : > { %988 = vmatpush.msrb.mxu2 %v613_v44  ;;  %1007 = vmatpush.msrb.mxu3 %v681_v41  ;;  %v449_v44 = vunpack.c.h.bf16 %v5060_v40  ;;  %v5061_v41 = vld [vmem:[#allocation21_spill] sm:$0xff] }
  0xb2   : > { %947 = vmatpush.msrb.mxu0 %v489_v45  ;;  %967 = vmatpush.msrb.mxu1 %v553_v46  ;;  %v513_v45 = vunpack.c.h.bf16 %v3640_v6  ;;  %v5062_v46 = vld [vmem:[#allocation32_spill] sm:$0xff]  ;;  %v441_v6 = vunpack.c.h.bf16 %v3666_v20 }
  0xb3   : > { %989 = vmatpush.msrb.mxu2 %v609_v49  ;;  %1008 = vmatpush.msrb.mxu3 %v677_v50  ;;  %v569_v49 = vunpack.c.h.bf16 %v5062_v46  ;;  %v5063_v50 = vld [vmem:[#allocation18_spill] sm:$0xff] }
  0xb4   : > { %948 = vmatpush.msrb.mxu0 %v485_v57  ;;  %968 = vmatpush.msrb.mxu1 %v549_v58  ;;  %v445_v57 = vunpack.c.h.bf16 %v3653_v48  ;;  %v509_v58 = vunpack.c.h.bf16 %v3656_v27 }
  0xb5   : > { %990 = vmatpush.msrb.mxu2 %v605_v4  ;;  %1009 = vmatpush.msrb.mxu3 %v673_v38  ;;  %v633_v4 = vunpack.c.h.bf16 %v3661_v34  ;;  %v505_v38 = vunpack.c.h.bf16 %v3671_v25 }
  0xb6   : > { %949 = vmatpush.msrb.mxu0 %v481_v59  ;;  %969 = vmatpush.msrb.mxu1 %v545_v18 }
  0xb7   : > { %991 = vmatpush.msrb.mxu2 %v601_v22  ;;  %1010 = vmatpush.msrb.mxu3 %v669_v29 }
  0xb8   : > { %950 = vmatpush.msrb.mxu0 %v477_v42  ;;  %970 = vmatpush.msrb.mxu1 %v541_v56 }
  0xb9   : > { %992 = vmatpush.msrb.mxu2 %v597_v0  ;;  %1011 = vmatpush.msrb.mxu3 %v665_v1 }
  0xba   : > { %951 = vmatpush.msrb.mxu0 %v473_v2  ;;  %971 = vmatpush.msrb.mxu1 %v537_v7 }
  0xbb   : > { %993 = vmatpush.msrb.mxu2 %v593_v9  ;;  %1012 = vmatpush.msrb.mxu3 %v661_v13 }
  0xbc   : > { %952 = vmatpush.msrb.mxu0 %v469_v21  ;;  %972 = vmatpush.msrb.mxu1 %v533_v51 }
  0xbd   : > { %994 = vmatpush.msrb.mxu2 %v589_v16  ;;  %1013 = vmatpush.msrb.mxu3 %v657_v31 }
  0xbe   : > { %953 = vmatpush.msrb.mxu0 %v465_v63  ;;  %973 = vmatpush.msrb.mxu1 %v529_v36 }
  0xbf   : > { %995 = vmatpush.msrb.mxu2 %v585_v43  ;;  %1014 = vmatpush.msrb.mxu3 %v653_v53 }
  0xc0   : > { %920 = vmatmul.f32.vlgmr.msra.gmra.mxu2 %v5052_v26  ;;  %954 = vmatpush.msrb.mxu0 %v461_v11 }
  0xc1   : > { %974 = vmatpush.msrb.mxu1 %v525_v52  ;;  %996 = vmatpush.msrb.mxu2 %v581_v10  ;;  %v308_v10 = vld [vmem:[#allocation2] sm:$0xff] }
  0xc2   : > { %1015 = vmatpush.msrb.mxu3 %v649_v47  ;;  %955 = vmatpush.msrb.mxu0 %v457_v55 }
  0xc3   : > { %940 = vmatmul.f32.vlgmr.msra.gmra.mxu3 %v5057_v24  ;;  %975 = vmatpush.msrb.mxu1 %v521_v33 }
  0xc4   : > { %997 = vmatpush.msrb.mxu2 %v577_v19  ;;  %1016 = vmatpush.msrb.mxu3 %v645_v35 }
  0xc5   : > { %880 = vmatmul.f32.vlgmr.msra.gmra.mxu0 %v5061_v41  ;;  %900 = vmatmul.f32.vlgmr.msra.gmra.mxu1 %v5063_v50 }
  0xc6   : > { %956 = vmatpush.msrb.mxu0 %v453_v61  ;;  %976 = vmatpush.msrb.mxu1 %v517_v30 }
  0xc7   : > { %998 = vmatpush.msrb.mxu2 %v573_v39  ;;  %1017 = vmatpush.msrb.mxu3 %v641_v37 }
  0xc8   : > { %957 = vmatpush.msrb.mxu0 %v449_v44  ;;  %977 = vmatpush.msrb.mxu1 %v513_v45 }
  0xc9   : > { %999 = vmatpush.msrb.mxu2 %v569_v49  ;;  %1018 = vmatpush.msrb.mxu3 %v637_v3 }
  0xca   : > { %1000 = vmatmul.f32.vlgmr.msrb.gmra.mxu2 %v5052_v26  ;;  %958 = vmatpush.msrb.mxu0 %v445_v57 }
  0xcb   : > { %978 = vmatpush.msrb.mxu1 %v509_v58  ;;  %1019 = vmatpush.msrb.mxu3 %v633_v4 }
  0xcc   : > { %1020 = vmatmul.f32.vlgmr.msrb.gmra.mxu3 %v5057_v24  ;;  %959 = vmatpush.msrb.mxu0 %v441_v6 }
  0xcd   : > { %979 = vmatpush.msrb.mxu1 %v505_v38  ;;  %960 = vmatmul.f32.vlgmr.msrb.gmra.mxu0 %v5061_v41 }
  0xce   : > { %980 = vmatmul.f32.vlgmr.msrb.gmra.mxu1 %v5063_v50 }
  0xfc   : > { %v721_v5 = vpop.f32.mrf.mxu0 }
  0xfe   : > { %v741_v27 = vpop.f32.mrf.mxu1  ;;  %v761_v48 = vpop.f32.mrf.mxu2 }
  0xff   : > { %v742_v7 = vadd.f32 %v741_v27, %v721_v5 }
 0x101   : > { %v762_v63 = vadd.f32 %v761_v48, %v742_v7 }
 0x102   : > { %v781_v34 = vpop.f32.mrf.mxu3 }
 0x103   : > { %v782_v12 = vadd.f32 %v781_v34, %v762_v63 }
 0x108   : > { %v801_v20 = vpop.f32.mrf.mxu0  ;;  %v821_v59 = vpop.f32.mrf.mxu1 }
 0x109   : > { %v841_v18 = vpop.f32.mrf.mxu2  ;;  %v822_v56 = vadd.f32 %v821_v59, %v801_v20 }
 0x10b   : > { %v842_v2 = vadd.f32 %v841_v18, %v822_v56 }
 0x10c   : > { %v861_v22 = vpop.f32.mrf.mxu3 }
 0x10d   : > { %v862_v51 = vadd.f32 %v861_v22, %v842_v2 }
 0x10f   : > { %v1028_v62 = vrot.slane %v862_v51, 6 }
 0x111   : > { %v1032_v28 = vsel %vm1031_vm0, %v782_v12, %v1028_v62 }
 0x142   : > { %v881_v25 = vpop.f32.mrf.mxu0  ;;  %v901_v29 = vpop.f32.mrf.mxu1 }
 0x143   : > { %v921_v42 = vpop.f32.mrf.mxu2  ;;  %v902_v1 = vadd.f32 %v901_v29, %v881_v25 }
 0x145   : > { %v922_v9 = vadd.f32 %v921_v42, %v902_v1 }
 0x146   : > { %v941_v0 = vpop.f32.mrf.mxu3 }
 0x147   : > { %v942_v36 = vadd.f32 %v941_v0, %v922_v9 }
 0x149   : > { %v1029_v52 = vrot.slane %v942_v36, 4 }
 0x14a   : > { %v961_v13 = vpop.f32.mrf.mxu0 }
 0x14b   : > { %v981_v21 = vpop.f32.mrf.mxu1 }
 0x14c   : > { %v982_v16 = vadd.f32 %v981_v21, %v961_v13 }
 0x14d   : > { %v1001_v31 = vpop.f32.mrf.mxu2 }
 0x14e   : > { %v1002_v43 = vadd.f32 %v1001_v31, %v982_v16 }
 0x14f   : > { %v1021_v53 = vpop.f32.mrf.mxu3 }
 0x150   : > { %v1022_v11 = vadd.f32 %v1021_v53, %v1002_v43 }
 0x152   : > { %v1030_v60 = vrot.slane %v1022_v11, 2 }
 0x154   : > { %v1034_v47 = vsel %vm1033_vm1, %v1029_v52, %v1030_v60  ;;  %1043 = sbr.rel (%p2638_p1) target bundleno = 798 (0x31e), region = 64 }
 0x155   : > { %v1036_v23 = vsel %vm1035_vm2, %v1032_v28, %v1034_v47 }
 0x156   : > { %v1038_v55 = vadd.f32 %v1036_v23, %v308_v10 }
 0x158   : > { %1039 = vst [vmem:[#allocation2] sm:$0xff] %v1038_v55 }
 0x159   : > { %v3751_v26 = vld [vmem:[#allocation8 + $0x5e0] sm:$0xff] }
 0x15a   : > { %v3753_v8 = vld [vmem:[#allocation8 + $0x1e0] sm:$0xff]  ;;  %v1692_v14 = vunpack.c.l.bf16 %v3751_v26 }
 0x15b   : > { %v3755_v33 = vld [vmem:[#allocation8 + $0x5c0] sm:$0xff]  ;;  %v1436_v19 = vunpack.c.l.bf16 %v3753_v8 }
 0x15c   : > { %v1684_v15 = vunpack.c.l.bf16 %v3755_v33  ;;  %v3760_v35 = vld [vmem:[#allocation8 + $0x7e0] sm:$0xff]  ;;  %1896 = vmatpush.msra.mxu2 %v1692_v14 }
 0x15d   : > { %v3762_v54 = vld [vmem:[#allocation8 + $0x1c0] sm:$0xff]  ;;  %v1820_v24 = vunpack.c.l.bf16 %v3760_v35  ;;  %1856 = vmatpush.msra.mxu0 %v1436_v19 }
 0x15e   : > { %v3764_v61 = vld [vmem:[#allocation8 + $0x3e0] sm:$0xff]  ;;  %v1428_v30 = vunpack.c.l.bf16 %v3762_v54  ;;  %1897 = vmatpush.msra.mxu2 %v1684_v15 }
 0x15f   : > { %v1564_v17 = vunpack.c.l.bf16 %v3764_v61  ;;  %v3769_v39 = vld [vmem:[#allocation8 + $0x5a0] sm:$0xff]  ;;  %1916 = vmatpush.msra.mxu3 %v1820_v24 }
 0x160   : > { %v3771_v32 = vld [vmem:[#allocation8 + $0x7c0] sm:$0xff]  ;;  %v1676_v40 = vunpack.c.l.bf16 %v3769_v39  ;;  %1857 = vmatpush.msra.mxu0 %v1428_v30 }
 0x161   : > { %v3773_v37 = vld [vmem:[#allocation8 + $0x1a0] sm:$0xff]  ;;  %v1812_v44 = vunpack.c.l.bf16 %v3771_v32  ;;  %1876 = vmatpush.msra.mxu1 %v1564_v17 }
 0x162   : > { %v1420_v41 = vunpack.c.l.bf16 %v3773_v37  ;;  %v3778_v45 = vld [vmem:[#allocation8 + $0x3c0] sm:$0xff]  ;;  %1898 = vmatpush.msra.mxu2 %v1676_v40 }
 0x163   : > { %v3780_v46 = vld [vmem:[#allocation8 + $0x580] sm:$0xff]  ;;  %v1556_v50 = vunpack.c.l.bf16 %v3778_v45  ;;  %1917 = vmatpush.msra.mxu3 %v1812_v44 }
 0x164   : > { %v3782_v49 = vld [vmem:[#allocation8 + $0x7a0] sm:$0xff]  ;;  %v1668_v6 = vunpack.c.l.bf16 %v3780_v46  ;;  %1858 = vmatpush.msra.mxu0 %v1420_v41 }
 0x165   : > { %v1804_v3 = vunpack.c.l.bf16 %v3782_v49  ;;  %v3786_v57 = vld [vmem:[#allocation8 + $0x180] sm:$0xff]  ;;  %1877 = vmatpush.msra.mxu1 %v1556_v50 }
 0x166   : > { %v3788_v58 = vld [vmem:[#allocation8 + $0x3a0] sm:$0xff]  ;;  %v1412_v38 = vunpack.c.l.bf16 %v3786_v57  ;;  %1899 = vmatpush.msra.mxu2 %v1668_v6 }
 0x167   : > { %v3790_v4 = vld [vmem:[#allocation8 + $0x560] sm:$0xff]  ;;  %v1548_v5 = vunpack.c.l.bf16 %v3788_v58  ;;  %1918 = vmatpush.msra.mxu3 %v1804_v3 }
 0x168   : > { %v3795_v27 = vld [vmem:[#allocation8 + $0x780] sm:$0xff]  ;;  %v1660_v29 = vunpack.c.l.bf16 %v3790_v4  ;;  %1859 = vmatpush.msra.mxu0 %v1412_v38 }
 0x169   : > { %v3797_v48 = vld [vmem:[#allocation8 + $0x160] sm:$0xff]  ;;  %v1796_v20 = vunpack.c.l.bf16 %v3795_v27  ;;  %1878 = vmatpush.msra.mxu1 %v1548_v5 }
 0x16a   : > { %v3799_v34 = vld [vmem:[#allocation8 + $0x380] sm:$0xff]  ;;  %v1404_v42 = vunpack.c.l.bf16 %v3797_v48  ;;  %1900 = vmatpush.msra.mxu2 %v1660_v29 }
 0x16b   : > { %v1540_v59 = vunpack.c.l.bf16 %v3799_v34  ;;  %v3803_v18 = vld [vmem:[#allocation8 + $0x540] sm:$0xff]  ;;  %1919 = vmatpush.msra.mxu3 %v1796_v20 }
 0x16c   : > { %v3805_v22 = vld [vmem:[#allocation8 + $0x760] sm:$0xff]  ;;  %v1652_v21 = vunpack.c.l.bf16 %v3803_v18  ;;  %1860 = vmatpush.msra.mxu0 %v1404_v42 }
 0x16d   : > { %v3807_v25 = vld [vmem:[#allocation8 + $0x140] sm:$0xff]  ;;  %v1788_v1 = vunpack.c.l.bf16 %v3805_v22  ;;  %1879 = vmatpush.msra.mxu1 %v1540_v59 }
 0x16e   : > { %v3811_v56 = vld [vmem:[#allocation8 + $0x360] sm:$0xff]  ;;  %v1396_v51 = vunpack.c.l.bf16 %v3807_v25  ;;  %1901 = vmatpush.msra.mxu2 %v1652_v21 }
 0x16f   : > { %v3813_v0 = vld [vmem:[#allocation8 + $0x740] sm:$0xff]  ;;  %v1532_v2 = vunpack.c.l.bf16 %v3811_v56  ;;  %1920 = vmatpush.msra.mxu3 %v1788_v1 }
 0x170   : > { %v3817_v7 = vld [vmem:[#allocation8 + $0x520] sm:$0xff]  ;;  %v1780_v63 = vunpack.c.l.bf16 %v3813_v0  ;;  %1861 = vmatpush.msra.mxu0 %v1396_v51 }
 0x171   : > { %v3819_v9 = vld [vmem:[#allocation8 + $0x120] sm:$0xff]  ;;  %v1644_v62 = vunpack.c.l.bf16 %v3817_v7  ;;  %1880 = vmatpush.msra.mxu1 %v1532_v2 }
 0x172   : > { %v3821_v13 = vld [vmem:[#allocation8 + $0x340] sm:$0xff]  ;;  %v1388_v11 = vunpack.c.l.bf16 %v3819_v9  ;;  %1921 = vmatpush.msra.mxu3 %v1780_v63 }
 0x173   : > { %v3825_v16 = vld [vmem:[#allocation8 + $0x720] sm:$0xff]  ;;  %v1524_v36 = vunpack.c.l.bf16 %v3821_v13  ;;  %1902 = vmatpush.msra.mxu2 %v1644_v62 }
 0x174   : > { %v3827_v31 = vld [vmem:[#allocation8 + $0x320] sm:$0xff]  ;;  %v1772_v60 = vunpack.c.l.bf16 %v3825_v16  ;;  %1862 = vmatpush.msra.mxu0 %v1388_v11 }
 0x175   : > { %v3831_v43 = vld [vmem:[#allocation8 + $0x500] sm:$0xff]  ;;  %v1516_v10 = vunpack.c.l.bf16 %v3827_v31  ;;  %1881 = vmatpush.msra.mxu1 %v1524_v36 }
 0x176   : > { %v3833_v53 = vld [vmem:[#allocation8 + $0x100] sm:$0xff]  ;;  %v1636_v23 = vunpack.c.l.bf16 %v3831_v43  ;;  %1922 = vmatpush.msra.mxu3 %v1772_v60 }
 0x177   : > { %v3837_v12 = vld [vmem:[#allocation8 + $0x700] sm:$0xff]  ;;  %v1380_v55 = vunpack.c.l.bf16 %v3833_v53  ;;  %1882 = vmatpush.msra.mxu1 %v1516_v10 }
 0x178   : > { %v3839_v52 = vld [vmem:[#allocation8 + $0x300] sm:$0xff]  ;;  %v1764_v15 = vunpack.c.l.bf16 %v3837_v12  ;;  %1903 = vmatpush.msra.mxu2 %v1636_v23 }
 0x179   : > { %v3843_v28 = vld [vmem:[#allocation8 + $0x4e0] sm:$0xff]  ;;  %v1508_v24 = vunpack.c.l.bf16 %v3839_v52  ;;  %1863 = vmatpush.msra.mxu0 %v1380_v55 }
 0x17a   : > { %v3845_v47 = vld [vmem:[#allocation8 + $0xe0] sm:$0xff]  ;;  %v1628_v40 = vunpack.c.l.bf16 %v3843_v28  ;;  %1923 = vmatpush.msra.mxu3 %v1764_v15 }
 0x17b   : > { %v3849_v14 = vld [vmem:[#allocation8 + $0x6e0] sm:$0xff]  ;;  %v1372_v44 = vunpack.c.l.bf16 %v3845_v47  ;;  %1883 = vmatpush.msra.mxu1 %v1508_v24 }
 0x17c   : > { %v3851_v19 = vld [vmem:[#allocation8 + $0x2e0] sm:$0xff]  ;;  %v1756_v3 = vunpack.c.l.bf16 %v3849_v14  ;;  %1904 = vmatpush.msra.mxu2 %v1628_v40 }
 0x17d   : > { %v3855_v30 = vld [vmem:[#allocation8 + $0x4c0] sm:$0xff]  ;;  %v1500_v6 = vunpack.c.l.bf16 %v3851_v19  ;;  %1864 = vmatpush.msra.mxu0 %v1372_v44 }
 0x17e   : > { %v3857_v17 = vld [vmem:[#allocation8 + $0xc0] sm:$0xff]  ;;  %v1620_v20 = vunpack.c.l.bf16 %v3855_v30  ;;  %1924 = vmatpush.msra.mxu3 %v1756_v3 }
 0x17f   : > { %v3861_v41 = vld [vmem:[#allocation8 + $0x6c0] sm:$0xff]  ;;  %v1364_v59 = vunpack.c.l.bf16 %v3857_v17  ;;  %1884 = vmatpush.msra.mxu1 %v1500_v6 }
 0x180   : > { %v3863_v50 = vld [vmem:[#allocation8 + $0x2c0] sm:$0xff]  ;;  %v1748_v1 = vunpack.c.l.bf16 %v3861_v41  ;;  %1905 = vmatpush.msra.mxu2 %v1620_v20 }
 0x181   : > { %5064 = vst [vmem:[#allocation33_spill] sm:$0xff] %v3863_v50  ;;  %v3867_v38 = vld [vmem:[#allocation8 + $0x4a0] sm:$0xff]  ;;  %v1492_v2 = vunpack.c.l.bf16 %v3863_v50  ;;  %1865 = vmatpush.msra.mxu0 %v1364_v59  ;;  %v1045_v50 = vld [vmem:[#allocation6] sm:$0xf] }
 0x182   : > { %v3869_v5 = vld [vmem:[#allocation8 + $0xa0] sm:$0xff]  ;;  %v1612_v63 = vunpack.c.l.bf16 %v3867_v38  ;;  %1925 = vmatpush.msra.mxu3 %v1748_v1 }
 0x183   : > { %5065 = vst [vmem:[#allocation34_spill] sm:$0xff] %v3869_v5  ;;  %v3873_v29 = vld [vmem:[#allocation8 + $0x6a0] sm:$0xff]  ;;  %v1356_v36 = vunpack.c.l.bf16 %v3869_v5  ;;  %1885 = vmatpush.msra.mxu1 %v1492_v2  ;;  %v1050_v5 = vperm.slane %v1045_v50, 3 }
 0x184   : > { %5066 = vst [vmem:[#allocation35_spill] sm:$0xff] %v3873_v29  ;;  %v3875_v42 = vld [vmem:[#allocation8 + $0x2a0] sm:$0xff]  ;;  %v1740_v60 = vunpack.c.l.bf16 %v3873_v29  ;;  %1906 = vmatpush.msra.mxu2 %v1612_v63 }
 0x185   : > { %5067 = vst [vmem:[#allocation36_spill] sm:$0xff] %v3875_v42  ;;  %v3879_v21 = vld [vmem:[#allocation8 + $0x480] sm:$0xff]  ;;  %v1484_v10 = vunpack.c.l.bf16 %v3875_v42  ;;  %1866 = vmatpush.msra.mxu0 %v1356_v36 }
 0x186   : > { %5068 = vst [vmem:[#allocation37_spill] sm:$0xff] %v3879_v21  ;;  %v3881_v51 = vld [vmem:[#allocation8 + $0x80] sm:$0xff]  ;;  %v1604_v15 = vunpack.c.l.bf16 %v3879_v21  ;;  %1926 = vmatpush.msra.mxu3 %v1740_v60 }
 0x187   : > { %5069 = vst [vmem:[#allocation38_spill] sm:$0xff] %v3881_v51  ;;  %v3885_v62 = vld [vmem:[#allocation8 + $0x680] sm:$0xff]  ;;  %v1348_v24 = vunpack.c.l.bf16 %v3881_v51  ;;  %1886 = vmatpush.msra.mxu1 %v1484_v10 }
 0x188   : > { %5070 = vst [vmem:[#allocation39_spill] sm:$0xff] %v3885_v62  ;;  %v3887_v11 = vld [vmem:[#allocation8 + $0x280] sm:$0xff]  ;;  %v1732_v3 = vunpack.c.l.bf16 %v3885_v62  ;;  %1907 = vmatpush.msra.mxu2 %v1604_v15 }
 0x189   : > { %5071 = vst [vmem:[#allocation40_spill] sm:$0xff] %v3887_v11  ;;  %v3891_v23 = vld [vmem:[#allocation8 + $0x460] sm:$0xff]  ;;  %v1476_v6 = vunpack.c.l.bf16 %v3887_v11  ;;  %1867 = vmatpush.msra.mxu0 %v1348_v24 }
 0x18a   : > { %5072 = vst [vmem:[#allocation41_spill] sm:$0xff] %v3891_v23  ;;  %v3893_v55 = vld [vmem:[#allocation8 + $0x60] sm:$0xff]  ;;  %v1596_v20 = vunpack.c.l.bf16 %v3891_v23  ;;  %1927 = vmatpush.msra.mxu3 %v1732_v3 }
 0x18b   : > { %5073 = vst [vmem:[#allocation42_spill] sm:$0xff] %v3893_v55  ;;  %v3897_v40 = vld [vmem:[#allocation8 + $0x660] sm:$0xff]  ;;  %v1340_v59 = vunpack.c.l.bf16 %v3893_v55  ;;  %1887 = vmatpush.msra.mxu1 %v1476_v6  ;;  %v1047_v6 = vperm.slane %v1045_v50, 0 }
 0x18c   : > { %5074 = vst [vmem:[#allocation43_spill] sm:$0xff] %v3897_v40  ;;  %v3899_v44 = vld [vmem:[#allocation8 + $0x260] sm:$0xff]  ;;  %v1724_v2 = vunpack.c.l.bf16 %v3897_v40  ;;  %1908 = vmatpush.msra.mxu2 %v1596_v20 }
 0x18d   : > { %5075 = vst [vmem:[#allocation44_spill] sm:$0xff] %v3899_v44  ;;  %v3903_v42 = vld [vmem:[#allocation8 + $0x440] sm:$0xff]  ;;  %v1468_v11 = vunpack.c.l.bf16 %v3899_v44  ;;  %1868 = vmatpush.msra.mxu0 %v1340_v59  ;;  %v1693_v59 = vunpack.c.h.bf16 %v3751_v26  ;;  %v1685_v26 = vunpack.c.h.bf16 %v3755_v33  ;;  %v1813_v33 = vunpack.c.h.bf16 %v3771_v32 }
 0x18e   : > { %5076 = vst [vmem:[#allocation45_spill] sm:$0xff] %v3903_v42  ;;  %v3905_v29 = vld [vmem:[#allocation8 + $0x40] sm:$0xff]  ;;  %v1588_v55 = vunpack.c.l.bf16 %v3903_v42  ;;  %1928 = vmatpush.msra.mxu3 %v1724_v2  ;;  %v1549_v32 = vunpack.c.h.bf16 %v3788_v58  ;;  %v1397_v58 = vunpack.c.h.bf16 %v3807_v25  ;;  %v1773_v25 = vunpack.c.h.bf16 %v3825_v16 }
 0x18f   : > { %5077 = vst [vmem:[#allocation46_spill] sm:$0xff] %v3905_v29  ;;  %v3909_v51 = vld [vmem:[#allocation8 + $0x420] sm:$0xff]  ;;  %v1332_v23 = vunpack.c.l.bf16 %v3905_v29  ;;  %1888 = vmatpush.msra.mxu1 %v1468_v11  ;;  %v1621_v16 = vunpack.c.h.bf16 %v3855_v30 }
 0x190   : > { %5078 = vst [vmem:[#allocation47_spill] sm:$0xff] %v3909_v51  ;;  %v3911_v21 = vld [vmem:[#allocation8 + $0x640] sm:$0xff]  ;;  %v1580_v15 = vunpack.c.l.bf16 %v3909_v51  ;;  %1909 = vmatpush.msra.mxu2 %v1588_v55  ;;  %v1044_v55 = vld [vmem:[#allocation2] sm:$0xff] }
 0x191   : > { %5079 = vst [vmem:[#allocation48_spill] sm:$0xff] %v3911_v21  ;;  %v3913_v1 = vld [vmem:[#allocation8 + $0x240] sm:$0xff]  ;;  %v1716_v60 = vunpack.c.l.bf16 %v3911_v21  ;;  %v1049_v21 = vperm.slane %v1045_v50, 2  ;;  %1869 = vmatpush.msra.mxu0 %v1332_v23  ;;  %v1821_v23 = vunpack.c.h.bf16 %v3760_v35  ;;  %v1677_v35 = vunpack.c.h.bf16 %v3769_v39 }
 0x192   : > { %5080 = vst [vmem:[#allocation49_spill] sm:$0xff] %v3913_v1  ;;  %v3917_v62 = vld [vmem:[#allocation8 + $0x20] sm:$0xff]  ;;  %v1460_v10 = vunpack.c.l.bf16 %v3913_v1  ;;  %v1048_v1 = vperm.slane %v1045_v50, 1  ;;  %1910 = vmatpush.msra.mxu2 %v1580_v15  ;;  %v1437_v50 = vunpack.c.h.bf16 %v3753_v8  ;;  %v1413_v39 = vunpack.c.h.bf16 %v3786_v57 }
 0x193   : > { %5081 = vst [vmem:[#allocation50_spill] sm:$0xff] %v3917_v62  ;;  %v3919_v63 = vld [vmem:[#allocation8 + $0x620] sm:$0xff]  ;;  %v1324_v24 = vunpack.c.l.bf16 %v3917_v62  ;;  %1929 = vmatpush.msra.mxu3 %v1716_v60  ;;  %v1052_v11 = vrot.slane %v1049_v21, 4  ;;  %v1565_v21 = vunpack.c.h.bf16 %v3764_v61  ;;  %v1805_v61 = vunpack.c.h.bf16 %v3782_v49 }
 0x194   : > { %5082 = vst [vmem:[#allocation51_spill] sm:$0xff] %v3919_v63  ;;  %v3921_v36 = vld [vmem:[#allocation8 + $0x220] sm:$0xff]  ;;  %v1708_v42 = vunpack.c.l.bf16 %v3919_v63  ;;  %1889 = vmatpush.msra.mxu1 %v1460_v10  ;;  %v1051_v2 = vrot.slane %v1048_v1, 6  ;;  %v1053_v63 = vrot.slane %v1050_v5, 2  ;;  %v1429_v5 = vunpack.c.h.bf16 %v3762_v54 }
 0x195   : > { %5083 = vst [vmem:[#allocation52_spill] sm:$0xff] %v3921_v36  ;;  %v3927_v44 = vld [vmem:[#allocation8 + $0x400] sm:$0xff]  ;;  %v1452_v29 = vunpack.c.l.bf16 %v3921_v36  ;;  %1870 = vmatpush.msra.mxu0 %v1324_v24  ;;  %v1557_v1 = vunpack.c.h.bf16 %v3778_v45  ;;  %v1669_v54 = vunpack.c.h.bf16 %v3780_v46  ;;  %v1405_v45 = vunpack.c.h.bf16 %v3797_v48  ;;  %v5088_v24 = vld [vmem:[#allocation35_spill] sm:$0xff] }
 0x196   : > { %v3929_v40 = vld [vmem:[#allocation8] sm:$0xff]  ;;  %v1572_v20 = vunpack.c.l.bf16 %v3927_v44  ;;  %1930 = vmatpush.msra.mxu3 %v1708_v42  ;;  %v1054_v60 = vsel %vm1031_vm0, %v1047_v6, %v1051_v2  ;;  %v1055_v10 = vsel %vm1033_vm1, %v1052_v11, %v1053_v63  ;;  %v1421_v42 = vunpack.c.h.bf16 %v3773_v37  ;;  %v5093_v11 = vld [vmem:[#allocation39_spill] sm:$0xff] }
 0x197   : > { %5084 = vst [vmem:[#allocation53_spill] sm:$0xff] %v3929_v40  ;;  %v3935_v3 = vld [vmem:[#allocation8 + $0x600] sm:$0xff]  ;;  %v1316_v62 = vunpack.c.l.bf16 %v3929_v40  ;;  %1890 = vmatpush.msra.mxu1 %v1452_v29  ;;  %v1056_v8 = vsel %vm1035_vm2, %v1054_v60, %v1055_v10  ;;  %v1661_v63 = vunpack.c.h.bf16 %v3790_v4  ;;  %v1797_v37 = vunpack.c.h.bf16 %v3795_v27  ;;  %v5097_v10 = vld [vmem:[#allocation40_spill] sm:$0xff] }
 0x198   : > { %v3940_v51 = vld [vmem:[#allocation8 + $0x200] sm:$0xff]  ;;  %v1700_v36 = vunpack.c.l.bf16 %v3935_v3  ;;  %1911 = vmatpush.msra.mxu2 %v1572_v20  ;;  %v1058_v29 = vadd.f32 %v1056_v8, %v1044_v55  ;;  %v1541_v46 = vunpack.c.h.bf16 %v3799_v34  ;;  %v1653_v49 = vunpack.c.h.bf16 %v3803_v18  ;;  %v5095_v55 = vld [vmem:[#allocation42_spill] sm:$0xff] }
 0x199   : > { %v1444_v40 = vunpack.c.l.bf16 %v3940_v51  ;;  %1871 = vmatpush.msra.mxu0 %v1316_v62  ;;  %v1789_v57 = vunpack.c.h.bf16 %v3805_v22  ;;  %v1533_v4 = vunpack.c.h.bf16 %v3811_v56  ;;  %v1645_v27 = vunpack.c.h.bf16 %v3817_v7 }
 0x19a   : > { %1976 = vmatpush.msrb.mxu2 %v1693_v59  ;;  %1931 = vmatpush.msra.mxu3 %v1700_v36  ;;  %v1059_v62 = vmax.f32 %v1058_v29, 0.0  ;;  %v1781_v48 = vunpack.c.h.bf16 %v3813_v0  ;;  %v1389_v34 = vunpack.c.h.bf16 %v3819_v9  ;;  %v1525_v18 = vunpack.c.h.bf16 %v3821_v13  ;;  %v5086_v36 = vld [vmem:[#allocation33_spill] sm:$0xff] }
 0x19b   : > { %1936 = vmatpush.msrb.mxu0 %v1437_v50  ;;  %1891 = vmatpush.msra.mxu1 %v1444_v40  ;;  %v1637_v22 = vunpack.c.h.bf16 %v3831_v43  ;;  %v1381_v56 = vunpack.c.h.bf16 %v3833_v53  ;;  %v1517_v7 = vunpack.c.h.bf16 %v3827_v31  ;;  %v1629_v0 = vunpack.c.h.bf16 %v3843_v28  ;;  %v5092_v59 = vld [vmem:[#allocation41_spill] sm:$0xff] }
 0x19c   : > { %1996 = vmatpush.msrb.mxu3 %v1821_v23  ;;  %1977 = vmatpush.msrb.mxu2 %v1685_v26  ;;  %1847 = vst [vmem:[#allocation1] ss:$4 sm:$0xff] %v1059_v62  ;;  %v1765_v9 = vunpack.c.h.bf16 %v3837_v12  ;;  %v1373_v13 = vunpack.c.h.bf16 %v3845_v47  ;;  %v1509_v43 = vunpack.c.h.bf16 %v3839_v52  ;;  %v1757_v53 = vunpack.c.h.bf16 %v3849_v14  ;;  %v5085_v52 = vld [vmem:[#allocation34_spill] sm:$0xff]  ;;  %v5087_v14 = vld [vmem:[#allocation37_spill] sm:$0xff]  ;;  %v5103_v62 = vld [vmem:[#allocation47_spill] sm:$0xff] }
 0x19d   : > { %1937 = vmatpush.msrb.mxu0 %v1429_v5  ;;  %1956 = vmatpush.msrb.mxu1 %v1565_v21  ;;  %v1365_v31 = vunpack.c.h.bf16 %v3857_v17  ;;  %v1501_v28 = vunpack.c.h.bf16 %v3851_v19  ;;  %v1613_v12 = vunpack.c.h.bf16 %v3867_v38  ;;  %v1749_v47 = vunpack.c.h.bf16 %v3861_v41  ;;  %v5089_v19 = vld [vmem:[#allocation38_spill] sm:$0xff]  ;;  %v5091_v41 = vld [vmem:[#allocation36_spill] sm:$0xff]  ;;  %v5098_v21 = vld [vmem:[#allocation45_spill] sm:$0xff] }
 0x19e   : > { %1978 = vmatpush.msrb.mxu2 %v1677_v35  ;;  %1997 = vmatpush.msrb.mxu3 %v1813_v33  ;;  %v1357_v40 = vunpack.c.h.bf16 %v5085_v52  ;;  %v1493_v30 = vunpack.c.h.bf16 %v5086_v36  ;;  %v1605_v15 = vunpack.c.h.bf16 %v5087_v14  ;;  %v1741_v17 = vunpack.c.h.bf16 %v5088_v24  ;;  %v5099_v35 = vld [vmem:[#allocation43_spill] sm:$0xff]  ;;  %v4046_v52 = vld [vmem:[#allocation8 + $0x588] sm:$0xff] }
 0x19f   : > { %1938 = vmatpush.msrb.mxu0 %v1421_v42  ;;  %1957 = vmatpush.msrb.mxu1 %v1557_v1  ;;  %v1349_v6 = vunpack.c.h.bf16 %v5089_v19  ;;  %v1485_v20 = vunpack.c.h.bf16 %v5091_v41  ;;  %v1597_v2 = vunpack.c.h.bf16 %v5092_v59  ;;  %v1733_v50 = vunpack.c.h.bf16 %v5093_v11  ;;  %v5101_v42 = vld [vmem:[#allocation46_spill] sm:$0xff] }
 0x1a0   : > { %1979 = vmatpush.msrb.mxu2 %v1669_v54  ;;  %1998 = vmatpush.msrb.mxu3 %v1805_v61  ;;  %v1341_v26 = vunpack.c.h.bf16 %v5095_v55  ;;  %v1477_v5 = vunpack.c.h.bf16 %v5097_v10  ;;  %v1589_v8 = vunpack.c.h.bf16 %v5098_v21  ;;  %v1725_v33 = vunpack.c.h.bf16 %v5099_v35  ;;  %v5102_v54 = vld [vmem:[#allocation44_spill] sm:$0xff]  ;;  %v4050_v36 = vld [vmem:[#allocation8 + $0x3c8] sm:$0xff] }
 0x1a1   : > { %1939 = vmatpush.msrb.mxu0 %v1413_v39  ;;  %1958 = vmatpush.msrb.mxu1 %v1549_v32  ;;  %v1333_v1 = vunpack.c.h.bf16 %v5101_v42  ;;  %v1469_v61 = vunpack.c.h.bf16 %v5102_v54  ;;  %v1581_v39 = vunpack.c.h.bf16 %v5103_v62  ;;  %v5104_v32 = vld [vmem:[#allocation48_spill] sm:$0xff]  ;;  %v4059_v24 = vld [vmem:[#allocation8 + $0x568] sm:$0xff]  ;;  %v1670_v19 = vunpack.c.l.bf16 %v4046_v52 }
 0x1a2   : > { %1980 = vmatpush.msrb.mxu2 %v1661_v63  ;;  %1999 = vmatpush.msrb.mxu3 %v1797_v37  ;;  %v1717_v63 = vunpack.c.h.bf16 %v5104_v32  ;;  %v5105_v37 = vld [vmem:[#allocation50_spill] sm:$0xff]  ;;  %v1662_v55 = vunpack.c.l.bf16 %v4059_v24 }
 0x1a3   : > { %1940 = vmatpush.msrb.mxu0 %v1405_v45  ;;  %1959 = vmatpush.msrb.mxu1 %v1541_v46  ;;  %v3991_v38 = vld.sshfl [vmem:[#allocation1 + $0x10] sm:$0xff pattern:$0x73625140]  ;;  %v3996_v23 = vld.sshfl [vmem:[#allocation1] sm:$0xff pattern:$0x73625140]  ;;  %v1325_v45 = vunpack.c.h.bf16 %v5105_v37 }
 0x1a4   : > { %1981 = vmatpush.msrb.mxu2 %v1653_v49  ;;  %2000 = vmatpush.msrb.mxu3 %v1789_v57  ;;  %5090 = vst [vmem:[#allocation34_spill] sm:$0xff] %v3991_v38  ;;  %v4000_v60 = vld.sshfl [vmem:[#allocation1 + $0x18] sm:$0xff pattern:$0x73625140] }
 0x1a5   : > { %1941 = vmatpush.msrb.mxu0 %v1397_v58  ;;  %1960 = vmatpush.msrb.mxu1 %v1533_v4  ;;  %5094 = vst [vmem:[#allocation33_spill] sm:$0xff] %v3996_v23  ;;  %v4006_v29 = vld.sshfl [vmem:[#allocation1 + $0x8] sm:$0xff pattern:$0x73625140]  ;;  %v5106_v46 = vld [vmem:[#allocation49_spill] sm:$0xff]  ;;  %v4015_v57 = vld [vmem:[#allocation8 + $0x5e8] sm:$0xff]  ;;  %v1573_v58 = vunpack.c.h.bf16 %v3927_v44  ;;  %v1701_v44 = vunpack.c.h.bf16 %v3935_v3  ;;  %v1445_v3 = vunpack.c.h.bf16 %v3940_v51 }
 0x1a6   : > { %1982 = vmatpush.msrb.mxu2 %v1645_v27  ;;  %2001 = vmatpush.msrb.mxu3 %v1781_v48  ;;  %5096 = vst [vmem:[#allocation37_spill] sm:$0xff] %v4000_v60  ;;  %v1461_v49 = vunpack.c.h.bf16 %v5106_v46  ;;  %v5107_v4 = vld [vmem:[#allocation51_spill] sm:$0xff]  ;;  %v5108_v48 = vld [vmem:[#allocation53_spill] sm:$0xff]  ;;  %v4065_v41 = vld [vmem:[#allocation8 + $0x788] sm:$0xff] }
 0x1a7   : > { %1942 = vmatpush.msrb.mxu0 %v1389_v34  ;;  %1961 = vmatpush.msrb.mxu1 %v1525_v18  ;;  %5100 = vst [vmem:[#allocation35_spill] sm:$0xff] %v4006_v29  ;;  %v1709_v27 = vunpack.c.h.bf16 %v5107_v4  ;;  %v1317_v34 = vunpack.c.h.bf16 %v5108_v48  ;;  %v4021_v18 = vld [vmem:[#allocation8 + $0x1e8] sm:$0xff]  ;;  %v1798_v21 = vunpack.c.l.bf16 %v4065_v41 }
 0x1a8   : > { %1983 = vmatpush.msrb.mxu2 %v1637_v22  ;;  %2002 = vmatpush.msrb.mxu3 %v1773_v25  ;;  %v1694_v22 = vunpack.c.l.bf16 %v4015_v57  ;;  %v5109_v25 = vld [vmem:[#allocation52_spill] sm:$0xff]  ;;  %v4071_v11 = vld [vmem:[#allocation8 + $0x548] sm:$0xff] }
 0x1a9   : > { %1943 = vmatpush.msrb.mxu0 %v1381_v56  ;;  %1962 = vmatpush.msrb.mxu1 %v1517_v7  ;;  %v1453_v56 = vunpack.c.h.bf16 %v5109_v25  ;;  %v4025_v7 = vld [vmem:[#allocation8 + $0x5c8] sm:$0xff]  ;;  %v1654_v42 = vunpack.c.l.bf16 %v4071_v11 }
 0x1aa   : > { %1984 = vmatpush.msrb.mxu2 %v1629_v0  ;;  %2003 = vmatpush.msrb.mxu3 %v1765_v9  ;;  %v4027_v0 = vld [vmem:[#allocation8 + $0x7e8] sm:$0xff] }
 0x1ab   : > { %1944 = vmatpush.msrb.mxu0 %v1373_v13  ;;  %1963 = vmatpush.msrb.mxu1 %v1509_v43  ;;  %v4030_v9 = vld [vmem:[#allocation8 + $0x1c8] sm:$0xff]  ;;  %v1438_v13 = vunpack.c.l.bf16 %v4021_v18 }
 0x1ac   : > { %1985 = vmatpush.msrb.mxu2 %v1621_v16  ;;  %2004 = vmatpush.msrb.mxu3 %v1757_v53  ;;  %v4033_v43 = vld [vmem:[#allocation8 + $0x5a8] sm:$0xff]  ;;  %v1686_v16 = vunpack.c.l.bf16 %v4025_v7  ;;  %v1822_v53 = vunpack.c.l.bf16 %v4027_v0 }
 0x1ad   : > { %1945 = vmatpush.msrb.mxu0 %v1365_v31  ;;  %1964 = vmatpush.msrb.mxu1 %v1501_v28  ;;  %v4038_v31 = vld [vmem:[#allocation8 + $0x3e8] sm:$0xff] }
 0x1ae   : > { %1986 = vmatpush.msrb.mxu2 %v1613_v12  ;;  %2005 = vmatpush.msrb.mxu3 %v1749_v47  ;;  %v4040_v28 = vld [vmem:[#allocation8 + $0x7c8] sm:$0xff]  ;;  %v1430_v12 = vunpack.c.l.bf16 %v4030_v9  ;;  %v1566_v51 = vunpack.c.l.bf16 %v4038_v31 }
 0x1af   : > { %1946 = vmatpush.msrb.mxu0 %v1357_v40  ;;  %1965 = vmatpush.msrb.mxu1 %v1493_v30  ;;  %v4044_v47 = vld [vmem:[#allocation8 + $0x1a8] sm:$0xff]  ;;  %v1678_v40 = vunpack.c.l.bf16 %v4033_v43  ;;  %v1814_v14 = vunpack.c.l.bf16 %v4040_v28 }
 0x1b0   : > { %1987 = vmatpush.msrb.mxu2 %v1605_v15  ;;  %2006 = vmatpush.msrb.mxu3 %v1741_v17  ;;  %v4052_v30 = vld [vmem:[#allocation8 + $0x7a8] sm:$0xff]  ;;  %v1422_v17 = vunpack.c.l.bf16 %v4044_v47 }
 0x1b1   : > { %1912 = vmatmul.f32.vlgmr.msra.gmra.mxu2 %v3991_v38  ;;  %1947 = vmatpush.msrb.mxu0 %v1349_v6  ;;  %v4057_v15 = vld [vmem:[#allocation8 + $0x188] sm:$0xff]  ;;  %v1806_v59 = vunpack.c.l.bf16 %v4052_v30 }
 0x1b2   : > { %1966 = vmatpush.msrb.mxu1 %v1485_v20  ;;  %1988 = vmatpush.msrb.mxu2 %v1597_v2  ;;  %v4063_v6 = vld [vmem:[#allocation8 + $0x3a8] sm:$0xff]  ;;  %v1558_v20 = vunpack.c.l.bf16 %v4050_v36 }
 0x1b3   : > { %2007 = vmatpush.msrb.mxu3 %v1733_v50  ;;  %1872 = vmatmul.f32.vlgmr.msra.gmra.mxu0 %v3996_v23  ;;  %v4069_v2 = vld [vmem:[#allocation8 + $0x168] sm:$0xff]  ;;  %v1414_v50 = vunpack.c.l.bf16 %v4057_v15 }
 0x1b4   : > { %1932 = vmatmul.f32.vlgmr.msra.gmra.mxu3 %v4000_v60  ;;  %1948 = vmatpush.msrb.mxu0 %v1341_v26  ;;  %v4076_v26 = vld [vmem:[#allocation8 + $0x388] sm:$0xff] }
 0x1b5   : > { %1967 = vmatpush.msrb.mxu1 %v1477_v5  ;;  %1989 = vmatpush.msrb.mxu2 %v1589_v8  ;;  %v4078_v10 = vld [vmem:[#allocation8 + $0x768] sm:$0xff]  ;;  %v1550_v5 = vunpack.c.l.bf16 %v4063_v6 }
 0x1b6   : > { %2008 = vmatpush.msrb.mxu3 %v1725_v33  ;;  %1892 = vmatmul.f32.vlgmr.msra.gmra.mxu1 %v4006_v29  ;;  %v4082_v8 = vld [vmem:[#allocation8 + $0x148] sm:$0xff]  ;;  %v1406_v33 = vunpack.c.l.bf16 %v4069_v2  ;;  %v1790_v62 = vunpack.c.l.bf16 %v4078_v10 }
 0x1b7   : > { %1949 = vmatpush.msrb.mxu0 %v1333_v1  ;;  %1968 = vmatpush.msrb.mxu1 %v1469_v61  ;;  %v4084_v35 = vld [vmem:[#allocation8 + $0x528] sm:$0xff]  ;;  %v1542_v61 = vunpack.c.l.bf16 %v4076_v26 }
 0x1b8   : > { %1990 = vmatpush.msrb.mxu2 %v1581_v39  ;;  %2009 = vmatpush.msrb.mxu3 %v1717_v63  ;;  %v4088_v1 = vld [vmem:[#allocation8 + $0x368] sm:$0xff]  ;;  %v1398_v63 = vunpack.c.l.bf16 %v4082_v8  ;;  %v1646_v37 = vunpack.c.l.bf16 %v4084_v35 }
 0x1b9   : > { %1950 = vmatpush.msrb.mxu0 %v1325_v45  ;;  %1969 = vmatpush.msrb.mxu1 %v1461_v49  ;;  %v4090_v54 = vld [vmem:[#allocation8 + $0x748] sm:$0xff]  ;;  %v1534_v49 = vunpack.c.l.bf16 %v4088_v1 }
 0x1ba   : > { %1991 = vmatpush.msrb.mxu2 %v1573_v58  ;;  %2010 = vmatpush.msrb.mxu3 %v1709_v27  ;;  %v4094_v39 = vld [vmem:[#allocation8 + $0x128] sm:$0xff]  ;;  %v1782_v58 = vunpack.c.l.bf16 %v4090_v54 }
 0x1bb   : > { %1992 = vmatmul.f32.vlgmr.msrb.gmra.mxu2 %v3991_v38  ;;  %1951 = vmatpush.msrb.mxu0 %v1317_v34  ;;  %v4096_v32 = vld [vmem:[#allocation8 + $0x508] sm:$0xff]  ;;  %v1390_v48 = vunpack.c.l.bf16 %v4094_v39 }
 0x1bc   : > { %2056 = vmatpush.msra.mxu2 %v1694_v22  ;;  %1970 = vmatpush.msrb.mxu1 %v1453_v56  ;;  %v4100_v45 = vld [vmem:[#allocation8 + $0x348] sm:$0xff]  ;;  %v1638_v34 = vunpack.c.l.bf16 %v4096_v32 }
 0x1bd   : > { %2011 = vmatpush.msrb.mxu3 %v1701_v44  ;;  %1952 = vmatmul.f32.vlgmr.msrb.gmra.mxu0 %v3996_v23  ;;  %v4102_v46 = vld [vmem:[#allocation8 + $0x728] sm:$0xff]  ;;  %v1526_v56 = vunpack.c.l.bf16 %v4100_v45 }
 0x1be   : > { %2012 = vmatmul.f32.vlgmr.msrb.gmra.mxu3 %v4000_v60  ;;  %2016 = vmatpush.msra.mxu0 %v1438_v13  ;;  %v4106_v4 = vld [vmem:[#allocation8 + $0x108] sm:$0xff]  ;;  %v1774_v44 = vunpack.c.l.bf16 %v4102_v46 }
 0x1bf   : > { %2057 = vmatpush.msra.mxu2 %v1686_v16  ;;  %2076 = vmatpush.msra.mxu3 %v1822_v53  ;;  %v4108_v27 = vld [vmem:[#allocation8 + $0x4e8] sm:$0xff]  ;;  %v1382_v53 = vunpack.c.l.bf16 %v4106_v4 }
 0x1c0   : > { %1971 = vmatpush.msrb.mxu1 %v1445_v3  ;;  %2017 = vmatpush.msra.mxu0 %v1430_v12  ;;  %v4112_v22 = vld [vmem:[#allocation8 + $0x328] sm:$0xff]  ;;  %v1630_v3 = vunpack.c.l.bf16 %v4108_v27 }
 0x1c1   : > { %1972 = vmatmul.f32.vlgmr.msrb.gmra.mxu1 %v4006_v29  ;;  %2058 = vmatpush.msra.mxu2 %v1678_v40  ;;  %v4114_v25 = vld [vmem:[#allocation8 + $0x708] sm:$0xff] }
 0x1c2   : > { %2036 = vmatpush.msra.mxu1 %v1566_v51  ;;  %2077 = vmatpush.msra.mxu3 %v1814_v14  ;;  %v4118_v13 = vld [vmem:[#allocation8 + $0xe8] sm:$0xff]  ;;  %v1518_v51 = vunpack.c.l.bf16 %v4112_v22  ;;  %v1766_v14 = vunpack.c.l.bf16 %v4114_v25 }
 0x1c3   : > { %2018 = vmatpush.msra.mxu0 %v1422_v17  ;;  %2059 = vmatpush.msra.mxu2 %v1670_v19  ;;  %v4120_v16 = vld [vmem:[#allocation8 + $0x4c8] sm:$0xff] }
 0x1c4   : > { %2037 = vmatpush.msra.mxu1 %v1558_v20  ;;  %2078 = vmatpush.msra.mxu3 %v1806_v59  ;;  %v4124_v12 = vld [vmem:[#allocation8 + $0x308] sm:$0xff]  ;;  %v1374_v20 = vunpack.c.l.bf16 %v4118_v13  ;;  %v1622_v59 = vunpack.c.l.bf16 %v4120_v16 }
 0x1c5   : > { %2019 = vmatpush.msra.mxu0 %v1414_v50  ;;  %2060 = vmatpush.msra.mxu2 %v1662_v55  ;;  %v4126_v40 = vld [vmem:[#allocation8 + $0x6e8] sm:$0xff] }
 0x1c6   : > { %2038 = vmatpush.msra.mxu1 %v1550_v5  ;;  %2079 = vmatpush.msra.mxu3 %v1798_v21  ;;  %v4130_v17 = vld [vmem:[#allocation8 + $0xc8] sm:$0xff]  ;;  %v1510_v5 = vunpack.c.l.bf16 %v4124_v12  ;;  %v1758_v21 = vunpack.c.l.bf16 %v4126_v40 }
 0x1c7   : > { %2020 = vmatpush.msra.mxu0 %v1406_v33  ;;  %2061 = vmatpush.msra.mxu2 %v1654_v42  ;;  %v4132_v19 = vld [vmem:[#allocation8 + $0x4a8] sm:$0xff] }
 0x1c8   : > { %2039 = vmatpush.msra.mxu1 %v1542_v61  ;;  %2080 = vmatpush.msra.mxu3 %v1790_v62  ;;  %v4136_v50 = vld [vmem:[#allocation8 + $0x2e8] sm:$0xff]  ;;  %v1366_v61 = vunpack.c.l.bf16 %v4130_v17  ;;  %v1614_v62 = vunpack.c.l.bf16 %v4132_v19 }
 0x1c9   : > { %2021 = vmatpush.msra.mxu0 %v1398_v63  ;;  %2062 = vmatpush.msra.mxu2 %v1646_v37  ;;  %v4138_v55 = vld [vmem:[#allocation8 + $0x6c8] sm:$0xff] }
 0x1ca   : > { %2040 = vmatpush.msra.mxu1 %v1534_v49  ;;  %2081 = vmatpush.msra.mxu3 %v1782_v58  ;;  %v4142_v33 = vld [vmem:[#allocation8 + $0xa8] sm:$0xff]  ;;  %v1502_v49 = vunpack.c.l.bf16 %v4136_v50  ;;  %v1750_v58 = vunpack.c.l.bf16 %v4138_v55 }
 0x1cb   : > { %2022 = vmatpush.msra.mxu0 %v1390_v48  ;;  %2063 = vmatpush.msra.mxu2 %v1638_v34  ;;  %v4144_v42 = vld [vmem:[#allocation8 + $0x488] sm:$0xff] }
 0x1cc   : > { %2041 = vmatpush.msra.mxu1 %v1526_v56  ;;  %2082 = vmatpush.msra.mxu3 %v1774_v44  ;;  %5110 = vst [vmem:[#allocation38_spill] sm:$0xff] %v4144_v42  ;;  %v4148_v63 = vld [vmem:[#allocation8 + $0x2c8] sm:$0xff]  ;;  %v1358_v56 = vunpack.c.l.bf16 %v4142_v33  ;;  %v1606_v44 = vunpack.c.l.bf16 %v4144_v42 }
 0x1cd   : > { %2023 = vmatpush.msra.mxu0 %v1382_v53  ;;  %2064 = vmatpush.msra.mxu2 %v1630_v3  ;;  %v4150_v37 = vld [vmem:[#allocation8 + $0x6a8] sm:$0xff] }
 0x1ce   : > { %5111 = vst [vmem:[#allocation36_spill] sm:$0xff] %v4150_v37  ;;  %2042 = vmatpush.msra.mxu1 %v1518_v51  ;;  %2083 = vmatpush.msra.mxu3 %v1766_v14  ;;  %v4154_v48 = vld [vmem:[#allocation8 + $0x88] sm:$0xff]  ;;  %v1494_v51 = vunpack.c.l.bf16 %v4148_v63  ;;  %v1742_v14 = vunpack.c.l.bf16 %v4150_v37 }
 0x1cf   : > { %5112 = vst [vmem:[#allocation41_spill] sm:$0xff] %v4154_v48  ;;  %v4156_v34 = vld [vmem:[#allocation8 + $0x468] sm:$0xff]  ;;  %2024 = vmatpush.msra.mxu0 %v1374_v20  ;;  %2065 = vmatpush.msra.mxu2 %v1622_v59  ;;  %v1350_v20 = vunpack.c.l.bf16 %v4154_v48 }
 0x1d0   : > { %5113 = vst [vmem:[#allocation39_spill] sm:$0xff] %v4156_v34  ;;  %v4160_v53 = vld [vmem:[#allocation8 + $0x2a8] sm:$0xff]  ;;  %2043 = vmatpush.msra.mxu1 %v1510_v5  ;;  %2084 = vmatpush.msra.mxu3 %v1758_v21  ;;  %v1598_v59 = vunpack.c.l.bf16 %v4156_v34 }
 0x1d1   : > { %5114 = vst [vmem:[#allocation42_spill] sm:$0xff] %v4160_v53  ;;  %v4162_v3 = vld [vmem:[#allocation8 + $0x688] sm:$0xff]  ;;  %2025 = vmatpush.msra.mxu0 %v1366_v61  ;;  %2066 = vmatpush.msra.mxu2 %v1614_v62  ;;  %v1486_v5 = vunpack.c.l.bf16 %v4160_v53 }
 0x1d2   : > { %5115 = vst [vmem:[#allocation40_spill] sm:$0xff] %v4162_v3  ;;  %v4166_v29 = vld [vmem:[#allocation8 + $0x68] sm:$0xff]  ;;  %2044 = vmatpush.msra.mxu1 %v1502_v49  ;;  %2085 = vmatpush.msra.mxu3 %v1750_v58  ;;  %v1734_v21 = vunpack.c.l.bf16 %v4162_v3 }
 0x1d3   : > { %5116 = vst [vmem:[#allocation45_spill] sm:$0xff] %v4166_v29  ;;  %v4168_v60 = vld [vmem:[#allocation8 + $0x448] sm:$0xff]  ;;  %2026 = vmatpush.msra.mxu0 %v1358_v56  ;;  %2067 = vmatpush.msra.mxu2 %v1606_v44  ;;  %v1342_v61 = vunpack.c.l.bf16 %v4166_v29 }
 0x1d4   : > { %5117 = vst [vmem:[#allocation43_spill] sm:$0xff] %v4168_v60  ;;  %v4172_v23 = vld [vmem:[#allocation8 + $0x288] sm:$0xff]  ;;  %v1590_v62 = vunpack.c.l.bf16 %v4168_v60  ;;  %2045 = vmatpush.msra.mxu1 %v1494_v51  ;;  %2086 = vmatpush.msra.mxu3 %v1742_v14 }
 0x1d5   : > { %v4174_v38 = vld [vmem:[#allocation8 + $0x668] sm:$0xff]  ;;  %v1478_v49 = vunpack.c.l.bf16 %v4172_v23  ;;  %2027 = vmatpush.msra.mxu0 %v1350_v20  ;;  %2068 = vmatpush.msra.mxu2 %v1598_v59 }
 0x1d6   : > { %5118 = vst [vmem:[#allocation46_spill] sm:$0xff] %v4174_v38  ;;  %v4178_v37 = vld [vmem:[#allocation8 + $0x48] sm:$0xff]  ;;  %v1726_v58 = vunpack.c.l.bf16 %v4174_v38  ;;  %2046 = vmatpush.msra.mxu1 %v1486_v5  ;;  %2087 = vmatpush.msra.mxu3 %v1734_v21 }
 0x1d7   : > { %5119 = vst [vmem:[#allocation44_spill] sm:$0xff] %v4178_v37  ;;  %v4180_v42 = vld [vmem:[#allocation8 + $0x428] sm:$0xff]  ;;  %v1334_v56 = vunpack.c.l.bf16 %v4178_v37  ;;  %2028 = vmatpush.msra.mxu0 %v1342_v61  ;;  %2069 = vmatpush.msra.mxu2 %v1590_v62 }
 0x1d8   : > { %5120 = vst [vmem:[#allocation47_spill] sm:$0xff] %v4180_v42  ;;  %v4184_v34 = vld [vmem:[#allocation8 + $0x268] sm:$0xff]  ;;  %v1582_v44 = vunpack.c.l.bf16 %v4180_v42  ;;  %2047 = vmatpush.msra.mxu1 %v1478_v49  ;;  %2088 = vmatpush.msra.mxu3 %v1726_v58  ;;  %v1439_v49 = vunpack.c.h.bf16 %v4021_v18  ;;  %v1687_v58 = vunpack.c.h.bf16 %v4025_v7  ;;  %v1815_v18 = vunpack.c.h.bf16 %v4040_v28 }
 0x1d9   : > { %v4186_v48 = vld [vmem:[#allocation8 + $0x648] sm:$0xff]  ;;  %v1470_v51 = vunpack.c.l.bf16 %v4184_v34  ;;  %2029 = vmatpush.msra.mxu0 %v1334_v56  ;;  %v1423_v7 = vunpack.c.h.bf16 %v4044_v47  ;;  %v1663_v28 = vunpack.c.h.bf16 %v4059_v24  ;;  %v1799_v47 = vunpack.c.h.bf16 %v4065_v41 }
 0x1da   : > { %5121 = vst [vmem:[#allocation48_spill] sm:$0xff] %v4186_v48  ;;  %v4190_v3 = vld [vmem:[#allocation8 + $0x28] sm:$0xff]  ;;  %v1718_v14 = vunpack.c.l.bf16 %v4186_v48  ;;  %2070 = vmatpush.msra.mxu2 %v1582_v44  ;;  %v1695_v48 = vunpack.c.h.bf16 %v4015_v57  ;;  %v1823_v57 = vunpack.c.h.bf16 %v4027_v0  ;;  %v1431_v44 = vunpack.c.h.bf16 %v4030_v9 }
 0x1db   : > { %5122 = vst [vmem:[#allocation50_spill] sm:$0xff] %v4190_v3  ;;  %v4192_v53 = vld [vmem:[#allocation8 + $0x408] sm:$0xff]  ;;  %v1326_v20 = vunpack.c.l.bf16 %v4190_v3  ;;  %2048 = vmatpush.msra.mxu1 %v1470_v51  ;;  %v1567_v51 = vunpack.c.h.bf16 %v4038_v31  ;;  %v1559_v0 = vunpack.c.h.bf16 %v4050_v36  ;;  %v1807_v9 = vunpack.c.h.bf16 %v4052_v30 }
 0x1dc   : > { %5123 = vst [vmem:[#allocation49_spill] sm:$0xff] %v4192_v53  ;;  %v4196_v60 = vld [vmem:[#allocation8 + $0x248] sm:$0xff]  ;;  %v1574_v59 = vunpack.c.l.bf16 %v4192_v53  ;;  %2089 = vmatpush.msra.mxu3 %v1718_v14  ;;  %v1679_v14 = vunpack.c.h.bf16 %v4033_v43  ;;  %v1415_v31 = vunpack.c.h.bf16 %v4057_v15  ;;  %v1551_v43 = vunpack.c.h.bf16 %v4063_v6 }
 0x1dd   : > { %v4198_v29 = vld [vmem:[#allocation8 + $0x628] sm:$0xff]  ;;  %v1462_v5 = vunpack.c.l.bf16 %v4196_v60  ;;  %2030 = vmatpush.msra.mxu0 %v1326_v20  ;;  %v1407_v36 = vunpack.c.h.bf16 %v4069_v2  ;;  %v1655_v30 = vunpack.c.h.bf16 %v4071_v11  ;;  %v1791_v15 = vunpack.c.h.bf16 %v4078_v10 }
 0x1de   : > { %v4202_v38 = vld [vmem:[#allocation8 + $0x8] sm:$0xff]  ;;  %v1710_v21 = vunpack.c.l.bf16 %v4198_v29  ;;  %2071 = vmatpush.msra.mxu2 %v1574_v59  ;;  %v1399_v6 = vunpack.c.h.bf16 %v4082_v8  ;;  %v1535_v24 = vunpack.c.h.bf16 %v4088_v1  ;;  %v1647_v41 = vunpack.c.h.bf16 %v4084_v35  ;;  %v5128_v59 = vld [vmem:[#allocation39_spill] sm:$0xff] }
 0x1df   : > { %v4206_v37 = vld [vmem:[#allocation8 + $0x228] sm:$0xff]  ;;  %v1318_v61 = vunpack.c.l.bf16 %v4202_v38  ;;  %2049 = vmatpush.msra.mxu1 %v1462_v5  ;;  %v1783_v2 = vunpack.c.h.bf16 %v4090_v54  ;;  %v1527_v11 = vunpack.c.h.bf16 %v4100_v45  ;;  %v1639_v10 = vunpack.c.h.bf16 %v4096_v32 }
 0x1e0   : > { %v4208_v42 = vld [vmem:[#allocation8 + $0x608] sm:$0xff]  ;;  %v1454_v53 = vunpack.c.l.bf16 %v4206_v37  ;;  %2090 = vmatpush.msra.mxu3 %v1710_v21  ;;  %2136 = vmatpush.msrb.mxu2 %v1695_v48  ;;  %v1671_v48 = vunpack.c.h.bf16 %v4046_v52  ;;  %v1543_v52 = vunpack.c.h.bf16 %v4076_v26  ;;  %v1391_v26 = vunpack.c.h.bf16 %v4094_v39  ;;  %v5130_v21 = vld [vmem:[#allocation45_spill] sm:$0xff] }
 0x1e1   : > { %v4214_v62 = vld [vmem:[#allocation8 + $0x208] sm:$0xff]  ;;  %v1702_v3 = vunpack.c.l.bf16 %v4208_v42  ;;  %2031 = vmatpush.msra.mxu0 %v1318_v61  ;;  %v1775_v8 = vunpack.c.h.bf16 %v4102_v46  ;;  %v1383_v1 = vunpack.c.h.bf16 %v4106_v4  ;;  %v1519_v35 = vunpack.c.h.bf16 %v4112_v22 }
 0x1e2   : > { %v1446_v56 = vunpack.c.l.bf16 %v4214_v62  ;;  %2050 = vmatpush.msra.mxu1 %v1454_v53  ;;  %2137 = vmatpush.msrb.mxu2 %v1687_v58  ;;  %v1631_v54 = vunpack.c.h.bf16 %v4108_v27  ;;  %v1767_v39 = vunpack.c.h.bf16 %v4114_v25  ;;  %v1375_v45 = vunpack.c.h.bf16 %v4118_v13 }
 0x1e3   : > { %2091 = vmatpush.msra.mxu3 %v1702_v3  ;;  %2096 = vmatpush.msrb.mxu0 %v1439_v49  ;;  %v1511_v32 = vunpack.c.h.bf16 %v4124_v12  ;;  %v1623_v46 = vunpack.c.h.bf16 %v4120_v16  ;;  %v1759_v4 = vunpack.c.h.bf16 %v4126_v40  ;;  %v1367_v22 = vunpack.c.h.bf16 %v4130_v17  ;;  %v5124_v40 = vld [vmem:[#allocation38_spill] sm:$0xff]  ;;  %v5125_v3 = vld [vmem:[#allocation36_spill] sm:$0xff] }
 0x1e4   : > { %2051 = vmatpush.msra.mxu1 %v1446_v56  ;;  %2138 = vmatpush.msrb.mxu2 %v1679_v14  ;;  %v1503_v27 = vunpack.c.h.bf16 %v4136_v50  ;;  %v1615_v25 = vunpack.c.h.bf16 %v4132_v19  ;;  %v1751_v13 = vunpack.c.h.bf16 %v4138_v55  ;;  %v1359_v12 = vunpack.c.h.bf16 %v4142_v33  ;;  %v5126_v50 = vld [vmem:[#allocation41_spill] sm:$0xff]  ;;  %v5127_v19 = vld [vmem:[#allocation42_spill] sm:$0xff]  ;;  %v5129_v33 = vld [vmem:[#allocation40_spill] sm:$0xff] }
 0x1e5   : > { %2156 = vmatpush.msrb.mxu3 %v1823_v57  ;;  %2097 = vmatpush.msrb.mxu0 %v1431_v44  ;;  %v1495_v16 = vunpack.c.h.bf16 %v4148_v63  ;;  %v1607_v53 = vunpack.c.h.bf16 %v5124_v40  ;;  %v1743_v17 = vunpack.c.h.bf16 %v5125_v3  ;;  %v1351_v20 = vunpack.c.h.bf16 %v5126_v50  ;;  %v5131_v49 = vld [vmem:[#allocation34_spill] sm:$0xff]  ;;  %v5132_v57 = vld [vmem:[#allocation43_spill] sm:$0xff]  ;;  %v5134_v14 = vld [vmem:[#allocation33_spill] sm:$0xff] }
 0x1e6   : > { %2116 = vmatpush.msrb.mxu1 %v1567_v51  ;;  %2139 = vmatpush.msrb.mxu2 %v1671_v48  ;;  %v1487_v55 = vunpack.c.h.bf16 %v5127_v19  ;;  %v1599_v5 = vunpack.c.h.bf16 %v5128_v59  ;;  %v1735_v63 = vunpack.c.h.bf16 %v5129_v33  ;;  %v1343_v61 = vunpack.c.h.bf16 %v5130_v21  ;;  %v5133_v44 = vld [vmem:[#allocation46_spill] sm:$0xff]  ;;  %v5136_v48 = vld [vmem:[#allocation37_spill] sm:$0xff]  ;;  %v4327_v40 = vld [vmem:[#allocation8 + $0x3b0] sm:$0xff] }
 0x1e7   : > { %2157 = vmatpush.msrb.mxu3 %v1815_v18  ;;  %2098 = vmatpush.msrb.mxu0 %v1423_v7  ;;  %v1479_v58 = vunpack.c.h.bf16 %v4172_v23  ;;  %v1591_v56 = vunpack.c.h.bf16 %v5132_v57  ;;  %v1727_v51 = vunpack.c.h.bf16 %v5133_v44  ;;  %v5135_v18 = vld [vmem:[#allocation44_spill] sm:$0xff]  ;;  %v4333_v50 = vld [vmem:[#allocation8 + $0x170] sm:$0xff]  ;;  %v1552_v33 = vunpack.c.l.bf16 %v4327_v40 }
 0x1e8   : > { %2117 = vmatpush.msrb.mxu1 %v1559_v0  ;;  %2140 = vmatpush.msrb.mxu2 %v1663_v28  ;;  %v1335_v7 = vunpack.c.h.bf16 %v5135_v18  ;;  %v1471_v0 = vunpack.c.h.bf16 %v4184_v34  ;;  %v5139_v28 = vld [vmem:[#allocation50_spill] sm:$0xff]  ;;  %v4340_v59 = vld [vmem:[#allocation8 + $0x390] sm:$0xff] }
 0x1e9   : > { %2158 = vmatpush.msrb.mxu3 %v1807_v9  ;;  %2099 = vmatpush.msrb.mxu0 %v1415_v31  ;;  %v5137_v9 = vld [vmem:[#allocation47_spill] sm:$0xff]  ;;  %v1544_v44 = vunpack.c.l.bf16 %v4340_v59 }
 0x1ea   : > { %2118 = vmatpush.msrb.mxu1 %v1551_v43  ;;  %2141 = vmatpush.msrb.mxu2 %v1655_v30  ;;  %v1583_v31 = vunpack.c.h.bf16 %v5137_v9  ;;  %v5138_v43 = vld [vmem:[#allocation48_spill] sm:$0xff]  ;;  %v5140_v30 = vld [vmem:[#allocation35_spill] sm:$0xff] }
 0x1eb   : > { %2159 = vmatpush.msrb.mxu3 %v1799_v47  ;;  %2100 = vmatpush.msrb.mxu0 %v1407_v36  ;;  %v1719_v23 = vunpack.c.h.bf16 %v5138_v43  ;;  %v1327_v47 = vunpack.c.h.bf16 %v5139_v28  ;;  %v1463_v36 = vunpack.c.h.bf16 %v4196_v60  ;;  %v1455_v60 = vunpack.c.h.bf16 %v4206_v37  ;;  %v4346_v21 = vld [vmem:[#allocation8 + $0x150] sm:$0xff] }
 0x1ec   : > { %2119 = vmatpush.msrb.mxu1 %v1543_v52  ;;  %2142 = vmatpush.msrb.mxu2 %v1647_v41  ;;  %v4279_v52 = vld [vmem:[#allocation8 + $0x5f0] sm:$0xff] }
 0x1ed   : > { %2160 = vmatpush.msrb.mxu3 %v1791_v15  ;;  %2101 = vmatpush.msrb.mxu0 %v1399_v6  ;;  %v5141_v15 = vld [vmem:[#allocation49_spill] sm:$0xff]  ;;  %v1711_v6 = vunpack.c.h.bf16 %v4198_v29  ;;  %v4285_v41 = vld [vmem:[#allocation8 + $0x1f0] sm:$0xff]  ;;  %v1703_v29 = vunpack.c.h.bf16 %v4208_v42  ;;  %v1447_v42 = vunpack.c.h.bf16 %v4214_v62 }
 0x1ee   : > { %2120 = vmatpush.msrb.mxu1 %v1535_v24  ;;  %2143 = vmatpush.msrb.mxu2 %v1639_v10  ;;  %v1575_v34 = vunpack.c.h.bf16 %v5141_v15  ;;  %v1319_v24 = vunpack.c.h.bf16 %v4202_v38  ;;  %v4294_v10 = vld [vmem:[#allocation8 + $0x1d0] sm:$0xff]  ;;  %v1440_v38 = vunpack.c.l.bf16 %v4285_v41 }
 0x1ef   : > { %2161 = vmatpush.msrb.mxu3 %v1783_v2  ;;  %2102 = vmatpush.msrb.mxu0 %v1391_v26  ;;  %v1696_v2 = vunpack.c.l.bf16 %v4279_v52  ;;  %v4289_v26 = vld [vmem:[#allocation8 + $0x5d0] sm:$0xff] }
 0x1f0   : > { %2121 = vmatpush.msrb.mxu1 %v1527_v11  ;;  %2144 = vmatpush.msrb.mxu2 %v1631_v54  ;;  %v4291_v11 = vld [vmem:[#allocation8 + $0x7f0] sm:$0xff]  ;;  %v1688_v37 = vunpack.c.l.bf16 %v4289_v26 }
 0x1f1   : > { %2162 = vmatpush.msrb.mxu3 %v1775_v8  ;;  %2103 = vmatpush.msrb.mxu0 %v1383_v1  ;;  %v4297_v8 = vld [vmem:[#allocation8 + $0x5b0] sm:$0xff]  ;;  %v1824_v1 = vunpack.c.l.bf16 %v4291_v11 }
 0x1f2   : > { %2122 = vmatpush.msrb.mxu1 %v1519_v35  ;;  %2145 = vmatpush.msrb.mxu2 %v1623_v46  ;;  %v4302_v35 = vld [vmem:[#allocation8 + $0x3f0] sm:$0xff]  ;;  %v1680_v46 = vunpack.c.l.bf16 %v4297_v8 }
 0x1f3   : > { %2163 = vmatpush.msrb.mxu3 %v1767_v39  ;;  %2104 = vmatpush.msrb.mxu0 %v1375_v45  ;;  %v4304_v54 = vld [vmem:[#allocation8 + $0x7d0] sm:$0xff]  ;;  %v1432_v39 = vunpack.c.l.bf16 %v4294_v10  ;;  %v1568_v62 = vunpack.c.l.bf16 %v4302_v35 }
 0x1f4   : > { %2123 = vmatpush.msrb.mxu1 %v1511_v32  ;;  %2146 = vmatpush.msrb.mxu2 %v1615_v25  ;;  %v4308_v45 = vld [vmem:[#allocation8 + $0x1b0] sm:$0xff] }
 0x1f5   : > { %2164 = vmatpush.msrb.mxu3 %v1759_v4  ;;  %2105 = vmatpush.msrb.mxu0 %v1367_v22  ;;  %v4310_v32 = vld [vmem:[#allocation8 + $0x590] sm:$0xff] }
 0x1f6   : > { %2124 = vmatpush.msrb.mxu1 %v1503_v27  ;;  %2147 = vmatpush.msrb.mxu2 %v1607_v53  ;;  %v4314_v4 = vld [vmem:[#allocation8 + $0x3d0] sm:$0xff]  ;;  %v1816_v27 = vunpack.c.l.bf16 %v4304_v54 }
 0x1f7   : > { %2165 = vmatpush.msrb.mxu3 %v1751_v13  ;;  %2106 = vmatpush.msrb.mxu0 %v1359_v12  ;;  %v4316_v22 = vld [vmem:[#allocation8 + $0x7b0] sm:$0xff]  ;;  %v1424_v12 = vunpack.c.l.bf16 %v4308_v45  ;;  %v1560_v3 = vunpack.c.l.bf16 %v4314_v4 }
 0x1f8   : > { %2125 = vmatpush.msrb.mxu1 %v1495_v16  ;;  %2072 = vmatmul.f32.vlgmr.msra.gmra.mxu2 %v5131_v49  ;;  %v4321_v25 = vld [vmem:[#allocation8 + $0x190] sm:$0xff]  ;;  %v1672_v16 = vunpack.c.l.bf16 %v4310_v32 }
 0x1f9   : > { %2166 = vmatpush.msrb.mxu3 %v1743_v17  ;;  %2107 = vmatpush.msrb.mxu0 %v1351_v20  ;;  %v4323_v13 = vld [vmem:[#allocation8 + $0x570] sm:$0xff]  ;;  %v1808_v17 = vunpack.c.l.bf16 %v4316_v22  ;;  %v1416_v19 = vunpack.c.l.bf16 %v4321_v25 }
 0x1fa   : > { %2126 = vmatpush.msrb.mxu1 %v1487_v55  ;;  %2148 = vmatpush.msrb.mxu2 %v1599_v5  ;;  %v4329_v53 = vld [vmem:[#allocation8 + $0x790] sm:$0xff]  ;;  %v1664_v55 = vunpack.c.l.bf16 %v4323_v13 }
 0x1fb   : > { %2167 = vmatpush.msrb.mxu3 %v1735_v63  ;;  %2032 = vmatmul.f32.vlgmr.msra.gmra.mxu0 %v5134_v14  ;;  %v4335_v20 = vld [vmem:[#allocation8 + $0x550] sm:$0xff]  ;;  %v1800_v63 = vunpack.c.l.bf16 %v4329_v53 }
 0x1fc   : > { %2092 = vmatmul.f32.vlgmr.msra.gmra.mxu3 %v5136_v48  ;;  %2108 = vmatpush.msrb.mxu0 %v1343_v61  ;;  %v4342_v5 = vld [vmem:[#allocation8 + $0x770] sm:$0xff] }
 0x1fd   : > { %2127 = vmatpush.msrb.mxu1 %v1479_v58  ;;  %2149 = vmatpush.msrb.mxu2 %v1591_v56  ;;  %v4348_v61 = vld [vmem:[#allocation8 + $0x530] sm:$0xff]  ;;  %v1656_v58 = vunpack.c.l.bf16 %v4335_v20 }
 0x1fe   : > { %2168 = vmatpush.msrb.mxu3 %v1727_v51  ;;  %2052 = vmatmul.f32.vlgmr.msra.gmra.mxu1 %v5140_v30  ;;  %v4352_v57 = vld [vmem:[#allocation8 + $0x370] sm:$0xff]  ;;  %v1792_v51 = vunpack.c.l.bf16 %v4342_v5 }
 0x1ff   : > { %2109 = vmatpush.msrb.mxu0 %v1335_v7  ;;  %2128 = vmatpush.msrb.mxu1 %v1471_v0  ;;  %v4354_v56 = vld [vmem:[#allocation8 + $0x750] sm:$0xff]  ;;  %v1400_v7 = vunpack.c.l.bf16 %v4346_v21  ;;  %v1648_v0 = vunpack.c.l.bf16 %v4348_v61 }
 0x200   : > { %2150 = vmatpush.msrb.mxu2 %v1583_v31  ;;  %2169 = vmatpush.msrb.mxu3 %v1719_v23  ;;  %v4360_v18 = vld [vmem:[#allocation8 + $0x510] sm:$0xff]  ;;  %v1536_v31 = vunpack.c.l.bf16 %v4352_v57  ;;  %v1784_v43 = vunpack.c.l.bf16 %v4354_v56 }
 0x201   : > { %2110 = vmatpush.msrb.mxu0 %v1327_v47  ;;  %2129 = vmatpush.msrb.mxu1 %v1463_v36  ;;  %v4366_v9 = vld [vmem:[#allocation8 + $0x730] sm:$0xff]  ;;  %v1640_v36 = vunpack.c.l.bf16 %v4360_v18 }
 0x202   : > { %2151 = vmatpush.msrb.mxu2 %v1575_v34  ;;  %2170 = vmatpush.msrb.mxu3 %v1711_v6  ;;  %v4370_v23 = vld [vmem:[#allocation8 + $0x110] sm:$0xff]  ;;  %v1776_v6 = vunpack.c.l.bf16 %v4366_v9 }
 0x203   : > { %2152 = vmatmul.f32.vlgmr.msrb.gmra.mxu2 %v5131_v49  ;;  %2111 = vmatpush.msrb.mxu0 %v1319_v24  ;;  %v1408_v49 = vunpack.c.l.bf16 %v4333_v50  ;;  %v4372_v28 = vld [vmem:[#allocation8 + $0x4f0] sm:$0xff] }
 0x204   : > { %2216 = vmatpush.msra.mxu2 %v1696_v2  ;;  %2130 = vmatpush.msrb.mxu1 %v1455_v60  ;;  %v4378_v15 = vld [vmem:[#allocation8 + $0x710] sm:$0xff]  ;;  %v1384_v60 = vunpack.c.l.bf16 %v4370_v23 }
 0x205   : > { %2171 = vmatpush.msrb.mxu3 %v1703_v29  ;;  %2112 = vmatmul.f32.vlgmr.msrb.gmra.mxu0 %v5134_v14  ;;  %v4358_v14 = vld [vmem:[#allocation8 + $0x130] sm:$0xff]  ;;  %v1632_v29 = vunpack.c.l.bf16 %v4372_v28 }
 0x206   : > { %2172 = vmatmul.f32.vlgmr.msrb.gmra.mxu3 %v5136_v48  ;;  %2176 = vmatpush.msra.mxu0 %v1440_v38  ;;  %v4364_v48 = vld [vmem:[#allocation8 + $0x350] sm:$0xff]  ;;  %v1392_v47 = vunpack.c.l.bf16 %v4358_v14 }
 0x207   : > { %2217 = vmatpush.msra.mxu2 %v1688_v37  ;;  %2236 = vmatpush.msra.mxu3 %v1824_v1  ;;  %v1528_v34 = vunpack.c.l.bf16 %v4364_v48  ;;  %v4382_v24 = vld [vmem:[#allocation8 + $0xf0] sm:$0xff] }
 0x208   : > { %2131 = vmatpush.msrb.mxu1 %v1447_v42  ;;  %2177 = vmatpush.msra.mxu0 %v1432_v39  ;;  %v4384_v2 = vld [vmem:[#allocation8 + $0x4d0] sm:$0xff]  ;;  %v1768_v42 = vunpack.c.l.bf16 %v4378_v15 }
 0x209   : > { %2132 = vmatmul.f32.vlgmr.msrb.gmra.mxu1 %v5140_v30  ;;  %2218 = vmatpush.msra.mxu2 %v1680_v46  ;;  %v4376_v30 = vld [vmem:[#allocation8 + $0x330] sm:$0xff] }
 0x20a   : > { %2196 = vmatpush.msra.mxu1 %v1568_v62  ;;  %2237 = vmatpush.msra.mxu3 %v1816_v27  ;;  %v4388_v38 = vld [vmem:[#allocation8 + $0x310] sm:$0xff]  ;;  %v1520_v1 = vunpack.c.l.bf16 %v4376_v30  ;;  %v1376_v62 = vunpack.c.l.bf16 %v4382_v24  ;;  %v1624_v27 = vunpack.c.l.bf16 %v4384_v2 }
 0x20b   : > { %2178 = vmatpush.msra.mxu0 %v1424_v12  ;;  %2219 = vmatpush.msra.mxu2 %v1672_v16  ;;  %v4390_v37 = vld [vmem:[#allocation8 + $0x6f0] sm:$0xff] }
 0x20c   : > { %2197 = vmatpush.msra.mxu1 %v1560_v3  ;;  %2238 = vmatpush.msra.mxu3 %v1808_v17  ;;  %v4394_v39 = vld [vmem:[#allocation8 + $0xd0] sm:$0xff]  ;;  %v1512_v3 = vunpack.c.l.bf16 %v4388_v38  ;;  %v1760_v17 = vunpack.c.l.bf16 %v4390_v37 }
 0x20d   : > { %2179 = vmatpush.msra.mxu0 %v1416_v19  ;;  %2220 = vmatpush.msra.mxu2 %v1664_v55  ;;  %v4396_v46 = vld [vmem:[#allocation8 + $0x4b0] sm:$0xff] }
 0x20e   : > { %2198 = vmatpush.msra.mxu1 %v1552_v33  ;;  %2239 = vmatpush.msra.mxu3 %v1800_v63  ;;  %v4400_v12 = vld [vmem:[#allocation8 + $0x2f0] sm:$0xff]  ;;  %v1368_v33 = vunpack.c.l.bf16 %v4394_v39  ;;  %v1616_v63 = vunpack.c.l.bf16 %v4396_v46 }
 0x20f   : > { %2180 = vmatpush.msra.mxu0 %v1408_v49  ;;  %2221 = vmatpush.msra.mxu2 %v1656_v58  ;;  %v4402_v16 = vld [vmem:[#allocation8 + $0x6d0] sm:$0xff] }
 0x210   : > { %2199 = vmatpush.msra.mxu1 %v1544_v44  ;;  %2240 = vmatpush.msra.mxu3 %v1792_v51  ;;  %v4406_v19 = vld [vmem:[#allocation8 + $0xb0] sm:$0xff]  ;;  %v1504_v44 = vunpack.c.l.bf16 %v4400_v12  ;;  %v1752_v51 = vunpack.c.l.bf16 %v4402_v16 }
 0x211   : > { %2181 = vmatpush.msra.mxu0 %v1400_v7  ;;  %2222 = vmatpush.msra.mxu2 %v1648_v0  ;;  %v4408_v55 = vld [vmem:[#allocation8 + $0x490] sm:$0xff] }
 0x212   : > { %2200 = vmatpush.msra.mxu1 %v1536_v31  ;;  %2241 = vmatpush.msra.mxu3 %v1784_v43  ;;  %5142 = vst [vmem:[#allocation51_spill] sm:$0xff] %v4408_v55  ;;  %v4412_v49 = vld [vmem:[#allocation8 + $0x2d0] sm:$0xff]  ;;  %v1360_v31 = vunpack.c.l.bf16 %v4406_v19  ;;  %v1608_v43 = vunpack.c.l.bf16 %v4408_v55 }
 0x213   : > { %2182 = vmatpush.msra.mxu0 %v1392_v47  ;;  %2223 = vmatpush.msra.mxu2 %v1640_v36  ;;  %v4414_v58 = vld [vmem:[#allocation8 + $0x6b0] sm:$0xff] }
 0x214   : > { %2201 = vmatpush.msra.mxu1 %v1528_v34  ;;  %2242 = vmatpush.msra.mxu3 %v1776_v6  ;;  %5143 = vst [vmem:[#allocation53_spill] sm:$0xff] %v4414_v58  ;;  %v4418_v7 = vld [vmem:[#allocation8 + $0x90] sm:$0xff]  ;;  %v1496_v34 = vunpack.c.l.bf16 %v4412_v49  ;;  %v1744_v6 = vunpack.c.l.bf16 %v4414_v58 }
 0x215   : > { %2183 = vmatpush.msra.mxu0 %v1384_v60  ;;  %2224 = vmatpush.msra.mxu2 %v1632_v29  ;;  %5144 = vst [vmem:[#allocation52_spill] sm:$0xff] %v4418_v7  ;;  %v4420_v0 = vld [vmem:[#allocation8 + $0x470] sm:$0xff] }
 0x216   : > { %2202 = vmatpush.msra.mxu1 %v1520_v1  ;;  %2243 = vmatpush.msra.mxu3 %v1768_v42  ;;  %5145 = vst [vmem:[#allocation38_spill] sm:$0xff] %v4420_v0  ;;  %v4424_v47 = vld [vmem:[#allocation8 + $0x2b0] sm:$0xff]  ;;  %v1352_v1 = vunpack.c.l.bf16 %v4418_v7  ;;  %v1600_v42 = vunpack.c.l.bf16 %v4420_v0 }
 0x217   : > { %2184 = vmatpush.msra.mxu0 %v1376_v62  ;;  %2225 = vmatpush.msra.mxu2 %v1624_v27  ;;  %5146 = vst [vmem:[#allocation36_spill] sm:$0xff] %v4424_v47  ;;  %v4426_v36 = vld [vmem:[#allocation8 + $0x690] sm:$0xff] }
 0x218   : > { %5147 = vst [vmem:[#allocation41_spill] sm:$0xff] %v4426_v36  ;;  %2203 = vmatpush.msra.mxu1 %v1512_v3  ;;  %2244 = vmatpush.msra.mxu3 %v1760_v17  ;;  %v4430_v60 = vld [vmem:[#allocation8 + $0x70] sm:$0xff]  ;;  %v1488_v3 = vunpack.c.l.bf16 %v4424_v47  ;;  %v1736_v17 = vunpack.c.l.bf16 %v4426_v36 }
 0x219   : > { %5148 = vst [vmem:[#allocation42_spill] sm:$0xff] %v4430_v60  ;;  %v4432_v29 = vld [vmem:[#allocation8 + $0x450] sm:$0xff]  ;;  %2185 = vmatpush.msra.mxu0 %v1368_v33  ;;  %2226 = vmatpush.msra.mxu2 %v1616_v63  ;;  %v1344_v33 = vunpack.c.l.bf16 %v4430_v60 }
 0x21a   : > { %5149 = vst [vmem:[#allocation39_spill] sm:$0xff] %v4432_v29  ;;  %v4436_v62 = vld [vmem:[#allocation8 + $0x290] sm:$0xff]  ;;  %2204 = vmatpush.msra.mxu1 %v1504_v44  ;;  %2245 = vmatpush.msra.mxu3 %v1752_v51  ;;  %v1592_v63 = vunpack.c.l.bf16 %v4432_v29 }
 0x21b   : > { %v4438_v27 = vld [vmem:[#allocation8 + $0x670] sm:$0xff]  ;;  %2186 = vmatpush.msra.mxu0 %v1360_v31  ;;  %2227 = vmatpush.msra.mxu2 %v1608_v43  ;;  %v1480_v44 = vunpack.c.l.bf16 %v4436_v62 }
 0x21c   : > { %5150 = vst [vmem:[#allocation40_spill] sm:$0xff] %v4438_v27  ;;  %v4442_v58 = vld [vmem:[#allocation8 + $0x50] sm:$0xff]  ;;  %2205 = vmatpush.msra.mxu1 %v1496_v34  ;;  %2246 = vmatpush.msra.mxu3 %v1744_v6  ;;  %v1728_v51 = vunpack.c.l.bf16 %v4438_v27 }
 0x21d   : > { %5151 = vst [vmem:[#allocation45_spill] sm:$0xff] %v4442_v58  ;;  %v4444_v55 = vld [vmem:[#allocation8 + $0x430] sm:$0xff]  ;;  %2187 = vmatpush.msra.mxu0 %v1352_v1  ;;  %2228 = vmatpush.msra.mxu2 %v1600_v42  ;;  %v1336_v31 = vunpack.c.l.bf16 %v4442_v58 }
 0x21e   : > { %5152 = vst [vmem:[#allocation34_spill] sm:$0xff] %v4444_v55  ;;  %v4448_v0 = vld [vmem:[#allocation8 + $0x270] sm:$0xff]  ;;  %v1584_v43 = vunpack.c.l.bf16 %v4444_v55  ;;  %2206 = vmatpush.msra.mxu1 %v1488_v3  ;;  %2247 = vmatpush.msra.mxu3 %v1736_v17 }
 0x21f   : > { %v4450_v7 = vld [vmem:[#allocation8 + $0x650] sm:$0xff]  ;;  %v1472_v34 = vunpack.c.l.bf16 %v4448_v0  ;;  %2188 = vmatpush.msra.mxu0 %v1344_v33  ;;  %2229 = vmatpush.msra.mxu2 %v1592_v63 }
 0x220   : > { %5153 = vst [vmem:[#allocation43_spill] sm:$0xff] %v4450_v7  ;;  %v4454_v36 = vld [vmem:[#allocation8 + $0x30] sm:$0xff]  ;;  %v1720_v6 = vunpack.c.l.bf16 %v4450_v7  ;;  %2207 = vmatpush.msra.mxu1 %v1480_v44  ;;  %2248 = vmatpush.msra.mxu3 %v1728_v51  ;;  %v1697_v7 = vunpack.c.h.bf16 %v4279_v52  ;;  %v1441_v44 = vunpack.c.h.bf16 %v4285_v41  ;;  %v1689_v51 = vunpack.c.h.bf16 %v4289_v26 }
 0x221   : > { %5154 = vst [vmem:[#allocation46_spill] sm:$0xff] %v4454_v36  ;;  %v4456_v47 = vld [vmem:[#allocation8 + $0x410] sm:$0xff]  ;;  %v1328_v1 = vunpack.c.l.bf16 %v4454_v36  ;;  %2189 = vmatpush.msra.mxu0 %v1336_v31  ;;  %2230 = vmatpush.msra.mxu2 %v1584_v43  ;;  %v1825_v52 = vunpack.c.h.bf16 %v4291_v11  ;;  %v1433_v43 = vunpack.c.h.bf16 %v4294_v10  ;;  %v1817_v41 = vunpack.c.h.bf16 %v4304_v54 }
 0x222   : > { %5155 = vst [vmem:[#allocation33_spill] sm:$0xff] %v4456_v47  ;;  %v4460_v29 = vld [vmem:[#allocation8 + $0x250] sm:$0xff]  ;;  %v1576_v42 = vunpack.c.l.bf16 %v4456_v47  ;;  %2208 = vmatpush.msra.mxu1 %v1472_v34  ;;  %2249 = vmatpush.msra.mxu3 %v1720_v6  ;;  %v1569_v34 = vunpack.c.h.bf16 %v4302_v35  ;;  %v1681_v6 = vunpack.c.h.bf16 %v4297_v8  ;;  %v1425_v26 = vunpack.c.h.bf16 %v4308_v45 }
 0x223   : > { %v4462_v60 = vld [vmem:[#allocation8 + $0x630] sm:$0xff]  ;;  %v1464_v3 = vunpack.c.l.bf16 %v4460_v29  ;;  %2190 = vmatpush.msra.mxu0 %v1328_v1  ;;  %v1561_v11 = vunpack.c.h.bf16 %v4314_v4  ;;  %v1809_v10 = vunpack.c.h.bf16 %v4316_v22  ;;  %v1417_v35 = vunpack.c.h.bf16 %v4321_v25 }
 0x224   : > { %v4466_v27 = vld [vmem:[#allocation8 + $0x10] sm:$0xff]  ;;  %v1712_v17 = vunpack.c.l.bf16 %v4462_v60  ;;  %2231 = vmatpush.msra.mxu2 %v1576_v42  ;;  %v1553_v8 = vunpack.c.h.bf16 %v4327_v40  ;;  %v1665_v54 = vunpack.c.h.bf16 %v4323_v13  ;;  %v1801_v45 = vunpack.c.h.bf16 %v4329_v53  ;;  %v5160_v42 = vld [vmem:[#allocation38_spill] sm:$0xff] }
 0x225   : > { %v4470_v58 = vld [vmem:[#allocation8 + $0x230] sm:$0xff]  ;;  %v1320_v33 = vunpack.c.l.bf16 %v4466_v27  ;;  %2209 = vmatpush.msra.mxu1 %v1464_v3  ;;  %v1409_v4 = vunpack.c.h.bf16 %v4333_v50  ;;  %v1657_v22 = vunpack.c.h.bf16 %v4335_v20  ;;  %v1793_v25 = vunpack.c.h.bf16 %v4342_v5 }
 0x226   : > { %v4472_v55 = vld [vmem:[#allocation8 + $0x610] sm:$0xff]  ;;  %v1456_v47 = vunpack.c.l.bf16 %v4470_v58  ;;  %2250 = vmatpush.msra.mxu3 %v1712_v17  ;;  %2296 = vmatpush.msrb.mxu2 %v1697_v7  ;;  %v1673_v7 = vunpack.c.h.bf16 %v4310_v32  ;;  %v1545_v32 = vunpack.c.h.bf16 %v4340_v59  ;;  %v1401_v40 = vunpack.c.h.bf16 %v4346_v21  ;;  %v5162_v17 = vld [vmem:[#allocation42_spill] sm:$0xff] }
 0x227   : > { %v4478_v63 = vld [vmem:[#allocation8 + $0x210] sm:$0xff]  ;;  %v1704_v36 = vunpack.c.l.bf16 %v4472_v55  ;;  %2191 = vmatpush.msra.mxu0 %v1320_v33  ;;  %v1537_v13 = vunpack.c.h.bf16 %v4352_v57  ;;  %v1649_v53 = vunpack.c.h.bf16 %v4348_v61  ;;  %v1785_v50 = vunpack.c.h.bf16 %v4354_v56 }
 0x228   : > { %v1448_v31 = vunpack.c.l.bf16 %v4478_v63  ;;  %2210 = vmatpush.msra.mxu1 %v1456_v47  ;;  %2297 = vmatpush.msrb.mxu2 %v1689_v51  ;;  %v1393_v59 = vunpack.c.h.bf16 %v4358_v14  ;;  %v1529_v20 = vunpack.c.h.bf16 %v4364_v48  ;;  %v1641_v5 = vunpack.c.h.bf16 %v4360_v18 }
 0x229   : > { %2251 = vmatpush.msra.mxu3 %v1704_v36  ;;  %2256 = vmatpush.msrb.mxu0 %v1441_v44  ;;  %v1777_v21 = vunpack.c.h.bf16 %v4366_v9  ;;  %v1385_v57 = vunpack.c.h.bf16 %v4370_v23  ;;  %v1521_v61 = vunpack.c.h.bf16 %v4376_v30  ;;  %v1633_v56 = vunpack.c.h.bf16 %v4372_v28  ;;  %v5157_v36 = vld [vmem:[#allocation53_spill] sm:$0xff] }
 0x22a   : > { %2211 = vmatpush.msra.mxu1 %v1448_v31  ;;  %2298 = vmatpush.msrb.mxu2 %v1681_v6  ;;  %v1769_v14 = vunpack.c.h.bf16 %v4378_v15  ;;  %v1377_v48 = vunpack.c.h.bf16 %v4382_v24  ;;  %v1513_v18 = vunpack.c.h.bf16 %v4388_v38  ;;  %v1625_v9 = vunpack.c.h.bf16 %v4384_v2  ;;  %v4531_v44 = vld.sshfl [vmem:[#allocation1 + $0x10] sm:$0xff pattern:$0x73625140]  ;;  %v4537_v6 = vld.sshfl [vmem:[#allocation1] sm:$0xff pattern:$0x73625140] }
 0x22b   : > { %2316 = vmatpush.msrb.mxu3 %v1825_v52  ;;  %2257 = vmatpush.msrb.mxu0 %v1433_v43  ;;  %v1761_v23 = vunpack.c.h.bf16 %v4390_v37  ;;  %v1369_v30 = vunpack.c.h.bf16 %v4394_v39  ;;  %v1505_v28 = vunpack.c.h.bf16 %v4400_v12  ;;  %v1617_v15 = vunpack.c.h.bf16 %v4396_v46  ;;  %v5156_v37 = vld [vmem:[#allocation51_spill] sm:$0xff]  ;;  %v5158_v12 = vld [vmem:[#allocation52_spill] sm:$0xff]  ;;  %5163 = vst [vmem:[#allocation44_spill] sm:$0xff] %v4531_v44 }
 0x22c   : > { %2276 = vmatpush.msrb.mxu1 %v1569_v34  ;;  %2299 = vmatpush.msrb.mxu2 %v1673_v7  ;;  %v1753_v24 = vunpack.c.h.bf16 %v4402_v16  ;;  %v1361_v38 = vunpack.c.h.bf16 %v4406_v19  ;;  %v1497_v2 = vunpack.c.h.bf16 %v4412_v49  ;;  %v1609_v47 = vunpack.c.h.bf16 %v5156_v37  ;;  %v5159_v46 = vld [vmem:[#allocation36_spill] sm:$0xff]  ;;  %v5161_v19 = vld [vmem:[#allocation41_spill] sm:$0xff]  ;;  %v5164_v52 = vld [vmem:[#allocation39_spill] sm:$0xff]  ;;  %5166 = vst [vmem:[#allocation37_spill] sm:$0xff] %v4537_v6 }
 0x22d   : > { %2317 = vmatpush.msrb.mxu3 %v1817_v41  ;;  %2258 = vmatpush.msrb.mxu0 %v1425_v26  ;;  %v1745_v39 = vunpack.c.h.bf16 %v5157_v36  ;;  %v1353_v1 = vunpack.c.h.bf16 %v5158_v12  ;;  %v1489_v16 = vunpack.c.h.bf16 %v5159_v46  ;;  %v1601_v3 = vunpack.c.h.bf16 %v5160_v42  ;;  %v5165_v43 = vld [vmem:[#allocation40_spill] sm:$0xff]  ;;  %v5167_v41 = vld [vmem:[#allocation45_spill] sm:$0xff] }
 0x22e   : > { %2277 = vmatpush.msrb.mxu1 %v1561_v11  ;;  %2300 = vmatpush.msrb.mxu2 %v1665_v54  ;;  %v1737_v49 = vunpack.c.h.bf16 %v5161_v19  ;;  %v1345_v33 = vunpack.c.h.bf16 %v5162_v17  ;;  %v1481_v51 = vunpack.c.h.bf16 %v4436_v62  ;;  %v1593_v31 = vunpack.c.h.bf16 %v5164_v52  ;;  %v4542_v7 = vld.sshfl [vmem:[#allocation1 + $0x18] sm:$0xff pattern:$0x73625140]  ;;  %v4599_v37 = vld [vmem:[#allocation8 + $0x3b8] sm:$0xff] }
 0x22f   : > { %2318 = vmatpush.msrb.mxu3 %v1809_v10  ;;  %2259 = vmatpush.msrb.mxu0 %v1417_v35  ;;  %v1729_v34 = vunpack.c.h.bf16 %v5165_v43  ;;  %v1337_v26 = vunpack.c.h.bf16 %v5167_v41  ;;  %v1473_v11 = vunpack.c.h.bf16 %v4448_v0  ;;  %5168 = vst [vmem:[#allocation47_spill] sm:$0xff] %v4542_v7  ;;  %v5169_v62 = vld [vmem:[#allocation34_spill] sm:$0xff]  ;;  %v5170_v35 = vld [vmem:[#allocation43_spill] sm:$0xff]  ;;  %v5173_v0 = vld [vmem:[#allocation33_spill] sm:$0xff]  ;;  %v1554_v19 = vunpack.c.l.bf16 %v4599_v37 }
 0x230   : > { %2278 = vmatpush.msrb.mxu1 %v1553_v8  ;;  %2301 = vmatpush.msrb.mxu2 %v1657_v22  ;;  %v1585_v10 = vunpack.c.h.bf16 %v5169_v62  ;;  %v1721_v8 = vunpack.c.h.bf16 %v5170_v35  ;;  %v5171_v54 = vld [vmem:[#allocation46_spill] sm:$0xff]  ;;  %v4551_v22 = vld.sshfl [vmem:[#allocation1 + $0x8] sm:$0xff pattern:$0x73625140] }
 0x231   : > { %2319 = vmatpush.msrb.mxu3 %v1801_v45  ;;  %2260 = vmatpush.msrb.mxu0 %v1409_v4  ;;  %v1329_v45 = vunpack.c.h.bf16 %v5171_v54  ;;  %v1465_v4 = vunpack.c.h.bf16 %v4460_v29  ;;  %5172 = vst [vmem:[#allocation48_spill] sm:$0xff] %v4551_v22  ;;  %v4605_v12 = vld [vmem:[#allocation8 + $0x178] sm:$0xff] }
 0x232   : > { %2279 = vmatpush.msrb.mxu1 %v1545_v32  ;;  %2302 = vmatpush.msrb.mxu2 %v1649_v53  ;;  %v4549_v32 = vld [vmem:[#allocation8 + $0x5f8] sm:$0xff] }
 0x233   : > { %2320 = vmatpush.msrb.mxu3 %v1793_v25  ;;  %2261 = vmatpush.msrb.mxu0 %v1401_v40  ;;  %v1577_v25 = vunpack.c.h.bf16 %v5173_v0  ;;  %v1713_v40 = vunpack.c.h.bf16 %v4462_v60  ;;  %v4557_v53 = vld [vmem:[#allocation8 + $0x1f8] sm:$0xff]  ;;  %v1698_v29 = vunpack.c.l.bf16 %v4549_v32  ;;  %v1705_v60 = vunpack.c.h.bf16 %v4472_v55 }
 0x234   : > { %2280 = vmatpush.msrb.mxu1 %v1537_v13  ;;  %2303 = vmatpush.msrb.mxu2 %v1641_v5  ;;  %v1321_v13 = vunpack.c.h.bf16 %v4466_v27  ;;  %v4566_v5 = vld [vmem:[#allocation8 + $0x1d8] sm:$0xff]  ;;  %v1442_v27 = vunpack.c.l.bf16 %v4557_v53  ;;  %v1449_v55 = vunpack.c.h.bf16 %v4478_v63 }
 0x235   : > { %2321 = vmatpush.msrb.mxu3 %v1785_v50  ;;  %2262 = vmatpush.msrb.mxu0 %v1393_v59  ;;  %v1457_v50 = vunpack.c.h.bf16 %v4470_v58  ;;  %v4561_v59 = vld [vmem:[#allocation8 + $0x5d8] sm:$0xff] }
 0x236   : > { %2281 = vmatpush.msrb.mxu1 %v1529_v20  ;;  %2304 = vmatpush.msrb.mxu2 %v1633_v56  ;;  %v4563_v20 = vld [vmem:[#allocation8 + $0x7f8] sm:$0xff]  ;;  %v1690_v58 = vunpack.c.l.bf16 %v4561_v59 }
 0x237   : > { %2322 = vmatpush.msrb.mxu3 %v1777_v21  ;;  %2263 = vmatpush.msrb.mxu0 %v1385_v57  ;;  %v4569_v21 = vld [vmem:[#allocation8 + $0x5b8] sm:$0xff]  ;;  %v1826_v57 = vunpack.c.l.bf16 %v4563_v20 }
 0x238   : > { %2282 = vmatpush.msrb.mxu1 %v1521_v61  ;;  %2305 = vmatpush.msrb.mxu2 %v1625_v9  ;;  %v4574_v61 = vld [vmem:[#allocation8 + $0x3f8] sm:$0xff]  ;;  %v1682_v9 = vunpack.c.l.bf16 %v4569_v21 }
 0x239   : > { %2323 = vmatpush.msrb.mxu3 %v1769_v14  ;;  %2264 = vmatpush.msrb.mxu0 %v1377_v48  ;;  %v4576_v56 = vld [vmem:[#allocation8 + $0x7d8] sm:$0xff]  ;;  %v1434_v14 = vunpack.c.l.bf16 %v4566_v5  ;;  %v1570_v63 = vunpack.c.l.bf16 %v4574_v61 }
 0x23a   : > { %2283 = vmatpush.msrb.mxu1 %v1513_v18  ;;  %2306 = vmatpush.msrb.mxu2 %v1617_v15  ;;  %v4580_v48 = vld [vmem:[#allocation8 + $0x1b8] sm:$0xff] }
 0x23b   : > { %2324 = vmatpush.msrb.mxu3 %v1761_v23  ;;  %2265 = vmatpush.msrb.mxu0 %v1369_v30  ;;  %v4582_v18 = vld [vmem:[#allocation8 + $0x598] sm:$0xff] }
 0x23c   : > { %2284 = vmatpush.msrb.mxu1 %v1505_v28  ;;  %2307 = vmatpush.msrb.mxu2 %v1609_v47  ;;  %v4586_v23 = vld [vmem:[#allocation8 + $0x3d8] sm:$0xff]  ;;  %v1818_v28 = vunpack.c.l.bf16 %v4576_v56 }
 0x23d   : > { %2325 = vmatpush.msrb.mxu3 %v1753_v24  ;;  %2266 = vmatpush.msrb.mxu0 %v1361_v38  ;;  %v4588_v30 = vld [vmem:[#allocation8 + $0x7b8] sm:$0xff]  ;;  %v1426_v38 = vunpack.c.l.bf16 %v4580_v48  ;;  %v1562_v36 = vunpack.c.l.bf16 %v4586_v23 }
 0x23e   : > { %2285 = vmatpush.msrb.mxu1 %v1497_v2  ;;  %2232 = vmatmul.f32.vlgmr.msra.gmra.mxu2 %v4531_v44  ;;  %v4593_v15 = vld [vmem:[#allocation8 + $0x198] sm:$0xff]  ;;  %v1674_v2 = vunpack.c.l.bf16 %v4582_v18 }
 0x23f   : > { %2326 = vmatpush.msrb.mxu3 %v1745_v39  ;;  %2267 = vmatpush.msrb.mxu0 %v1353_v1  ;;  %v4595_v24 = vld [vmem:[#allocation8 + $0x578] sm:$0xff]  ;;  %v1810_v39 = vunpack.c.l.bf16 %v4588_v30  ;;  %v1418_v46 = vunpack.c.l.bf16 %v4593_v15 }
 0x240   : > { %2286 = vmatpush.msrb.mxu1 %v1489_v16  ;;  %2308 = vmatpush.msrb.mxu2 %v1601_v3  ;;  %v4601_v47 = vld [vmem:[#allocation8 + $0x798] sm:$0xff]  ;;  %v1666_v16 = vunpack.c.l.bf16 %v4595_v24 }
 0x241   : > { %2327 = vmatpush.msrb.mxu3 %v1737_v49  ;;  %2192 = vmatmul.f32.vlgmr.msra.gmra.mxu0 %v4537_v6  ;;  %v4607_v1 = vld [vmem:[#allocation8 + $0x558] sm:$0xff]  ;;  %v1802_v49 = vunpack.c.l.bf16 %v4601_v47 }
 0x242   : > { %2252 = vmatmul.f32.vlgmr.msra.gmra.mxu3 %v4542_v7  ;;  %2268 = vmatpush.msrb.mxu0 %v1345_v33  ;;  %v4612_v42 = vld [vmem:[#allocation8 + $0x398] sm:$0xff]  ;;  %v1658_v52 = vunpack.c.l.bf16 %v4607_v1 }
 0x243   : > { %2287 = vmatpush.msrb.mxu1 %v1481_v51  ;;  %2309 = vmatpush.msrb.mxu2 %v1593_v31  ;;  %v4614_v3 = vld [vmem:[#allocation8 + $0x778] sm:$0xff]  ;;  %v1410_v51 = vunpack.c.l.bf16 %v4605_v12 }
 0x244   : > { %2328 = vmatpush.msrb.mxu3 %v1729_v34  ;;  %2212 = vmatmul.f32.vlgmr.msra.gmra.mxu1 %v4551_v22  ;;  %v4618_v17 = vld [vmem:[#allocation8 + $0x158] sm:$0xff]  ;;  %v1546_v34 = vunpack.c.l.bf16 %v4612_v42  ;;  %v1794_v41 = vunpack.c.l.bf16 %v4614_v3 }
 0x245   : > { %2269 = vmatpush.msrb.mxu0 %v1337_v26  ;;  %2288 = vmatpush.msrb.mxu1 %v1473_v11  ;;  %v4620_v33 = vld [vmem:[#allocation8 + $0x538] sm:$0xff]  ;;  %v1402_v62 = vunpack.c.l.bf16 %v4618_v17 }
 0x246   : > { %2310 = vmatpush.msrb.mxu2 %v1585_v10  ;;  %2329 = vmatpush.msrb.mxu3 %v1721_v8  ;;  %v4624_v31 = vld [vmem:[#allocation8 + $0x378] sm:$0xff]  ;;  %v1650_v10 = vunpack.c.l.bf16 %v4620_v33 }
 0x247   : > { %2270 = vmatpush.msrb.mxu0 %v1329_v45  ;;  %2289 = vmatpush.msrb.mxu1 %v1465_v4  ;;  %v4626_v43 = vld [vmem:[#allocation8 + $0x758] sm:$0xff]  ;;  %v1538_v54 = vunpack.c.l.bf16 %v4624_v31 }
 0x248   : > { %2311 = vmatpush.msrb.mxu2 %v1577_v25  ;;  %2330 = vmatpush.msrb.mxu3 %v1713_v40  ;;  %v4630_v26 = vld [vmem:[#allocation8 + $0x138] sm:$0xff]  ;;  %v1786_v45 = vunpack.c.l.bf16 %v4626_v43 }
 0x249   : > { %2312 = vmatmul.f32.vlgmr.msrb.gmra.mxu2 %v4531_v44  ;;  %2271 = vmatpush.msrb.mxu0 %v1321_v13  ;;  %v4632_v11 = vld [vmem:[#allocation8 + $0x518] sm:$0xff]  ;;  %v1394_v25 = vunpack.c.l.bf16 %v4630_v26 }
 0x24a   : > { %2376 = vmatpush.msra.mxu2 %v1698_v29  ;;  %2290 = vmatpush.msrb.mxu1 %v1457_v50  ;;  %v4636_v35 = vld [vmem:[#allocation8 + $0x358] sm:$0xff]  ;;  %v1642_v40 = vunpack.c.l.bf16 %v4632_v11 }
 0x24b   : > { %2331 = vmatpush.msrb.mxu3 %v1705_v60  ;;  %2272 = vmatmul.f32.vlgmr.msrb.gmra.mxu0 %v4537_v6  ;;  %v4638_v8 = vld [vmem:[#allocation8 + $0x738] sm:$0xff]  ;;  %v1530_v50 = vunpack.c.l.bf16 %v4636_v35 }
 0x24c   : > { %2332 = vmatmul.f32.vlgmr.msrb.gmra.mxu3 %v4542_v7  ;;  %2336 = vmatpush.msra.mxu0 %v1442_v27  ;;  %v4642_v4 = vld [vmem:[#allocation8 + $0x118] sm:$0xff]  ;;  %v1778_v60 = vunpack.c.l.bf16 %v4638_v8 }
 0x24d   : > { %2377 = vmatpush.msra.mxu2 %v1690_v58  ;;  %2396 = vmatpush.msra.mxu3 %v1826_v57  ;;  %v4644_v0 = vld [vmem:[#allocation8 + $0x4f8] sm:$0xff]  ;;  %v1386_v57 = vunpack.c.l.bf16 %v4642_v4 }
 0x24e   : > { %2291 = vmatpush.msrb.mxu1 %v1449_v55  ;;  %2337 = vmatpush.msra.mxu0 %v1434_v14  ;;  %v4648_v13 = vld [vmem:[#allocation8 + $0x338] sm:$0xff]  ;;  %v1634_v55 = vunpack.c.l.bf16 %v4644_v0 }
 0x24f   : > { %2292 = vmatmul.f32.vlgmr.msrb.gmra.mxu1 %v4551_v22  ;;  %2378 = vmatpush.msra.mxu2 %v1682_v9  ;;  %v4650_v29 = vld [vmem:[#allocation8 + $0x718] sm:$0xff] }
 0x250   : > { %2356 = vmatpush.msra.mxu1 %v1570_v63  ;;  %2397 = vmatpush.msra.mxu3 %v1818_v28  ;;  %v4654_v27 = vld [vmem:[#allocation8 + $0xf8] sm:$0xff]  ;;  %v1522_v63 = vunpack.c.l.bf16 %v4648_v13  ;;  %v1770_v28 = vunpack.c.l.bf16 %v4650_v29 }
 0x251   : > { %2338 = vmatpush.msra.mxu0 %v1426_v38  ;;  %2379 = vmatpush.msra.mxu2 %v1674_v2  ;;  %v4656_v58 = vld [vmem:[#allocation8 + $0x4d8] sm:$0xff] }
 0x252   : > { %2357 = vmatpush.msra.mxu1 %v1562_v36  ;;  %2398 = vmatpush.msra.mxu3 %v1810_v39  ;;  %v4660_v14 = vld [vmem:[#allocation8 + $0x318] sm:$0xff]  ;;  %v1378_v36 = vunpack.c.l.bf16 %v4654_v27  ;;  %v1626_v39 = vunpack.c.l.bf16 %v4656_v58 }
 0x253   : > { %2339 = vmatpush.msra.mxu0 %v1418_v46  ;;  %2380 = vmatpush.msra.mxu2 %v1666_v16  ;;  %v4662_v9 = vld [vmem:[#allocation8 + $0x6f8] sm:$0xff] }
 0x254   : > { %2358 = vmatpush.msra.mxu1 %v1554_v19  ;;  %2399 = vmatpush.msra.mxu3 %v1802_v49  ;;  %v4666_v38 = vld [vmem:[#allocation8 + $0xd8] sm:$0xff]  ;;  %v1514_v19 = vunpack.c.l.bf16 %v4660_v14  ;;  %v1762_v49 = vunpack.c.l.bf16 %v4662_v9 }
 0x255   : > { %2340 = vmatpush.msra.mxu0 %v1410_v51  ;;  %2381 = vmatpush.msra.mxu2 %v1658_v52  ;;  %v4668_v2 = vld [vmem:[#allocation8 + $0x4b8] sm:$0xff] }
 0x256   : > { %2359 = vmatpush.msra.mxu1 %v1546_v34  ;;  %2400 = vmatpush.msra.mxu3 %v1794_v41  ;;  %v4672_v46 = vld [vmem:[#allocation8 + $0x2f8] sm:$0xff]  ;;  %v1370_v34 = vunpack.c.l.bf16 %v4666_v38  ;;  %v1618_v41 = vunpack.c.l.bf16 %v4668_v2 }
 0x257   : > { %2341 = vmatpush.msra.mxu0 %v1402_v62  ;;  %2382 = vmatpush.msra.mxu2 %v1650_v10  ;;  %v4674_v16 = vld [vmem:[#allocation8 + $0x6d8] sm:$0xff] }
 0x258   : > { %2360 = vmatpush.msra.mxu1 %v1538_v54  ;;  %2401 = vmatpush.msra.mxu3 %v1786_v45  ;;  %v4678_v51 = vld [vmem:[#allocation8 + $0xb8] sm:$0xff]  ;;  %v1506_v54 = vunpack.c.l.bf16 %v4672_v46  ;;  %v1754_v45 = vunpack.c.l.bf16 %v4674_v16 }
 0x259   : > { %2342 = vmatpush.msra.mxu0 %v1394_v25  ;;  %2383 = vmatpush.msra.mxu2 %v1642_v40  ;;  %v4680_v52 = vld [vmem:[#allocation8 + $0x498] sm:$0xff] }
 0x25a   : > { %2361 = vmatpush.msra.mxu1 %v1530_v50  ;;  %2402 = vmatpush.msra.mxu3 %v1778_v60  ;;  %5174 = vst [vmem:[#allocation50_spill] sm:$0xff] %v4680_v52  ;;  %v4684_v62 = vld [vmem:[#allocation8 + $0x2d8] sm:$0xff]  ;;  %v1362_v50 = vunpack.c.l.bf16 %v4678_v51  ;;  %v1610_v60 = vunpack.c.l.bf16 %v4680_v52 }
 0x25b   : > { %2343 = vmatpush.msra.mxu0 %v1386_v57  ;;  %2384 = vmatpush.msra.mxu2 %v1634_v55  ;;  %v4686_v10 = vld [vmem:[#allocation8 + $0x6b8] sm:$0xff] }
 0x25c   : > { %5175 = vst [vmem:[#allocation35_spill] sm:$0xff] %v4686_v10  ;;  %2362 = vmatpush.msra.mxu1 %v1522_v63  ;;  %2403 = vmatpush.msra.mxu3 %v1770_v28  ;;  %v4690_v25 = vld [vmem:[#allocation8 + $0x98] sm:$0xff]  ;;  %v1498_v63 = vunpack.c.l.bf16 %v4684_v62  ;;  %v1746_v28 = vunpack.c.l.bf16 %v4686_v10 }
 0x25d   : > { %5176 = vst [vmem:[#allocation49_spill] sm:$0xff] %v4690_v25  ;;  %v4692_v40 = vld [vmem:[#allocation8 + $0x478] sm:$0xff]  ;;  %2344 = vmatpush.msra.mxu0 %v1378_v36  ;;  %2385 = vmatpush.msra.mxu2 %v1626_v39  ;;  %v1354_v36 = vunpack.c.l.bf16 %v4690_v25 }
 0x25e   : > { %5177 = vst [vmem:[#allocation51_spill] sm:$0xff] %v4692_v40  ;;  %v4696_v57 = vld [vmem:[#allocation8 + $0x2b8] sm:$0xff]  ;;  %2363 = vmatpush.msra.mxu1 %v1514_v19  ;;  %2404 = vmatpush.msra.mxu3 %v1762_v49  ;;  %v1602_v39 = vunpack.c.l.bf16 %v4692_v40 }
 0x25f   : > { %5178 = vst [vmem:[#allocation53_spill] sm:$0xff] %v4696_v57  ;;  %v4698_v55 = vld [vmem:[#allocation8 + $0x698] sm:$0xff]  ;;  %2345 = vmatpush.msra.mxu0 %v1370_v34  ;;  %2386 = vmatpush.msra.mxu2 %v1618_v41  ;;  %v1490_v19 = vunpack.c.l.bf16 %v4696_v57 }
 0x260   : > { %5179 = vst [vmem:[#allocation52_spill] sm:$0xff] %v4698_v55  ;;  %v4702_v22 = vld [vmem:[#allocation8 + $0x78] sm:$0xff]  ;;  %2364 = vmatpush.msra.mxu1 %v1506_v54  ;;  %2405 = vmatpush.msra.mxu3 %v1754_v45  ;;  %v1738_v49 = vunpack.c.l.bf16 %v4698_v55 }
 0x261   : > { %5180 = vst [vmem:[#allocation36_spill] sm:$0xff] %v4702_v22  ;;  %v4704_v7 = vld [vmem:[#allocation8 + $0x458] sm:$0xff]  ;;  %2346 = vmatpush.msra.mxu0 %v1362_v50  ;;  %2387 = vmatpush.msra.mxu2 %v1610_v60  ;;  %v1346_v34 = vunpack.c.l.bf16 %v4702_v22 }
 0x262   : > { %5181 = vst [vmem:[#allocation38_spill] sm:$0xff] %v4704_v7  ;;  %v4708_v6 = vld [vmem:[#allocation8 + $0x298] sm:$0xff]  ;;  %v1594_v41 = vunpack.c.l.bf16 %v4704_v7  ;;  %2365 = vmatpush.msra.mxu1 %v1498_v63  ;;  %2406 = vmatpush.msra.mxu3 %v1746_v28 }
 0x263   : > { %v4710_v44 = vld [vmem:[#allocation8 + $0x678] sm:$0xff]  ;;  %v1482_v54 = vunpack.c.l.bf16 %v4708_v6  ;;  %2347 = vmatpush.msra.mxu0 %v1354_v36  ;;  %2388 = vmatpush.msra.mxu2 %v1602_v39 }
 0x264   : > { %5182 = vst [vmem:[#allocation41_spill] sm:$0xff] %v4710_v44  ;;  %v4714_v10 = vld [vmem:[#allocation8 + $0x58] sm:$0xff]  ;;  %v1730_v45 = vunpack.c.l.bf16 %v4710_v44  ;;  %2366 = vmatpush.msra.mxu1 %v1490_v19  ;;  %2407 = vmatpush.msra.mxu3 %v1738_v49 }
 0x265   : > { %5183 = vst [vmem:[#allocation42_spill] sm:$0xff] %v4714_v10  ;;  %v4716_v52 = vld [vmem:[#allocation8 + $0x438] sm:$0xff]  ;;  %v1338_v50 = vunpack.c.l.bf16 %v4714_v10  ;;  %2348 = vmatpush.msra.mxu0 %v1346_v34  ;;  %2389 = vmatpush.msra.mxu2 %v1594_v41 }
 0x266   : > { %5184 = vst [vmem:[#allocation39_spill] sm:$0xff] %v4716_v52  ;;  %v4720_v40 = vld [vmem:[#allocation8 + $0x278] sm:$0xff]  ;;  %v1586_v60 = vunpack.c.l.bf16 %v4716_v52  ;;  %2367 = vmatpush.msra.mxu1 %v1482_v54  ;;  %2408 = vmatpush.msra.mxu3 %v1730_v45  ;;  %v1443_v45 = vunpack.c.h.bf16 %v4557_v53  ;;  %v1683_v53 = vunpack.c.h.bf16 %v4569_v21  ;;  %v1419_v21 = vunpack.c.h.bf16 %v4593_v15 }
 0x267   : > { %v4722_v25 = vld [vmem:[#allocation8 + $0x658] sm:$0xff]  ;;  %v1474_v63 = vunpack.c.l.bf16 %v4720_v40  ;;  %2349 = vmatpush.msra.mxu0 %v1338_v50  ;;  %v1691_v50 = vunpack.c.h.bf16 %v4561_v59  ;;  %v1819_v59 = vunpack.c.h.bf16 %v4576_v56  ;;  %v1555_v56 = vunpack.c.h.bf16 %v4599_v37 }
 0x268   : > { %5185 = vst [vmem:[#allocation40_spill] sm:$0xff] %v4722_v25  ;;  %v4726_v55 = vld [vmem:[#allocation8 + $0x38] sm:$0xff]  ;;  %v1722_v28 = vunpack.c.l.bf16 %v4722_v25  ;;  %2390 = vmatpush.msra.mxu2 %v1586_v60  ;;  %v1699_v25 = vunpack.c.h.bf16 %v4549_v32  ;;  %v1827_v32 = vunpack.c.h.bf16 %v4563_v20  ;;  %v1427_v20 = vunpack.c.h.bf16 %v4580_v48 }
 0x269   : > { %5186 = vst [vmem:[#allocation45_spill] sm:$0xff] %v4726_v55  ;;  %v4728_v57 = vld [vmem:[#allocation8 + $0x418] sm:$0xff]  ;;  %v1330_v36 = vunpack.c.l.bf16 %v4726_v55  ;;  %v4752_v55 = vpop.f32.mrf.mxu0  ;;  %2368 = vmatpush.msra.mxu1 %v1474_v63  ;;  %v1435_v63 = vunpack.c.h.bf16 %v4566_v5  ;;  %v1675_v5 = vunpack.c.h.bf16 %v4582_v18  ;;  %v1667_v48 = vunpack.c.h.bf16 %v4595_v24 }
 0x26a   : > { %5187 = vst [vmem:[#allocation34_spill] sm:$0xff] %v4728_v57  ;;  %v4732_v7 = vld [vmem:[#allocation8 + $0x258] sm:$0xff]  ;;  %v1578_v39 = vunpack.c.l.bf16 %v4728_v57  ;;  %2409 = vmatpush.msra.mxu3 %v1722_v28  ;;  %v1571_v28 = vunpack.c.h.bf16 %v4574_v61  ;;  %v1811_v61 = vunpack.c.h.bf16 %v4588_v30  ;;  %v1411_v18 = vunpack.c.h.bf16 %v4605_v12 }
 0x26b   : > { %v4734_v22 = vld [vmem:[#allocation8 + $0x638] sm:$0xff]  ;;  %v1466_v19 = vunpack.c.l.bf16 %v4732_v7  ;;  %2350 = vmatpush.msra.mxu0 %v1330_v36  ;;  %v4764_v36 = vpop.f32.mrf.mxu2  ;;  %v1547_v30 = vunpack.c.h.bf16 %v4612_v42  ;;  %v1795_v15 = vunpack.c.h.bf16 %v4614_v3  ;;  %v1403_v37 = vunpack.c.h.bf16 %v4618_v17  ;;  %v4786_v42 = vld [vmem:[#allocation9] sm:$0xff] }
 0x26c   : > { %v4738_v44 = vld [vmem:[#allocation8 + $0x18] sm:$0xff]  ;;  %v1714_v49 = vunpack.c.l.bf16 %v4734_v22  ;;  %2391 = vmatpush.msra.mxu2 %v1578_v39  ;;  %v4772_v39 = vpop.f32.mrf.mxu3  ;;  %v1539_v24 = vunpack.c.h.bf16 %v4624_v31  ;;  %v1787_v12 = vunpack.c.h.bf16 %v4626_v43  ;;  %v1531_v3 = vunpack.c.h.bf16 %v4636_v35 }
 0x26d   : > { %v4742_v10 = vld [vmem:[#allocation8 + $0x238] sm:$0xff]  ;;  %v1322_v34 = vunpack.c.l.bf16 %v4738_v44  ;;  %2369 = vmatpush.msra.mxu1 %v1466_v19  ;;  %v1659_v19 = vunpack.c.h.bf16 %v4607_v1  ;;  %v1395_v1 = vunpack.c.h.bf16 %v4630_v26  ;;  %v1643_v17 = vunpack.c.h.bf16 %v4632_v11 }
 0x26e   : > { %5188 = vst [vmem:[#allocation43_spill] sm:$0xff] %v4742_v10  ;;  %v4744_v52 = vld [vmem:[#allocation8 + $0x618] sm:$0xff]  ;;  %v1458_v57 = vunpack.c.l.bf16 %v4742_v10  ;;  %2410 = vmatpush.msra.mxu3 %v1714_v49  ;;  %2456 = vmatpush.msrb.mxu2 %v1699_v25  ;;  %v4762_v10 = vpop.f32.mrf.mxu1  ;;  %v1563_v25 = vunpack.c.h.bf16 %v4586_v23  ;;  %v1803_v23 = vunpack.c.h.bf16 %v4601_v47  ;;  %v1651_v47 = vunpack.c.h.bf16 %v4620_v33 }
 0x26f   : > { %v4750_v41 = vld [vmem:[#allocation8 + $0x218] sm:$0xff]  ;;  %v1706_v54 = vunpack.c.l.bf16 %v4744_v52  ;;  %2351 = vmatpush.msra.mxu0 %v1322_v34  ;;  %v1779_v31 = vunpack.c.h.bf16 %v4638_v8  ;;  %v1387_v33 = vunpack.c.h.bf16 %v4642_v4  ;;  %v1523_v43 = vunpack.c.h.bf16 %v4648_v13 }
 0x270   : > { %v1450_v60 = vunpack.c.l.bf16 %v4750_v41  ;;  %2370 = vmatpush.msra.mxu1 %v1458_v57  ;;  %2457 = vmatpush.msrb.mxu2 %v1691_v50  ;;  %v1635_v26 = vunpack.c.h.bf16 %v4644_v0  ;;  %v1771_v35 = vunpack.c.h.bf16 %v4650_v29  ;;  %v1379_v11 = vunpack.c.h.bf16 %v4654_v27 }
 0x271   : > { %2411 = vmatpush.msra.mxu3 %v1706_v54  ;;  %2416 = vmatpush.msrb.mxu0 %v1443_v45  ;;  %v1953_v57 = vpop.f32.mrf.mxu0  ;;  %v1831_v54 = vperm.slane %v4786_v42, 1  ;;  %v1515_v8 = vunpack.c.h.bf16 %v4660_v14  ;;  %v1832_v4 = vperm.slane %v4786_v42, 2  ;;  %v1627_v13 = vunpack.c.h.bf16 %v4656_v58 }
 0x272   : > { %2371 = vmatpush.msra.mxu1 %v1450_v60  ;;  %2458 = vmatpush.msrb.mxu2 %v1683_v53  ;;  %v1763_v50 = vunpack.c.h.bf16 %v4662_v9  ;;  %v1371_v0 = vunpack.c.h.bf16 %v4666_v38  ;;  %v1507_v29 = vunpack.c.h.bf16 %v4672_v46  ;;  %v1619_v27 = vunpack.c.h.bf16 %v4668_v2  ;;  %v5190_v53 = vld [vmem:[#allocation35_spill] sm:$0xff]  ;;  %v5191_v2 = vld [vmem:[#allocation49_spill] sm:$0xff] }
 0x273   : > { %2476 = vmatpush.msrb.mxu3 %v1827_v32  ;;  %2417 = vmatpush.msrb.mxu0 %v1435_v63  ;;  %v4790_v34 = vpop.f32.mrf.mxu2  ;;  %v1954_v60 = vadd.f32 %v1953_v57, %v1831_v54  ;;  %v1755_v14 = vunpack.c.h.bf16 %v4674_v16  ;;  %v1363_v58 = vunpack.c.h.bf16 %v4678_v51  ;;  %v1499_v9 = vunpack.c.h.bf16 %v4684_v62  ;;  %v5192_v51 = vld [vmem:[#allocation53_spill] sm:$0xff]  ;;  %v5195_v57 = vld [vmem:[#allocation36_spill] sm:$0xff] }
 0x274   : > { %2436 = vmatpush.msrb.mxu1 %v1571_v28  ;;  %2459 = vmatpush.msrb.mxu2 %v1675_v5  ;;  %v4799_v45 = vpop.f32.mrf.mxu3  ;;  %v5189_v28 = vld [vmem:[#allocation50_spill] sm:$0xff]  ;;  %v1747_v46 = vunpack.c.h.bf16 %v5190_v53  ;;  %v1355_v16 = vunpack.c.h.bf16 %v5191_v2  ;;  %v1491_v62 = vunpack.c.h.bf16 %v5192_v51 }
 0x275   : > { %2477 = vmatpush.msrb.mxu3 %v1819_v59  ;;  %2418 = vmatpush.msrb.mxu0 %v1427_v20  ;;  %v1611_v38 = vunpack.c.h.bf16 %v5189_v28 }
 0x276   : > { %2437 = vmatpush.msrb.mxu1 %v1563_v25  ;;  %2460 = vmatpush.msrb.mxu2 %v1667_v48  ;;  %v1973_v49 = vpop.f32.mrf.mxu1  ;;  %v1830_v25 = vperm.slane %v4786_v42, 0 }
 0x277   : > { %2478 = vmatpush.msrb.mxu3 %v1811_v61  ;;  %2419 = vmatpush.msrb.mxu0 %v1419_v21  ;;  %v1974_v5 = vadd.f32 %v1973_v49, %v1954_v60  ;;  %v5193_v61 = vld [vmem:[#allocation51_spill] sm:$0xff]  ;;  %v1715_v60 = vunpack.c.h.bf16 %v4734_v22 }
 0x278   : > { %2438 = vmatpush.msrb.mxu1 %v1555_v56  ;;  %2461 = vmatpush.msrb.mxu2 %v1659_v19  ;;  %v1603_v21 = vunpack.c.h.bf16 %v5193_v61  ;;  %v5194_v56 = vld [vmem:[#allocation52_spill] sm:$0xff]  ;;  %v1347_v19 = vunpack.c.h.bf16 %v5195_v57  ;;  %v1834_v57 = vperm.slane %v4786_v42, 4 }
 0x279   : > { %2479 = vmatpush.msrb.mxu3 %v1803_v23  ;;  %2420 = vmatpush.msrb.mxu0 %v1411_v18  ;;  %v2033_v32 = vpop.f32.mrf.mxu0  ;;  %v1739_v48 = vunpack.c.h.bf16 %v5194_v56  ;;  %v1835_v56 = vperm.slane %v4786_v42, 5 }
 0x27a   : > { %2439 = vmatpush.msrb.mxu1 %v1547_v30  ;;  %2462 = vmatpush.msrb.mxu2 %v1651_v47  ;;  %v2034_v63 = vadd.f32 %v2033_v32, %v1832_v4  ;;  %v1833_v30 = vperm.slane %v4786_v42, 3  ;;  %v5197_v47 = vld [vmem:[#allocation38_spill] sm:$0xff]  ;;  %v1467_v32 = vunpack.c.h.bf16 %v4732_v7  ;;  %v5207_v7 = vld [vmem:[#allocation43_spill] sm:$0xff] }
 0x27b   : > { %2480 = vmatpush.msrb.mxu3 %v1795_v15  ;;  %2421 = vmatpush.msrb.mxu0 %v1403_v37  ;;  %v2073_v20 = vpop.f32.mrf.mxu2  ;;  %v1874_v15 = vadd.f32 %v4752_v55, %v1830_v25  ;;  %v5196_v37 = vld [vmem:[#allocation44_spill] sm:$0xff]  ;;  %v1475_v55 = vunpack.c.h.bf16 %v4720_v40  ;;  %v5206_v40 = vld [vmem:[#allocation34_spill] sm:$0xff]  ;;  %v1459_v28 = vunpack.c.h.bf16 %v5207_v7 }
 0x27c   : > { %2440 = vmatpush.msrb.mxu1 %v1539_v24  ;;  %2463 = vmatpush.msrb.mxu2 %v1643_v17  ;;  %v1483_v24 = vunpack.c.h.bf16 %v4708_v6  ;;  %v5202_v6 = vld [vmem:[#allocation39_spill] sm:$0xff] }
 0x27d   : > { %2481 = vmatpush.msrb.mxu3 %v1787_v12  ;;  %2422 = vmatpush.msrb.mxu0 %v1395_v1  ;;  %v1595_v12 = vunpack.c.h.bf16 %v5197_v47  ;;  %v1994_v1 = vadd.f32 %v4790_v34, %v1974_v5  ;;  %v5203_v34 = vld [vmem:[#allocation40_spill] sm:$0xff]  ;;  %v1894_v4 = vadd.f32 %v4762_v10, %v1874_v15 }
 0x27e   : > { %2441 = vmatpush.msrb.mxu1 %v1531_v3  ;;  %2464 = vmatpush.msrb.mxu2 %v1635_v26  ;;  %v2053_v59 = vpop.f32.mrf.mxu1  ;;  %v5198_v3 = vld [vmem:[#allocation41_spill] sm:$0xff] }
 0x27f   : > { %2482 = vmatpush.msrb.mxu3 %v1779_v31  ;;  %2423 = vmatpush.msrb.mxu0 %v1387_v33  ;;  %v2054_v23 = vadd.f32 %v2053_v59, %v2034_v63  ;;  %v2093_v18 = vpop.f32.mrf.mxu3  ;;  %v1731_v49 = vunpack.c.h.bf16 %v5198_v3  ;;  %v5199_v31 = vld [vmem:[#allocation37_spill] sm:$0xff]  ;;  %v5200_v33 = vld [vmem:[#allocation42_spill] sm:$0xff]  ;;  %v1914_v53 = vadd.f32 %v4764_v36, %v1894_v4  ;;  %v1837_v3 = vperm.slane %v4786_v42, 7 }
 0x280   : > { %2442 = vmatpush.msrb.mxu1 %v1523_v43  ;;  %2465 = vmatpush.msrb.mxu2 %v1627_v13  ;;  %v1339_v43 = vunpack.c.h.bf16 %v5200_v33  ;;  %v5204_v13 = vld [vmem:[#allocation45_spill] sm:$0xff] }
 0x281   : > { %2483 = vmatpush.msrb.mxu3 %v1771_v35  ;;  %2424 = vmatpush.msrb.mxu0 %v1379_v11  ;;  %v2074_v54 = vadd.f32 %v2073_v20, %v2054_v23  ;;  %v5201_v35 = vld [vmem:[#allocation47_spill] sm:$0xff]  ;;  %v1587_v11 = vunpack.c.h.bf16 %v5202_v6  ;;  %v1836_v23 = vperm.slane %v4786_v42, 6 }
 0x282   : > { %2443 = vmatpush.msrb.mxu1 %v1515_v8  ;;  %2466 = vmatpush.msrb.mxu2 %v1619_v27  ;;  %v2113_v17 = vpop.f32.mrf.mxu0  ;;  %v1723_v8 = vunpack.c.h.bf16 %v5203_v34 }
 0x283   : > { %2484 = vmatpush.msrb.mxu3 %v1763_v50  ;;  %2425 = vmatpush.msrb.mxu0 %v1371_v0  ;;  %v2114_v26 = vadd.f32 %v2113_v17, %v1833_v30  ;;  %v1331_v50 = vunpack.c.h.bf16 %v5204_v13  ;;  %v5205_v0 = vld [vmem:[#allocation48_spill] sm:$0xff]  ;;  %v2094_v10 = vadd.f32 %v2093_v18, %v2074_v54 }
 0x284   : > { %2444 = vmatpush.msrb.mxu1 %v1507_v29  ;;  %2467 = vmatpush.msrb.mxu2 %v1611_v38  ;;  %v1579_v29 = vunpack.c.h.bf16 %v5206_v40  ;;  %v1707_v38 = vunpack.c.h.bf16 %v4744_v52  ;;  %v1934_v52 = vadd.f32 %v4772_v39, %v1914_v53 }
 0x285   : > { %2485 = vmatpush.msrb.mxu3 %v1755_v14  ;;  %2426 = vmatpush.msrb.mxu0 %v1363_v58  ;;  %v2014_v58 = vadd.f32 %v4799_v45, %v1994_v1  ;;  %v1451_v45 = vunpack.c.h.bf16 %v4750_v41 }
 0x286   : > { %2445 = vmatpush.msrb.mxu1 %v1499_v9  ;;  %2392 = vmatmul.f32.vlgmr.msra.gmra.mxu2 %v5196_v37  ;;  %v2133_v27 = vpop.f32.mrf.mxu1  ;;  %v2153_v14 = vpop.f32.mrf.mxu2  ;;  %v1323_v9 = vunpack.c.h.bf16 %v4738_v44  ;;  %v2505_v44 = vrot.slane %v2094_v10, 4 }
 0x287   : > { %2486 = vmatpush.msrb.mxu3 %v1747_v46  ;;  %2427 = vmatpush.msrb.mxu0 %v1355_v16  ;;  %v2134_v63 = vadd.f32 %v2133_v27, %v2114_v26  ;;  %v2504_v59 = vrot.slane %v2014_v58, 6 }
 0x288   : > { %2446 = vmatpush.msrb.mxu1 %v1491_v62  ;;  %2468 = vmatpush.msrb.mxu2 %v1603_v21 }
 0x289   : > { %2487 = vmatpush.msrb.mxu3 %v1739_v48  ;;  %2352 = vmatmul.f32.vlgmr.msra.gmra.mxu0 %v5199_v31  ;;  %v2154_v22 = vadd.f32 %v2153_v14, %v2134_v63  ;;  %v2173_v46 = vpop.f32.mrf.mxu3  ;;  %v2510_v25 = vsel %vm1031_vm0, %v1934_v52, %v2504_v59 }
 0x28a   : > { %2412 = vmatmul.f32.vlgmr.msra.gmra.mxu3 %v5201_v35  ;;  %2428 = vmatpush.msrb.mxu0 %v1347_v19 }
 0x28b   : > { %2447 = vmatpush.msrb.mxu1 %v1483_v24  ;;  %2469 = vmatpush.msrb.mxu2 %v1595_v12  ;;  %v2174_v20 = vadd.f32 %v2173_v46, %v2154_v22 }
 0x28c   : > { %2488 = vmatpush.msrb.mxu3 %v1731_v49  ;;  %2372 = vmatmul.f32.vlgmr.msra.gmra.mxu1 %v5205_v0 }
 0x28d   : > { %2429 = vmatpush.msrb.mxu0 %v1339_v43  ;;  %2448 = vmatpush.msrb.mxu1 %v1475_v55  ;;  %v2506_v36 = vrot.slane %v2174_v20, 2 }
 0x28e   : > { %2470 = vmatpush.msrb.mxu2 %v1587_v11  ;;  %2489 = vmatpush.msrb.mxu3 %v1723_v8 }
 0x28f   : > { %2430 = vmatpush.msrb.mxu0 %v1331_v50  ;;  %2449 = vmatpush.msrb.mxu1 %v1467_v32  ;;  %v2511_v41 = vsel %vm1033_vm1, %v2505_v44, %v2506_v36 }
 0x290   : > { %2471 = vmatpush.msrb.mxu2 %v1579_v29  ;;  %2490 = vmatpush.msrb.mxu3 %v1715_v60  ;;  %v2512_v2 = vsel %vm1035_vm2, %v2510_v25, %v2511_v41 }
 0x291   : > { %2472 = vmatmul.f32.vlgmr.msrb.gmra.mxu2 %v5196_v37  ;;  %2431 = vmatpush.msrb.mxu0 %v1323_v9  ;;  %2518 = vst [vmem:[#allocation11] sm:$0xff] %v2512_v2 }
 0x292   : > { %2450 = vmatpush.msrb.mxu1 %v1459_v28  ;;  %2491 = vmatpush.msrb.mxu3 %v1707_v38 }
 0x293   : > { %2432 = vmatmul.f32.vlgmr.msrb.gmra.mxu0 %v5199_v31  ;;  %2492 = vmatmul.f32.vlgmr.msrb.gmra.mxu3 %v5201_v35 }
 0x294   : > { %2451 = vmatpush.msrb.mxu1 %v1451_v45 }
 0x295   : > { %2452 = vmatmul.f32.vlgmr.msrb.gmra.mxu1 %v5205_v0 }
 0x2be   : > { %v2193_v16 = vpop.f32.mrf.mxu0 }
 0x2bf   : > { %v2194_v47 = vadd.f32 %v2193_v16, %v1834_v57 }
 0x2c1   : > { %v2213_v5 = vpop.f32.mrf.mxu1  ;;  %v2233_v51 = vpop.f32.mrf.mxu2 }
 0x2c2   : > { %v2214_v31 = vadd.f32 %v2213_v5, %v2194_v47 }
 0x2c4   : > { %v2234_v6 = vadd.f32 %v2233_v51, %v2214_v31 }
 0x2c5   : > { %v2253_v62 = vpop.f32.mrf.mxu3 }
 0x2c6   : > { %v2254_v50 = vadd.f32 %v2253_v62, %v2234_v6 }
 0x2c8   : > { %v2273_v39 = vpop.f32.mrf.mxu0 }
 0x2c9   : > { %v2274_v30 = vadd.f32 %v2273_v39, %v1835_v56 }
 0x2cc   : > { %v2293_v61 = vpop.f32.mrf.mxu1  ;;  %v2313_v21 = vpop.f32.mrf.mxu2 }
 0x2cd   : > { %v2294_v24 = vadd.f32 %v2293_v61, %v2274_v30 }
 0x2cf   : > { %v2333_v48 = vpop.f32.mrf.mxu3  ;;  %v2314_v49 = vadd.f32 %v2313_v21, %v2294_v24 }
 0x2d1   : > { %v2334_v54 = vadd.f32 %v2333_v48, %v2314_v49 }
 0x2d3   : > { %v2507_v4 = vrot.slane %v2334_v54, 6 }
 0x2d5   : > { %v2513_v42 = vsel %vm1031_vm0, %v2254_v50, %v2507_v4 }
 0x306   : > { %v2353_v18 = vpop.f32.mrf.mxu0 }
 0x307   : > { %v2354_v19 = vadd.f32 %v2353_v18, %v1836_v23 }
 0x309   : > { %v2373_v15 = vpop.f32.mrf.mxu1  ;;  %v2393_v37 = vpop.f32.mrf.mxu2 }
 0x30a   : > { %v2374_v12 = vadd.f32 %v2373_v15, %v2354_v19 }
 0x30c   : > { %v2394_v33 = vadd.f32 %v2393_v37, %v2374_v12 }
 0x30d   : > { %v2413_v1 = vpop.f32.mrf.mxu3 }
 0x30e   : > { %v2414_v11 = vadd.f32 %v2413_v1, %v2394_v33 }
 0x310   : > { %v2433_v17 = vpop.f32.mrf.mxu0  ;;  %v2508_v32 = vrot.slane %v2414_v11, 4 }
 0x311   : > { %v2434_v43 = vadd.f32 %v2433_v17, %v1837_v3 }
 0x312   : > { %v2453_v55 = vpop.f32.mrf.mxu1 }
 0x313   : > { %v2454_v26 = vadd.f32 %v2453_v55, %v2434_v43 }
 0x314   : > { %v2473_v35 = vpop.f32.mrf.mxu2 }
 0x315   : > { %v2474_v34 = vadd.f32 %v2473_v35, %v2454_v26 }
 0x316   : > { %v2493_v8 = vpop.f32.mrf.mxu3 }
 0x317   : > { %v2494_v13 = vadd.f32 %v2493_v8, %v2474_v34 }
 0x319   : > { %v2509_v0 = vrot.slane %v2494_v13, 2 }
 0x31b   : > { %v2514_v40 = vsel %vm1033_vm1, %v2508_v32, %v2509_v0 }
 0x31c   : > { %v2515_v29 = vsel %vm1035_vm2, %v2513_v42, %v2514_v40 }
 0x31d   : > { %2519 = vst [vmem:[#allocation11 + $0x8] sm:$0xff] %v2515_v29 }
 0x31e PF: > { %p2684_p4 = scmp.eq.s32.totalorder %s2985_s22, 7  ;;  %s2935_s12 = smov [#allocation11]  }
 0x31f   : > { %s2526_s13 = sshll.u32 %s2935_s12, 4  ;;  %s2528_s21 = sshll.u32 %s4882_s5, 4  ;;  %s2527_s13 = int_to_ptr.vmem [resolvable:$true] %s2526_s13  ;;  %s2529_s21 = int_to_ptr.hbm [resolvable:$true] %s2528_s21 }
 0x320   : > { %2660 = dma.vmem_to_hbm [thread:$0]  (%p2684_p4), %s2527_s13, 256, %s2529_s21, [#allocation5]  }
 0x321   : > { %2908 = dma.done.wait (%p2684_p4), [#allocation5], 256  }
 0x322   : > { %2910 = vsyncadd (%p2684_p4), [#allocation5], 4294967040 }
 0x323 PF: > { %s5208_s16 = smov %s3026_s18  ;;  %p18_p5 = scmp.ge.s32.totalorder %s3026_s18, 10  }
 0x324   : > { %s5209_s18 = smov %s2917_s19  ;;  %s5210_s19 = smov %s2921_s20 }
 0x325   : > { %s5211_s20 = smov %s3036_s26  ;;  %s5212_s21 = smov %s5208_s16 }
 0x326   :  { %20 = sbr.rel (!%p18_p5) target bundleno = 6 (0x6), region = 100 }
 0x32b   :  { %2542 = vsyncpa [#allocation4], 1 }
 0x32c   :  { %2544 = vsyncpa [#allocation4 + $0x1], 1 }
 0x32d   :  { %2545 = vsyncpa [#allocation7], 1 }
 0x32e   :  { %2546 = vsyncpa [#allocation10], 1 }
 0x32f   :  { %2547 = vsyncpa [#allocation5], 1 }
 0x330   :  { %2549 = vsyncpa [#allocation5 + $0x1], 1 }

// kernel: alexnet_forward.2
= control target key start
LH: loop header
LB: loop body
LE: loop exit
PB: predicated region body
PF: predicated region fallthrough
CT: control target
= control target key end

     0   :  { %10 = vsyncpa [#allocation5], 0  ;;  %s4384_s0 = inlined_call_operand.vmem [shape: f32[2,16,32,3], index: 0, kind: input, shape index: {}]   ;;  %s4385_s1 = inlined_call_operand.hbm [shape: f32[3,3,128], index: 1, kind: input, shape index: {}]   ;;  %s4386_s2 = inlined_call_operand.hbm [shape: f32[1,128], index: 2, kind: input, shape index: {}]   ;;  %s4387_s3 = inlined_call_operand.hbm [shape: f32[384,128], index: 3, kind: input, shape index: {}]   ;;  %s4388_s4 = inlined_call_operand.hbm [shape: f32[1,128], index: 4, kind: input, shape index: {}]   ;;  %s4389_s5 = inlined_call_operand.vmem [shape: f32[2,32,128], index: 5, kind: output, shape index: {}]  }
   0x1   :  { %11 = vsyncpa [#allocation7], 0 }
   0x2   :  { %12 = vsyncpa [#allocation10], 0  ;;  %s3231_s18 = smov 0  }
   0x3 LB: > { %s185_s21 = sshll.u32 %s4386_s2, 4  ;;  %s3240_s22 = sadd.s32 4294967295, %s3191_s18   ;;  %s3191_s18 = sphi %s3231_s18, %s18_s18   ;;  %s186_s21 = int_to_ptr.hbm [resolvable:$true] %s185_s21 }
   0x4   : > { %p2756_p0 = scmp.ge.s32.totalorder %s3191_s18, 1  ;;  %p159_p1 = scmp.lt.s32.totalorder %s3191_s18, 3 }
   0x5   : > { %p3026_p2 = scmp.eq.s32.totalorder %s3240_s22, 0  ;;  %s3193_s24 = smov [#allocation6]  }
   0x6   : > { %p3245_p3 = pnand %p2756_p0, %p159_p1  ;;  %s187_s25 = sshll.u32 %s3193_s24, 4  ;;  %s188_s25 = int_to_ptr.vmem [resolvable:$true] %s187_s25 }
   0x7   : > { %s170_s28 = sshll.u32 %s4385_s1, 4  ;;  %s3194_s30 = smov [#allocation4]   ;;  %s171_s28 = int_to_ptr.hbm [resolvable:$true] %s170_s28 }
   0x8   : > { %p3013_p4 = pneg %p3245_p3  ;;  %s172_s6 = sshll.u32 %s3194_s30, 4  ;;  %s173_s6 = int_to_ptr.vmem [resolvable:$true] %s172_s6 }
   0x9   : > { %s196_s9 = sshll.u32 %s4387_s3, 4  ;;  %s3195_s10 = smov 64   ;;  %s197_s9 = int_to_ptr.hbm [resolvable:$true] %s196_s9 }
   0xa   : > { %p3256_p5 = pnand %p3026_p2, %p3013_p4  ;;  %s3196_s11 = smov 4  }
   0xb   : > { %s3197_s12 = smov [#allocation8]   ;;  %s3198_s14 = smov 128  }
   0xc   : > { %3019 = dma.hbm_to_vmem [thread:$0]  (!%p3256_p5), %s186_s21, 16, %s188_s25, [#allocation7]  }
   0xd   : > { %3016 = dma.hbm_to_vmem [thread:$0]  (!%p3256_p5), %s171_s28, 192, %s173_s6, [#allocation5], %s3195_s10, %s3195_s10, %s3196_s11  }
   0xe   : > { %s198_s13 = sshll.u32 %s3197_s12, 4  ;;  %s3199_s15 = smov 8   ;;  %s199_s13 = int_to_ptr.vmem [resolvable:$true] %s198_s13 }
   0xf   : > { %3022 = dma.hbm_to_vmem [thread:$0]  (!%p3256_p5), %s197_s9, 6144, %s199_s13, [#allocation7], %s3198_s14, %s3198_s14, %s3199_s15  }
  0x10   : > { %s211_s19 = sshll.u32 %s4388_s4, 4  ;;  %s3200_s20 = smov [#allocation9]   ;;  %s212_s19 = int_to_ptr.hbm [resolvable:$true] %s211_s19 }
  0x11   : > { %s213_s21 = sshll.u32 %s3200_s20, 4  ;;  %234 = sbr.rel (%p3245_p3) target bundleno = 1076 (0x434), region = 40  ;;  %s214_s21 = int_to_ptr.vmem [resolvable:$true] %s213_s21 }
  0x12   : > { %3025 = dma.hbm_to_vmem [thread:$0]  (!%p3256_p5), %s212_s19, 16, %s214_s21, [#allocation10]  }
  0x16   : > { %3178 = dma.done.wait (%p3026_p2), [#allocation5], 192  }
  0x17   : > { %3180 = vsyncadd (%p3026_p2), [#allocation5], 4294967104 }
  0x18   : > { %3182 = dma.done.wait (%p3026_p2), [#allocation7], 6160  }
  0x19   : > { %3184 = vsyncadd (%p3026_p2), [#allocation7], 4294961136 }
  0x1a   : > { %3186 = dma.done.wait (%p3026_p2), [#allocation10], 16  }
  0x1b   : > { %3188 = vsyncadd (%p3026_p2), [#allocation10], 4294967280  ;;  %p278_p6 = scmp.lt.s32.totalorder %s3240_s22, 1  ;;  %vm838_vm0 = vcmask 1042432   ;;  %vm561_vm1 = vcmask 1046528   ;;  %vm709_vm2 = vcmask 23552  }
  0x1c   : > { %v3298_v0 = vld [vmem:[#allocation4 + $0x8] sm:$0x7]  ;;  %vm416_vm3 = vcmask 1040384   ;;  %v708_v5 = vld [vmem:[#allocation4 + $0x4] sm:$0x7] }
  0x1d   : > { %s4395_s22 = smov (!%p278_p6, %s3240_s22), 1  ;;  %2901 = vmatpush.msk.msra.mxu2 %vm838_vm0, %v3298_v0  ;;  %v706_v6 = vld [vmem:[#allocation4] sm:$0x7]  ;;  %2771 = vmatpush.msk.msra.mxu0 %vm838_vm0, %v708_v5  ;;  %vm3588_vm4 = vmneg %vm416_vm3 }
  0x1e   : > { %s2992_s23 = sshll.u32 %s4395_s22, 9  ;;  %2836 = vmatpush.msk.msra.mxu1 %vm838_vm0, %v706_v6  ;;  %2994 = vmatpush.msk.msra.mxu3 %vm838_vm0, %v708_v5  ;;  %s2993_s27 = sshll.u32 %s4395_s22, 5 }
  0x1f   : > { %s3296_s26 = scalar_lea.vmem %s4384_s0, %s2992_s23  ;;  %s4339_s30 = scalar_lea.vmem %s4389_s5, %s2993_s27 }
  0x20   : > { %v288_v1 = vld [vmem:[%s3296_s26] sm:$0xff]  ;;  %v289_v2 = vld [vmem:[%s3296_s26 + $0x8] sm:$0xff]  ;;  %v290_v8 = vld [vmem:[%s3296_s26 + $0x10] sm:$0xff]  ;;  %2995 = vmatpush.msk.msrb.mxu3 %vm838_vm0, %v706_v6 }
  0x21   : > { %v562_v3 = vrot.slane %v288_v1, 1  ;;  %v563_v4 = vrot.slane %v289_v2, 1  ;;  %v417_v7 = vrot.slane %v288_v1, 7  ;;  %2772 = vmatmul.msk.f32.vlgmr.msra.gmra.mxu0 %vm709_vm2, %v288_v1  ;;  %v565_v11 = vrot.slane %v290_v8, 1  ;;  %v291_v15 = vld [vmem:[%s3296_s26 + $0x18] sm:$0xff]  ;;  %v292_v23 = vld [vmem:[%s3296_s26 + $0x20] sm:$0xff] }
  0x22   : > { %v418_v12 = vrot.slane %v289_v2, 7  ;;  %v567_v16 = vrot.slane %v291_v15, 1  ;;  %v420_v17 = vrot.slane %v290_v8, 7  ;;  %v422_v20 = vrot.slane %v291_v15, 7  ;;  %v293_v24 = vld [vmem:[%s3296_s26 + $0x28] sm:$0xff]  ;;  %v294_v30 = vld [vmem:[%s3296_s26 + $0x30] sm:$0xff] }
  0x23   : > { %v564_v9 = vsel %vm561_vm1, %v562_v3, %v563_v4  ;;  %v545_v10 = vsel %vm416_vm3, 0.0, %v417_v7  ;;  %v566_v13 = vsel %vm561_vm1, %v563_v4, %v565_v11  ;;  %v569_v25 = vrot.slane %v292_v23, 1  ;;  %v295_v35 = vld [vmem:[%s3296_s26 + $0x38] sm:$0xff]  ;;  %v296_v43 = vld [vmem:[%s3296_s26 + $0x40] sm:$0xff]  ;;  %v297_v44 = vld [vmem:[%s3296_s26 + $0x48] sm:$0xff] }
  0x24   : > { %2902 = vmatmul.msk.f32.vlgmr.msra.gmra.mxu2 %vm709_vm2, %v564_v9  ;;  %2837 = vmatmul.msk.f32.vlgmr.msra.gmra.mxu1 %vm709_vm2, %v545_v10  ;;  %v419_v14 = vsel %vm416_vm3, %v417_v7, %v418_v12  ;;  %v568_v18 = vsel %vm561_vm1, %v565_v11, %v567_v16  ;;  %v421_v19 = vsel %vm416_vm3, %v418_v12, %v420_v17  ;;  %v690_v21 = vsel %vm561_vm1, %v567_v16, 0.0  ;;  %v298_v50 = vld [vmem:[%s3296_s26 + $0x50] sm:$0xff]  ;;  %v3363_v52 = vld [vmem:[%s3296_s26 + $0x1e0] sm:$0xff]  ;;  %v299_v56 = vld [vmem:[%s3296_s26 + $0x58] sm:$0xff] }
  0x25   : > { %v423_v22 = vsel %vm416_vm3, %v420_v17, %v422_v20  ;;  %v570_v26 = vrot.slane %v293_v24, 1  ;;  %v424_v27 = vrot.slane %v292_v23, 7  ;;  %v572_v31 = vrot.slane %v294_v30, 1  ;;  %2832 = vmatmul.msk.f32.vlgmr.msra.gmra.mxu3 %vm709_vm2, %v3363_v52  ;;  %v3376_v58 = vld [vmem:[%s3296_s26 + $0x1e8] sm:$0xff]  ;;  %v3386_v62 = vld [vmem:[%s3296_s26 + $0x1f0] sm:$0xff]  ;;  %v3398_v6 = vld [vmem:[%s3296_s26 + $0x1f8] sm:$0xff] }
  0x26   : > { %v425_v32 = vrot.slane %v293_v24, 7  ;;  %v574_v36 = vrot.slane %v295_v35, 1  ;;  %v427_v37 = vrot.slane %v294_v30, 7  ;;  %v429_v40 = vrot.slane %v295_v35, 7  ;;  %2996 = vmatpush.msk.msra.mxu3 %vm838_vm0, %v3298_v0  ;;  %v301_v3 = vld [vmem:[%s3296_s26 + $0x68] sm:$0xff]  ;;  %v302_v10 = vld [vmem:[%s3296_s26 + $0x70] sm:$0xff] }
  0x27   : > { %v571_v28 = vsel %vm561_vm1, %v569_v25, %v570_v26  ;;  %v546_v29 = vsel %vm416_vm3, 0.0, %v424_v27  ;;  %v573_v33 = vsel %vm561_vm1, %v570_v26, %v572_v31  ;;  %v576_v45 = vrot.slane %v296_v43, 1  ;;  %v303_v17 = vld [vmem:[%s3296_s26 + $0x78] sm:$0xff] }
  0x28   : > { %v426_v34 = vsel %vm416_vm3, %v424_v27, %v425_v32  ;;  %v575_v38 = vsel %vm561_vm1, %v572_v31, %v574_v36  ;;  %v428_v39 = vsel %vm416_vm3, %v425_v32, %v427_v37  ;;  %v691_v41 = vsel %vm561_vm1, %v574_v36, 0.0 }
  0x29   : > { %2773 = vmatmul.msk.f32.gmra.mxu0 %vm709_vm2, %v289_v2  ;;  %v430_v42 = vsel %vm416_vm3, %v427_v37, %v429_v40  ;;  %v577_v46 = vrot.slane %v297_v44, 1  ;;  %v431_v47 = vrot.slane %v296_v43, 7  ;;  %v579_v51 = vrot.slane %v298_v50, 1  ;;  %v300_v2 = vld [vmem:[%s3296_s26 + $0x60] sm:$0xff]  ;;  %v306_v40 = vld [vmem:[%s3296_s26 + $0x90] sm:$0xff] }
  0x2a   : > { %v432_v53 = vrot.slane %v297_v44, 7  ;;  %v581_v57 = vrot.slane %v299_v56, 1  ;;  %v434_v59 = vrot.slane %v298_v50, 7  ;;  %v436_v63 = vrot.slane %v299_v56, 7 }
  0x2b   : > { %v578_v48 = vsel %vm561_vm1, %v576_v45, %v577_v46  ;;  %v547_v49 = vsel %vm416_vm3, 0.0, %v431_v47  ;;  %v580_v54 = vsel %vm561_vm1, %v577_v46, %v579_v51  ;;  %v583_v4 = vrot.slane %v300_v2, 1 }
  0x2c   : > { %2903 = vmatmul.msk.f32.gmra.mxu2 %vm709_vm2, %v566_v13  ;;  %2838 = vmatmul.msk.f32.gmra.mxu1 %vm709_vm2, %v419_v14  ;;  %v433_v55 = vsel %vm416_vm3, %v431_v47, %v432_v53  ;;  %v582_v60 = vsel %vm561_vm1, %v579_v51, %v581_v57  ;;  %v435_v61 = vsel %vm416_vm3, %v432_v53, %v434_v59  ;;  %v692_v0 = vsel %vm561_vm1, %v581_v57, 0.0  ;;  %v2342_v53 = vld [vmem:[#allocation8 + $0x70] sm:$0xff] }
  0x2d   : > { %2833 = vmatmul.msk.f32.gmra.mxu3 %vm709_vm2, %v3376_v58  ;;  %v437_v1 = vsel %vm416_vm3, %v434_v59, %v436_v63  ;;  %v584_v5 = vrot.slane %v301_v3, 1  ;;  %v438_v7 = vrot.slane %v300_v2, 7  ;;  %v522_v11 = vrot.slane %v3363_v52, 7  ;;  %v2340_v59 = vld [vmem:[#allocation8 + $0x60] sm:$0xff] }
  0x2e   : > { %v586_v12 = vrot.slane %v302_v10, 1  ;;  %v439_v13 = vrot.slane %v301_v3, 7  ;;  %v441_v20 = vrot.slane %v302_v10, 7  ;;  %v443_v25 = vrot.slane %v303_v17, 7 }
  0x2f   : > { %v548_v9 = vsel %vm416_vm3, 0.0, %v438_v7  ;;  %v560_v14 = vsel %vm416_vm3, 0.0, %v522_v11  ;;  %v527_v31 = vrot.slane %v3398_v6, 7  ;;  %v448_v57 = vrot.slane %v306_v40, 7 }
  0x30   : > { %v440_v16 = vsel %vm416_vm3, %v438_v7, %v439_v13 }
  0x31   : > { %2774 = vmatmul.msk.f32.gmra.mxu0 %vm709_vm2, %v290_v8  ;;  %v585_v8 = vsel %vm561_vm1, %v583_v4, %v584_v5  ;;  %v2337_v4 = vld [vmem:[#allocation8 + $0x48] sm:$0xff] }
  0x34   : > { %2904 = vmatmul.msk.f32.gmra.mxu2 %vm709_vm2, %v568_v18  ;;  %2839 = vmatmul.msk.f32.gmra.mxu1 %vm709_vm2, %v421_v19  ;;  %v523_v18 = vrot.slane %v3376_v58, 7  ;;  %v588_v19 = vrot.slane %v303_v17, 1 }
  0x35   : > { %2834 = vmatmul.msk.f32.gmra.mxu3 %vm709_vm2, %v3386_v62 }
  0x36   : > { %v693_v27 = vsel %vm561_vm1, %v588_v19, 0.0 }
  0x39   : > { %2775 = vmatmul.msk.f32.gmra.mxu0 %vm709_vm2, %v291_v15  ;;  %v587_v15 = vsel %vm561_vm1, %v584_v5, %v586_v12 }
  0x3c   : > { %2905 = vmatmul.msk.f32.gmra.mxu2 %vm709_vm2, %v690_v21  ;;  %2840 = vmatmul.msk.f32.gmra.mxu1 %vm709_vm2, %v423_v22  ;;  %v524_v21 = vsel %vm416_vm3, %v522_v11, %v523_v18  ;;  %v589_v22 = vsel %vm561_vm1, %v586_v12, %v588_v19  ;;  %v2335_v11 = vld [vmem:[#allocation8 + $0x38] sm:$0xff]  ;;  %v2333_v19 = vld [vmem:[#allocation8 + $0x28] sm:$0xff] }
  0x3d   : > { %2835 = vmatmul.msk.f32.gmra.mxu3 %vm709_vm2, %v3398_v6 }
  0x41   : > { %2776 = vmatmul.msk.f32.gmra.mxu0 %vm709_vm2, %v292_v23  ;;  %v442_v23 = vsel %vm416_vm3, %v439_v13, %v441_v20 }
  0x44   : > { %2906 = vmatmul.msk.f32.gmra.mxu2 %vm709_vm2, %v571_v28  ;;  %2841 = vmatmul.msk.f32.gmra.mxu1 %vm709_vm2, %v546_v29  ;;  %v444_v28 = vsel %vm416_vm3, %v441_v20, %v443_v25  ;;  %v304_v29 = vld [vmem:[%s3296_s26 + $0x80] sm:$0xff] }
  0x45   : > { %2897 = vmatmul.msk.f32.vlgmr.msrb.gmra.mxu3 %vm709_vm2, %v560_v14  ;;  %v590_v32 = vrot.slane %v304_v29, 1  ;;  %v308_v14 = vld [vmem:[%s3296_s26 + $0xa0] sm:$0xff] }
  0x46   : > { %v452_v20 = vrot.slane %v308_v14, 7 }
  0x49   : > { %2777 = vmatmul.msk.f32.gmra.mxu0 %vm709_vm2, %v293_v24  ;;  %v525_v24 = vrot.slane %v3386_v62, 7 }
  0x4b   : > { %v526_v26 = vsel %vm416_vm3, %v523_v18, %v525_v24  ;;  %v528_v36 = vsel %vm416_vm3, %v525_v24, %v527_v31  ;;  %v2330_v31 = vld [vmem:[#allocation8 + $0x10] sm:$0xff] }
  0x4c   : > { %2907 = vmatmul.msk.f32.gmra.mxu2 %vm709_vm2, %v573_v33  ;;  %2842 = vmatmul.msk.f32.gmra.mxu1 %vm709_vm2, %v426_v34  ;;  %v445_v34 = vrot.slane %v304_v29, 7 }
  0x4d   : > { %2898 = vmatmul.msk.f32.gmra.mxu3 %vm709_vm2, %v524_v21 }
  0x51   : > { %2778 = vmatmul.msk.f32.gmra.mxu0 %vm709_vm2, %v294_v30  ;;  %v305_v30 = vld [vmem:[%s3296_s26 + $0x88] sm:$0xff] }
  0x52   : > { %v591_v33 = vrot.slane %v305_v30, 1 }
  0x54   : > { %2908 = vmatmul.msk.f32.gmra.mxu2 %vm709_vm2, %v575_v38  ;;  %2843 = vmatmul.msk.f32.gmra.mxu1 %vm709_vm2, %v428_v39  ;;  %v592_v37 = vsel %vm561_vm1, %v590_v32, %v591_v33  ;;  %v549_v39 = vsel %vm416_vm3, 0.0, %v445_v34 }
  0x55   : > { %2899 = vmatmul.msk.f32.gmra.mxu3 %vm709_vm2, %v526_v26 }
  0x59   : > { %2779 = vmatmul.msk.f32.gmra.mxu0 %vm709_vm2, %v295_v35 }
  0x5c   : > { %2909 = vmatmul.msk.f32.gmra.mxu2 %vm709_vm2, %v691_v41  ;;  %2844 = vmatmul.msk.f32.gmra.mxu1 %vm709_vm2, %v430_v42  ;;  %v667_v41 = vrot.slane %v3363_v52, 1  ;;  %v668_v42 = vrot.slane %v3376_v58, 1  ;;  %v307_v52 = vld [vmem:[%s3296_s26 + $0x98] sm:$0xff] }
  0x5d   : > { %2900 = vmatmul.msk.f32.gmra.mxu3 %vm709_vm2, %v528_v36  ;;  %v450_v5 = vrot.slane %v307_v52, 7  ;;  %v2329_v36 = vld [vmem:[#allocation8 + $0x8] sm:$0xff] }
  0x5e   : > { %v669_v47 = vsel %vm561_vm1, %v667_v41, %v668_v42 }
  0x5f   : > { %v451_v13 = vsel %vm416_vm3, %v448_v57, %v450_v5 }
  0x61   : > { %2780 = vmatmul.msk.f32.gmra.mxu0 %vm709_vm2, %v296_v43  ;;  %v593_v43 = vrot.slane %v306_v40, 1 }
  0x64   : > { %2910 = vmatmul.msk.f32.gmra.mxu2 %vm709_vm2, %v578_v48  ;;  %2845 = vmatmul.msk.f32.gmra.mxu1 %vm709_vm2, %v547_v49  ;;  %v594_v48 = vsel %vm561_vm1, %v591_v33, %v593_v43  ;;  %v2343_v49 = vld [vmem:[#allocation8 + $0x78] sm:$0xff] }
  0x65   : > { %2962 = vmatmul.msk.f32.vlgmr.msra.gmra.mxu3 %vm709_vm2, %v669_v47  ;;  %v3510_v33 = vld [vmem:[#allocation6] ss:$0 sm:$0xff] }
  0x66   : > { %2380 = vmatpush.msrb.mxu3 %v2343_v49  ;;  %v311_v49 = vld [vmem:[%s3296_s26 + $0xb8] sm:$0xff] }
  0x68   : > { %2381 = vmatpush.msrb.mxu3 %v2342_v53  ;;  %v602_v53 = vrot.slane %v311_v49, 1 }
  0x69   : > { %2781 = vmatmul.msk.f32.gmra.mxu0 %vm709_vm2, %v297_v44  ;;  %v446_v44 = vrot.slane %v305_v30, 7 }
  0x6b   : > { %v447_v51 = vsel %vm416_vm3, %v445_v34, %v446_v44 }
  0x6c   : > { %2911 = vmatmul.msk.f32.gmra.mxu2 %vm709_vm2, %v580_v54  ;;  %2846 = vmatmul.msk.f32.gmra.mxu1 %vm709_vm2, %v433_v55  ;;  %v670_v54 = vrot.slane %v3386_v62, 1  ;;  %v595_v55 = vrot.slane %v307_v52, 1  ;;  %v2339_v62 = vld [vmem:[#allocation8 + $0x58] sm:$0xff] }
  0x6e   : > { %v596_v63 = vsel %vm561_vm1, %v593_v43, %v595_v55 }
  0x71   : > { %2782 = vmatmul.msk.f32.gmra.mxu0 %vm709_vm2, %v298_v50 }
  0x74   : > { %2912 = vmatmul.msk.f32.gmra.mxu2 %vm709_vm2, %v582_v60  ;;  %2847 = vmatmul.msk.f32.gmra.mxu1 %vm709_vm2, %v435_v61  ;;  %v671_v61 = vsel %vm561_vm1, %v668_v42, %v670_v54 }
  0x75   : > { %2963 = vmatmul.msk.f32.gmra.mxu3 %vm709_vm2, %v671_v61 }
  0x79   : > { %2783 = vmatmul.msk.f32.gmra.mxu0 %vm709_vm2, %v299_v56  ;;  %v2341_v56 = vld [vmem:[#allocation8 + $0x68] sm:$0xff] }
  0x7a   : > { %2382 = vmatpush.msrb.mxu3 %v2341_v56 }
  0x7c   : > { %2913 = vmatmul.msk.f32.gmra.mxu2 %vm709_vm2, %v692_v0  ;;  %2848 = vmatmul.msk.f32.gmra.mxu1 %vm709_vm2, %v437_v1  ;;  %v449_v1 = vsel %vm416_vm3, %v446_v44, %v448_v57 }
  0x7d   : > { %2383 = vmatpush.msrb.mxu3 %v2340_v59 }
  0x7f   : > { %2384 = vmatpush.msrb.mxu3 %v2339_v62 }
  0x81   : > { %2784 = vmatmul.msk.f32.gmra.mxu0 %vm709_vm2, %v300_v2  ;;  %v2338_v2 = vld [vmem:[#allocation8 + $0x50] sm:$0xff] }
  0x82   : > { %2385 = vmatpush.msrb.mxu3 %v2338_v2 }
  0x84   : > { %2914 = vmatmul.msk.f32.gmra.mxu2 %vm709_vm2, %v585_v8  ;;  %2849 = vmatmul.msk.f32.gmra.mxu1 %vm709_vm2, %v548_v9  ;;  %v2336_v8 = vld [vmem:[#allocation8 + $0x40] sm:$0xff] }
  0x85   : > { %2386 = vmatpush.msrb.mxu3 %v2337_v4 }
  0x87   : > { %2387 = vmatpush.msrb.mxu3 %v2336_v8 }
  0x89   : > { %2785 = vmatmul.msk.f32.gmra.mxu0 %vm709_vm2, %v301_v3  ;;  %v672_v3 = vrot.slane %v3398_v6, 1  ;;  %v694_v6 = vsel %vm561_vm1, %v595_v55, 0.0  ;;  %2388 = vmatpush.msrb.mxu3 %v2335_v11 }
  0x8b   : > { %v705_v25 = vsel %vm561_vm1, %v672_v3, 0.0 }
  0x8c   : > { %2915 = vmatmul.msk.f32.gmra.mxu2 %vm709_vm2, %v587_v15  ;;  %2850 = vmatmul.msk.f32.gmra.mxu1 %vm709_vm2, %v440_v16  ;;  %v3491_v15 = vld [vmem:[%s3296_s26 + $0xa8] sm:$0xff]  ;;  %v2334_v16 = vld [vmem:[#allocation8 + $0x30] sm:$0xff] }
  0x8d   : > { %2389 = vmatpush.msrb.mxu3 %v2334_v16  ;;  %v598_v18 = vrot.slane %v3491_v15, 1  ;;  %v695_v16 = vsel %vm561_vm1, %v602_v53, 0.0 }
  0x8f   : > { %2390 = vmatpush.msrb.mxu3 %v2333_v19 }
  0x91   : > { %2786 = vmatmul.msk.f32.gmra.mxu0 %vm709_vm2, %v302_v10  ;;  %v673_v10 = vsel %vm561_vm1, %v670_v54, %v672_v3 }
  0x92   : > { %2964 = vmatmul.msk.f32.gmra.mxu3 %vm709_vm2, %v673_v10  ;;  %v457_v10 = vrot.slane %v311_v49, 7 }
  0x94   : > { %2916 = vmatmul.msk.f32.gmra.mxu2 %vm709_vm2, %v589_v22  ;;  %2851 = vmatmul.msk.f32.gmra.mxu1 %vm709_vm2, %v442_v23  ;;  %v2332_v22 = vld [vmem:[#allocation8 + $0x20] sm:$0xff] }
  0x95   : > { %2391 = vmatpush.msrb.mxu3 %v2332_v22  ;;  %v313_v22 = vld [vmem:[%s3296_s26 + $0xc8] sm:$0xff] }
  0x99   : > { %2787 = vmatmul.msk.f32.gmra.mxu0 %vm709_vm2, %v303_v17  ;;  %v597_v17 = vrot.slane %v308_v14, 1 }
  0x9a   : > { %2965 = vmatmul.msk.f32.gmra.mxu3 %vm709_vm2, %v705_v25 }
  0x9b   : > { %v599_v26 = vsel %vm561_vm1, %v597_v17, %v598_v18 }
  0x9c   : > { %2917 = vmatmul.msk.f32.gmra.mxu2 %vm709_vm2, %v693_v27  ;;  %2852 = vmatmul.msk.f32.gmra.mxu1 %vm709_vm2, %v444_v28  ;;  %v2331_v27 = vld [vmem:[#allocation8 + $0x18] sm:$0xff] }
  0x9d   : > { %2392 = vmatpush.msrb.mxu3 %v2331_v27 }
  0x9e   : > { %v3436_v35 = vpop.f32.mrf.mxu0 }
  0x9f   : > { %2393 = vmatpush.msrb.mxu3 %v2330_v31 }
  0xa1   : > { %v3441_v38 = vpop.f32.mrf.mxu1  ;;  %2788 = vmatmul.msk.f32.gmra.mxu0 %vm709_vm2, %v304_v29  ;;  %v550_v29 = vsel %vm416_vm3, 0.0, %v452_v20  ;;  %2394 = vmatpush.msrb.mxu3 %v2329_v36 }
  0xa2   : > { %v1216_v23 = vadd.f32 %v3441_v38, %v3436_v35 }
  0xa4   : > { %2918 = vmatmul.msk.f32.gmra.mxu2 %vm709_vm2, %v592_v37  ;;  %2853 = vmatmul.msk.f32.gmra.mxu1 %vm709_vm2, %v549_v39  ;;  %v453_v37 = vrot.slane %v3491_v15, 7  ;;  %v2328_v39 = vld [vmem:[#allocation8] sm:$0xff] }
  0xa5   : > { %2395 = vmatpush.msrb.mxu3 %v2328_v39 }
  0xa6   : > { %v3452_v46 = vpop.f32.mrf.mxu0 }
  0xa7   : > { %v3450_v45 = vpop.f32.mrf.mxu2 }
  0xa8   : > { %v1765_v32 = vadd.f32 %v3450_v45, %v1216_v23 }
  0xa9   : > { %v3457_v50 = vpop.f32.mrf.mxu1  ;;  %2789 = vmatmul.msk.f32.gmra.mxu0 %vm709_vm2, %v305_v30  ;;  %v3506_v30 = vld [vmem:[%s3296_s26 + $0xb0] sm:$0xff] }
  0xaa   : > { %v600_v35 = vrot.slane %v3506_v30, 1  ;;  %v1219_v41 = vadd.f32 %v3457_v50, %v3452_v46  ;;  %v455_v55 = vrot.slane %v3506_v30, 7 }
  0xac   : > { %2919 = vmatmul.msk.f32.gmra.mxu2 %vm709_vm2, %v594_v48  ;;  %2854 = vmatmul.msk.f32.gmra.mxu1 %vm709_vm2, %v447_v51  ;;  %v601_v44 = vsel %vm561_vm1, %v598_v18, %v600_v35  ;;  %v454_v48 = vsel %vm416_vm3, %v452_v20, %v453_v37  ;;  %v603_v62 = vsel %vm561_vm1, %v600_v35, %v602_v53  ;;  %v312_v20 = vld [vmem:[%s3296_s26 + $0xc0] sm:$0xff] }
  0xad   : > { %v456_v3 = vsel %vm416_vm3, %v453_v37, %v455_v55  ;;  %v458_v19 = vsel %vm416_vm3, %v455_v55, %v457_v10  ;;  %v604_v25 = vrot.slane %v312_v20, 1 }
  0xae   : > { %v3467_v60 = vpop.f32.mrf.mxu0 }
  0xaf   : > { %v3465_v58 = vpop.f32.mrf.mxu2 }
  0xb1   : > { %v3472_v0 = vpop.f32.mrf.mxu1  ;;  %2790 = vmatmul.msk.f32.gmra.mxu0 %vm709_vm2, %v306_v40  ;;  %v1833_v40 = vadd.f32 %v3510_v33, %v1765_v32 }
  0xb2   : > { %v1222_v59 = vadd.f32 %v3472_v0, %v3467_v60 }
  0xb3   : > { %v1897_v51 = vmax.f32 %v1833_v40, 0.0 }
  0xb4   : > { %2920 = vmatmul.msk.f32.gmra.mxu2 %vm709_vm2, %v596_v63  ;;  %2855 = vmatmul.msk.f32.gmra.mxu1 %vm709_vm2, %v449_v1 }
  0xb6   : > { %v3481_v9 = vpop.f32.mrf.mxu0 }
  0xb7   : > { %v3479_v7 = vpop.f32.mrf.mxu2 }
  0xb8   : > { %v1767_v5 = vadd.f32 %v3479_v7, %v1222_v59 }
  0xb9   : > { %v3486_v12 = vpop.f32.mrf.mxu1  ;;  %2791 = vmatmul.msk.f32.gmra.mxu0 %vm709_vm2, %v307_v52  ;;  %v1766_v52 = vadd.f32 %v3465_v58, %v1219_v41 }
  0xba   : > { %v1835_v11 = vadd.f32 %v3510_v33, %v1767_v5 }
  0xbb   : > { %v1834_v57 = vadd.f32 %v3510_v33, %v1766_v52  ;;  %v2372_v52 = vld [vmem:[#allocation8 + $0x160] sm:$0xff] }
  0xbc   : > { %2921 = vmatmul.msk.f32.gmra.mxu2 %vm709_vm2, %v694_v6  ;;  %2856 = vmatmul.msk.f32.gmra.mxu1 %vm709_vm2, %v451_v13  ;;  %v1225_v13 = vadd.f32 %v3486_v12, %v3481_v9  ;;  %v1899_v23 = vmax.f32 %v1835_v11, 0.0 }
  0xbd   : > { %v1898_v4 = vmax.f32 %v1834_v57, 0.0 }
  0xbe   : > { %v871_v24 = vpop.f32.mrf.mxu0 }
  0xbf   : > { %v3497_v21 = vpop.f32.mrf.mxu2 }
  0xc1   : > { %v1227_v28 = vpop.f32.mrf.mxu1  ;;  %2792 = vmatmul.msk.f32.gmra.mxu0 %vm709_vm2, %v308_v14 }
  0xc2   : > { %v1228_v34 = vadd.f32 %v1227_v28, %v871_v24  ;;  %v1768_v24 = vadd.f32 %v3497_v21, %v1225_v13  ;;  %v459_v28 = vrot.slane %v312_v20, 7 }
  0xc4   : > { %2922 = vmatmul.msk.f32.gmra.mxu2 %vm709_vm2, %v599_v26  ;;  %2857 = vmatmul.msk.f32.gmra.mxu1 %vm709_vm2, %v550_v29  ;;  %v605_v26 = vrot.slane %v313_v22, 1  ;;  %v551_v39 = vsel %vm416_vm3, 0.0, %v459_v28 }
  0xc6   : > { %v874_v43 = vpop.f32.mrf.mxu0 }
  0xc7   : > { %v1585_v38 = vpop.f32.mrf.mxu2 }
  0xc8   : > { %v1769_v42 = vadd.f32 %v1585_v38, %v1228_v34  ;;  %v606_v34 = vsel %vm561_vm1, %v604_v25, %v605_v26 }
  0xc9   : > { %v1230_v47 = vpop.f32.mrf.mxu1  ;;  %2793 = vmatmul.msk.f32.gmra.mxu0 %vm709_vm2, %v3491_v15 }
  0xca   : > { %v3521_v45 = vadd.f32 %v3510_v33, %v1769_v42  ;;  %v1231_v50 = vadd.f32 %v1230_v47, %v874_v43  ;;  %v314_v42 = vld [vmem:[%s3296_s26 + $0xd0] sm:$0xff] }
  0xcc   : > { %v1901_v46 = vmax.f32 %v3521_v45, 0.0  ;;  %2923 = vmatmul.msk.f32.gmra.mxu2 %vm709_vm2, %v601_v44  ;;  %2858 = vmatmul.msk.f32.gmra.mxu1 %vm709_vm2, %v454_v48 }
  0xce   : > { %v1961_v54 = vmax.f32 %v1897_v51, %v1901_v46  ;;  %v877_v63 = vpop.f32.mrf.mxu0 }
  0xcf   : > { %v1588_v56 = vpop.f32.mrf.mxu2 }
  0xd0   : > { %v1993_v58 = vmax.f32 %v1961_v54, 0.0  ;;  %v1770_v61 = vadd.f32 %v1588_v56, %v1231_v50  ;;  %v460_v50 = vrot.slane %v313_v22, 7 }
  0xd1   : > { %v1233_v2 = vpop.f32.mrf.mxu1  ;;  %2794 = vmatmul.msk.f32.gmra.mxu0 %vm709_vm2, %v3506_v30  ;;  %v1836_v30 = vadd.f32 %v3510_v33, %v1768_v24  ;;  %v316_v24 = vld [vmem:[%s3296_s26 + $0xe0] sm:$0xff] }
  0xd2   : > { %2025 = vst [vmem:[#allocation2] sm:$0xff] %v1993_v58  ;;  %v3539_v1 = vadd.f32 %v3510_v33, %v1770_v61  ;;  %v1234_v0 = vadd.f32 %v1233_v2, %v877_v63  ;;  %v461_v58 = vsel %vm416_vm3, %v459_v28, %v460_v50  ;;  %v315_v61 = vld [vmem:[%s3296_s26 + $0xd8] sm:$0xff]  ;;  %v611_v25 = vrot.slane %v316_v24, 1 }
  0xd3   : > { %v1900_v43 = vmax.f32 %v1836_v30, 0.0  ;;  %v609_v63 = vrot.slane %v315_v61, 1 }
  0xd4   : > { %v1902_v60 = vmax.f32 %v3539_v1, 0.0  ;;  %2924 = vmatmul.msk.f32.gmra.mxu2 %vm709_vm2, %v603_v62  ;;  %2859 = vmatmul.msk.f32.gmra.mxu1 %vm709_vm2, %v456_v3  ;;  %v462_v62 = vrot.slane %v314_v42, 7 }
  0xd6   : > { %v1962_v8 = vmax.f32 %v1898_v4, %v1902_v60  ;;  %v880_v15 = vpop.f32.mrf.mxu0  ;;  %v463_v10 = vsel %vm416_vm3, %v460_v50, %v462_v62 }
  0xd7   : > { %v1591_v6 = vpop.f32.mrf.mxu2 }
  0xd8   : > { %v1994_v7 = vmax.f32 %v1962_v8, 0.0  ;;  %v1771_v14 = vadd.f32 %v1591_v6, %v1234_v0 }
  0xd9   : > { %v1236_v18 = vpop.f32.mrf.mxu1  ;;  %2795 = vmatmul.msk.f32.gmra.mxu0 %vm709_vm2, %v311_v49  ;;  %v607_v49 = vrot.slane %v314_v42, 1 }
  0xda   : > { %2026 = vst [vmem:[#allocation2 + $0x8] sm:$0xff] %v1994_v7  ;;  %v3555_v17 = vadd.f32 %v3510_v33, %v1771_v14  ;;  %v1237_v12 = vadd.f32 %v1236_v18, %v880_v15  ;;  %v464_v14 = vrot.slane %v315_v61, 7 }
  0xdb   : > { %v608_v57 = vsel %vm561_vm1, %v605_v26, %v607_v49  ;;  %v610_v4 = vsel %vm561_vm1, %v607_v49, %v609_v63 }
  0xdc   : > { %v1903_v9 = vmax.f32 %v3555_v17, 0.0  ;;  %2925 = vmatmul.msk.f32.gmra.mxu2 %vm709_vm2, %v695_v16  ;;  %2860 = vmatmul.msk.f32.gmra.mxu1 %vm709_vm2, %v458_v19 }
  0xde   : > { %v1963_v27 = vmax.f32 %v1899_v23, %v1903_v9  ;;  %v3568_v21 = vpop.f32.mrf.mxu0  ;;  %v465_v23 = vsel %vm416_vm3, %v462_v62, %v464_v14 }
  0xdf   : > { %v1594_v29 = vpop.f32.mrf.mxu2 }
  0xe0   : > { %v1995_v31 = vmax.f32 %v1963_v27, 0.0  ;;  %v1772_v32 = vadd.f32 %v1594_v29, %v1237_v12  ;;  %v317_v12 = vld [vmem:[%s3296_s26 + $0xe8] sm:$0xff]  ;;  %v466_v27 = vrot.slane %v316_v24, 7 }
  0xe1   : > { %v2057_v35 = vld [vmem:[#allocation2] ss:$2 sm:$0xff]  ;;  %v2089_v36 = vld [vmem:[#allocation2 + $0x1] ss:$2 sm:$0xff]  ;;  %v3574_v38 = vpop.f32.mrf.mxu1  ;;  %2796 = vmatmul.msk.f32.gmra.mxu0 %vm709_vm2, %v312_v20  ;;  %v696_v20 = vsel %vm561_vm1, %v609_v63, 0.0  ;;  %v612_v26 = vrot.slane %v317_v12, 1 }
  0xe2   : > { %2027 = vst [vmem:[#allocation2 + $0x10] sm:$0xff] %v1995_v31  ;;  %v3572_v37 = vadd.f32 %v3510_v33, %v1772_v32  ;;  %v2136_v40 = vrot.slane %v2089_v36, 7  ;;  %v2184_v41 = vmax.f32 %v2057_v35, %v2089_v36  ;;  %v1240_v29 = vadd.f32 %v3574_v38, %v3568_v21  ;;  %v318_v35 = vld [vmem:[%s3296_s26 + $0xf0] sm:$0xff] }
  0xe3   : > { %v613_v31 = vsel %vm561_vm1, %v611_v25, %v612_v26  ;;  %v469_v63 = vrot.slane %v318_v35, 7 }
  0xe4   : > { %v1904_v44 = vmax.f32 %v3572_v37, 0.0  ;;  %2926 = vmatmul.msk.f32.gmra.mxu2 %vm709_vm2, %v606_v34  ;;  %v2176_v47 = vsel %vm416_vm3, 0.0, %v2136_v40  ;;  %2861 = vmatmul.msk.f32.gmra.mxu1 %vm709_vm2, %v551_v39  ;;  %v552_v34 = vsel %vm416_vm3, 0.0, %v466_v27 }
  0xe5   : > { %v3583_v48 = vmax.f32 %v2184_v41, %v2176_v47  ;;  %v467_v41 = vrot.slane %v317_v12, 7 }
  0xe6   : > { %v1964_v51 = vmax.f32 %v1900_v43, %v1904_v44  ;;  %v886_v56 = vpop.f32.mrf.mxu0 }
  0xe7   : > { %v1597_v53 = vpop.f32.mrf.mxu2  ;;  %v2232_v54 = vrot.slane %v3583_v48, 7  ;;  %v470_v14 = vsel %vm416_vm3, %v467_v41, %v469_v63 }
  0xe8   : > { %v1996_v55 = vmax.f32 %v1964_v51, 0.0  ;;  %v1773_v36 = vadd.f32 %v1597_v53, %v1240_v29  ;;  %v468_v53 = vsel %vm416_vm3, %v466_v27, %v467_v41 }
  0xe9   : > { %2967 = vmatmul.msk.f32.vlgmr.msrb.gmra.mxu3 %vm3588_vm4, %v2232_v54  ;;  %v1242_v59 = vpop.f32.mrf.mxu1  ;;  %2797 = vmatmul.msk.f32.gmra.mxu0 %vm709_vm2, %v313_v22 }
  0xea   : > { %2028 = vst [vmem:[#allocation2 + $0x18] sm:$0xff] %v1996_v55  ;;  %v1841_v21 = vadd.f32 %v3510_v33, %v1773_v36  ;;  %v1243_v38 = vadd.f32 %v1242_v59, %v886_v56 }
  0xec   : > { %2927 = vmatmul.msk.f32.gmra.mxu2 %vm709_vm2, %v608_v57  ;;  %2862 = vmatmul.msk.f32.gmra.mxu1 %vm709_vm2, %v461_v58  ;;  %v1905_v55 = vmax.f32 %v1841_v21, 0.0 }
  0xee   : > { %v3601_v3 = vpop.f32.mrf.mxu0 }
  0xef   : > { %v1600_v2 = vpop.f32.mrf.mxu2 }
  0xf0   : > { %v1774_v57 = vadd.f32 %v1600_v2, %v1243_v38 }
  0xf1   : > { %v2059_v5 = vld [vmem:[#allocation2 + $0x10] ss:$2 sm:$0xff]  ;;  %v2091_v0 = vld [vmem:[#allocation2 + $0x11] ss:$2 sm:$0xff]  ;;  %v1245_v8 = vpop.f32.mrf.mxu1  ;;  %2798 = vmatmul.msk.f32.gmra.mxu0 %vm709_vm2, %v314_v42 }
  0xf2   : > { %v2137_v6 = vrot.slane %v2091_v0, 7  ;;  %v2185_v11 = vmax.f32 %v2059_v5, %v2091_v0  ;;  %v1246_v5 = vadd.f32 %v1245_v8, %v3601_v3 }
  0xf4   : > { %2928 = vmatmul.msk.f32.gmra.mxu2 %vm709_vm2, %v610_v4  ;;  %v2138_v13 = vsel %vm416_vm3, %v2136_v40, %v2137_v6  ;;  %2863 = vmatmul.msk.f32.gmra.mxu1 %vm709_vm2, %v463_v10  ;;  %v614_v40 = vrot.slane %v318_v35, 1  ;;  %v1842_v4 = vadd.f32 %v3510_v33, %v1774_v57  ;;  %v322_v57 = vld [vmem:[%s3296_s26 + $0x110] sm:$0xff] }
  0xf5   : > { %v3609_v7 = vmax.f32 %v2185_v11, %v2138_v13  ;;  %v476_v37 = vrot.slane %v322_v57, 7 }
  0xf6   : > { %v3614_v18 = vpop.f32.mrf.mxu0  ;;  %v615_v49 = vsel %vm561_vm1, %v612_v26, %v614_v40 }
  0xf7   : > { %v3611_v15 = vpop.f32.mrf.mxu2  ;;  %v2233_v16 = vrot.slane %v3609_v7, 7 }
  0xf9   : > { %v2234_v19 = vsel %vm416_vm3, %v2232_v54, %v2233_v16  ;;  %v3618_v22 = vpop.f32.mrf.mxu1  ;;  %2799 = vmatmul.msk.f32.gmra.mxu0 %vm709_vm2, %v315_v61  ;;  %v319_v54 = vld [vmem:[%s3296_s26 + $0xf8] sm:$0xff]  ;;  %v1906_v16 = vmax.f32 %v1842_v4, 0.0 }
  0xfa   : > { %2399 = vmatmul.f32.gmra.mxu3 %v2234_v19  ;;  %v616_v59 = vrot.slane %v319_v54, 1  ;;  %v1775_v19 = vadd.f32 %v3611_v15, %v1246_v5  ;;  %v471_v8 = vrot.slane %v319_v54, 7 }
  0xfc   : > { %2929 = vmatmul.msk.f32.gmra.mxu2 %vm709_vm2, %v696_v20  ;;  %2864 = vmatmul.msk.f32.gmra.mxu1 %vm709_vm2, %v465_v23  ;;  %v617_v6 = vsel %vm561_vm1, %v614_v40, %v616_v59  ;;  %v1843_v23 = vadd.f32 %v3510_v33, %v1775_v19  ;;  %v697_v26 = vsel %vm561_vm1, %v616_v59, 0.0 }
  0xfe   : > { %v895_v30 = vpop.f32.mrf.mxu0 }
  0xff   : > { %v3626_v28 = vpop.f32.mrf.mxu2 }
 0x101   : > { %v1251_v32 = vpop.f32.mrf.mxu1  ;;  %2800 = vmatmul.msk.f32.gmra.mxu0 %vm709_vm2, %v316_v24  ;;  %v1249_v24 = vadd.f32 %v3618_v22, %v3614_v18 }
 0x102   : > { %v1252_v39 = vadd.f32 %v1251_v32, %v895_v30  ;;  %v472_v30 = vsel %vm416_vm3, %v469_v63, %v471_v8  ;;  %v321_v32 = vld [vmem:[%s3296_s26 + $0x108] sm:$0xff] }
 0x103   : > { %v1776_v18 = vadd.f32 %v3626_v28, %v1249_v24 }
 0x104   : > { %2930 = vmatmul.msk.f32.gmra.mxu2 %vm709_vm2, %v613_v31  ;;  %2865 = vmatmul.msk.f32.gmra.mxu1 %vm709_vm2, %v552_v34  ;;  %v320_v31 = vld [vmem:[%s3296_s26 + $0x100] sm:$0xff]  ;;  %v1907_v34 = vmax.f32 %v1843_v23, 0.0 }
 0x105   : > { %v618_v22 = vrot.slane %v320_v31, 1  ;;  %v1844_v41 = vadd.f32 %v3510_v33, %v1776_v18 }
 0x106   : > { %v898_v47 = vpop.f32.mrf.mxu0 }
 0x107   : > { %v1609_v42 = vpop.f32.mrf.mxu2  ;;  %v1908_v17 = vmax.f32 %v1844_v41, 0.0 }
 0x108   : > { %v1777_v43 = vadd.f32 %v1609_v42, %v1252_v39  ;;  %v473_v39 = vrot.slane %v320_v31, 7 }
 0x109   : > { %v1254_v50 = vpop.f32.mrf.mxu1  ;;  %2801 = vmatmul.msk.f32.gmra.mxu0 %vm709_vm2, %v317_v12 }
 0x10a   : > { %v3639_v51 = vadd.f32 %v3510_v33, %v1777_v43  ;;  %v1255_v56 = vadd.f32 %v1254_v50, %v898_v47 }
 0x10c   : > { %v1909_v58 = vmax.f32 %v3639_v51, 0.0  ;;  %2931 = vmatmul.msk.f32.gmra.mxu2 %vm709_vm2, %v615_v49  ;;  %2866 = vmatmul.msk.f32.gmra.mxu1 %vm709_vm2, %v468_v53  ;;  %v553_v53 = vsel %vm416_vm3, 0.0, %v473_v39 }
 0x10e   : > { %v1965_v61 = vmax.f32 %v1905_v55, %v1909_v58  ;;  %v901_v10 = vpop.f32.mrf.mxu0 }
 0x10f   : > { %v1612_v62 = vpop.f32.mrf.mxu2 }
 0x110   : > { %v1997_v2 = vmax.f32 %v1965_v61, %v1901_v46  ;;  %v1778_v0 = vadd.f32 %v1612_v62, %v1255_v56  ;;  %v621_v61 = vrot.slane %v322_v57, 1  ;;  %v474_v62 = vrot.slane %v321_v32, 7 }
 0x111   : > { %v1257_v13 = vpop.f32.mrf.mxu1  ;;  %2802 = vmatmul.msk.f32.gmra.mxu0 %vm709_vm2, %v318_v35  ;;  %v619_v35 = vrot.slane %v321_v32, 1 }
 0x112   : > { %2029 = vst [vmem:[#allocation2 + $0x20] sm:$0xff] %v1997_v2  ;;  %v3655_v11 = vadd.f32 %v3510_v33, %v1778_v0  ;;  %v1258_v45 = vadd.f32 %v1257_v13, %v901_v10  ;;  %v475_v13 = vsel %vm416_vm3, %v473_v39, %v474_v62  ;;  %v477_v23 = vsel %vm416_vm3, %v474_v62, %v476_v37 }
 0x113   : > { %v620_v38 = vsel %vm561_vm1, %v618_v22, %v619_v35  ;;  %v622_v10 = vsel %vm561_vm1, %v619_v35, %v621_v61  ;;  %v324_v22 = vld [vmem:[%s3296_s26 + $0x120] sm:$0xff]  ;;  %v325_v35 = vld [vmem:[%s3296_s26 + $0x128] sm:$0xff] }
 0x114   : > { %v1910_v3 = vmax.f32 %v3655_v11, 0.0  ;;  %2932 = vmatmul.msk.f32.gmra.mxu2 %vm709_vm2, %v617_v6  ;;  %2867 = vmatmul.msk.f32.gmra.mxu1 %vm709_vm2, %v470_v14  ;;  %v323_v14 = vld [vmem:[%s3296_s26 + $0x118] sm:$0xff]  ;;  %v626_v39 = vrot.slane %v325_v35, 1 }
 0x116   : > { %v1966_v46 = vmax.f32 %v1906_v16, %v1910_v3  ;;  %v904_v25 = vpop.f32.mrf.mxu0  ;;  %v623_v16 = vrot.slane %v323_v14, 1 }
 0x117   : > { %v1615_v20 = vpop.f32.mrf.mxu2 }
 0x118   : > { %v1998_v15 = vmax.f32 %v1966_v46, %v1902_v60  ;;  %v1779_v12 = vadd.f32 %v1615_v20, %v1258_v45  ;;  %v624_v45 = vsel %vm561_vm1, %v621_v61, %v623_v16 }
 0x119   : > { %v1260_v29 = vpop.f32.mrf.mxu1  ;;  %2803 = vmatmul.msk.f32.gmra.mxu0 %vm709_vm2, %v319_v54 }
 0x11a   : > { %2030 = vst [vmem:[#allocation2 + $0x28] sm:$0xff] %v1998_v15  ;;  %v3672_v27 = vadd.f32 %v3510_v33, %v1779_v12  ;;  %v1261_v60 = vadd.f32 %v1260_v29, %v904_v25 }
 0x11c   : > { %v1911_v1 = vmax.f32 %v3672_v27, 0.0  ;;  %2933 = vmatmul.msk.f32.gmra.mxu2 %vm709_vm2, %v697_v26  ;;  %2868 = vmatmul.msk.f32.gmra.mxu1 %vm709_vm2, %v472_v30  ;;  %v478_v26 = vrot.slane %v323_v14, 7 }
 0x11e   : > { %v1967_v36 = vmax.f32 %v1907_v34, %v1911_v1  ;;  %v3687_v21 = vpop.f32.mrf.mxu0  ;;  %v698_v34 = vsel %vm561_vm1, %v623_v16, 0.0 }
 0x11f   : > { %v1618_v40 = vpop.f32.mrf.mxu2 }
 0x120   : > { %v1999_v28 = vmax.f32 %v1967_v36, %v1903_v9  ;;  %v1780_v42 = vadd.f32 %v1618_v40, %v1261_v60  ;;  %v479_v60 = vsel %vm416_vm3, %v476_v37, %v478_v26  ;;  %v625_v36 = vrot.slane %v324_v22, 1 }
 0x121   : > { %v2061_v43 = vld [vmem:[#allocation2 + $0x20] ss:$2 sm:$0xff]  ;;  %v2093_v47 = vld [vmem:[#allocation2 + $0x21] ss:$2 sm:$0xff]  ;;  %v1263_v50 = vpop.f32.mrf.mxu1  ;;  %2804 = vmatmul.msk.f32.gmra.mxu0 %vm709_vm2, %v320_v31  ;;  %v480_v40 = vrot.slane %v324_v22, 7 }
 0x122   : > { %2031 = vst [vmem:[#allocation2 + $0x30] sm:$0xff] %v1999_v28  ;;  %v3691_v49 = vadd.f32 %v3510_v33, %v1780_v42  ;;  %v2139_v54 = vrot.slane %v2093_v47, 7  ;;  %v2186_v55 = vmax.f32 %v2061_v43, %v2093_v47  ;;  %v1264_v28 = vadd.f32 %v1263_v50, %v3687_v21 }
 0x123   : > { %v554_v47 = vsel %vm416_vm3, 0.0, %v480_v40 }
 0x124   : > { %v1912_v9 = vmax.f32 %v3691_v49, 0.0  ;;  %2934 = vmatmul.msk.f32.gmra.mxu2 %vm709_vm2, %v620_v38  ;;  %v2177_v56 = vsel %vm416_vm3, 0.0, %v2139_v54  ;;  %2869 = vmatmul.msk.f32.gmra.mxu1 %vm709_vm2, %v553_v53  ;;  %v627_v38 = vsel %vm561_vm1, %v625_v36, %v626_v39  ;;  %v326_v53 = vld [vmem:[%s3296_s26 + $0x130] sm:$0xff] }
 0x125   : > { %v3700_v59 = vmax.f32 %v2186_v55, %v2177_v56 }
 0x126   : > { %v1968_v63 = vmax.f32 %v1908_v17, %v1912_v9  ;;  %v910_v0 = vpop.f32.mrf.mxu0  ;;  %v481_v17 = vrot.slane %v325_v35, 7 }
 0x127   : > { %v1621_v4 = vpop.f32.mrf.mxu2  ;;  %v2235_v5 = vrot.slane %v3700_v59, 7 }
 0x128   : > { %v2000_v2 = vmax.f32 %v1968_v63, %v1904_v44 }
 0x129   : > { %2969 = vmatmul.msk.f32.gmra.mxu3 %vm3588_vm4, %v2235_v5  ;;  %v1266_v6 = vpop.f32.mrf.mxu1  ;;  %2805 = vmatmul.msk.f32.gmra.mxu0 %vm709_vm2, %v321_v32 }
 0x12a   : > { %2032 = vst [vmem:[#allocation2 + $0x38] sm:$0xff] %v2000_v2  ;;  %v1267_v50 = vadd.f32 %v1266_v6, %v910_v0 }
 0x12c   : > { %2935 = vmatmul.msk.f32.gmra.mxu2 %vm709_vm2, %v622_v10  ;;  %2870 = vmatmul.msk.f32.gmra.mxu1 %vm709_vm2, %v475_v13  ;;  %v327_v10 = vld [vmem:[%s3296_s26 + $0x138] sm:$0xff] }
 0x12d   : > { %v630_v6 = vrot.slane %v327_v10, 1 }
 0x12e   : > { %v3715_v19 = vpop.f32.mrf.mxu0 }
 0x12f   : > { %v1624_v44 = vpop.f32.mrf.mxu2 }
 0x131   : > { %v2063_v46 = vld [vmem:[#allocation2 + $0x30] ss:$2 sm:$0xff]  ;;  %v2095_v8 = vld [vmem:[#allocation2 + $0x31] ss:$2 sm:$0xff]  ;;  %v1269_v20 = vpop.f32.mrf.mxu1  ;;  %2806 = vmatmul.msk.f32.gmra.mxu0 %vm709_vm2, %v322_v57  ;;  %v628_v57 = vrot.slane %v326_v53, 1 }
 0x132   : > { %v2140_v24 = vrot.slane %v2095_v8, 7  ;;  %v2187_v15 = vmax.f32 %v2063_v46, %v2095_v8 }
 0x133   : > { %v629_v62 = vsel %vm561_vm1, %v626_v39, %v628_v57 }
 0x134   : > { %2936 = vmatmul.msk.f32.gmra.mxu2 %vm709_vm2, %v624_v45  ;;  %v2141_v12 = vsel %vm416_vm3, %v2139_v54, %v2140_v24  ;;  %2871 = vmatmul.msk.f32.gmra.mxu1 %vm709_vm2, %v477_v23  ;;  %v1781_v54 = vadd.f32 %v1621_v4, %v1264_v28  ;;  %v482_v4 = vsel %vm416_vm3, %v480_v40, %v481_v17  ;;  %v483_v45 = vrot.slane %v326_v53, 7 }
 0x135   : > { %v3723_v25 = vmax.f32 %v2187_v15, %v2141_v12  ;;  %v1270_v23 = vadd.f32 %v1269_v20, %v3715_v19  ;;  %v631_v12 = vsel %vm561_vm1, %v628_v57, %v630_v6  ;;  %v485_v20 = vrot.slane %v327_v10, 7 }
 0x136   : > { %v3728_v31 = vpop.f32.mrf.mxu0  ;;  %v1849_v21 = vadd.f32 %v3510_v33, %v1781_v54  ;;  %v699_v28 = vsel %vm561_vm1, %v630_v6, 0.0  ;;  %v330_v6 = vld [vmem:[%s3296_s26 + $0x150] sm:$0xff] }
 0x137   : > { %v3725_v29 = vpop.f32.mrf.mxu2  ;;  %v2236_v30 = vrot.slane %v3723_v25, 7  ;;  %v490_v49 = vrot.slane %v330_v6, 7 }
 0x138   : > { %v1913_v13 = vmax.f32 %v1849_v21, 0.0 }
 0x139   : > { %v2237_v32 = vsel %vm416_vm3, %v2235_v5, %v2236_v30  ;;  %v3732_v18 = vpop.f32.mrf.mxu1  ;;  %2807 = vmatmul.msk.f32.gmra.mxu0 %vm709_vm2, %v323_v14  ;;  %v1782_v14 = vadd.f32 %v1624_v44, %v1267_v50 }
 0x13a   : > { %2405 = vmatmul.f32.gmra.mxu3 %v2237_v32  ;;  %v484_v32 = vsel %vm416_vm3, %v481_v17, %v483_v45  ;;  %v1273_v36 = vadd.f32 %v3732_v18, %v3728_v31 }
 0x13b   : > { %v1850_v8 = vadd.f32 %v3510_v33, %v1782_v14 }
 0x13c   : > { %2937 = vmatmul.msk.f32.gmra.mxu2 %vm709_vm2, %v698_v34  ;;  %2872 = vmatmul.msk.f32.gmra.mxu1 %vm709_vm2, %v479_v60  ;;  %v1783_v60 = vadd.f32 %v3725_v29, %v1270_v23 }
 0x13d   : > { %v1914_v34 = vmax.f32 %v1850_v8, 0.0 }
 0x13e   : > { %v919_v42 = vpop.f32.mrf.mxu0 }
 0x13f   : > { %v3740_v41 = vpop.f32.mrf.mxu2 }
 0x140   : > { %v1784_v31 = vadd.f32 %v3740_v41, %v1273_v36 }
 0x141   : > { %v1275_v43 = vpop.f32.mrf.mxu1  ;;  %2808 = vmatmul.msk.f32.gmra.mxu0 %vm709_vm2, %v324_v22 }
 0x142   : > { %v1276_v55 = vadd.f32 %v1275_v43, %v919_v42  ;;  %v486_v43 = vsel %vm416_vm3, %v483_v45, %v485_v20  ;;  %v1852_v21 = vadd.f32 %v3510_v33, %v1784_v31 }
 0x144   : > { %2938 = vmatmul.msk.f32.gmra.mxu2 %vm709_vm2, %v627_v38  ;;  %2873 = vmatmul.msk.f32.gmra.mxu1 %vm709_vm2, %v554_v47  ;;  %v328_v47 = vld [vmem:[%s3296_s26 + $0x140] sm:$0xff]  ;;  %v1916_v27 = vmax.f32 %v1852_v21, 0.0 }
 0x145   : > { %v632_v18 = vrot.slane %v328_v47, 1  ;;  %v487_v17 = vrot.slane %v328_v47, 7 }
 0x146   : > { %v922_v63 = vpop.f32.mrf.mxu0 }
 0x147   : > { %v1633_v56 = vpop.f32.mrf.mxu2 }
 0x148   : > { %v1785_v61 = vadd.f32 %v1633_v56, %v1276_v55 }
 0x149   : > { %v1278_v2 = vpop.f32.mrf.mxu1  ;;  %2809 = vmatmul.msk.f32.gmra.mxu0 %vm709_vm2, %v325_v35  ;;  %v1851_v35 = vadd.f32 %v3510_v33, %v1783_v60  ;;  %v331_v60 = vld [vmem:[%s3296_s26 + $0x158] sm:$0xff] }
 0x14a   : > { %v3752_v5 = vadd.f32 %v3510_v33, %v1785_v61  ;;  %v1279_v0 = vadd.f32 %v1278_v2, %v922_v63 }
 0x14b   : > { %v1915_v54 = vmax.f32 %v1851_v35, 0.0 }
 0x14c   : > { %v1917_v16 = vmax.f32 %v3752_v5, 0.0  ;;  %2939 = vmatmul.msk.f32.gmra.mxu2 %vm709_vm2, %v629_v62  ;;  %2874 = vmatmul.msk.f32.gmra.mxu1 %vm709_vm2, %v482_v4 }
 0x14e   : > { %v1969_v37 = vmax.f32 %v1913_v13, %v1917_v16  ;;  %v925_v15 = vpop.f32.mrf.mxu0  ;;  %v555_v13 = vsel %vm416_vm3, 0.0, %v487_v17 }
 0x14f   : > { %v1636_v46 = vpop.f32.mrf.mxu2 }
 0x150   : > { %v2001_v44 = vmax.f32 %v1969_v37, %v1909_v58  ;;  %v1786_v24 = vadd.f32 %v1636_v46, %v1279_v0  ;;  %v635_v46 = vrot.slane %v330_v6, 1 }
 0x151   : > { %v1281_v30 = vpop.f32.mrf.mxu1  ;;  %2810 = vmatmul.msk.f32.gmra.mxu0 %vm709_vm2, %v326_v53  ;;  %v329_v53 = vld [vmem:[%s3296_s26 + $0x148] sm:$0xff] }
 0x152   : > { %2033 = vst [vmem:[#allocation2 + $0x40] sm:$0xff] %v2001_v44  ;;  %v3768_v26 = vadd.f32 %v3510_v33, %v1786_v24  ;;  %v1282_v51 = vadd.f32 %v1281_v30, %v925_v15  ;;  %v633_v55 = vrot.slane %v329_v53, 1  ;;  %v488_v23 = vrot.slane %v329_v53, 7 }
 0x154   : > { %v1918_v19 = vmax.f32 %v3768_v26, 0.0  ;;  %2940 = vmatmul.msk.f32.gmra.mxu2 %vm709_vm2, %v631_v12  ;;  %2875 = vmatmul.msk.f32.gmra.mxu1 %vm709_vm2, %v484_v32  ;;  %v634_v63 = vsel %vm561_vm1, %v632_v18, %v633_v55  ;;  %v636_v30 = vsel %vm561_vm1, %v633_v55, %v635_v46 }
 0x156   : > { %v1970_v58 = vmax.f32 %v1914_v34, %v1918_v19  ;;  %v928_v40 = vpop.f32.mrf.mxu0  ;;  %v489_v34 = vsel %vm416_vm3, %v487_v17, %v488_v23  ;;  %v333_v17 = vld [vmem:[%s3296_s26 + $0x168] sm:$0xff] }
 0x157   : > { %v1639_v22 = vpop.f32.mrf.mxu2  ;;  %v640_v21 = vrot.slane %v333_v17, 1 }
 0x158   : > { %v2002_v29 = vmax.f32 %v1970_v58, %v1910_v3  ;;  %v1787_v39 = vadd.f32 %v1639_v22, %v1282_v51  ;;  %v637_v51 = vrot.slane %v331_v60, 1 }
 0x159   : > { %v1284_v38 = vpop.f32.mrf.mxu1  ;;  %2811 = vmatmul.msk.f32.gmra.mxu0 %vm709_vm2, %v327_v10 }
 0x15a   : > { %2034 = vst [vmem:[#allocation2 + $0x48] sm:$0xff] %v2002_v29  ;;  %v3785_v42 = vadd.f32 %v3510_v33, %v1787_v39  ;;  %v1285_v3 = vadd.f32 %v1284_v38, %v928_v40  ;;  %v638_v20 = vsel %vm561_vm1, %v635_v46, %v637_v51  ;;  %v491_v29 = vsel %vm416_vm3, %v488_v23, %v490_v49 }
 0x15b   : > { %v495_v46 = vrot.slane %v333_v17, 7 }
 0x15c   : > { %v1919_v11 = vmax.f32 %v3785_v42, 0.0  ;;  %2941 = vmatmul.msk.f32.gmra.mxu2 %vm709_vm2, %v699_v28  ;;  %2876 = vmatmul.msk.f32.gmra.mxu1 %vm709_vm2, %v486_v43  ;;  %v492_v43 = vrot.slane %v331_v60, 7 }
 0x15e   : > { %v1971_v57 = vmax.f32 %v1915_v54, %v1919_v11  ;;  %v3800_v61 = vpop.f32.mrf.mxu0  ;;  %v493_v55 = vsel %vm416_vm3, %v490_v49, %v492_v43 }
 0x15f   : > { %v1642_v56 = vpop.f32.mrf.mxu2 }
 0x160   : > { %v2003_v41 = vmax.f32 %v1971_v57, %v1911_v1  ;;  %v1788_v50 = vadd.f32 %v1642_v56, %v1285_v3  ;;  %v700_v3 = vsel %vm561_vm1, %v637_v51, 0.0  ;;  %v332_v57 = vld [vmem:[%s3296_s26 + $0x160] sm:$0xff] }
 0x161   : > { %v2065_v62 = vld [vmem:[#allocation2 + $0x40] ss:$2 sm:$0xff]  ;;  %v2097_v2 = vld [vmem:[#allocation2 + $0x41] ss:$2 sm:$0xff]  ;;  %v1287_v10 = vpop.f32.mrf.mxu1  ;;  %2812 = vmatmul.msk.f32.gmra.mxu0 %vm709_vm2, %v328_v47  ;;  %v639_v56 = vrot.slane %v332_v57, 1 }
 0x162   : > { %2035 = vst [vmem:[#allocation2 + $0x50] sm:$0xff] %v2003_v41  ;;  %v3804_v4 = vadd.f32 %v3510_v33, %v1788_v50  ;;  %v2142_v14 = vrot.slane %v2097_v2, 7  ;;  %v2188_v0 = vmax.f32 %v2065_v62, %v2097_v2  ;;  %v494_v41 = vrot.slane %v332_v57, 7 }
 0x163   : > { %v641_v2 = vsel %vm561_vm1, %v639_v56, %v640_v21 }
 0x164   : > { %v1920_v1 = vmax.f32 %v3804_v4, 0.0  ;;  %2942 = vmatmul.msk.f32.gmra.mxu2 %vm709_vm2, %v634_v63  ;;  %v2178_v37 = vsel %vm416_vm3, 0.0, %v2142_v14  ;;  %2877 = vmatmul.msk.f32.gmra.mxu1 %vm709_vm2, %v555_v13  ;;  %v1288_v63 = vadd.f32 %v1287_v10, %v3800_v61 }
 0x165   : > { %v3813_v45 = vmax.f32 %v2188_v0, %v2178_v37  ;;  %v334_v0 = vld [vmem:[%s3296_s26 + $0x170] sm:$0xff] }
 0x166   : > { %v1972_v8 = vmax.f32 %v1916_v27, %v1920_v1  ;;  %v934_v12 = vpop.f32.mrf.mxu0  ;;  %v642_v37 = vrot.slane %v334_v0, 1 }
 0x167   : > { %v1645_v44 = vpop.f32.mrf.mxu2  ;;  %v2238_v24 = vrot.slane %v3813_v45, 7 }
 0x168   : > { %v2004_v15 = vmax.f32 %v1972_v8, %v1912_v9 }
 0x169   : > { %2971 = vmatmul.msk.f32.gmra.mxu3 %vm3588_vm4, %v2238_v24  ;;  %v1290_v32 = vpop.f32.mrf.mxu1  ;;  %2813 = vmatmul.msk.f32.gmra.mxu0 %vm709_vm2, %v329_v53 }
 0x16a   : > { %2036 = vst [vmem:[#allocation2 + $0x58] sm:$0xff] %v2004_v15  ;;  %v1291_v10 = vadd.f32 %v1290_v32, %v934_v12  ;;  %v643_v15 = vsel %vm561_vm1, %v640_v21, %v642_v37 }
 0x16c   : > { %2943 = vmatmul.msk.f32.gmra.mxu2 %vm709_vm2, %v636_v30  ;;  %2878 = vmatmul.msk.f32.gmra.mxu1 %vm709_vm2, %v489_v34 }
 0x16e   : > { %v3828_v58 = vpop.f32.mrf.mxu0 }
 0x16f   : > { %v1648_v9 = vpop.f32.mrf.mxu2 }
 0x170   : > { %v1790_v49 = vadd.f32 %v1648_v9, %v1291_v10  ;;  %v3910_v10 = vld [vmem:[#allocation6] ss:$0 sm:$0xff] }
 0x171   : > { %v2067_v22 = vld [vmem:[#allocation2 + $0x50] ss:$2 sm:$0xff]  ;;  %v2099_v35 = vld [vmem:[#allocation2 + $0x51] ss:$2 sm:$0xff]  ;;  %v1293_v36 = vpop.f32.mrf.mxu1  ;;  %2814 = vmatmul.msk.f32.gmra.mxu0 %vm709_vm2, %v330_v6  ;;  %v1789_v6 = vadd.f32 %v1645_v44, %v1288_v63  ;;  %v496_v44 = vsel %vm416_vm3, %v494_v41, %v495_v46 }
 0x172   : > { %v2143_v39 = vrot.slane %v2099_v35, 7  ;;  %v2189_v40 = vmax.f32 %v2067_v22, %v2099_v35  ;;  %v497_v35 = vrot.slane %v334_v0, 7 }
 0x173   : > { %v1857_v61 = vadd.f32 %v3510_v33, %v1789_v6  ;;  %v336_v6 = vld [vmem:[%s3296_s26 + $0x180] sm:$0xff] }
 0x174   : > { %2944 = vmatmul.msk.f32.gmra.mxu2 %vm709_vm2, %v638_v20  ;;  %v2144_v28 = vsel %vm416_vm3, %v2142_v14, %v2143_v39  ;;  %2879 = vmatmul.msk.f32.gmra.mxu1 %vm709_vm2, %v491_v29  ;;  %v556_v14 = vsel %vm416_vm3, 0.0, %v494_v41  ;;  %v1858_v39 = vadd.f32 %v3510_v33, %v1790_v49 }
 0x175   : > { %v3836_v38 = vmax.f32 %v2189_v40, %v2144_v28  ;;  %v1921_v51 = vmax.f32 %v1857_v61, 0.0  ;;  %v1294_v40 = vadd.f32 %v1293_v36, %v3828_v58 }
 0x176   : > { %v3841_v54 = vpop.f32.mrf.mxu0 }
 0x177   : > { %v3838_v47 = vpop.f32.mrf.mxu2  ;;  %v2239_v53 = vrot.slane %v3836_v38, 7 }
 0x179   : > { %v2240_v31 = vsel %vm416_vm3, %v2238_v24, %v2239_v53  ;;  %v3845_v18 = vpop.f32.mrf.mxu1  ;;  %2815 = vmatmul.msk.f32.gmra.mxu0 %vm709_vm2, %v331_v60  ;;  %v335_v60 = vld [vmem:[%s3296_s26 + $0x178] sm:$0xff] }
 0x17a   : > { %2411 = vmatmul.f32.gmra.mxu3 %v2240_v31  ;;  %v644_v32 = vrot.slane %v335_v60, 1  ;;  %v499_v36 = vrot.slane %v335_v60, 7  ;;  %v1297_v41 = vadd.f32 %v3845_v18, %v3841_v54  ;;  %v646_v18 = vrot.slane %v336_v6, 1 }
 0x17c   : > { %2945 = vmatmul.msk.f32.gmra.mxu2 %vm709_vm2, %v700_v3  ;;  %2880 = vmatmul.msk.f32.gmra.mxu1 %vm709_vm2, %v493_v55  ;;  %v645_v53 = vsel %vm561_vm1, %v642_v37, %v644_v32  ;;  %v498_v55 = vsel %vm416_vm3, %v495_v46, %v497_v35 }
 0x17e   : > { %v943_v62 = vpop.f32.mrf.mxu0 }
 0x17f   : > { %v3853_v50 = vpop.f32.mrf.mxu2 }
 0x180   : > { %v1792_v54 = vadd.f32 %v3853_v50, %v1297_v41 }
 0x181   : > { %v1299_v13 = vpop.f32.mrf.mxu1  ;;  %2816 = vmatmul.msk.f32.gmra.mxu0 %vm709_vm2, %v332_v57  ;;  %v1922_v57 = vmax.f32 %v1858_v39, 0.0 }
 0x182   : > { %v1300_v27 = vadd.f32 %v1299_v13, %v943_v62 }
 0x184   : > { %2946 = vmatmul.msk.f32.gmra.mxu2 %vm709_vm2, %v641_v2  ;;  %2881 = vmatmul.msk.f32.gmra.mxu1 %vm709_vm2, %v556_v14  ;;  %v701_v2 = vsel %vm561_vm1, %v644_v32, 0.0 }
 0x186   : > { %v946_v24 = vpop.f32.mrf.mxu0 }
 0x187   : > { %v1657_v8 = vpop.f32.mrf.mxu2 }
 0x188   : > { %v1793_v23 = vadd.f32 %v1657_v8, %v1300_v27  ;;  %v337_v27 = vld [vmem:[%s3296_s26 + $0x188] sm:$0xff]  ;;  %v501_v8 = vrot.slane %v336_v6, 7 }
 0x189   : > { %v1302_v34 = vpop.f32.mrf.mxu1  ;;  %2817 = vmatmul.msk.f32.gmra.mxu0 %vm709_vm2, %v333_v17  ;;  %v1791_v17 = vadd.f32 %v3838_v47, %v1294_v40 }
 0x18a   : > { %v3865_v30 = vadd.f32 %v3510_v33, %v1793_v23  ;;  %v1303_v12 = vadd.f32 %v1302_v34, %v946_v24  ;;  %v1860_v23 = vadd.f32 %v3910_v10, %v1792_v54 }
 0x18b   : > { %v1859_v21 = vadd.f32 %v3510_v33, %v1791_v17 }
 0x18c   : > { %v1925_v20 = vmax.f32 %v3865_v30, 0.0  ;;  %2947 = vmatmul.msk.f32.gmra.mxu2 %vm709_vm2, %v643_v15  ;;  %2882 = vmatmul.msk.f32.gmra.mxu1 %vm709_vm2, %v496_v44  ;;  %v1924_v42 = vmax.f32 %v1860_v23, 0.0  ;;  %v341_v23 = vld [vmem:[%s3296_s26 + $0x1a8] sm:$0xff] }
 0x18d   : > { %v1923_v37 = vmax.f32 %v1859_v21, 0.0 }
 0x18e   : > { %v1973_v22 = vmax.f32 %v1921_v51, %v1925_v20  ;;  %v949_v43 = vpop.f32.mrf.mxu0 }
 0x18f   : > { %v1660_v29 = vpop.f32.mrf.mxu2 }
 0x190   : > { %v2005_v9 = vmax.f32 %v1973_v22, %v1917_v16  ;;  %v1794_v28 = vadd.f32 %v1660_v29, %v1303_v12  ;;  %v557_v12 = vsel %vm416_vm3, 0.0, %v501_v8 }
 0x191   : > { %v1305_v3 = vpop.f32.mrf.mxu1  ;;  %2818 = vmatmul.msk.f32.gmra.mxu0 %vm709_vm2, %v334_v0  ;;  %v500_v0 = vsel %vm416_vm3, %v497_v35, %v499_v36  ;;  %v338_v35 = vld [vmem:[%s3296_s26 + $0x190] sm:$0xff] }
 0x192   : > { %2037 = vst [vmem:[#allocation2 + $0x60] sm:$0xff] %v2005_v9  ;;  %v3881_v31 = vadd.f32 %v3510_v33, %v1794_v28  ;;  %v1306_v5 = vadd.f32 %v1305_v3, %v949_v43  ;;  %v649_v40 = vrot.slane %v338_v35, 1  ;;  %v502_v28 = vrot.slane %v337_v27, 7 }
 0x193   : > { %v504_v4 = vrot.slane %v338_v35, 7 }
 0x194   : > { %v1926_v58 = vmax.f32 %v3881_v31, 0.0  ;;  %2948 = vmatmul.msk.f32.gmra.mxu2 %vm709_vm2, %v645_v53  ;;  %2883 = vmatmul.msk.f32.gmra.mxu1 %vm709_vm2, %v498_v55 }
 0x196   : > { %v1974_v16 = vmax.f32 %v1922_v57, %v1926_v58  ;;  %v952_v62 = vpop.f32.mrf.mxu0 }
 0x197   : > { %v1663_v56 = vpop.f32.mrf.mxu2 }
 0x198   : > { %v2006_v47 = vmax.f32 %v1974_v16, %v1918_v19  ;;  %v1795_v63 = vadd.f32 %v1663_v56, %v1306_v5  ;;  %v503_v5 = vsel %vm416_vm3, %v501_v8, %v502_v28  ;;  %v339_v16 = vld [vmem:[%s3296_s26 + $0x198] sm:$0xff] }
 0x199   : > { %v1308_v14 = vpop.f32.mrf.mxu1  ;;  %2819 = vmatmul.msk.f32.gmra.mxu0 %vm709_vm2, %v335_v60  ;;  %v651_v36 = vrot.slane %v339_v16, 1 }
 0x19a   : > { %2038 = vst [vmem:[#allocation2 + $0x68] sm:$0xff] %v2006_v47  ;;  %v3898_v13 = vadd.f32 %v3510_v33, %v1795_v63  ;;  %v1309_v19 = vadd.f32 %v1308_v14, %v952_v62  ;;  %v647_v33 = vrot.slane %v337_v27, 1  ;;  %v505_v62 = vsel %vm416_vm3, %v502_v28, %v504_v4 }
 0x19b   : > { %v652_v21 = vsel %vm561_vm1, %v649_v40, %v651_v36  ;;  %v509_v28 = vrot.slane %v341_v23, 7 }
 0x19c   : > { %v1927_v26 = vmax.f32 %v3898_v13, 0.0  ;;  %2949 = vmatmul.msk.f32.gmra.mxu2 %vm709_vm2, %v701_v2  ;;  %2884 = vmatmul.msk.f32.gmra.mxu1 %vm709_vm2, %v500_v0  ;;  %v648_v34 = vsel %vm561_vm1, %v646_v18, %v647_v33  ;;  %v650_v57 = vsel %vm561_vm1, %v647_v33, %v649_v40  ;;  %v702_v33 = vsel %vm561_vm1, %v651_v36, 0.0 }
 0x19e   : > { %v1975_v46 = vmax.f32 %v1923_v37, %v1927_v26  ;;  %v3915_v15 = vpop.f32.mrf.mxu0 }
 0x19f   : > { %v1666_v61 = vpop.f32.mrf.mxu2 }
 0x1a0   : > { %v2007_v50 = vmax.f32 %v1975_v46, %v1919_v11  ;;  %v1796_v24 = vadd.f32 %v1666_v61, %v1309_v19  ;;  %v340_v61 = vld [vmem:[%s3296_s26 + $0x1a0] sm:$0xff] }
 0x1a1   : > { %v2069_v44 = vld [vmem:[#allocation2 + $0x60] ss:$2 sm:$0xff]  ;;  %v2101_v60 = vld [vmem:[#allocation2 + $0x61] ss:$2 sm:$0xff]  ;;  %v1311_v49 = vpop.f32.mrf.mxu1  ;;  %2820 = vmatmul.msk.f32.gmra.mxu0 %vm709_vm2, %v336_v6 }
 0x1a2   : > { %2039 = vst [vmem:[#allocation2 + $0x70] sm:$0xff] %v2007_v50  ;;  %v3919_v51 = vadd.f32 %v3910_v10, %v1796_v24  ;;  %v2145_v32 = vrot.slane %v2101_v60, 7  ;;  %v2190_v22 = vmax.f32 %v2069_v44, %v2101_v60  ;;  %v653_v50 = vrot.slane %v340_v61, 1 }
 0x1a3   : > { %v654_v24 = vrot.slane %v341_v23, 1  ;;  %v1312_v60 = vadd.f32 %v1311_v49, %v3915_v15 }
 0x1a4   : > { %v1928_v11 = vmax.f32 %v3919_v51, 0.0  ;;  %2950 = vmatmul.msk.f32.gmra.mxu2 %vm709_vm2, %v648_v34  ;;  %v2179_v29 = vsel %vm416_vm3, 0.0, %v2145_v32  ;;  %2885 = vmatmul.msk.f32.gmra.mxu1 %vm709_vm2, %v557_v12  ;;  %v508_v34 = vrot.slane %v340_v61, 7 }
 0x1a5   : > { %v3928_v39 = vmax.f32 %v2190_v22, %v2179_v29 }
 0x1a6   : > { %v1976_v9 = vmax.f32 %v1924_v42, %v1928_v11  ;;  %v958_v55 = vpop.f32.mrf.mxu0  ;;  %v342_v42 = vld [vmem:[%s3296_s26 + $0x1b0] sm:$0xff] }
 0x1a7   : > { %v1669_v43 = vpop.f32.mrf.mxu2  ;;  %v2241_v53 = vrot.slane %v3928_v39, 7 }
 0x1a8   : > { %v2008_v3 = vmax.f32 %v1976_v9, %v1920_v1  ;;  %v1797_v29 = vadd.f32 %v1669_v43, %v1312_v60  ;;  %v656_v9 = vrot.slane %v342_v42, 1  ;;  %v510_v43 = vsel %vm416_vm3, %v508_v34, %v509_v28 }
 0x1a9   : > { %2973 = vmatmul.msk.f32.gmra.mxu3 %vm3588_vm4, %v2241_v53  ;;  %v1314_v17 = vpop.f32.mrf.mxu1  ;;  %2821 = vmatmul.msk.f32.gmra.mxu0 %vm709_vm2, %v337_v27  ;;  %v506_v27 = vrot.slane %v339_v16, 7 }
 0x1aa   : > { %2040 = vst [vmem:[#allocation2 + $0x78] sm:$0xff] %v2008_v3  ;;  %v1865_v15 = vadd.f32 %v3910_v10, %v1797_v29  ;;  %v1315_v49 = vadd.f32 %v1314_v17, %v958_v55 }
 0x1ab   : > { %v507_v8 = vsel %vm416_vm3, %v504_v4, %v506_v27  ;;  %v343_v4 = vld [vmem:[%s3296_s26 + $0x1b8] sm:$0xff] }
 0x1ac   : > { %2951 = vmatmul.msk.f32.gmra.mxu2 %vm709_vm2, %v650_v57  ;;  %2886 = vmatmul.msk.f32.gmra.mxu1 %vm709_vm2, %v503_v5  ;;  %v657_v5 = vsel %vm561_vm1, %v654_v24, %v656_v9  ;;  %v658_v17 = vrot.slane %v343_v4, 1 }
 0x1ae   : > { %v3943_v56 = vpop.f32.mrf.mxu0 }
 0x1af   : > { %v1672_v1 = vpop.f32.mrf.mxu2 }
 0x1b1   : > { %v2071_v41 = vld [vmem:[#allocation2 + $0x70] ss:$2 sm:$0xff]  ;;  %v2103_v47 = vld [vmem:[#allocation2 + $0x71] ss:$2 sm:$0xff]  ;;  %v1317_v63 = vpop.f32.mrf.mxu1  ;;  %2822 = vmatmul.msk.f32.gmra.mxu0 %vm709_vm2, %v338_v35  ;;  %v558_v35 = vsel %vm416_vm3, 0.0, %v508_v34 }
 0x1b2   : > { %v2146_v2 = vrot.slane %v2103_v47, 7  ;;  %v2191_v14 = vmax.f32 %v2071_v41, %v2103_v47  ;;  %v1798_v41 = vadd.f32 %v1672_v1, %v1315_v49  ;;  %v1318_v27 = vadd.f32 %v1317_v63, %v3943_v56 }
 0x1b3   : > { %v513_v63 = vrot.slane %v343_v4, 7 }
 0x1b4   : > { %2952 = vmatmul.msk.f32.gmra.mxu2 %vm709_vm2, %v652_v21  ;;  %v2147_v0 = vsel %vm416_vm3, %v2145_v32, %v2146_v2  ;;  %2887 = vmatmul.msk.f32.gmra.mxu1 %vm709_vm2, %v505_v62  ;;  %v655_v32 = vsel %vm561_vm1, %v653_v50, %v654_v24  ;;  %v1929_v21 = vmax.f32 %v1865_v15, 0.0  ;;  %v511_v2 = vrot.slane %v342_v42, 7 }
 0x1b5   : > { %v3951_v6 = vmax.f32 %v2191_v14, %v2147_v0  ;;  %v1866_v0 = vadd.f32 %v3910_v10, %v1798_v41 }
 0x1b6   : > { %v3956_v19 = vpop.f32.mrf.mxu0 }
 0x1b7   : > { %v3953_v37 = vpop.f32.mrf.mxu2  ;;  %v2242_v54 = vrot.slane %v3951_v6, 7  ;;  %v1930_v50 = vmax.f32 %v1866_v0, 0.0  ;;  %v346_v0 = vld [vmem:[%s3296_s26 + $0x1d0] sm:$0xff] }
 0x1b8   : > { %v1799_v24 = vadd.f32 %v3953_v37, %v1318_v27  ;;  %v518_v51 = vrot.slane %v346_v0, 7 }
 0x1b9   : > { %v2243_v18 = vsel %vm416_vm3, %v2241_v53, %v2242_v54  ;;  %v3960_v46 = vpop.f32.mrf.mxu1  ;;  %2823 = vmatmul.msk.f32.gmra.mxu0 %vm709_vm2, %v339_v16 }
 0x1ba   : > { %2417 = vmatmul.f32.gmra.mxu3 %v2243_v18  ;;  %v1867_v60 = vadd.f32 %v3910_v10, %v1799_v24 }
 0x1bc   : > { %2953 = vmatmul.msk.f32.gmra.mxu2 %vm709_vm2, %v702_v33  ;;  %2888 = vmatmul.msk.f32.gmra.mxu1 %vm709_vm2, %v507_v8  ;;  %v659_v33 = vsel %vm561_vm1, %v656_v9, %v658_v17  ;;  %v344_v9 = vld [vmem:[%s3296_s26 + $0x1c0] sm:$0xff] }
 0x1be   : > { %v967_v12 = vpop.f32.mrf.mxu0 }
 0x1bf   : > { %v3968_v44 = vpop.f32.mrf.mxu2 }
 0x1c1   : > { %v1323_v22 = vpop.f32.mrf.mxu1  ;;  %2824 = vmatmul.msk.f32.gmra.mxu0 %vm709_vm2, %v340_v61 }
 0x1c2   : > { %v1324_v40 = vadd.f32 %v1323_v22, %v967_v12  ;;  %v1321_v12 = vadd.f32 %v3960_v46, %v3956_v19  ;;  %v660_v46 = vrot.slane %v344_v9, 1 }
 0x1c4   : > { %2954 = vmatmul.msk.f32.gmra.mxu2 %vm709_vm2, %v655_v32  ;;  %2889 = vmatmul.msk.f32.gmra.mxu1 %vm709_vm2, %v558_v35  ;;  %v703_v35 = vsel %vm561_vm1, %v658_v17, 0.0  ;;  %v1800_v19 = vadd.f32 %v3968_v44, %v1321_v12 }
 0x1c6   : > { %v970_v57 = vpop.f32.mrf.mxu0 }
 0x1c7   : > { %v1681_v53 = vpop.f32.mrf.mxu2 }
 0x1c8   : > { %v1801_v3 = vadd.f32 %v1681_v53, %v1324_v40  ;;  %v514_v40 = vsel %vm416_vm3, %v511_v2, %v513_v63  ;;  %v1931_v53 = vmax.f32 %v1867_v60, 0.0 }
 0x1c9   : > { %v1326_v36 = vpop.f32.mrf.mxu1  ;;  %2825 = vmatmul.msk.f32.gmra.mxu0 %vm709_vm2, %v341_v23  ;;  %v512_v23 = vsel %vm416_vm3, %v509_v28, %v511_v2  ;;  %v345_v28 = vld [vmem:[%s3296_s26 + $0x1c8] sm:$0xff] }
 0x1ca   : > { %v3980_v16 = vadd.f32 %v3910_v10, %v1801_v3  ;;  %v1327_v55 = vadd.f32 %v1326_v36, %v970_v57  ;;  %v661_v15 = vrot.slane %v345_v28, 1  ;;  %v515_v3 = vrot.slane %v344_v9, 7 }
 0x1cc   : > { %v1933_v47 = vmax.f32 %v3980_v16, 0.0  ;;  %2955 = vmatmul.msk.f32.gmra.mxu2 %vm709_vm2, %v657_v5  ;;  %2890 = vmatmul.msk.f32.gmra.mxu1 %vm709_vm2, %v510_v43  ;;  %v1868_v5 = vadd.f32 %v3910_v10, %v1800_v19 }
 0x1ce   : > { %v1977_v62 = vmax.f32 %v1929_v21, %v1933_v47  ;;  %v973_v18 = vpop.f32.mrf.mxu0  ;;  %v1932_v13 = vmax.f32 %v1868_v5, 0.0 }
 0x1cf   : > { %v1684_v14 = vpop.f32.mrf.mxu2 }
 0x1d0   : > { %v2009_v1 = vmax.f32 %v1977_v62, %v1925_v20  ;;  %v1802_v54 = vadd.f32 %v1684_v14, %v1327_v55  ;;  %v559_v62 = vsel %vm416_vm3, 0.0, %v515_v3 }
 0x1d1   : > { %v1329_v61 = vpop.f32.mrf.mxu1  ;;  %2826 = vmatmul.msk.f32.gmra.mxu0 %vm709_vm2, %v342_v42 }
 0x1d2   : > { %2041 = vst [vmem:[#allocation2 + $0x80] sm:$0xff] %v2009_v1  ;;  %v3996_v8 = vadd.f32 %v3910_v10, %v1802_v54  ;;  %v1330_v30 = vadd.f32 %v1329_v61, %v973_v18  ;;  %v663_v54 = vrot.slane %v346_v0, 1 }
 0x1d4   : > { %v1934_v56 = vmax.f32 %v3996_v8, 0.0  ;;  %2956 = vmatmul.msk.f32.gmra.mxu2 %vm709_vm2, %v659_v33  ;;  %2891 = vmatmul.msk.f32.gmra.mxu1 %vm709_vm2, %v512_v23  ;;  %v516_v33 = vrot.slane %v345_v28, 7 }
 0x1d6   : > { %v1978_v20 = vmax.f32 %v1930_v50, %v1934_v56  ;;  %v976_v22 = vpop.f32.mrf.mxu0  ;;  %v517_v63 = vsel %vm416_vm3, %v515_v3, %v516_v33 }
 0x1d7   : > { %v1687_v34 = vpop.f32.mrf.mxu2 }
 0x1d8   : > { %v2010_v37 = vmax.f32 %v1978_v20, %v1926_v58  ;;  %v1803_v32 = vadd.f32 %v1687_v34, %v1330_v30  ;;  %v664_v30 = vsel %vm561_vm1, %v661_v15, %v663_v54  ;;  %v347_v34 = vld [vmem:[%s3296_s26 + $0x1d8] sm:$0xff] }
 0x1d9   : > { %v1332_v29 = vpop.f32.mrf.mxu1  ;;  %2827 = vmatmul.msk.f32.gmra.mxu0 %vm709_vm2, %v343_v4  ;;  %v662_v4 = vsel %vm561_vm1, %v660_v46, %v661_v15  ;;  %v665_v60 = vrot.slane %v347_v34, 1  ;;  %v520_v19 = vrot.slane %v347_v34, 7 }
 0x1da   : > { %2042 = vst [vmem:[#allocation2 + $0x88] sm:$0xff] %v2010_v37  ;;  %v4013_v42 = vadd.f32 %v3910_v10, %v1803_v32  ;;  %v1333_v58 = vadd.f32 %v1332_v29, %v976_v22  ;;  %v519_v29 = vsel %vm416_vm3, %v516_v33, %v518_v51  ;;  %v2359_v33 = vld [vmem:[#allocation8 + $0xf8] sm:$0xff] }
 0x1db   : > { %v666_v37 = vsel %vm561_vm1, %v663_v54, %v665_v60  ;;  %v704_v3 = vsel %vm561_vm1, %v665_v60, 0.0  ;;  %v521_v5 = vsel %vm416_vm3, %v518_v51, %v520_v19  ;;  %2445 = vmatpush.msra.mxu3 %v2359_v33 }
 0x1dc   : > { %v1935_v31 = vmax.f32 %v4013_v42, 0.0  ;;  %2957 = vmatmul.msk.f32.gmra.mxu2 %vm709_vm2, %v703_v35  ;;  %2892 = vmatmul.msk.f32.gmra.mxu1 %vm709_vm2, %v514_v40  ;;  %v2355_v42 = vld [vmem:[#allocation8 + $0xd8] sm:$0xff] }
 0x1de   : > { %v1979_v49 = vmax.f32 %v1931_v53, %v1935_v31  ;;  %v4028_v43 = vpop.f32.mrf.mxu0 }
 0x1df   : > { %v1690_v57 = vpop.f32.mrf.mxu2 }
 0x1e0   : > { %v2011_v44 = vmax.f32 %v1979_v49, %v1927_v26  ;;  %v1804_v36 = vadd.f32 %v1690_v57, %v1333_v58 }
 0x1e1   : > { %v2073_v21 = vld [vmem:[#allocation2 + $0x80] ss:$2 sm:$0xff]  ;;  %v2105_v41 = vld [vmem:[#allocation2 + $0x81] ss:$2 sm:$0xff]  ;;  %v1335_v17 = vpop.f32.mrf.mxu1  ;;  %2828 = vmatmul.msk.f32.gmra.mxu0 %vm709_vm2, %v344_v9 }
 0x1e2   : > { %2043 = vst [vmem:[#allocation2 + $0x90] sm:$0xff] %v2011_v44  ;;  %v4032_v55 = vadd.f32 %v3910_v10, %v1804_v36  ;;  %v2148_v2 = vrot.slane %v2105_v41, 7  ;;  %v2192_v14 = vmax.f32 %v2073_v21, %v2105_v41  ;;  %v1336_v36 = vadd.f32 %v1335_v17, %v4028_v43 }
 0x1e4   : > { %v1936_v26 = vmax.f32 %v4032_v55, 0.0  ;;  %2958 = vmatmul.msk.f32.gmra.mxu2 %vm709_vm2, %v662_v4  ;;  %v2180_v27 = vsel %vm416_vm3, 0.0, %v2148_v2  ;;  %2893 = vmatmul.msk.f32.gmra.mxu1 %vm709_vm2, %v559_v62 }
 0x1e5   : > { %v4041_v1 = vmax.f32 %v2192_v14, %v2180_v27 }
 0x1e6   : > { %v1980_v18 = vmax.f32 %v1932_v13, %v1936_v26  ;;  %v982_v24 = vpop.f32.mrf.mxu0 }
 0x1e7   : > { %v1693_v61 = vpop.f32.mrf.mxu2  ;;  %v2244_v23 = vrot.slane %v4041_v1, 7 }
 0x1e8   : > { %v2012_v50 = vmax.f32 %v1980_v18, %v1928_v11  ;;  %v1805_v41 = vadd.f32 %v1693_v61, %v1336_v36  ;;  %v4077_v61 = vpop.f32.mrf.mxu3 }
 0x1e9   : > { %2975 = vmatmul.msk.f32.gmra.mxu3 %vm3588_vm4, %v2244_v23  ;;  %v1338_v20 = vpop.f32.mrf.mxu1  ;;  %2829 = vmatmul.msk.f32.gmra.mxu0 %vm709_vm2, %v345_v28 }
 0x1ea   : > { %2044 = vst [vmem:[#allocation2 + $0x98] sm:$0xff] %v2012_v50  ;;  %v1873_v14 = vadd.f32 %v3910_v10, %v1805_v41 }
 0x1ec   : > { %2959 = vmatmul.msk.f32.gmra.mxu2 %vm709_vm2, %v664_v30  ;;  %2894 = vmatmul.msk.f32.gmra.mxu1 %vm709_vm2, %v517_v63  ;;  %v2358_v30 = vld [vmem:[#allocation8 + $0xf0] sm:$0xff] }
 0x1ed   : > { %2446 = vmatpush.msra.mxu3 %v2358_v30 }
 0x1ee   : > { %v985_v12 = vpop.f32.mrf.mxu0 }
 0x1ef   : > { %v1696_v11 = vpop.f32.mrf.mxu2 }
 0x1f1   : > { %v2075_v32 = vld [vmem:[#allocation2 + $0x90] ss:$2 sm:$0xff]  ;;  %v2107_v22 = vld [vmem:[#allocation2 + $0x91] ss:$2 sm:$0xff]  ;;  %v1341_v35 = vpop.f32.mrf.mxu1  ;;  %2830 = vmatmul.msk.f32.gmra.mxu0 %vm709_vm2, %v346_v0  ;;  %v1339_v0 = vadd.f32 %v1338_v20, %v982_v24 }
 0x1f2   : > { %v2149_v40 = vrot.slane %v2107_v22, 7  ;;  %v2193_v9 = vmax.f32 %v2075_v32, %v2107_v22 }
 0x1f3   : > { %v1806_v50 = vadd.f32 %v1696_v11, %v1339_v0 }
 0x1f4   : > { %2960 = vmatmul.msk.f32.gmra.mxu2 %vm709_vm2, %v666_v37  ;;  %v2150_v28 = vsel %vm416_vm3, %v2148_v2, %v2149_v40  ;;  %2895 = vmatmul.msk.f32.gmra.mxu1 %vm709_vm2, %v519_v29 }
 0x1f5   : > { %v4062_v53 = vmax.f32 %v2193_v9, %v2150_v28  ;;  %v1874_v63 = vadd.f32 %v3910_v10, %v1806_v50  ;;  %v2357_v28 = vld [vmem:[#allocation8 + $0xe8] sm:$0xff] }
 0x1f6   : > { %v988_v15 = vpop.f32.mrf.mxu0  ;;  %2447 = vmatpush.msra.mxu3 %v2357_v28 }
 0x1f7   : > { %v1699_v58 = vpop.f32.mrf.mxu2  ;;  %v2245_v46 = vrot.slane %v4062_v53, 7  ;;  %v1938_v22 = vmax.f32 %v1874_v63, 0.0 }
 0x1f9   : > { %v2246_v49 = vsel %vm416_vm3, %v2244_v23, %v2245_v46  ;;  %v1344_v57 = vpop.f32.mrf.mxu1  ;;  %2831 = vmatmul.msk.f32.gmra.mxu0 %vm709_vm2, %v347_v34  ;;  %v1937_v23 = vmax.f32 %v1873_v14, 0.0  ;;  %v1342_v34 = vadd.f32 %v1341_v35, %v985_v12  ;;  %v4090_v35 = vpop.f32.mrf.mxu3 }
 0x1fa   : > { %2423 = vmatmul.f32.gmra.mxu3 %v2246_v49  ;;  %v1345_v19 = vadd.f32 %v1344_v57, %v988_v15 }
 0x1fb   : > { %v1807_v29 = vadd.f32 %v1699_v58, %v1342_v34 }
 0x1fc   : > { %2961 = vmatmul.msk.f32.gmra.mxu2 %vm709_vm2, %v704_v3  ;;  %2896 = vmatmul.msk.f32.gmra.mxu1 %vm709_vm2, %v521_v5 }
 0x1fe   : > { %v991_v4 = vpop.f32.mrf.mxu0 }
 0x1ff   : > { %v1702_v44 = vpop.f32.mrf.mxu2 }
 0x201   : > { %v1347_v21 = vpop.f32.mrf.mxu1  ;;  %v4104_v0 = vpop.f32.mrf.mxu3 }
 0x202   : > { %v1348_v62 = vadd.f32 %v1347_v21, %v991_v4  ;;  %v1808_v4 = vadd.f32 %v1702_v44, %v1345_v19 }
 0x204   : > { %v1876_v8 = vadd.f32 %v3910_v10, %v1808_v4  ;;  %v2353_v4 = vld [vmem:[#allocation8 + $0xc8] sm:$0xff] }
 0x206   : > { %v994_v27 = vpop.f32.mrf.mxu0  ;;  %v1940_v50 = vmax.f32 %v1876_v8, 0.0 }
 0x207   : > { %v1705_v2 = vpop.f32.mrf.mxu2 }
 0x208   : > { %v1809_v13 = vadd.f32 %v1705_v2, %v1348_v62  ;;  %v2356_v62 = vld [vmem:[#allocation8 + $0xe0] sm:$0xff] }
 0x209   : > { %v1350_v18 = vpop.f32.mrf.mxu1  ;;  %2448 = vmatpush.msra.mxu3 %v2356_v62 }
 0x20a   : > { %v4074_v54 = vadd.f32 %v3910_v10, %v1809_v13  ;;  %v1351_v17 = vadd.f32 %v1350_v18, %v994_v27 }
 0x20b   : > { %2449 = vmatpush.msra.mxu3 %v2355_v42 }
 0x20c   : > { %v1941_v43 = vmax.f32 %v4074_v54, 0.0 }
 0x20e   : > { %v1981_v24 = vmax.f32 %v1937_v23, %v1941_v43  ;;  %v997_v37 = vpop.f32.mrf.mxu0 }
 0x20f   : > { %v1708_v20 = vpop.f32.mrf.mxu2 }
 0x210   : > { %v2013_v60 = vmax.f32 %v1981_v24, %v1933_v47  ;;  %v1810_v51 = vadd.f32 %v1708_v20, %v1351_v17  ;;  %v1875_v47 = vadd.f32 %v3910_v10, %v1807_v29 }
 0x211   : > { %v1353_v32 = vpop.f32.mrf.mxu1 }
 0x212   : > { %2045 = vst [vmem:[#allocation2 + $0xa0] sm:$0xff] %v2013_v60  ;;  %v4085_v11 = vadd.f32 %v3910_v10, %v1810_v51  ;;  %v1354_v9 = vadd.f32 %v1353_v32, %v997_v37  ;;  %v1939_v36 = vmax.f32 %v1875_v47, 0.0  ;;  %v4120_v37 = vpop.f32.mrf.mxu3  ;;  %v2354_v47 = vld [vmem:[#allocation8 + $0xd0] sm:$0xff] }
 0x213   : > { %2450 = vmatpush.msra.mxu3 %v2354_v47 }
 0x214   : > { %v1942_v40 = vmax.f32 %v4085_v11, 0.0 }
 0x215   : > { %2451 = vmatpush.msra.mxu3 %v2353_v4 }
 0x216   : > { %v1982_v12 = vmax.f32 %v1938_v22, %v1942_v40  ;;  %v1000_v3 = vpop.f32.mrf.mxu0 }
 0x217   : > { %v1711_v16 = vpop.f32.mrf.mxu2 }
 0x218   : > { %v2014_v46 = vmax.f32 %v1982_v12, %v1934_v56  ;;  %v1811_v49 = vadd.f32 %v1711_v16, %v1354_v9 }
 0x219   : > { %v1356_v5 = vpop.f32.mrf.mxu1 }
 0x21a   : > { %2046 = vst [vmem:[#allocation2 + $0xa8] sm:$0xff] %v2014_v46  ;;  %v4096_v58 = vadd.f32 %v3910_v10, %v1811_v49  ;;  %v1357_v41 = vadd.f32 %v1356_v5, %v1000_v3 }
 0x21c   : > { %v1943_v21 = vmax.f32 %v4096_v58, 0.0 }
 0x21e   : > { %v1983_v15 = vmax.f32 %v1939_v36, %v1943_v21  ;;  %v1003_v14 = vpop.f32.mrf.mxu0 }
 0x21f   : > { %v1714_v57 = vpop.f32.mrf.mxu2 }
 0x220   : > { %v2015_v56 = vmax.f32 %v1983_v15, %v1935_v31  ;;  %v1812_v2 = vadd.f32 %v1714_v57, %v1357_v41 }
 0x221   : > { %v2077_v13 = vld [vmem:[#allocation2 + $0xa0] ss:$2 sm:$0xff]  ;;  %v2109_v44 = vld [vmem:[#allocation2 + $0xa1] ss:$2 sm:$0xff]  ;;  %v1359_v18 = vpop.f32.mrf.mxu1 }
 0x222   : > { %2047 = vst [vmem:[#allocation2 + $0xb0] sm:$0xff] %v2015_v56  ;;  %v4107_v27 = vadd.f32 %v3910_v10, %v1812_v2  ;;  %v2151_v33 = vrot.slane %v2109_v44, 7  ;;  %v2194_v23 = vmax.f32 %v2077_v13, %v2109_v44  ;;  %v1360_v15 = vadd.f32 %v1359_v18, %v1003_v14  ;;  %v2352_v56 = vld [vmem:[#allocation8 + $0xc0] sm:$0xff] }
 0x223   : > { %2452 = vmatpush.msra.mxu3 %v2352_v56 }
 0x224   : > { %v1944_v17 = vmax.f32 %v4107_v27, 0.0  ;;  %v2181_v30 = vsel %vm416_vm3, 0.0, %v2151_v33 }
 0x225   : > { %v4111_v31 = vmax.f32 %v2194_v23, %v2181_v30 }
 0x226   : > { %v1984_v24 = vmax.f32 %v1940_v50, %v1944_v17  ;;  %v1006_v60 = vpop.f32.mrf.mxu0 }
 0x227   : > { %v1717_v20 = vpop.f32.mrf.mxu2  ;;  %v2247_v63 = vrot.slane %v4111_v31, 7 }
 0x228   : > { %v2016_v34 = vmax.f32 %v1984_v24, %v1936_v26  ;;  %v4123_v26 = vpop.f32.mrf.mxu3  ;;  %v1813_v2 = vadd.f32 %v1717_v20, %v1360_v15 }
 0x229   : > { %2977 = vmatmul.msk.f32.gmra.mxu3 %vm3588_vm4, %v2247_v63  ;;  %v1362_v51 = vpop.f32.mrf.mxu1  ;;  %v1396_v11 = vadd.f32 %v4123_v26, %v4077_v61 }
 0x22a   : > { %2048 = vst [vmem:[#allocation2 + $0xb8] sm:$0xff] %v2016_v34  ;;  %v1363_v23 = vadd.f32 %v1362_v51, %v1006_v60  ;;  %v2351_v34 = vld [vmem:[#allocation8 + $0xb8] sm:$0xff] }
 0x22b   : > { %2453 = vmatpush.msra.mxu3 %v2351_v34 }
 0x22e   : > { %v1009_v22 = vpop.f32.mrf.mxu0 }
 0x22f   : > { %v1720_v32 = vpop.f32.mrf.mxu2 }
 0x230   : > { %v4129_v41 = vpop.f32.mrf.mxu3  ;;  %v1814_v18 = vadd.f32 %v1720_v32, %v1363_v23  ;;  %v2349_v23 = vld [vmem:[#allocation8 + $0xa8] sm:$0xff] }
 0x231   : > { %v2079_v29 = vld [vmem:[#allocation2 + $0xb0] ss:$2 sm:$0xff]  ;;  %v2111_v9 = vld [vmem:[#allocation2 + $0xb1] ss:$2 sm:$0xff]  ;;  %v1365_v28 = vpop.f32.mrf.mxu1 }
 0x232   : > { %v2152_v12 = vrot.slane %v2111_v9, 7  ;;  %v2195_v16 = vmax.f32 %v2079_v29, %v2111_v9  ;;  %v1882_v60 = vadd.f32 %v3910_v10, %v1814_v18  ;;  %v1366_v51 = vadd.f32 %v1365_v28, %v1009_v22 }
 0x234   : > { %v2153_v55 = vsel %vm416_vm3, %v2151_v33, %v2152_v12  ;;  %v1881_v33 = vadd.f32 %v3910_v10, %v1813_v2  ;;  %v1946_v15 = vmax.f32 %v1882_v60, 0.0 }
 0x235   : > { %v4125_v19 = vmax.f32 %v2195_v16, %v2153_v55 }
 0x236   : > { %v1012_v3 = vpop.f32.mrf.mxu0  ;;  %v1945_v14 = vmax.f32 %v1881_v33, 0.0 }
 0x237   : > { %v1723_v46 = vpop.f32.mrf.mxu2  ;;  %v2248_v49 = vrot.slane %v4125_v19, 7 }
 0x238   : > { %v4132_v42 = vpop.f32.mrf.mxu3 }
 0x239   : > { %v2249_v5 = vsel %vm416_vm3, %v2247_v63, %v2248_v49  ;;  %v1368_v36 = vpop.f32.mrf.mxu1 }
 0x23a   : > { %2429 = vmatmul.f32.gmra.mxu3 %v2249_v5  ;;  %v2350_v5 = vld [vmem:[#allocation8 + $0xb0] sm:$0xff]  ;;  %v1369_v28 = vadd.f32 %v1368_v36, %v1012_v3 }
 0x23b   : > { %2454 = vmatpush.msra.mxu3 %v2350_v5 }
 0x23d   : > { %2455 = vmatpush.msra.mxu3 %v2349_v23  ;;  %v2347_v23 = vld [vmem:[#allocation8 + $0x98] sm:$0xff] }
 0x23e   : > { %v1015_v57 = vpop.f32.mrf.mxu0 }
 0x23f   : > { %v1726_v62 = vpop.f32.mrf.mxu2 }
 0x240   : > { %v4146_v4 = vpop.f32.mrf.mxu3 }
 0x241   : > { %v1371_v8 = vpop.f32.mrf.mxu1 }
 0x242   : > { %v1372_v13 = vadd.f32 %v1371_v8, %v1015_v57  ;;  %v1815_v57 = vadd.f32 %v1723_v46, %v1366_v51 }
 0x244   : > { %v1883_v22 = vadd.f32 %v3910_v10, %v1815_v57  ;;  %v1399_v57 = vadd.f32 %v4129_v41, %v4090_v35  ;;  %v2346_v35 = vld [vmem:[#allocation8 + $0x90] sm:$0xff] }
 0x246   : > { %v1018_v30 = vpop.f32.mrf.mxu0 }
 0x247   : > { %v1729_v44 = vpop.f32.mrf.mxu2 }
 0x248   : > { %v1817_v50 = vadd.f32 %v1729_v44, %v1372_v13 }
 0x249   : > { %v1374_v63 = vpop.f32.mrf.mxu1 }
 0x24a   : > { %v4135_v24 = vadd.f32 %v3910_v10, %v1817_v50  ;;  %v1375_v20 = vadd.f32 %v1374_v63, %v1018_v30  ;;  %v1947_v50 = vmax.f32 %v1883_v22, 0.0  ;;  %v1816_v30 = vadd.f32 %v1726_v62, %v1369_v28 }
 0x24c   : > { %v1949_v29 = vmax.f32 %v4135_v24, 0.0  ;;  %v1884_v36 = vadd.f32 %v3910_v10, %v1816_v30 }
 0x24e   : > { %v1985_v9 = vmax.f32 %v1945_v14, %v1949_v29  ;;  %v1021_v55 = vpop.f32.mrf.mxu0  ;;  %v1753_v14 = vpop.f32.mrf.mxu3  ;;  %v1948_v61 = vmax.f32 %v1884_v36, 0.0 }
 0x24f   : > { %v1732_v12 = vpop.f32.mrf.mxu2 }
 0x250   : > { %v2017_v16 = vmax.f32 %v1985_v9, %v1941_v43  ;;  %v1818_v47 = vadd.f32 %v1732_v12, %v1375_v20 }
 0x251   : > { %v1377_v32 = vpop.f32.mrf.mxu1 }
 0x252   : > { %2049 = vst [vmem:[#allocation2 + $0xc0] sm:$0xff] %v2017_v16  ;;  %v4144_v49 = vadd.f32 %v3910_v10, %v1818_v47  ;;  %v1378_v56 = vadd.f32 %v1377_v32, %v1021_v55  ;;  %v2348_v55 = vld [vmem:[#allocation8 + $0xa0] sm:$0xff]  ;;  %v1825_v32 = vadd.f32 %v1753_v14, %v1396_v11  ;;  %v2345_v14 = vld [vmem:[#allocation8 + $0x88] sm:$0xff]  ;;  %v1402_v11 = vadd.f32 %v4132_v42, %v4104_v0 }
 0x253   : > { %2456 = vmatpush.msra.mxu3 %v2348_v55 }
 0x254   : > { %v1950_v8 = vmax.f32 %v4144_v49, 0.0  ;;  %v1893_v22 = vadd.f32 %v3910_v10, %v1825_v32 }
 0x255   : > { %2457 = vmatpush.msra.mxu3 %v2347_v23 }
 0x256   : > { %v1986_v54 = vmax.f32 %v1946_v15, %v1950_v8  ;;  %v1024_v44 = vpop.f32.mrf.mxu0 }
 0x257   : > { %v1735_v43 = vpop.f32.mrf.mxu2  ;;  %2458 = vmatpush.msra.mxu3 %v2346_v35 }
 0x258   : > { %v2018_v2 = vmax.f32 %v1986_v54, %v1942_v40  ;;  %v1819_v13 = vadd.f32 %v1735_v43, %v1378_v56  ;;  %v1756_v56 = vpop.f32.mrf.mxu3 }
 0x259   : > { %v1380_v46 = vpop.f32.mrf.mxu1  ;;  %v1826_v41 = vadd.f32 %v1756_v56, %v1399_v57  ;;  %2459 = vmatpush.msra.mxu3 %v2345_v14  ;;  %v1405_v57 = vadd.f32 %v4146_v4, %v4120_v37 }
 0x25a   : > { %2050 = vst [vmem:[#allocation2 + $0xc8] sm:$0xff] %v2018_v2  ;;  %v4155_v33 = vadd.f32 %v3910_v10, %v1819_v13  ;;  %v1381_v34 = vadd.f32 %v1380_v46, %v1024_v44 }
 0x25c   : > { %v1951_v63 = vmax.f32 %v4155_v33, 0.0 }
 0x25e   : > { %v1987_v3 = vmax.f32 %v1947_v50, %v1951_v63  ;;  %v1027_v9 = vpop.f32.mrf.mxu0  ;;  %v1957_v50 = vmax.f32 %v1893_v22, 0.0 }
 0x25f   : > { %v1738_v40 = vpop.f32.mrf.mxu2 }
 0x260   : > { %v2019_v18 = vmax.f32 %v1987_v3, %v1943_v21  ;;  %v1820_v20 = vadd.f32 %v1738_v40, %v1381_v34 }
 0x261   : > { %v2081_v12 = vld [vmem:[#allocation2 + $0xc0] ss:$2 sm:$0xff]  ;;  %v2113_v62 = vld [vmem:[#allocation2 + $0xc1] ss:$2 sm:$0xff]  ;;  %v1383_v51 = vpop.f32.mrf.mxu1 }
 0x262   : > { %2051 = vst [vmem:[#allocation2 + $0xd0] sm:$0xff] %v2019_v18  ;;  %v4166_v60 = vadd.f32 %v3910_v10, %v1820_v20  ;;  %v2154_v16 = vrot.slane %v2113_v62, 7  ;;  %v2196_v47 = vmax.f32 %v2081_v12, %v2113_v62  ;;  %v1384_v5 = vadd.f32 %v1383_v51, %v1027_v9  ;;  %v1759_v20 = vpop.f32.mrf.mxu3 }
 0x264   : > { %v1952_v26 = vmax.f32 %v4166_v60, 0.0  ;;  %v2182_v58 = vsel %vm416_vm3, 0.0, %v2154_v16 }
 0x265   : > { %v4170_v21 = vmax.f32 %v2196_v47, %v2182_v58 }
 0x266   : > { %v1988_v15 = vmax.f32 %v1948_v61, %v1952_v26  ;;  %v1030_v13 = vpop.f32.mrf.mxu0  ;;  %v1827_v61 = vadd.f32 %v1759_v20, %v1402_v11 }
 0x267   : > { %v1741_v54 = vpop.f32.mrf.mxu2  ;;  %v2250_v43 = vrot.slane %v4170_v21, 7 }
 0x268   : > { %v2020_v28 = vmax.f32 %v1988_v15, %v1944_v17  ;;  %v1821_v2 = vadd.f32 %v1741_v54, %v1384_v5  ;;  %v1894_v17 = vadd.f32 %v3910_v10, %v1826_v41  ;;  %v1895_v56 = vadd.f32 %v3910_v10, %v1827_v61 }
 0x269   : > { %2979 = vmatmul.msk.f32.gmra.mxu3 %vm3588_vm4, %v2250_v43  ;;  %v1386_v46 = vpop.f32.mrf.mxu1 }
 0x26a   : > { %2052 = vst [vmem:[#allocation2 + $0xd8] sm:$0xff] %v2020_v28  ;;  %v1889_v44 = vadd.f32 %v3910_v10, %v1821_v2  ;;  %v1387_v34 = vadd.f32 %v1386_v46, %v1030_v13  ;;  %v1958_v32 = vmax.f32 %v1894_v17, 0.0  ;;  %v1762_v46 = vpop.f32.mrf.mxu3  ;;  %v1959_v23 = vmax.f32 %v1895_v56, 0.0  ;;  %v2367_v56 = vld [vmem:[#allocation8 + $0x138] sm:$0xff] }
 0x26b   : > { %v1828_v35 = vadd.f32 %v1762_v46, %v1405_v57  ;;  %v2363_v46 = vld [vmem:[#allocation8 + $0x118] sm:$0xff] }
 0x26c   : > { %v1953_v30 = vmax.f32 %v1889_v44, 0.0  ;;  %v2344_v44 = vld [vmem:[#allocation8 + $0x80] sm:$0xff] }
 0x26d   : > { %2460 = vmatpush.msra.mxu3 %v2344_v44  ;;  %v1896_v49 = vadd.f32 %v3910_v10, %v1828_v35  ;;  %v2362_v35 = vld [vmem:[#allocation8 + $0x110] sm:$0xff] }
 0x26e   : > { %v1989_v27 = vmax.f32 %v1953_v30, %v1957_v50  ;;  %v1033_v18 = vpop.f32.mrf.mxu0 }
 0x26f   : > { %v1744_v3 = vpop.f32.mrf.mxu2  ;;  %v1960_v11 = vmax.f32 %v1896_v49, 0.0 }
 0x270   : > { %v2021_v40 = vmax.f32 %v1989_v27, %v1949_v29  ;;  %v1822_v36 = vadd.f32 %v1744_v3, %v1387_v34  ;;  %v2375_v3 = vld [vmem:[#allocation8 + $0x178] sm:$0xff] }
 0x271   : > { %v2083_v9 = vld [vmem:[#allocation2 + $0xd0] ss:$2 sm:$0xff]  ;;  %v2115_v12 = vld [vmem:[#allocation2 + $0xd1] ss:$2 sm:$0xff]  ;;  %v1389_v51 = vpop.f32.mrf.mxu1  ;;  %2510 = vmatpush.msrb.mxu3 %v2375_v3 }
 0x272   : > { %2053 = vst [vmem:[#allocation2 + $0xe0] sm:$0xff] %v2021_v40  ;;  %v1890_v62 = vadd.f32 %v3910_v10, %v1822_v36  ;;  %v2155_v47 = vrot.slane %v2115_v12, 7  ;;  %v2197_v55 = vmax.f32 %v2083_v9, %v2115_v12  ;;  %v1390_v58 = vadd.f32 %v1389_v51, %v1033_v18 }
 0x274   : > { %v1954_v5 = vmax.f32 %v1890_v62, 0.0  ;;  %v2156_v0 = vsel %vm416_vm3, %v2154_v16, %v2155_v47  ;;  %v2373_v47 = vld [vmem:[#allocation8 + $0x168] sm:$0xff] }
 0x275   : > { %v4190_v42 = vmax.f32 %v2197_v55, %v2156_v0 }
 0x276   : > { %v1990_v24 = vmax.f32 %v1954_v5, %v1958_v32  ;;  %v1036_v2 = vpop.f32.mrf.mxu0  ;;  %v4218_v5 = vpop.f32.mrf.mxu3 }
 0x277   : > { %v1747_v29 = vpop.f32.mrf.mxu2  ;;  %v2251_v15 = vrot.slane %v4190_v42, 7 }
 0x278   : > { %v2022_v54 = vmax.f32 %v1990_v24, %v1950_v8  ;;  %v1823_v22 = vadd.f32 %v1747_v29, %v1390_v58  ;;  %v2370_v58 = vld [vmem:[#allocation8 + $0x150] sm:$0xff]  ;;  %v2369_v24 = vld [vmem:[#allocation8 + $0x148] sm:$0xff] }
 0x279   : > { %v2252_v28 = vsel %vm416_vm3, %v2250_v43, %v2251_v15  ;;  %v1392_v13 = vpop.f32.mrf.mxu1  ;;  %v2368_v15 = vld [vmem:[#allocation8 + $0x140] sm:$0xff] }
 0x27a   : > { %2054 = vst [vmem:[#allocation2 + $0xe8] sm:$0xff] %v2022_v54  ;;  %v1891_v16 = vadd.f32 %v3910_v10, %v1823_v22  ;;  %2435 = vmatmul.f32.gmra.mxu3 %v2252_v28  ;;  %v1393_v4 = vadd.f32 %v1392_v13, %v1036_v2  ;;  %v2366_v22 = vld [vmem:[#allocation8 + $0x130] sm:$0xff]  ;;  %v2365_v2 = vld [vmem:[#allocation8 + $0x128] sm:$0xff]  ;;  %v2364_v13 = vld [vmem:[#allocation8 + $0x120] sm:$0xff] }
 0x27c   : > { %v1955_v37 = vmax.f32 %v1891_v16, 0.0 }
 0x27e   : > { %v1991_v41 = vmax.f32 %v1955_v37, %v1959_v23  ;;  %v4221_v0 = vpop.f32.mrf.mxu3 }
 0x27f   : > { %v1750_v50 = vpop.f32.mrf.mxu2 }
 0x280   : > { %v2023_v8 = vmax.f32 %v1991_v41, %v1951_v63  ;;  %v1824_v43 = vadd.f32 %v1750_v50, %v1393_v4  ;;  %v2361_v4 = vld [vmem:[#allocation8 + $0x108] sm:$0xff]  ;;  %v2360_v50 = vld [vmem:[#allocation8 + $0x100] sm:$0xff] }
 0x281   : > { %v2085_v30 = vld [vmem:[#allocation2 + $0xe0] ss:$2 sm:$0xff]  ;;  %v2117_v34 = vld [vmem:[#allocation2 + $0xe1] ss:$2 sm:$0xff] }
 0x282   : > { %2055 = vst [vmem:[#allocation2 + $0xf0] sm:$0xff] %v2023_v8  ;;  %v1892_v14 = vadd.f32 %v3910_v10, %v1824_v43  ;;  %v2157_v27 = vrot.slane %v2117_v34, 7  ;;  %v2198_v17 = vmax.f32 %v2085_v30, %v2117_v34  ;;  %v2374_v10 = vld [vmem:[#allocation8 + $0x170] sm:$0xff] }
 0x283   : > { %2511 = vmatpush.msrb.mxu3 %v2374_v10 }
 0x284   : > { %v1956_v40 = vmax.f32 %v1892_v14, 0.0  ;;  %v2183_v36 = vsel %vm416_vm3, 0.0, %v2157_v27  ;;  %v2281_v14 = vrot.slane %v3609_v7, 1 }
 0x285   : > { %v4205_v18 = vmax.f32 %v2198_v17, %v2183_v36  ;;  %2512 = vmatpush.msrb.mxu3 %v2373_v47  ;;  %v2283_v36 = vrot.slane %v3700_v59, 1  ;;  %v2292_v47 = vrot.slane %v4041_v1, 1 }
 0x286   : > { %v1992_v20 = vmax.f32 %v1956_v40, %v1960_v11  ;;  %v4224_v29 = vpop.f32.mrf.mxu3  ;;  %v2284_v40 = vrot.slane %v3723_v25, 1 }
 0x287   : > { %v2253_v33 = vrot.slane %v4205_v18, 7  ;;  %2513 = vmatpush.msrb.mxu3 %v2372_v52 }
 0x288   : > { %v2024_v63 = vmax.f32 %v1992_v20, %v1952_v26  ;;  %v2371_v26 = vld [vmem:[#allocation8 + $0x158] sm:$0xff]  ;;  %v2285_v20 = vsel %vm561_vm1, %v2283_v36, %v2284_v40 }
 0x289   : > { %2981 = vmatmul.msk.f32.gmra.mxu3 %vm3588_vm4, %v2253_v33 }
 0x28a   : > { %2056 = vst [vmem:[#allocation2 + $0xf8] sm:$0xff] %v2024_v63  ;;  %2514 = vmatpush.msrb.mxu3 %v2371_v26  ;;  %v2286_v63 = vrot.slane %v3813_v45, 1 }
 0x28c   : > { %2515 = vmatpush.msrb.mxu3 %v2370_v58  ;;  %v2298_v58 = vrot.slane %v4170_v21, 1 }
 0x28e   : > { %2516 = vmatpush.msrb.mxu3 %v2369_v24  ;;  %v4227_v57 = vpop.f32.mrf.mxu3 }
 0x290   : > { %2517 = vmatpush.msrb.mxu3 %v2368_v15 }
 0x291   : > { %v2087_v9 = vld [vmem:[#allocation2 + $0xf0] ss:$2 sm:$0xff]  ;;  %v2119_v12 = vld [vmem:[#allocation2 + $0xf1] ss:$2 sm:$0xff] }
 0x292   : > { %v2158_v62 = vrot.slane %v2119_v12, 7  ;;  %v2199_v51 = vmax.f32 %v2087_v9, %v2119_v12  ;;  %2518 = vmatpush.msrb.mxu3 %v2367_v56  ;;  %v2289_v12 = vrot.slane %v3928_v39, 1  ;;  %v2301_v56 = vrot.slane %v4205_v18, 1 }
 0x294   : > { %v2159_v55 = vsel %vm416_vm3, %v2157_v27, %v2158_v62  ;;  %2519 = vmatpush.msrb.mxu3 %v2366_v22  ;;  %v2280_v27 = vrot.slane %v3583_v48, 1 }
 0x295   : > { %v4213_v32 = vmax.f32 %v2199_v51, %v2159_v55 }
 0x296   : > { %v4230_v54 = vpop.f32.mrf.mxu3  ;;  %2520 = vmatpush.msrb.mxu3 %v2365_v2  ;;  %v2282_v17 = vsel %vm561_vm1, %v2280_v27, %v2281_v14 }
 0x297   : > { %v2254_v61 = vrot.slane %v4213_v32, 7 }
 0x298   : > { %2521 = vmatpush.msrb.mxu3 %v2364_v13 }
 0x299   : > { %v2255_v60 = vsel %vm416_vm3, %v2253_v33, %v2254_v61 }
 0x29a   : > { %2441 = vmatmul.f32.gmra.mxu3 %v2255_v60  ;;  %v2295_v60 = vrot.slane %v4111_v31, 1 }
 0x29b   : > { %2522 = vmatpush.msrb.mxu3 %v2363_v46 }
 0x29d   : > { %2523 = vmatpush.msrb.mxu3 %v2362_v35 }
 0x29e   : > { %v4233_v28 = vpop.f32.mrf.mxu3 }
 0x29f   : > { %2524 = vmatpush.msrb.mxu3 %v2361_v4 }
 0x2a1   : > { %2525 = vmatpush.msrb.mxu3 %v2360_v50 }
 0x2a2   : > { %2461 = vmatmul.f32.vlgmr.msra.gmra.mxu3 %v3583_v48  ;;  %v2287_v48 = vrot.slane %v3836_v38, 1 }
 0x2a4   : > { %v2288_v10 = vsel %vm561_vm1, %v2286_v63, %v2287_v48 }
 0x2a6   : > { %v4236_v16 = vpop.f32.mrf.mxu3 }
 0x2aa   : > { %2464 = vmatmul.f32.gmra.mxu3 %v3609_v7 }
 0x2ae   : > { %v4239_v44 = vpop.f32.mrf.mxu3 }
 0x2b2   : > { %2467 = vmatmul.f32.gmra.mxu3 %v3700_v59  ;;  %v2290_v59 = vrot.slane %v3951_v6, 1 }
 0x2b4   : > { %v2291_v62 = vsel %vm561_vm1, %v2289_v12, %v2290_v59 }
 0x2b6   : > { %v4242_v23 = vpop.f32.mrf.mxu3 }
 0x2ba   : > { %2470 = vmatmul.f32.gmra.mxu3 %v3723_v25 }
 0x2be   : > { %v4245_v37 = vpop.f32.mrf.mxu3 }
 0x2c2   : > { %2473 = vmatmul.f32.gmra.mxu3 %v3813_v45 }
 0x2c6   : > { %v4248_v41 = vpop.f32.mrf.mxu3 }
 0x2ca   : > { %2476 = vmatmul.f32.gmra.mxu3 %v3836_v38  ;;  %v2293_v38 = vrot.slane %v4062_v53, 1 }
 0x2cc   : > { %v2294_v55 = vsel %vm561_vm1, %v2292_v47, %v2293_v38 }
 0x2ce   : > { %v4251_v49 = vpop.f32.mrf.mxu3 }
 0x2d2   : > { %2479 = vmatmul.f32.gmra.mxu3 %v3928_v39 }
 0x2da   : > { %2482 = vmatmul.f32.gmra.mxu3 %v3951_v6  ;;  %v2296_v6 = vrot.slane %v4125_v19, 1 }
 0x2dc   : > { %v2297_v52 = vsel %vm561_vm1, %v2295_v60, %v2296_v6 }
 0x2e2   : > { %2485 = vmatmul.f32.gmra.mxu3 %v4041_v1 }
 0x2ea   : > { %2488 = vmatmul.f32.gmra.mxu3 %v4062_v53  ;;  %v2299_v53 = vrot.slane %v4190_v42, 1 }
 0x2ec   : > { %v4254_v8 = vpop.f32.mrf.mxu3  ;;  %v2300_v24 = vsel %vm561_vm1, %v2298_v58, %v2299_v53 }
 0x2f2   : > { %2491 = vmatmul.f32.gmra.mxu3 %v4111_v31 }
 0x2fa   : > { %2494 = vmatmul.f32.gmra.mxu3 %v4125_v19  ;;  %v2302_v19 = vrot.slane %v4213_v32, 1 }
 0x2fc   : > { %v2303_v22 = vsel %vm561_vm1, %v2301_v56, %v2302_v19 }
 0x2fd   : > { %v4257_v43 = vpop.f32.mrf.mxu3 }
 0x302   : > { %2497 = vmatmul.f32.gmra.mxu3 %v4170_v21 }
 0x30a   : > { %2500 = vmatmul.f32.gmra.mxu3 %v4190_v42  ;;  %v4318_v42 = vld [vmem:[#allocation9] ss:$0 sm:$0xff] }
 0x30b   : > { %v2401_v36 = vadd.f32 %v4318_v42, %v4221_v0  ;;  %v2416_v58 = vadd.f32 %v4318_v42, %v4236_v16 }
 0x30c   : > { %v4260_v30 = vpop.f32.mrf.mxu3 }
 0x312   : > { %2503 = vmatmul.f32.gmra.mxu3 %v4205_v18  ;;  %v2404_v18 = vadd.f32 %v4318_v42, %v4224_v29 }
 0x31a   : > { %2506 = vmatmul.f32.gmra.mxu3 %v4213_v32  ;;  %v2398_v32 = vadd.f32 %v4318_v42, %v4218_v5 }
 0x31d   : > { %v2442_v34 = vpop.f32.mrf.mxu3 }
 0x31e   : > { %v2443_v21 = vadd.f32 %v4318_v42, %v2442_v34 }
 0x322   : > { %2526 = vmatmul.f32.vlgmr.msrb.gmra.mxu3 %v2282_v17 }
 0x325   : > { %v2462_v3 = vpop.f32.mrf.mxu3 }
 0x326   : > { %v2463_v50 = vadd.f32 %v2462_v3, %v2398_v32 }
 0x32a   : > { %2982 = vmatmul.msk.f32.gmra.mxu3 %vm561_vm1, %v2281_v14 }
 0x32d   : > { %v4267_v11 = vpop.f32.mrf.mxu3 }
 0x32e   : > { %v2466_v63 = vadd.f32 %v4267_v11, %v2401_v36  ;;  %v2410_v11 = vadd.f32 %v4318_v42, %v4230_v54 }
 0x332   : > { %2532 = vmatmul.f32.gmra.mxu3 %v2285_v20 }
 0x335   : > { %v2468_v33 = vpop.f32.mrf.mxu3 }
 0x336   : > { %v2469_v14 = vadd.f32 %v2468_v33, %v2404_v18 }
 0x33a   : > { %2983 = vmatmul.msk.f32.gmra.mxu3 %vm561_vm1, %v2284_v40 }
 0x33d   : > { %v2471_v7 = vpop.f32.mrf.mxu3 }
 0x342   : > { %2538 = vmatmul.f32.gmra.mxu3 %v2288_v10 }
 0x345   : > { %v4276_v9 = vpop.f32.mrf.mxu3 }
 0x34a   : > { %2984 = vmatmul.msk.f32.gmra.mxu3 %vm561_vm1, %v2287_v48  ;;  %v2407_v48 = vadd.f32 %v4318_v42, %v4227_v57 }
 0x34c   : > { %v2472_v10 = vadd.f32 %v2471_v7, %v2407_v48 }
 0x34d   : > { %v4279_v25 = vpop.f32.mrf.mxu3 }
 0x352   : > { %2544 = vmatmul.f32.gmra.mxu3 %v2291_v62 }
 0x355   : > { %v4284_v51 = vpop.f32.mrf.mxu3 }
 0x35a   : > { %2985 = vmatmul.msk.f32.gmra.mxu3 %vm561_vm1, %v2290_v59 }
 0x35d   : > { %v4287_v45 = vpop.f32.mrf.mxu3 }
 0x362   : > { %2550 = vmatmul.f32.gmra.mxu3 %v2294_v55 }
 0x365   : > { %v4292_v61 = vpop.f32.mrf.mxu3 }
 0x36a   : > { %2986 = vmatmul.msk.f32.gmra.mxu3 %vm561_vm1, %v2293_v38 }
 0x36d   : > { %v4295_v39 = vpop.f32.mrf.mxu3 }
 0x372   : > { %2556 = vmatmul.f32.gmra.mxu3 %v2297_v52 }
 0x375   : > { %v4300_v26 = vpop.f32.mrf.mxu3 }
 0x37a   : > { %2987 = vmatmul.msk.f32.gmra.mxu3 %vm561_vm1, %v2296_v6 }
 0x37d   : > { %v4303_v1 = vpop.f32.mrf.mxu3 }
 0x382   : > { %2562 = vmatmul.f32.gmra.mxu3 %v2300_v24  ;;  %v2475_v24 = vadd.f32 %v4276_v9, %v2410_v11 }
 0x385   : > { %v4308_v15 = vpop.f32.mrf.mxu3 }
 0x38a   : > { %2988 = vmatmul.msk.f32.gmra.mxu3 %vm561_vm1, %v2299_v53 }
 0x38d   : > { %v4311_v31 = vpop.f32.mrf.mxu3 }
 0x392   : > { %2568 = vmatmul.f32.gmra.mxu3 %v2303_v22 }
 0x395   : > { %v4316_v2 = vpop.f32.mrf.mxu3 }
 0x39a   : > { %2989 = vmatmul.msk.f32.gmra.mxu3 %vm561_vm1, %v2302_v19  ;;  %v2481_v19 = vadd.f32 %v4284_v51, %v2416_v58 }
 0x39d   : > { %v2507_v13 = vpop.f32.mrf.mxu3 }
 0x39e   : > { %v4322_v46 = vadd.f32 %v2507_v13, %v2443_v21  ;;  %v2413_v21 = vadd.f32 %v4318_v42, %v4233_v28 }
 0x3a0   : > { %v2478_v32 = vadd.f32 %v4279_v25, %v2413_v21 }
 0x3a5   : > { %v2527_v35 = vpop.f32.mrf.mxu3 }
 0x3a6   : > { %v2528_v27 = vadd.f32 %v2527_v35, %v2463_v50 }
 0x3a8   : > { %v2575_v34 = vmax.f32 %v2528_v27, 0.0 }
 0x3ad   : > { %v2530_v4 = vpop.f32.mrf.mxu3 }
 0x3ae   : > { %v2531_v59 = vadd.f32 %v2530_v4, %v2466_v63  ;;  %v2419_v4 = vadd.f32 %v4318_v42, %v4239_v44 }
 0x3b0   : > { %v2576_v12 = vmax.f32 %v2531_v59, 0.0  ;;  %v2484_v16 = vadd.f32 %v4287_v45, %v2419_v4  ;;  %v2422_v45 = vadd.f32 %v4318_v42, %v4242_v23  ;;  %v2431_v23 = vadd.f32 %v4318_v42, %v4251_v49 }
 0x3b2   : > { %v2487_v59 = vadd.f32 %v4292_v61, %v2422_v45 }
 0x3b5   : > { %v2533_v17 = vpop.f32.mrf.mxu3 }
 0x3b6   : > { %v2534_v40 = vadd.f32 %v2533_v17, %v2469_v14 }
 0x3b8   : > { %v2577_v20 = vmax.f32 %v2534_v40, 0.0 }
 0x3ba   : > { %v2591_v5 = vmax.f32 %v2575_v34, %v2577_v20 }
 0x3bc   : > { %v2599_v29 = vmax.f32 %v2591_v5, 0.0 }
 0x3bd   : > { %v2536_v3 = vpop.f32.mrf.mxu3 }
 0x3be   : > { %2607 = vst [vmem:[#allocation3] sm:$0xff] %v2599_v29  ;;  %v2537_v33 = vadd.f32 %v2536_v3, %v2472_v10  ;;  %v2428_v10 = vadd.f32 %v4318_v42, %v4248_v41  ;;  %v2496_v41 = vadd.f32 %v4303_v1, %v2431_v23  ;;  %v2434_v1 = vadd.f32 %v4318_v42, %v4254_v8 }
 0x3c0   : > { %v2578_v62 = vmax.f32 %v2537_v33, 0.0  ;;  %v2493_v29 = vadd.f32 %v4300_v26, %v2428_v10 }
 0x3c2   : > { %v2592_v38 = vmax.f32 %v2576_v12, %v2578_v62 }
 0x3c4   : > { %v2600_v47 = vmax.f32 %v2592_v38, 0.0 }
 0x3c5   : > { %v2539_v0 = vpop.f32.mrf.mxu3 }
 0x3c6   : > { %2608 = vst [vmem:[#allocation3 + $0x8] sm:$0xff] %v2600_v47  ;;  %v2540_v56 = vadd.f32 %v2539_v0, %v2475_v24 }
 0x3c8   : > { %v2579_v13 = vmax.f32 %v2540_v56, 0.0 }
 0x3cd   : > { %v2615_v55 = vld [vmem:[#allocation3] ss:$2 sm:$0xff]  ;;  %v2623_v6 = vld [vmem:[#allocation3 + $0x1] ss:$2 sm:$0xff]  ;;  %v2542_v60 = vpop.f32.mrf.mxu3 }
 0x3ce   : > { %v2634_v57 = vrot.slane %v2623_v6, 7  ;;  %v2646_v52 = vmax.f32 %v2615_v55, %v2623_v6  ;;  %v2543_v9 = vadd.f32 %v2542_v60, %v2478_v32  ;;  %v2437_v32 = vadd.f32 %v4318_v42, %v4257_v43 }
 0x3d0   : > { %v2642_v7 = vsel %vm416_vm3, 0.0, %v2634_v57  ;;  %v2580_v27 = vmax.f32 %v2543_v9, 0.0  ;;  %v2502_v8 = vadd.f32 %v4311_v31, %v2437_v32 }
 0x3d1   : > { %v2650_v53 = vmax.f32 %v2646_v52, %v2642_v7 }
 0x3d3   : > { %2654 = vst [vmem:[%s4339_s30] sm:$0xff] %v2650_v53 }
 0x3d5   : > { %v2545_v22 = vpop.f32.mrf.mxu3 }
 0x3d6   : > { %v2546_v54 = vadd.f32 %v2545_v22, %v2481_v19  ;;  %v2440_v22 = vadd.f32 %v4318_v42, %v4260_v30 }
 0x3d8   : > { %v2581_v35 = vmax.f32 %v2546_v54, 0.0  ;;  %v2499_v54 = vadd.f32 %v4308_v15, %v2434_v1  ;;  %v2505_v21 = vadd.f32 %v4316_v2, %v2440_v22 }
 0x3da   : > { %v2593_v18 = vmax.f32 %v2579_v13, %v2581_v35 }
 0x3dc   : > { %v2601_v50 = vmax.f32 %v2593_v18, %v2577_v20 }
 0x3dd   : > { %v2548_v14 = vpop.f32.mrf.mxu3 }
 0x3de   : > { %2609 = vst [vmem:[#allocation3 + $0x10] sm:$0xff] %v2601_v50  ;;  %v2549_v51 = vadd.f32 %v2548_v14, %v2484_v16 }
 0x3e0   : > { %v2582_v17 = vmax.f32 %v2549_v51, 0.0 }
 0x3e2   : > { %v2594_v40 = vmax.f32 %v2580_v27, %v2582_v17 }
 0x3e4   : > { %v2602_v28 = vmax.f32 %v2594_v40, %v2578_v62  ;;  %v2425_v62 = vadd.f32 %v4318_v42, %v4245_v37 }
 0x3e5   : > { %v2551_v36 = vpop.f32.mrf.mxu3 }
 0x3e6   : > { %2610 = vst [vmem:[#allocation3 + $0x18] sm:$0xff] %v2602_v28  ;;  %v2552_v3 = vadd.f32 %v2551_v36, %v2487_v59  ;;  %v2490_v0 = vadd.f32 %v4295_v39, %v2425_v62 }
 0x3e8   : > { %v2583_v38 = vmax.f32 %v2552_v3, 0.0 }
 0x3ed   : > { %v2617_v34 = vld [vmem:[#allocation3 + $0x10] ss:$2 sm:$0xff]  ;;  %v2625_v48 = vld [vmem:[#allocation3 + $0x11] ss:$2 sm:$0xff]  ;;  %v2554_v44 = vpop.f32.mrf.mxu3 }
 0x3ee   : > { %v2635_v63 = vrot.slane %v2625_v48, 7  ;;  %v2647_v25 = vmax.f32 %v2617_v34, %v2625_v48  ;;  %v2555_v61 = vadd.f32 %v2554_v44, %v2490_v0 }
 0x3f0   : > { %v2643_v20 = vsel %vm416_vm3, 0.0, %v2635_v63  ;;  %v2584_v57 = vmax.f32 %v2555_v61, 0.0 }
 0x3f1   : > { %v2651_v5 = vmax.f32 %v2647_v25, %v2643_v20 }
 0x3f3   : > { %2655 = vst [vmem:[%s4339_s30 + $0x8] sm:$0xff] %v2651_v5 }
 0x3f5   : > { %v2557_v33 = vpop.f32.mrf.mxu3 }
 0x3f6   : > { %v2558_v12 = vadd.f32 %v2557_v33, %v2493_v29 }
 0x3f8   : > { %v2585_v47 = vmax.f32 %v2558_v12, 0.0 }
 0x3fa   : > { %v2595_v55 = vmax.f32 %v2583_v38, %v2585_v47 }
 0x3fc   : > { %v2603_v6 = vmax.f32 %v2595_v55, %v2581_v35 }
 0x3fd   : > { %v2560_v60 = vpop.f32.mrf.mxu3 }
 0x3fe   : > { %2611 = vst [vmem:[#allocation3 + $0x20] sm:$0xff] %v2603_v6  ;;  %v2561_v26 = vadd.f32 %v2560_v60, %v2496_v41 }
 0x400   : > { %v2586_v52 = vmax.f32 %v2561_v26, 0.0 }
 0x402   : > { %v2596_v11 = vmax.f32 %v2584_v57, %v2586_v52 }
 0x404   : > { %v2604_v37 = vmax.f32 %v2596_v11, %v2582_v17 }
 0x405   : > { %v2563_v7 = vpop.f32.mrf.mxu3 }
 0x406   : > { %2612 = vst [vmem:[#allocation3 + $0x28] sm:$0xff] %v2604_v37  ;;  %v2564_v13 = vadd.f32 %v2563_v7, %v2499_v54 }
 0x408   : > { %v2587_v18 = vmax.f32 %v2564_v13, 0.0 }
 0x40d   : > { %v2619_v53 = vld [vmem:[#allocation3 + $0x20] ss:$2 sm:$0xff]  ;;  %v2627_v58 = vld [vmem:[#allocation3 + $0x21] ss:$2 sm:$0xff]  ;;  %v2566_v49 = vpop.f32.mrf.mxu3 }
 0x40e   : > { %v2636_v24 = vrot.slane %v2627_v58, 7  ;;  %v2648_v39 = vmax.f32 %v2619_v53, %v2627_v58  ;;  %v2567_v50 = vadd.f32 %v2566_v49, %v2502_v8 }
 0x410   : > { %v2644_v19 = vsel %vm416_vm3, 0.0, %v2636_v24  ;;  %v2588_v51 = vmax.f32 %v2567_v50, 0.0 }
 0x411   : > { %v2652_v56 = vmax.f32 %v2648_v39, %v2644_v19 }
 0x413   : > { %2656 = vst [vmem:[%s4339_s30 + $0x10] sm:$0xff] %v2652_v56 }
 0x415   : > { %v2569_v35 = vpop.f32.mrf.mxu3 }
 0x416   : > { %v2570_v4 = vadd.f32 %v2569_v35, %v2505_v21 }
 0x418   : > { %v2589_v16 = vmax.f32 %v2570_v4, 0.0 }
 0x41a   : > { %v2597_v9 = vmax.f32 %v2587_v18, %v2589_v16 }
 0x41c   : > { %v2605_v14 = vmax.f32 %v2597_v9, %v2585_v47 }
 0x41d   : > { %v2572_v30 = vpop.f32.mrf.mxu3 }
 0x41e   : > { %2613 = vst [vmem:[#allocation3 + $0x30] sm:$0xff] %v2605_v14  ;;  %v2573_v15 = vadd.f32 %v2572_v30, %v4322_v46 }
 0x420   : > { %v2590_v2 = vmax.f32 %v2573_v15, 0.0 }
 0x422   : > { %v2598_v27 = vmax.f32 %v2588_v51, %v2590_v2 }
 0x424   : > { %v2606_v17 = vmax.f32 %v2598_v27, %v2586_v52 }
 0x426   : > { %2614 = vst [vmem:[#allocation3 + $0x38] sm:$0xff] %v2606_v17 }
 0x42d   : > { %v2621_v40 = vld [vmem:[#allocation3 + $0x30] ss:$2 sm:$0xff]  ;;  %v2629_v28 = vld [vmem:[#allocation3 + $0x31] ss:$2 sm:$0xff] }
 0x42e   : > { %v2637_v43 = vrot.slane %v2629_v28, 7  ;;  %v2649_v42 = vmax.f32 %v2621_v40, %v2629_v28 }
 0x430   : > { %v2645_v36 = vsel %vm416_vm3, 0.0, %v2637_v43 }
 0x431   : > { %v2653_v31 = vmax.f32 %v2649_v42, %v2645_v36 }
 0x433   : > { %2657 = vst [vmem:[%s4339_s30 + $0x18] sm:$0xff] %v2653_v31 }
 0x434 PF: > { %s18_s18 = sadd.s32 1, %s3191_s18  }
 0x435   : > { %p15_p7 = scmp.ge.s32.totalorder %s18_s18, 4  }
 0x437   :  { %17 = sbr.rel (!%p15_p7) target bundleno = 3 (0x3), region = 127 }
 0x43c   :  { %2679 = vsyncpa [#allocation5], 1 }
 0x43d   :  { %2681 = vsyncpa [#allocation5 + $0x1], 1 }
 0x43e   :  { %2682 = vsyncpa [#allocation7], 1 }
 0x43f   :  { %2683 = vsyncpa [#allocation10], 1 }

</bundles_post_ra>
